<compile_context>
chip_gen: v5e
topology: v5e:2x2
jax: 0.10.0
libtpu: 0.0.40
codegen_flags: <defaults>
</compile_context>

<pallas_src>
import jax
import jax.numpy as jnp
from jax.experimental import pallas as pl
from jax.experimental.pallas import tpu as pltpu

EPS = 1e-5


# ----------------------------- parameter init -------------------------------

def _conv_init(key, shape, fan_in):
    bound = 1.0 / float(fan_in) ** 0.5
    return jax.random.uniform(key, shape, jnp.float32, -bound, bound)


def bn_default(c):
    return dict(gamma=jnp.ones((c,), jnp.float32), beta=jnp.zeros((c,), jnp.float32),
                mean=jnp.zeros((c,), jnp.float32), var=jnp.ones((c,), jnp.float32))


def init_modeconv(key, ci, co):
    ks = jax.random.split(key, 5)
    return dict(
        conv5x5=_conv_init(ks[0], (co, ci, 5, 5, 5), ci * 125),
        conv3x3=_conv_init(ks[1], (co, ci, 3, 3, 3), ci * 27),
        conv1x1=_conv_init(ks[2], (co, ci, 1, 1, 1), ci),
        avg3x3=_conv_init(ks[3], (co, ci, 1, 1, 1), ci),
        avg5x5=_conv_init(ks[4], (co, ci, 1, 1, 1), ci),
        bn=bn_default(co),
    )


def init_params(key, in_chan, out_chan):
    ks = jax.random.split(key, 5)
    return dict(
        # ConvTranspose3d weight (Ci, Co, 2,2,2); PyTorch fan_in = Co * 8
        convt_w=_conv_init(ks[0], (in_chan, out_chan, 2, 2, 2), out_chan * 8),
        bn0=bn_default(out_chan),
        frelu_w=_conv_init(ks[1], (out_chan, 1, 3, 3, 3), 27),
        frelu_b=_conv_init(ks[2], (out_chan,), 27),          # Conv3d default bias
        bn_frelu=bn_default(out_chan),
        m1=init_modeconv(ks[3], in_chan, out_chan),
        m2=init_modeconv(ks[4], out_chan, out_chan),
    )


# --------------------- host-side weight preparation (runs once) --------------

def bn_fold(bn):
    s = bn['gamma'] / jnp.sqrt(bn['var'] + EPS)
    return s, bn['beta'] - bn['mean'] * s


def mode_routed_weight(m):
    """Exactly the reference `routing`: g[:,0,:]=1, all other experts 0."""
    Co = m['conv5x5'].shape[0]

    def pad5(k):
        p = (5 - k.shape[-1]) // 2
        return jnp.pad(k, ((0, 0), (0, 0), (p, p), (p, p), (p, p)))

    avg3 = jnp.full((3, 3, 3), 1.0 / 27.0, jnp.float32)
    avg5 = jnp.full((5, 5, 5), 1.0 / 125.0, jnp.float32)
    experts = jnp.stack([
        m['conv5x5'],
        pad5(m['conv3x3']),
        pad5(m['conv1x1']),
        pad5(jnp.einsum('oidhw,dhw->oidhw', m['avg3x3'], avg3)),
        jnp.einsum('oidhw,dhw->oidhw', m['avg5x5'], avg5),
    ])                                                   # (5, Co, Ci, 5,5,5)
    g = jnp.zeros((5, Co), jnp.float32).at[0].set(1.0)   # hard-coded gate
    return jnp.einsum('eoidhw,eo->oidhw', experts, g)    # (Co, Ci, 5,5,5)


def _band_matrices(w, w_pad, w_out):
    """Fold the W-axis convolution + channel contraction of a KxKxK conv into
    per-(kd,kh) banded matrices.

    w: (Co, Ci, K, K, K) cross-correlation weight (BN already folded in).
    returns (K*K, w_pad*Ci, w_out*Co) with
       band[kd*K+kh][wi*Ci+ci, wo*Co+co] = w[co, ci, kd, kh, wi-wo]  (0<=wi-wo<K).
    """
    K = w.shape[-1]
    Co, Ci = w.shape[0], w.shape[1]
    wi = jnp.arange(w_pad)[:, None, None]
    wo = jnp.arange(w_out)[None, :, None]
    kw = jnp.arange(K)[None, None, :]
    sel = (wi == wo + kw).astype(w.dtype)                 # (w_pad, w_out, K)
    b = jnp.einsum('iok,zcdhk->dhicoz', sel, w)           # (K,K,w_pad,Ci,w_out,Co)
    return b.reshape(K * K, w_pad * Ci, w_out * Co)


def _convt_blocks(wct, W):
    """ConvTranspose3d(k=2,s=2) as 4 block-diagonal matmul matrices.

    wct: (Ci, Co, 2, 2, 2) (BN folded).  returns (4, W*Ci, W*2*Co) with
       blocks[kd*2+kh][w*Ci+ci, w*2*Co + kw*Co + co] = wct[ci, co, kd, kh, kw].
    """
    Ci, Co = wct.shape[0], wct.shape[1]
    blk = wct.transpose(2, 3, 0, 4, 1).reshape(2, 2, Ci, 2 * Co)  # (kd,kh,ci,kw*Co+co)
    eye_w = jnp.eye(W, dtype=wct.dtype)
    b = jnp.einsum('wv,khcj->khwcvj', eye_w, blk)                 # (2,2,W,Ci,W,2Co)
    return b.reshape(4, W * Ci, W * 2 * Co)


def prepare_kernel_params(p, W):
    """BN folding + expert routing + banded-matrix construction (host, once)."""
    ci, co = p['convt_w'].shape[0], p['convt_w'].shape[1]
    cs = ci - co
    W2 = 2 * W
    kp = {}
    # ConvTranspose3d + BN folded -> ONE lane-dense matrix (4 groups concatenated
    # along the output-lane axis) + a matching bias row.
    s0, b0 = bn_fold(p['bn0'])
    wct = p['convt_w'] * s0[None, :, None, None, None]
    ctb = _convt_blocks(wct, W)                                       # (4, W*Ci, 2W*Co)
    kp['ct_mat'] = ctb.transpose(1, 0, 2).reshape(W * ci, 4 * 2 * W * co)
    kp['ct_bias'] = jnp.tile(b0, 4 * 2 * W)[None, :]
    # FReLU depthwise 3x3x3 (+conv bias) + BN folded, diagonal-expanded then banded.
    s1, b1 = bn_fold(p['bn_frelu'])
    wdw = p['frelu_w'][:, 0] * s1[:, None, None, None]                # (Co,3,3,3)
    wdw_dense = wdw[:, None] * jnp.eye(co, dtype=wdw.dtype)[:, :, None, None, None]
    kp['fr_bands'] = _band_matrices(wdw_dense, W2 + 2, W2)            # (9,(W2+2)Co,W2Co)
    kp['fr_bias'] = jnp.tile(s1 * p['frelu_b'] + b1, W2)[None, :]
    # MoDEConv #1 (routed to expert 0) + BN folded.  The weight is split along Ci
    # (skip channels | upsampled channels) and the two band sets are stacked along
    # K so that the kernel never materialises the channel concat and does ONE
    # matmul per (kd,kh) tap.
    w1 = mode_routed_weight(p['m1'])
    sA, bA = bn_fold(p['m1']['bn'])
    w1 = w1 * sA[:, None, None, None, None]
    kp['c1_bands'] = jnp.concatenate(
        [_band_matrices(w1[:, :cs], W2 + 4, W2),                      # skip plane
         _band_matrices(w1[:, cs:], W2 + 4, W2)], axis=1)             # frelu plane
    kp['c1_bias'] = jnp.tile(bA, W2)[None, :]
    # MoDEConv #2
    w2 = mode_routed_weight(p['m2'])
    sB, bB = bn_fold(p['m2']['bn'])
    w2 = w2 * sB[:, None, None, None, None]
    kp['c2_bands'] = _band_matrices(w2, W2 + 4, W2)                   # (25,(W2+4)Co,·)
    kp['c2_bias'] = jnp.tile(bB, W2)[None, :]
    return kp


# ------------------------------- fused kernel --------------------------------

def _make_kernel(D, H, W, CI, CO):
    CS = CI - CO
    D2, H2, W2 = 2 * D, 2 * H, 2 * W
    M, NCOL = D2 * H2, W2 * CO            # working layout: (D2*H2 rows, W2*Co lanes)
    TW = 2 * W * CO                       # lanes per (kd,kh) group of the ConvT output
    LW_UP = (W2 + 2) * CO                 # lanes of the padded upsampled volume
    LW_F = (W2 + 4) * CO                  # lanes of the padded FReLU / conv1 outputs
    LW_S = (W2 + 4) * CS                  # lanes of the padded x_skip
    LW_CAT = LW_S + LW_F                  # lanes of the combined [skip | frelu] buffer

    def kernel(x_ref, xs_ref, ctb_ref, ctbias_ref, frb_ref, frbias_ref,
               c1b_ref, c1bias_ref, c2b_ref, c2bias_ref,
               o_ref, up_ref, cat_ref, c1_ref):
        # Zero the padded VMEM scratch buffers: only the halos must stay zero,
        # interiors are fully overwritten below (in-kernel 'same' padding).
        up_ref[...] = jnp.zeros_like(up_ref)
        cat_ref[...] = jnp.zeros_like(cat_ref)
        c1_ref[...] = jnp.zeros_like(c1_ref)

        # ---- ConvTranspose3d(k=2,s=2) + BN: one fat lane-dense matmul, then the
        #      2x scatter straight into up_ref ----
        # up_ref: (D2+2, H2+2, (W2+2)*Co), W and C merged on the lane axis.
        xin = x_ref[0]                                        # (D*H, W*CI)
        y = jnp.dot(xin, ctb_ref[...],
                    preferred_element_type=jnp.float32) + ctbias_ref[...]
        for kd in range(2):
            for kh in range(2):
                g = kd * 2 + kh
                yg = y[:, g * TW:(g + 1) * TW]
                # yg[d*H+h, (2w+kw)*Co+co] -> up[1+2d+kd, 1+2h+kh, (1+2w+kw)*Co+co]
                for d in range(D):
                    for h in range(H):
                        r = d * H + h
                        up_ref[1 + 2 * d + kd, 1 + 2 * h + kh:2 + 2 * h + kh,
                               CO:CO + TW] = yg[r:r + 1, :]

        # ---- FReLU: depthwise 3x3x3 + BN (banded matmuls), then max(x, y) ----
        acc = jnp.zeros((M, NCOL), jnp.float32)
        center = None
        for kd in range(3):
            for kh in range(3):
                sl = up_ref[kd:kd + D2, kh:kh + H2, :].reshape(M, LW_UP)
                acc = acc + jnp.dot(sl, frb_ref[kd * 3 + kh],
                                    preferred_element_type=jnp.float32)
                if kd == 1 and kh == 1:
                    center = sl[:, CO:CO + NCOL]              # the BN'd input itself
        fr = jnp.maximum(center, acc + frbias_ref[...])       # (M, NCOL)

        # ---- stage conv1 inputs with a halo of 2 into ONE buffer whose lane axis
        #      is [padded skip plane | padded frelu plane].  The channel concat is
        #      never materialised: the conv1 band weights were stacked along K. ----
        for d in range(D2):
            cat_ref[2 + d, 2:2 + H2, 2 * CS:2 * CS + W2 * CS] = xs_ref[0, d]
            cat_ref[2 + d, 2:2 + H2,
                    LW_S + 2 * CO:LW_S + 2 * CO + NCOL] = fr[d * H2:(d + 1) * H2, :]

        # ---- MoDEConv 5x5x5 #1 (expert 0) + BN + ReLU : 25 fat matmuls ----
        acc = jnp.zeros((M, NCOL), jnp.float32)
        for kd in range(5):
            for kh in range(5):
                sl = cat_ref[kd:kd + D2, kh:kh + H2, :].reshape(M, LW_CAT)
                acc = acc + jnp.dot(sl, c1b_ref[kd * 5 + kh],
                                    preferred_element_type=jnp.float32)
        c1 = jnp.maximum(acc + c1bias_ref[...], 0.0)

        for d in range(D2):
            c1_ref[2 + d, 2:2 + H2, 2 * CO:2 * CO + NCOL] = c1[d * H2:(d + 1) * H2, :]

        # ---- MoDEConv 5x5x5 #2 (expert 0) + BN + ReLU : 25 fat matmuls ----
        acc = jnp.zeros((M, NCOL), jnp.float32)
        for kd in range(5):
            for kh in range(5):
                sl = c1_ref[kd:kd + D2, kh:kh + H2, :].reshape(M, LW_F)
                acc = acc + jnp.dot(sl, c2b_ref[kd * 5 + kh],
                                    preferred_element_type=jnp.float32)
        o_ref[0] = jnp.maximum(acc + c2bias_ref[...], 0.0)    # (M, W2*Co)

    dims = dict(M=M, NCOL=NCOL, LW_UP=LW_UP, LW_F=LW_F, LW_S=LW_S, LW_CAT=LW_CAT,
                D2=D2, H2=H2, W2=W2, CS=CS)
    return kernel, dims


def mode_decoder_block_forward(kp, x, x_skip, t):
    """x: (N, D, H, W, Ci); x_skip: (N, 2D, 2H, 2W, Ci-Co); t unused (the
    reference forward hard-codes the routing gate to expert 0)."""
    del t
    N, D, H, W, CI = x.shape
    CS = x_skip.shape[-1]
    CO = CI - CS
    kernel, dm = _make_kernel(D, H, W, CI, CO)
    D2, H2, W2 = dm['D2'], dm['H2'], dm['W2']
    M, NCOL = dm['M'], dm['NCOL']
    LW_UP, LW_F, LW_CAT = dm['LW_UP'], dm['LW_F'], dm['LW_CAT']

    # layout plumbing: contiguous reshapes only (free in XLA)
    x2 = x.reshape(N, D * H, W * CI)
    xs2 = x_skip.reshape(N, D2, H2, W2 * CS)

    def _const_spec(a):
        nd = a.ndim

        def imap(n):
            return (0,) * nd

        return pl.BlockSpec(a.shape, imap)

    in_specs = [
        pl.BlockSpec((1, D * H, W * CI), lambda n: (n, 0, 0)),
        pl.BlockSpec((1, D2, H2, W2 * CS), lambda n: (n, 0, 0, 0)),
        _const_spec(kp['ct_mat']), _const_spec(kp['ct_bias']),
        _const_spec(kp['fr_bands']), _const_spec(kp['fr_bias']),
        _const_spec(kp['c1_bands']), _const_spec(kp['c1_bias']),
        _const_spec(kp['c2_bands']), _const_spec(kp['c2_bias']),
    ]
    out_specs = pl.BlockSpec((1, M, NCOL), lambda n: (n, 0, 0))
    scratch_shapes = [
        pltpu.VMEM((D2 + 2, H2 + 2, LW_UP), jnp.float32),   # padded upsampled x
        pltpu.VMEM((D2 + 4, H2 + 4, LW_CAT), jnp.float32),  # padded [skip | frelu]
        pltpu.VMEM((D2 + 4, H2 + 4, LW_F), jnp.float32),    # padded conv1 output
    ]
    flops = 2 * N * ((D * H) * (W * CI) * (8 * W * CO)
                     + M * LW_UP * NCOL * 9
                     + M * LW_CAT * NCOL * 25
                     + M * LW_F * NCOL * 25)
    bytes_accessed = 4 * (x2.size + xs2.size + N * M * NCOL
                          + sum(int(v.size) for v in kp.values()))

    out = pl.pallas_call(
        kernel,
        out_shape=jax.ShapeDtypeStruct((N, M, NCOL), jnp.float32),
        grid=(N,),
        in_specs=in_specs,
        out_specs=out_specs,
        scratch_shapes=scratch_shapes,
        compiler_params=pltpu.CompilerParams(
            dimension_semantics=("parallel",)),   # v7x: spread batch over both TCs
        cost_estimate=pl.CostEstimate(flops=flops, transcendentals=0,
                                      bytes_accessed=bytes_accessed),
    )(x2, xs2, kp['ct_mat'], kp['ct_bias'], kp['fr_bands'], kp['fr_bias'],
      kp['c1_bands'], kp['c1_bias'], kp['c2_bands'], kp['c2_bias'])

    # (N, D2*H2, W2*Co) -> NDHWC (contiguous reshape)
    return out.reshape(N, D2, H2, W2, CO)


if __name__ == "__main__":
    num_tasks = 2
    in_chan, out_chan = 8, 4
    N, D, H, W = 2, 4, 4, 4

    key = jax.random.PRNGKey(0)
    kx, ks, kt, kparam = jax.random.split(key, 4)
    # layout: NDHWC (channels-last)
    x = jax.random.normal(kx, (N, D, H, W, in_chan), jnp.float32)
    x_skip = jax.random.normal(ks, (N, 2 * D, 2 * H, 2 * W, in_chan - out_chan),
                               jnp.float32)
    t = jax.random.normal(kt, (N, num_tasks), jnp.float32)

    params = init_params(kparam, in_chan, out_chan)
    # BN folding / expert routing / band construction: hoisted, runs exactly once.
    kp = prepare_kernel_params(params, W)

    fwd = jax.jit(mode_decoder_block_forward)
    y = fwd(kp, x, x_skip, t)
    jax.block_until_ready(y)
    assert y.shape == (N, 2 * D, 2 * H, 2 * W, out_chan)
    assert bool(jnp.all(jnp.isfinite(y)))
    print("KERNEL_OK")
</pallas_src>

<mosaic_0001>
module attributes {stable_mosaic.version = 11 : i64} {
  func.func @kernel(%arg0: i32, %arg1: memref<1x16x32xf32, #tpu.memory_space<vmem>>, %arg2: memref<1x8x8x32xf32, #tpu.memory_space<vmem>>, %arg3: memref<32x128xf32, #tpu.memory_space<vmem>>, %arg4: memref<1x128xf32, #tpu.memory_space<vmem>>, %arg5: memref<9x40x32xf32, #tpu.memory_space<vmem>>, %arg6: memref<1x32xf32, #tpu.memory_space<vmem>>, %arg7: memref<25x96x32xf32, #tpu.memory_space<vmem>>, %arg8: memref<1x32xf32, #tpu.memory_space<vmem>>, %arg9: memref<25x48x32xf32, #tpu.memory_space<vmem>>, %arg10: memref<1x32xf32, #tpu.memory_space<vmem>>, %arg11: memref<1x64x32xf32, #tpu.memory_space<vmem>>, %arg12: memref<10x10x40xf32, #tpu.memory_space<vmem>>, %arg13: memref<12x12x96xf32, #tpu.memory_space<vmem>>, %arg14: memref<12x12x48xf32, #tpu.memory_space<vmem>>) attributes {dimension_semantics = [#tpu.dimension_semantics<parallel>], iteration_bounds = array<i64: 2>, scalar_prefetch = 0 : i64, scratch_operands = 3 : i64, tpu.core_type = #tpu.core_type<tc>, window_params = [{transform_indices = @transform_0, window_bounds = array<i64: 1, 16, 32>}, {transform_indices = @transform_1, window_bounds = array<i64: 1, 8, 8, 32>}, {pipeline_mode = #tpu.pipeline_mode<synchronous>, transform_indices = @transform_2, window_bounds = array<i64: 32, 128>}, {pipeline_mode = #tpu.pipeline_mode<synchronous>, transform_indices = @transform_3, window_bounds = array<i64: 1, 128>}, {pipeline_mode = #tpu.pipeline_mode<synchronous>, transform_indices = @transform_4, window_bounds = array<i64: 9, 40, 32>}, {pipeline_mode = #tpu.pipeline_mode<synchronous>, transform_indices = @transform_5, window_bounds = array<i64: 1, 32>}, {pipeline_mode = #tpu.pipeline_mode<synchronous>, transform_indices = @transform_6, window_bounds = array<i64: 25, 96, 32>}, {pipeline_mode = #tpu.pipeline_mode<synchronous>, transform_indices = @transform_7, window_bounds = array<i64: 1, 32>}, {pipeline_mode = #tpu.pipeline_mode<synchronous>, transform_indices = @transform_8, window_bounds = array<i64: 25, 48, 32>}, {pipeline_mode = #tpu.pipeline_mode<synchronous>, transform_indices = @transform_9, window_bounds = array<i64: 1, 32>}, {transform_indices = @transform_10, window_bounds = array<i64: 1, 64, 32>}]} {
    %cst = arith.constant 0.000000e+00 : f32
    %0 = vector.broadcast %cst : f32 to vector<10x10x40xf32>
    %c0 = arith.constant 0 : index
    %c0_0 = arith.constant 0 : index
    %c0_1 = arith.constant 0 : index
    %1 = vector.load %arg12[%c0, %c0_0, %c0_1] : memref<10x10x40xf32, #tpu.memory_space<vmem>>, vector<10x10x40xf32>
    tpu.vector_store %arg12[%c0, %c0_0, %c0_1], %0 {strides = array<i32>} : memref<10x10x40xf32, #tpu.memory_space<vmem>>, vector<10x10x40xf32>,
    %cst_2 = arith.constant 0.000000e+00 : f32
    %2 = vector.broadcast %cst_2 : f32 to vector<12x12x96xf32>
    %c0_3 = arith.constant 0 : index
    %c0_4 = arith.constant 0 : index
    %c0_5 = arith.constant 0 : index
    %3 = vector.load %arg13[%c0_3, %c0_4, %c0_5] : memref<12x12x96xf32, #tpu.memory_space<vmem>>, vector<12x12x96xf32>
    tpu.vector_store %arg13[%c0_3, %c0_4, %c0_5], %2 {strides = array<i32>} : memref<12x12x96xf32, #tpu.memory_space<vmem>>, vector<12x12x96xf32>,
    %cst_6 = arith.constant 0.000000e+00 : f32
    %4 = vector.broadcast %cst_6 : f32 to vector<12x12x48xf32>
    %c0_7 = arith.constant 0 : index
    %c0_8 = arith.constant 0 : index
    %c0_9 = arith.constant 0 : index
    %5 = vector.load %arg14[%c0_7, %c0_8, %c0_9] : memref<12x12x48xf32, #tpu.memory_space<vmem>>, vector<12x12x48xf32>
    tpu.vector_store %arg14[%c0_7, %c0_8, %c0_9], %4 {strides = array<i32>} : memref<12x12x48xf32, #tpu.memory_space<vmem>>, vector<12x12x48xf32>,
    %c0_10 = arith.constant 0 : index
    %c0_11 = arith.constant 0 : index
    %c0_12 = arith.constant 0 : index
    %6 = vector.load %arg1[%c0_10, %c0_11, %c0_12] : memref<1x16x32xf32, #tpu.memory_space<vmem>>, vector<1x16x32xf32>
    %7 = vector.shape_cast %6 : vector<1x16x32xf32> to vector<16x32xf32>
    %c0_13 = arith.constant 0 : index
    %c0_14 = arith.constant 0 : index
    %8 = vector.load %arg3[%c0_13, %c0_14] : memref<32x128xf32, #tpu.memory_space<vmem>>, vector<32x128xf32>
    %cst_15 = arith.constant dense<0.000000e+00> : vector<16x128xf32>
    %9 = tpu.matmul %7, %8, %cst_15 {dimension_numbers = #tpu.dot_dimension_numbers<[1], [0], [0], [1], [0, 0, 1, 1], [], []>} : vector<16x32xf32>, vector<32x128xf32>, vector<16x128xf32> -> vector<16x128xf32>
    %c0_16 = arith.constant 0 : index
    %c0_17 = arith.constant 0 : index
    %10 = vector.load %arg4[%c0_16, %c0_17] : memref<1x128xf32, #tpu.memory_space<vmem>>, vector<1x128xf32>
    %11 = vector.broadcast %10 : vector<1x128xf32> to vector<16x128xf32>
    %12 = arith.addf %9, %11 : vector<16x128xf32>
    %13 = vector.extract_strided_slice %12 {offsets = [0, 0], sizes = [16, 32], strides = [1, 1]} : vector<16x128xf32> to vector<16x32xf32>
    %14 = vector.extract_strided_slice %13 {offsets = [0, 0], sizes = [1, 32], strides = [1, 1]} : vector<16x32xf32> to vector<1x32xf32>
    %c1 = arith.constant 1 : index
    %c1_18 = arith.constant 1 : index
    %c4 = arith.constant 4 : index
    %15 = vector.load %arg12[%c1, %c1_18, %c4] : memref<10x10x40xf32, #tpu.memory_space<vmem>>, vector<1x1x32xf32>
    %16 = vector.shape_cast %15 : vector<1x1x32xf32> to vector<1x32xf32>
    %17 = vector.shape_cast %14 : vector<1x32xf32> to vector<1x1x32xf32>
    tpu.vector_store %arg12[%c1, %c1_18, %c4], %17 {strides = array<i32>} : memref<10x10x40xf32, #tpu.memory_space<vmem>>, vector<1x1x32xf32>,
    %18 = vector.extract_strided_slice %13 {offsets = [1, 0], sizes = [1, 32], strides = [1, 1]} : vector<16x32xf32> to vector<1x32xf32>
    %c1_19 = arith.constant 1 : index
    %c3 = arith.constant 3 : index
    %c4_20 = arith.constant 4 : index
    %19 = vector.load %arg12[%c1_19, %c3, %c4_20] : memref<10x10x40xf32, #tpu.memory_space<vmem>>, vector<1x1x32xf32>
    %20 = vector.shape_cast %19 : vector<1x1x32xf32> to vector<1x32xf32>
    %21 = vector.shape_cast %18 : vector<1x32xf32> to vector<1x1x32xf32>
    tpu.vector_store %arg12[%c1_19, %c3, %c4_20], %21 {strides = array<i32>} : memref<10x10x40xf32, #tpu.memory_space<vmem>>, vector<1x1x32xf32>,
    %22 = vector.extract_strided_slice %13 {offsets = [2, 0], sizes = [1, 32], strides = [1, 1]} : vector<16x32xf32> to vector<1x32xf32>
    %c1_21 = arith.constant 1 : index
    %c5 = arith.constant 5 : index
    %c4_22 = arith.constant 4 : index
    %23 = vector.load %arg12[%c1_21, %c5, %c4_22] : memref<10x10x40xf32, #tpu.memory_space<vmem>>, vector<1x1x32xf32>
    %24 = vector.shape_cast %23 : vector<1x1x32xf32> to vector<1x32xf32>
    %25 = vector.shape_cast %22 : vector<1x32xf32> to vector<1x1x32xf32>
    tpu.vector_store %arg12[%c1_21, %c5, %c4_22], %25 {strides = array<i32>} : memref<10x10x40xf32, #tpu.memory_space<vmem>>, vector<1x1x32xf32>,
    %26 = vector.extract_strided_slice %13 {offsets = [3, 0], sizes = [1, 32], strides = [1, 1]} : vector<16x32xf32> to vector<1x32xf32>
    %c1_23 = arith.constant 1 : index
    %c7 = arith.constant 7 : index
    %c4_24 = arith.constant 4 : index
    %27 = vector.load %arg12[%c1_23, %c7, %c4_24] : memref<10x10x40xf32, #tpu.memory_space<vmem>>, vector<1x1x32xf32>
    %28 = vector.shape_cast %27 : vector<1x1x32xf32> to vector<1x32xf32>
    %29 = vector.shape_cast %26 : vector<1x32xf32> to vector<1x1x32xf32>
    tpu.vector_store %arg12[%c1_23, %c7, %c4_24], %29 {strides = array<i32>} : memref<10x10x40xf32, #tpu.memory_space<vmem>>, vector<1x1x32xf32>,
    %30 = vector.extract_strided_slice %13 {offsets = [4, 0], sizes = [1, 32], strides = [1, 1]} : vector<16x32xf32> to vector<1x32xf32>
    %c3_25 = arith.constant 3 : index
    %c1_26 = arith.constant 1 : index
    %c4_27 = arith.constant 4 : index
    %31 = vector.load %arg12[%c3_25, %c1_26, %c4_27] : memref<10x10x40xf32, #tpu.memory_space<vmem>>, vector<1x1x32xf32>
    %32 = vector.shape_cast %31 : vector<1x1x32xf32> to vector<1x32xf32>
    %33 = vector.shape_cast %30 : vector<1x32xf32> to vector<1x1x32xf32>
    tpu.vector_store %arg12[%c3_25, %c1_26, %c4_27], %33 {strides = array<i32>} : memref<10x10x40xf32, #tpu.memory_space<vmem>>, vector<1x1x32xf32>,
    %34 = vector.extract_strided_slice %13 {offsets = [5, 0], sizes = [1, 32], strides = [1, 1]} : vector<16x32xf32> to vector<1x32xf32>
    %c3_28 = arith.constant 3 : index
    %c3_29 = arith.constant 3 : index
    %c4_30 = arith.constant 4 : index
    %35 = vector.load %arg12[%c3_28, %c3_29, %c4_30] : memref<10x10x40xf32, #tpu.memory_space<vmem>>, vector<1x1x32xf32>
    %36 = vector.shape_cast %35 : vector<1x1x32xf32> to vector<1x32xf32>
    %37 = vector.shape_cast %34 : vector<1x32xf32> to vector<1x1x32xf32>
    tpu.vector_store %arg12[%c3_28, %c3_29, %c4_30], %37 {strides = array<i32>} : memref<10x10x40xf32, #tpu.memory_space<vmem>>, vector<1x1x32xf32>,
    %38 = vector.extract_strided_slice %13 {offsets = [6, 0], sizes = [1, 32], strides = [1, 1]} : vector<16x32xf32> to vector<1x32xf32>
    %c3_31 = arith.constant 3 : index
    %c5_32 = arith.constant 5 : index
    %c4_33 = arith.constant 4 : index
    %39 = vector.load %arg12[%c3_31, %c5_32, %c4_33] : memref<10x10x40xf32, #tpu.memory_space<vmem>>, vector<1x1x32xf32>
    %40 = vector.shape_cast %39 : vector<1x1x32xf32> to vector<1x32xf32>
    %41 = vector.shape_cast %38 : vector<1x32xf32> to vector<1x1x32xf32>
    tpu.vector_store %arg12[%c3_31, %c5_32, %c4_33], %41 {strides = array<i32>} : memref<10x10x40xf32, #tpu.memory_space<vmem>>, vector<1x1x32xf32>,
    %42 = vector.extract_strided_slice %13 {offsets = [7, 0], sizes = [1, 32], strides = [1, 1]} : vector<16x32xf32> to vector<1x32xf32>
    %c3_34 = arith.constant 3 : index
    %c7_35 = arith.constant 7 : index
    %c4_36 = arith.constant 4 : index
    %43 = vector.load %arg12[%c3_34, %c7_35, %c4_36] : memref<10x10x40xf32, #tpu.memory_space<vmem>>, vector<1x1x32xf32>
    %44 = vector.shape_cast %43 : vector<1x1x32xf32> to vector<1x32xf32>
    %45 = vector.shape_cast %42 : vector<1x32xf32> to vector<1x1x32xf32>
    tpu.vector_store %arg12[%c3_34, %c7_35, %c4_36], %45 {strides = array<i32>} : memref<10x10x40xf32, #tpu.memory_space<vmem>>, vector<1x1x32xf32>,
    %46 = vector.extract_strided_slice %13 {offsets = [8, 0], sizes = [1, 32], strides = [1, 1]} : vector<16x32xf32> to vector<1x32xf32>
    %c5_37 = arith.constant 5 : index
    %c1_38 = arith.constant 1 : index
    %c4_39 = arith.constant 4 : index
    %47 = vector.load %arg12[%c5_37, %c1_38, %c4_39] : memref<10x10x40xf32, #tpu.memory_space<vmem>>, vector<1x1x32xf32>
    %48 = vector.shape_cast %47 : vector<1x1x32xf32> to vector<1x32xf32>
    %49 = vector.shape_cast %46 : vector<1x32xf32> to vector<1x1x32xf32>
    tpu.vector_store %arg12[%c5_37, %c1_38, %c4_39], %49 {strides = array<i32>} : memref<10x10x40xf32, #tpu.memory_space<vmem>>, vector<1x1x32xf32>,
    %50 = vector.extract_strided_slice %13 {offsets = [9, 0], sizes = [1, 32], strides = [1, 1]} : vector<16x32xf32> to vector<1x32xf32>
    %c5_40 = arith.constant 5 : index
    %c3_41 = arith.constant 3 : index
    %c4_42 = arith.constant 4 : index
    %51 = vector.load %arg12[%c5_40, %c3_41, %c4_42] : memref<10x10x40xf32, #tpu.memory_space<vmem>>, vector<1x1x32xf32>
    %52 = vector.shape_cast %51 : vector<1x1x32xf32> to vector<1x32xf32>
    %53 = vector.shape_cast %50 : vector<1x32xf32> to vector<1x1x32xf32>
    tpu.vector_store %arg12[%c5_40, %c3_41, %c4_42], %53 {strides = array<i32>} : memref<10x10x40xf32, #tpu.memory_space<vmem>>, vector<1x1x32xf32>,
    %54 = vector.extract_strided_slice %13 {offsets = [10, 0], sizes = [1, 32], strides = [1, 1]} : vector<16x32xf32> to vector<1x32xf32>
    %c5_43 = arith.constant 5 : index
    %c5_44 = arith.constant 5 : index
    %c4_45 = arith.constant 4 : index
    %55 = vector.load %arg12[%c5_43, %c5_44, %c4_45] : memref<10x10x40xf32, #tpu.memory_space<vmem>>, vector<1x1x32xf32>
    %56 = vector.shape_cast %55 : vector<1x1x32xf32> to vector<1x32xf32>
    %57 = vector.shape_cast %54 : vector<1x32xf32> to vector<1x1x32xf32>
    tpu.vector_store %arg12[%c5_43, %c5_44, %c4_45], %57 {strides = array<i32>} : memref<10x10x40xf32, #tpu.memory_space<vmem>>, vector<1x1x32xf32>,
    %58 = vector.extract_strided_slice %13 {offsets = [11, 0], sizes = [1, 32], strides = [1, 1]} : vector<16x32xf32> to vector<1x32xf32>
    %c5_46 = arith.constant 5 : index
    %c7_47 = arith.constant 7 : index
    %c4_48 = arith.constant 4 : index
    %59 = vector.load %arg12[%c5_46, %c7_47, %c4_48] : memref<10x10x40xf32, #tpu.memory_space<vmem>>, vector<1x1x32xf32>
    %60 = vector.shape_cast %59 : vector<1x1x32xf32> to vector<1x32xf32>
    %61 = vector.shape_cast %58 : vector<1x32xf32> to vector<1x1x32xf32>
    tpu.vector_store %arg12[%c5_46, %c7_47, %c4_48], %61 {strides = array<i32>} : memref<10x10x40xf32, #tpu.memory_space<vmem>>, vector<1x1x32xf32>,
    %62 = vector.extract_strided_slice %13 {offsets = [12, 0], sizes = [1, 32], strides = [1, 1]} : vector<16x32xf32> to vector<1x32xf32>
    %c7_49 = arith.constant 7 : index
    %c1_50 = arith.constant 1 : index
    %c4_51 = arith.constant 4 : index
    %63 = vector.load %arg12[%c7_49, %c1_50, %c4_51] : memref<10x10x40xf32, #tpu.memory_space<vmem>>, vector<1x1x32xf32>
    %64 = vector.shape_cast %63 : vector<1x1x32xf32> to vector<1x32xf32>
    %65 = vector.shape_cast %62 : vector<1x32xf32> to vector<1x1x32xf32>
    tpu.vector_store %arg12[%c7_49, %c1_50, %c4_51], %65 {strides = array<i32>} : memref<10x10x40xf32, #tpu.memory_space<vmem>>, vector<1x1x32xf32>,
    %66 = vector.extract_strided_slice %13 {offsets = [13, 0], sizes = [1, 32], strides = [1, 1]} : vector<16x32xf32> to vector<1x32xf32>
    %c7_52 = arith.constant 7 : index
    %c3_53 = arith.constant 3 : index
    %c4_54 = arith.constant 4 : index
    %67 = vector.load %arg12[%c7_52, %c3_53, %c4_54] : memref<10x10x40xf32, #tpu.memory_space<vmem>>, vector<1x1x32xf32>
    %68 = vector.shape_cast %67 : vector<1x1x32xf32> to vector<1x32xf32>
    %69 = vector.shape_cast %66 : vector<1x32xf32> to vector<1x1x32xf32>
    tpu.vector_store %arg12[%c7_52, %c3_53, %c4_54], %69 {strides = array<i32>} : memref<10x10x40xf32, #tpu.memory_space<vmem>>, vector<1x1x32xf32>,
    %70 = vector.extract_strided_slice %13 {offsets = [14, 0], sizes = [1, 32], strides = [1, 1]} : vector<16x32xf32> to vector<1x32xf32>
    %c7_55 = arith.constant 7 : index
    %c5_56 = arith.constant 5 : index
    %c4_57 = arith.constant 4 : index
    %71 = vector.load %arg12[%c7_55, %c5_56, %c4_57] : memref<10x10x40xf32, #tpu.memory_space<vmem>>, vector<1x1x32xf32>
    %72 = vector.shape_cast %71 : vector<1x1x32xf32> to vector<1x32xf32>
    %73 = vector.shape_cast %70 : vector<1x32xf32> to vector<1x1x32xf32>
    tpu.vector_store %arg12[%c7_55, %c5_56, %c4_57], %73 {strides = array<i32>} : memref<10x10x40xf32, #tpu.memory_space<vmem>>, vector<1x1x32xf32>,
    %74 = vector.extract_strided_slice %13 {offsets = [15, 0], sizes = [1, 32], strides = [1, 1]} : vector<16x32xf32> to vector<1x32xf32>
    %c7_58 = arith.constant 7 : index
    %c7_59 = arith.constant 7 : index
    %c4_60 = arith.constant 4 : index
    %75 = vector.load %arg12[%c7_58, %c7_59, %c4_60] : memref<10x10x40xf32, #tpu.memory_space<vmem>>, vector<1x1x32xf32>
    %76 = vector.shape_cast %75 : vector<1x1x32xf32> to vector<1x32xf32>
    %77 = vector.shape_cast %74 : vector<1x32xf32> to vector<1x1x32xf32>
    tpu.vector_store %arg12[%c7_58, %c7_59, %c4_60], %77 {strides = array<i32>} : memref<10x10x40xf32, #tpu.memory_space<vmem>>, vector<1x1x32xf32>,
    %78 = vector.extract_strided_slice %12 {offsets = [0, 32], sizes = [16, 32], strides = [1, 1]} : vector<16x128xf32> to vector<16x32xf32>
    %79 = vector.extract_strided_slice %78 {offsets = [0, 0], sizes = [1, 32], strides = [1, 1]} : vector<16x32xf32> to vector<1x32xf32>
    %c1_61 = arith.constant 1 : index
    %c2 = arith.constant 2 : index
    %c4_62 = arith.constant 4 : index
    %80 = vector.load %arg12[%c1_61, %c2, %c4_62] : memref<10x10x40xf32, #tpu.memory_space<vmem>>, vector<1x1x32xf32>
    %81 = vector.shape_cast %80 : vector<1x1x32xf32> to vector<1x32xf32>
    %82 = vector.shape_cast %79 : vector<1x32xf32> to vector<1x1x32xf32>
    tpu.vector_store %arg12[%c1_61, %c2, %c4_62], %82 {strides = array<i32>} : memref<10x10x40xf32, #tpu.memory_space<vmem>>, vector<1x1x32xf32>,
    %83 = vector.extract_strided_slice %78 {offsets = [1, 0], sizes = [1, 32], strides = [1, 1]} : vector<16x32xf32> to vector<1x32xf32>
    %c1_63 = arith.constant 1 : index
    %c4_64 = arith.constant 4 : index
    %c4_65 = arith.constant 4 : index
    %84 = vector.load %arg12[%c1_63, %c4_64, %c4_65] : memref<10x10x40xf32, #tpu.memory_space<vmem>>, vector<1x1x32xf32>
    %85 = vector.shape_cast %84 : vector<1x1x32xf32> to vector<1x32xf32>
    %86 = vector.shape_cast %83 : vector<1x32xf32> to vector<1x1x32xf32>
    tpu.vector_store %arg12[%c1_63, %c4_64, %c4_65], %86 {strides = array<i32>} : memref<10x10x40xf32, #tpu.memory_space<vmem>>, vector<1x1x32xf32>,
    %87 = vector.extract_strided_slice %78 {offsets = [2, 0], sizes = [1, 32], strides = [1, 1]} : vector<16x32xf32> to vector<1x32xf32>
    %c1_66 = arith.constant 1 : index
    %c6 = arith.constant 6 : index
    %c4_67 = arith.constant 4 : index
    %88 = vector.load %arg12[%c1_66, %c6, %c4_67] : memref<10x10x40xf32, #tpu.memory_space<vmem>>, vector<1x1x32xf32>
    %89 = vector.shape_cast %88 : vector<1x1x32xf32> to vector<1x32xf32>
    %90 = vector.shape_cast %87 : vector<1x32xf32> to vector<1x1x32xf32>
    tpu.vector_store %arg12[%c1_66, %c6, %c4_67], %90 {strides = array<i32>} : memref<10x10x40xf32, #tpu.memory_space<vmem>>, vector<1x1x32xf32>,
    %91 = vector.extract_strided_slice %78 {offsets = [3, 0], sizes = [1, 32], strides = [1, 1]} : vector<16x32xf32> to vector<1x32xf32>
    %c1_68 = arith.constant 1 : index
    %c8 = arith.constant 8 : index
    %c4_69 = arith.constant 4 : index
    %92 = vector.load %arg12[%c1_68, %c8, %c4_69] : memref<10x10x40xf32, #tpu.memory_space<vmem>>, vector<1x1x32xf32>
    %93 = vector.shape_cast %92 : vector<1x1x32xf32> to vector<1x32xf32>
    %94 = vector.shape_cast %91 : vector<1x32xf32> to vector<1x1x32xf32>
    tpu.vector_store %arg12[%c1_68, %c8, %c4_69], %94 {strides = array<i32>} : memref<10x10x40xf32, #tpu.memory_space<vmem>>, vector<1x1x32xf32>,
    %95 = vector.extract_strided_slice %78 {offsets = [4, 0], sizes = [1, 32], strides = [1, 1]} : vector<16x32xf32> to vector<1x32xf32>
    %c3_70 = arith.constant 3 : index
    %c2_71 = arith.constant 2 : index
    %c4_72 = arith.constant 4 : index
    %96 = vector.load %arg12[%c3_70, %c2_71, %c4_72] : memref<10x10x40xf32, #tpu.memory_space<vmem>>, vector<1x1x32xf32>
    %97 = vector.shape_cast %96 : vector<1x1x32xf32> to vector<1x32xf32>
    %98 = vector.shape_cast %95 : vector<1x32xf32> to vector<1x1x32xf32>
    tpu.vector_store %arg12[%c3_70, %c2_71, %c4_72], %98 {strides = array<i32>} : memref<10x10x40xf32, #tpu.memory_space<vmem>>, vector<1x1x32xf32>,
    %99 = vector.extract_strided_slice %78 {offsets = [5, 0], sizes = [1, 32], strides = [1, 1]} : vector<16x32xf32> to vector<1x32xf32>
    %c3_73 = arith.constant 3 : index
    %c4_74 = arith.constant 4 : index
    %c4_75 = arith.constant 4 : index
    %100 = vector.load %arg12[%c3_73, %c4_74, %c4_75] : memref<10x10x40xf32, #tpu.memory_space<vmem>>, vector<1x1x32xf32>
    %101 = vector.shape_cast %100 : vector<1x1x32xf32> to vector<1x32xf32>
    %102 = vector.shape_cast %99 : vector<1x32xf32> to vector<1x1x32xf32>
    tpu.vector_store %arg12[%c3_73, %c4_74, %c4_75], %102 {strides = array<i32>} : memref<10x10x40xf32, #tpu.memory_space<vmem>>, vector<1x1x32xf32>,
    %103 = vector.extract_strided_slice %78 {offsets = [6, 0], sizes = [1, 32], strides = [1, 1]} : vector<16x32xf32> to vector<1x32xf32>
    %c3_76 = arith.constant 3 : index
    %c6_77 = arith.constant 6 : index
    %c4_78 = arith.constant 4 : index
    %104 = vector.load %arg12[%c3_76, %c6_77, %c4_78] : memref<10x10x40xf32, #tpu.memory_space<vmem>>, vector<1x1x32xf32>
    %105 = vector.shape_cast %104 : vector<1x1x32xf32> to vector<1x32xf32>
    %106 = vector.shape_cast %103 : vector<1x32xf32> to vector<1x1x32xf32>
    tpu.vector_store %arg12[%c3_76, %c6_77, %c4_78], %106 {strides = array<i32>} : memref<10x10x40xf32, #tpu.memory_space<vmem>>, vector<1x1x32xf32>,
    %107 = vector.extract_strided_slice %78 {offsets = [7, 0], sizes = [1, 32], strides = [1, 1]} : vector<16x32xf32> to vector<1x32xf32>
    %c3_79 = arith.constant 3 : index
    %c8_80 = arith.constant 8 : index
    %c4_81 = arith.constant 4 : index
    %108 = vector.load %arg12[%c3_79, %c8_80, %c4_81] : memref<10x10x40xf32, #tpu.memory_space<vmem>>, vector<1x1x32xf32>
    %109 = vector.shape_cast %108 : vector<1x1x32xf32> to vector<1x32xf32>
    %110 = vector.shape_cast %107 : vector<1x32xf32> to vector<1x1x32xf32>
    tpu.vector_store %arg12[%c3_79, %c8_80, %c4_81], %110 {strides = array<i32>} : memref<10x10x40xf32, #tpu.memory_space<vmem>>, vector<1x1x32xf32>,
    %111 = vector.extract_strided_slice %78 {offsets = [8, 0], sizes = [1, 32], strides = [1, 1]} : vector<16x32xf32> to vector<1x32xf32>
    %c5_82 = arith.constant 5 : index
    %c2_83 = arith.constant 2 : index
    %c4_84 = arith.constant 4 : index
    %112 = vector.load %arg12[%c5_82, %c2_83, %c4_84] : memref<10x10x40xf32, #tpu.memory_space<vmem>>, vector<1x1x32xf32>
    %113 = vector.shape_cast %112 : vector<1x1x32xf32> to vector<1x32xf32>
    %114 = vector.shape_cast %111 : vector<1x32xf32> to vector<1x1x32xf32>
    tpu.vector_store %arg12[%c5_82, %c2_83, %c4_84], %114 {strides = array<i32>} : memref<10x10x40xf32, #tpu.memory_space<vmem>>, vector<1x1x32xf32>,
    %115 = vector.extract_strided_slice %78 {offsets = [9, 0], sizes = [1, 32], strides = [1, 1]} : vector<16x32xf32> to vector<1x32xf32>
    %c5_85 = arith.constant 5 : index
    %c4_86 = arith.constant 4 : index
    %c4_87 = arith.constant 4 : index
    %116 = vector.load %arg12[%c5_85, %c4_86, %c4_87] : memref<10x10x40xf32, #tpu.memory_space<vmem>>, vector<1x1x32xf32>
    %117 = vector.shape_cast %116 : vector<1x1x32xf32> to vector<1x32xf32>
    %118 = vector.shape_cast %115 : vector<1x32xf32> to vector<1x1x32xf32>
    tpu.vector_store %arg12[%c5_85, %c4_86, %c4_87], %118 {strides = array<i32>} : memref<10x10x40xf32, #tpu.memory_space<vmem>>, vector<1x1x32xf32>,
    %119 = vector.extract_strided_slice %78 {offsets = [10, 0], sizes = [1, 32], strides = [1, 1]} : vector<16x32xf32> to vector<1x32xf32>
    %c5_88 = arith.constant 5 : index
    %c6_89 = arith.constant 6 : index
    %c4_90 = arith.constant 4 : index
    %120 = vector.load %arg12[%c5_88, %c6_89, %c4_90] : memref<10x10x40xf32, #tpu.memory_space<vmem>>, vector<1x1x32xf32>
    %121 = vector.shape_cast %120 : vector<1x1x32xf32> to vector<1x32xf32>
    %122 = vector.shape_cast %119 : vector<1x32xf32> to vector<1x1x32xf32>
    tpu.vector_store %arg12[%c5_88, %c6_89, %c4_90], %122 {strides = array<i32>} : memref<10x10x40xf32, #tpu.memory_space<vmem>>, vector<1x1x32xf32>,
    %123 = vector.extract_strided_slice %78 {offsets = [11, 0], sizes = [1, 32], strides = [1, 1]} : vector<16x32xf32> to vector<1x32xf32>
    %c5_91 = arith.constant 5 : index
    %c8_92 = arith.constant 8 : index
    %c4_93 = arith.constant 4 : index
    %124 = vector.load %arg12[%c5_91, %c8_92, %c4_93] : memref<10x10x40xf32, #tpu.memory_space<vmem>>, vector<1x1x32xf32>
    %125 = vector.shape_cast %124 : vector<1x1x32xf32> to vector<1x32xf32>
    %126 = vector.shape_cast %123 : vector<1x32xf32> to vector<1x1x32xf32>
    tpu.vector_store %arg12[%c5_91, %c8_92, %c4_93], %126 {strides = array<i32>} : memref<10x10x40xf32, #tpu.memory_space<vmem>>, vector<1x1x32xf32>,
    %127 = vector.extract_strided_slice %78 {offsets = [12, 0], sizes = [1, 32], strides = [1, 1]} : vector<16x32xf32> to vector<1x32xf32>
    %c7_94 = arith.constant 7 : index
    %c2_95 = arith.constant 2 : index
    %c4_96 = arith.constant 4 : index
    %128 = vector.load %arg12[%c7_94, %c2_95, %c4_96] : memref<10x10x40xf32, #tpu.memory_space<vmem>>, vector<1x1x32xf32>
    %129 = vector.shape_cast %128 : vector<1x1x32xf32> to vector<1x32xf32>
    %130 = vector.shape_cast %127 : vector<1x32xf32> to vector<1x1x32xf32>
    tpu.vector_store %arg12[%c7_94, %c2_95, %c4_96], %130 {strides = array<i32>} : memref<10x10x40xf32, #tpu.memory_space<vmem>>, vector<1x1x32xf32>,
    %131 = vector.extract_strided_slice %78 {offsets = [13, 0], sizes = [1, 32], strides = [1, 1]} : vector<16x32xf32> to vector<1x32xf32>
    %c7_97 = arith.constant 7 : index
    %c4_98 = arith.constant 4 : index
    %c4_99 = arith.constant 4 : index
    %132 = vector.load %arg12[%c7_97, %c4_98, %c4_99] : memref<10x10x40xf32, #tpu.memory_space<vmem>>, vector<1x1x32xf32>
    %133 = vector.shape_cast %132 : vector<1x1x32xf32> to vector<1x32xf32>
    %134 = vector.shape_cast %131 : vector<1x32xf32> to vector<1x1x32xf32>
    tpu.vector_store %arg12[%c7_97, %c4_98, %c4_99], %134 {strides = array<i32>} : memref<10x10x40xf32, #tpu.memory_space<vmem>>, vector<1x1x32xf32>,
    %135 = vector.extract_strided_slice %78 {offsets = [14, 0], sizes = [1, 32], strides = [1, 1]} : vector<16x32xf32> to vector<1x32xf32>
    %c7_100 = arith.constant 7 : index
    %c6_101 = arith.constant 6 : index
    %c4_102 = arith.constant 4 : index
    %136 = vector.load %arg12[%c7_100, %c6_101, %c4_102] : memref<10x10x40xf32, #tpu.memory_space<vmem>>, vector<1x1x32xf32>
    %137 = vector.shape_cast %136 : vector<1x1x32xf32> to vector<1x32xf32>
    %138 = vector.shape_cast %135 : vector<1x32xf32> to vector<1x1x32xf32>
    tpu.vector_store %arg12[%c7_100, %c6_101, %c4_102], %138 {strides = array<i32>} : memref<10x10x40xf32, #tpu.memory_space<vmem>>, vector<1x1x32xf32>,
    %139 = vector.extract_strided_slice %78 {offsets = [15, 0], sizes = [1, 32], strides = [1, 1]} : vector<16x32xf32> to vector<1x32xf32>
    %c7_103 = arith.constant 7 : index
    %c8_104 = arith.constant 8 : index
    %c4_105 = arith.constant 4 : index
    %140 = vector.load %arg12[%c7_103, %c8_104, %c4_105] : memref<10x10x40xf32, #tpu.memory_space<vmem>>, vector<1x1x32xf32>
    %141 = vector.shape_cast %140 : vector<1x1x32xf32> to vector<1x32xf32>
    %142 = vector.shape_cast %139 : vector<1x32xf32> to vector<1x1x32xf32>
    tpu.vector_store %arg12[%c7_103, %c8_104, %c4_105], %142 {strides = array<i32>} : memref<10x10x40xf32, #tpu.memory_space<vmem>>, vector<1x1x32xf32>,
    %143 = vector.extract_strided_slice %12 {offsets = [0, 64], sizes = [16, 32], strides = [1, 1]} : vector<16x128xf32> to vector<16x32xf32>
    %144 = vector.extract_strided_slice %143 {offsets = [0, 0], sizes = [1, 32], strides = [1, 1]} : vector<16x32xf32> to vector<1x32xf32>
    %c2_106 = arith.constant 2 : index
    %c1_107 = arith.constant 1 : index
    %c4_108 = arith.constant 4 : index
    %145 = vector.load %arg12[%c2_106, %c1_107, %c4_108] : memref<10x10x40xf32, #tpu.memory_space<vmem>>, vector<1x1x32xf32>
    %146 = vector.shape_cast %145 : vector<1x1x32xf32> to vector<1x32xf32>
    %147 = vector.shape_cast %144 : vector<1x32xf32> to vector<1x1x32xf32>
    tpu.vector_store %arg12[%c2_106, %c1_107, %c4_108], %147 {strides = array<i32>} : memref<10x10x40xf32, #tpu.memory_space<vmem>>, vector<1x1x32xf32>,
    %148 = vector.extract_strided_slice %143 {offsets = [1, 0], sizes = [1, 32], strides = [1, 1]} : vector<16x32xf32> to vector<1x32xf32>
    %c2_109 = arith.constant 2 : index
    %c3_110 = arith.constant 3 : index
    %c4_111 = arith.constant 4 : index
    %149 = vector.load %arg12[%c2_109, %c3_110, %c4_111] : memref<10x10x40xf32, #tpu.memory_space<vmem>>, vector<1x1x32xf32>
    %150 = vector.shape_cast %149 : vector<1x1x32xf32> to vector<1x32xf32>
    %151 = vector.shape_cast %148 : vector<1x32xf32> to vector<1x1x32xf32>
    tpu.vector_store %arg12[%c2_109, %c3_110, %c4_111], %151 {strides = array<i32>} : memref<10x10x40xf32, #tpu.memory_space<vmem>>, vector<1x1x32xf32>,
    %152 = vector.extract_strided_slice %143 {offsets = [2, 0], sizes = [1, 32], strides = [1, 1]} : vector<16x32xf32> to vector<1x32xf32>
    %c2_112 = arith.constant 2 : index
    %c5_113 = arith.constant 5 : index
    %c4_114 = arith.constant 4 : index
    %153 = vector.load %arg12[%c2_112, %c5_113, %c4_114] : memref<10x10x40xf32, #tpu.memory_space<vmem>>, vector<1x1x32xf32>
    %154 = vector.shape_cast %153 : vector<1x1x32xf32> to vector<1x32xf32>
    %155 = vector.shape_cast %152 : vector<1x32xf32> to vector<1x1x32xf32>
    tpu.vector_store %arg12[%c2_112, %c5_113, %c4_114], %155 {strides = array<i32>} : memref<10x10x40xf32, #tpu.memory_space<vmem>>, vector<1x1x32xf32>,
    %156 = vector.extract_strided_slice %143 {offsets = [3, 0], sizes = [1, 32], strides = [1, 1]} : vector<16x32xf32> to vector<1x32xf32>
    %c2_115 = arith.constant 2 : index
    %c7_116 = arith.constant 7 : index
    %c4_117 = arith.constant 4 : index
    %157 = vector.load %arg12[%c2_115, %c7_116, %c4_117] : memref<10x10x40xf32, #tpu.memory_space<vmem>>, vector<1x1x32xf32>
    %158 = vector.shape_cast %157 : vector<1x1x32xf32> to vector<1x32xf32>
    %159 = vector.shape_cast %156 : vector<1x32xf32> to vector<1x1x32xf32>
    tpu.vector_store %arg12[%c2_115, %c7_116, %c4_117], %159 {strides = array<i32>} : memref<10x10x40xf32, #tpu.memory_space<vmem>>, vector<1x1x32xf32>,
    %160 = vector.extract_strided_slice %143 {offsets = [4, 0], sizes = [1, 32], strides = [1, 1]} : vector<16x32xf32> to vector<1x32xf32>
    %c4_118 = arith.constant 4 : index
    %c1_119 = arith.constant 1 : index
    %c4_120 = arith.constant 4 : index
    %161 = vector.load %arg12[%c4_118, %c1_119, %c4_120] : memref<10x10x40xf32, #tpu.memory_space<vmem>>, vector<1x1x32xf32>
    %162 = vector.shape_cast %161 : vector<1x1x32xf32> to vector<1x32xf32>
    %163 = vector.shape_cast %160 : vector<1x32xf32> to vector<1x1x32xf32>
    tpu.vector_store %arg12[%c4_118, %c1_119, %c4_120], %163 {strides = array<i32>} : memref<10x10x40xf32, #tpu.memory_space<vmem>>, vector<1x1x32xf32>,
    %164 = vector.extract_strided_slice %143 {offsets = [5, 0], sizes = [1, 32], strides = [1, 1]} : vector<16x32xf32> to vector<1x32xf32>
    %c4_121 = arith.constant 4 : index
    %c3_122 = arith.constant 3 : index
    %c4_123 = arith.constant 4 : index
    %165 = vector.load %arg12[%c4_121, %c3_122, %c4_123] : memref<10x10x40xf32, #tpu.memory_space<vmem>>, vector<1x1x32xf32>
    %166 = vector.shape_cast %165 : vector<1x1x32xf32> to vector<1x32xf32>
    %167 = vector.shape_cast %164 : vector<1x32xf32> to vector<1x1x32xf32>
    tpu.vector_store %arg12[%c4_121, %c3_122, %c4_123], %167 {strides = array<i32>} : memref<10x10x40xf32, #tpu.memory_space<vmem>>, vector<1x1x32xf32>,
    %168 = vector.extract_strided_slice %143 {offsets = [6, 0], sizes = [1, 32], strides = [1, 1]} : vector<16x32xf32> to vector<1x32xf32>
    %c4_124 = arith.constant 4 : index
    %c5_125 = arith.constant 5 : index
    %c4_126 = arith.constant 4 : index
    %169 = vector.load %arg12[%c4_124, %c5_125, %c4_126] : memref<10x10x40xf32, #tpu.memory_space<vmem>>, vector<1x1x32xf32>
    %170 = vector.shape_cast %169 : vector<1x1x32xf32> to vector<1x32xf32>
    %171 = vector.shape_cast %168 : vector<1x32xf32> to vector<1x1x32xf32>
    tpu.vector_store %arg12[%c4_124, %c5_125, %c4_126], %171 {strides = array<i32>} : memref<10x10x40xf32, #tpu.memory_space<vmem>>, vector<1x1x32xf32>,
    %172 = vector.extract_strided_slice %143 {offsets = [7, 0], sizes = [1, 32], strides = [1, 1]} : vector<16x32xf32> to vector<1x32xf32>
    %c4_127 = arith.constant 4 : index
    %c7_128 = arith.constant 7 : index
    %c4_129 = arith.constant 4 : index
    %173 = vector.load %arg12[%c4_127, %c7_128, %c4_129] : memref<10x10x40xf32, #tpu.memory_space<vmem>>, vector<1x1x32xf32>
    %174 = vector.shape_cast %173 : vector<1x1x32xf32> to vector<1x32xf32>
    %175 = vector.shape_cast %172 : vector<1x32xf32> to vector<1x1x32xf32>
    tpu.vector_store %arg12[%c4_127, %c7_128, %c4_129], %175 {strides = array<i32>} : memref<10x10x40xf32, #tpu.memory_space<vmem>>, vector<1x1x32xf32>,
    %176 = vector.extract_strided_slice %143 {offsets = [8, 0], sizes = [1, 32], strides = [1, 1]} : vector<16x32xf32> to vector<1x32xf32>
    %c6_130 = arith.constant 6 : index
    %c1_131 = arith.constant 1 : index
    %c4_132 = arith.constant 4 : index
    %177 = vector.load %arg12[%c6_130, %c1_131, %c4_132] : memref<10x10x40xf32, #tpu.memory_space<vmem>>, vector<1x1x32xf32>
    %178 = vector.shape_cast %177 : vector<1x1x32xf32> to vector<1x32xf32>
    %179 = vector.shape_cast %176 : vector<1x32xf32> to vector<1x1x32xf32>
    tpu.vector_store %arg12[%c6_130, %c1_131, %c4_132], %179 {strides = array<i32>} : memref<10x10x40xf32, #tpu.memory_space<vmem>>, vector<1x1x32xf32>,
    %180 = vector.extract_strided_slice %143 {offsets = [9, 0], sizes = [1, 32], strides = [1, 1]} : vector<16x32xf32> to vector<1x32xf32>
    %c6_133 = arith.constant 6 : index
    %c3_134 = arith.constant 3 : index
    %c4_135 = arith.constant 4 : index
    %181 = vector.load %arg12[%c6_133, %c3_134, %c4_135] : memref<10x10x40xf32, #tpu.memory_space<vmem>>, vector<1x1x32xf32>
    %182 = vector.shape_cast %181 : vector<1x1x32xf32> to vector<1x32xf32>
    %183 = vector.shape_cast %180 : vector<1x32xf32> to vector<1x1x32xf32>
    tpu.vector_store %arg12[%c6_133, %c3_134, %c4_135], %183 {strides = array<i32>} : memref<10x10x40xf32, #tpu.memory_space<vmem>>, vector<1x1x32xf32>,
    %184 = vector.extract_strided_slice %143 {offsets = [10, 0], sizes = [1, 32], strides = [1, 1]} : vector<16x32xf32> to vector<1x32xf32>
    %c6_136 = arith.constant 6 : index
    %c5_137 = arith.constant 5 : index
    %c4_138 = arith.constant 4 : index
    %185 = vector.load %arg12[%c6_136, %c5_137, %c4_138] : memref<10x10x40xf32, #tpu.memory_space<vmem>>, vector<1x1x32xf32>
    %186 = vector.shape_cast %185 : vector<1x1x32xf32> to vector<1x32xf32>
    %187 = vector.shape_cast %184 : vector<1x32xf32> to vector<1x1x32xf32>
    tpu.vector_store %arg12[%c6_136, %c5_137, %c4_138], %187 {strides = array<i32>} : memref<10x10x40xf32, #tpu.memory_space<vmem>>, vector<1x1x32xf32>,
    %188 = vector.extract_strided_slice %143 {offsets = [11, 0], sizes = [1, 32], strides = [1, 1]} : vector<16x32xf32> to vector<1x32xf32>
    %c6_139 = arith.constant 6 : index
    %c7_140 = arith.constant 7 : index
    %c4_141 = arith.constant 4 : index
    %189 = vector.load %arg12[%c6_139, %c7_140, %c4_141] : memref<10x10x40xf32, #tpu.memory_space<vmem>>, vector<1x1x32xf32>
    %190 = vector.shape_cast %189 : vector<1x1x32xf32> to vector<1x32xf32>
    %191 = vector.shape_cast %188 : vector<1x32xf32> to vector<1x1x32xf32>
    tpu.vector_store %arg12[%c6_139, %c7_140, %c4_141], %191 {strides = array<i32>} : memref<10x10x40xf32, #tpu.memory_space<vmem>>, vector<1x1x32xf32>,
    %192 = vector.extract_strided_slice %143 {offsets = [12, 0], sizes = [1, 32], strides = [1, 1]} : vector<16x32xf32> to vector<1x32xf32>
    %c8_142 = arith.constant 8 : index
    %c1_143 = arith.constant 1 : index
    %c4_144 = arith.constant 4 : index
    %193 = vector.load %arg12[%c8_142, %c1_143, %c4_144] : memref<10x10x40xf32, #tpu.memory_space<vmem>>, vector<1x1x32xf32>
    %194 = vector.shape_cast %193 : vector<1x1x32xf32> to vector<1x32xf32>
    %195 = vector.shape_cast %192 : vector<1x32xf32> to vector<1x1x32xf32>
    tpu.vector_store %arg12[%c8_142, %c1_143, %c4_144], %195 {strides = array<i32>} : memref<10x10x40xf32, #tpu.memory_space<vmem>>, vector<1x1x32xf32>,
    %196 = vector.extract_strided_slice %143 {offsets = [13, 0], sizes = [1, 32], strides = [1, 1]} : vector<16x32xf32> to vector<1x32xf32>
    %c8_145 = arith.constant 8 : index
    %c3_146 = arith.constant 3 : index
    %c4_147 = arith.constant 4 : index
    %197 = vector.load %arg12[%c8_145, %c3_146, %c4_147] : memref<10x10x40xf32, #tpu.memory_space<vmem>>, vector<1x1x32xf32>
    %198 = vector.shape_cast %197 : vector<1x1x32xf32> to vector<1x32xf32>
    %199 = vector.shape_cast %196 : vector<1x32xf32> to vector<1x1x32xf32>
    tpu.vector_store %arg12[%c8_145, %c3_146, %c4_147], %199 {strides = array<i32>} : memref<10x10x40xf32, #tpu.memory_space<vmem>>, vector<1x1x32xf32>,
    %200 = vector.extract_strided_slice %143 {offsets = [14, 0], sizes = [1, 32], strides = [1, 1]} : vector<16x32xf32> to vector<1x32xf32>
    %c8_148 = arith.constant 8 : index
    %c5_149 = arith.constant 5 : index
    %c4_150 = arith.constant 4 : index
    %201 = vector.load %arg12[%c8_148, %c5_149, %c4_150] : memref<10x10x40xf32, #tpu.memory_space<vmem>>, vector<1x1x32xf32>
    %202 = vector.shape_cast %201 : vector<1x1x32xf32> to vector<1x32xf32>
    %203 = vector.shape_cast %200 : vector<1x32xf32> to vector<1x1x32xf32>
    tpu.vector_store %arg12[%c8_148, %c5_149, %c4_150], %203 {strides = array<i32>} : memref<10x10x40xf32, #tpu.memory_space<vmem>>, vector<1x1x32xf32>,
    %204 = vector.extract_strided_slice %143 {offsets = [15, 0], sizes = [1, 32], strides = [1, 1]} : vector<16x32xf32> to vector<1x32xf32>
    %c8_151 = arith.constant 8 : index
    %c7_152 = arith.constant 7 : index
    %c4_153 = arith.constant 4 : index
    %205 = vector.load %arg12[%c8_151, %c7_152, %c4_153] : memref<10x10x40xf32, #tpu.memory_space<vmem>>, vector<1x1x32xf32>
    %206 = vector.shape_cast %205 : vector<1x1x32xf32> to vector<1x32xf32>
    %207 = vector.shape_cast %204 : vector<1x32xf32> to vector<1x1x32xf32>
    tpu.vector_store %arg12[%c8_151, %c7_152, %c4_153], %207 {strides = array<i32>} : memref<10x10x40xf32, #tpu.memory_space<vmem>>, vector<1x1x32xf32>,
    %208 = vector.extract_strided_slice %12 {offsets = [0, 96], sizes = [16, 32], strides = [1, 1]} : vector<16x128xf32> to vector<16x32xf32>
    %209 = vector.extract_strided_slice %208 {offsets = [0, 0], sizes = [1, 32], strides = [1, 1]} : vector<16x32xf32> to vector<1x32xf32>
    %c2_154 = arith.constant 2 : index
    %c2_155 = arith.constant 2 : index
    %c4_156 = arith.constant 4 : index
    %210 = vector.load %arg12[%c2_154, %c2_155, %c4_156] : memref<10x10x40xf32, #tpu.memory_space<vmem>>, vector<1x1x32xf32>
    %211 = vector.shape_cast %210 : vector<1x1x32xf32> to vector<1x32xf32>
    %212 = vector.shape_cast %209 : vector<1x32xf32> to vector<1x1x32xf32>
    tpu.vector_store %arg12[%c2_154, %c2_155, %c4_156], %212 {strides = array<i32>} : memref<10x10x40xf32, #tpu.memory_space<vmem>>, vector<1x1x32xf32>,
    %213 = vector.extract_strided_slice %208 {offsets = [1, 0], sizes = [1, 32], strides = [1, 1]} : vector<16x32xf32> to vector<1x32xf32>
    %c2_157 = arith.constant 2 : index
    %c4_158 = arith.constant 4 : index
    %c4_159 = arith.constant 4 : index
    %214 = vector.load %arg12[%c2_157, %c4_158, %c4_159] : memref<10x10x40xf32, #tpu.memory_space<vmem>>, vector<1x1x32xf32>
    %215 = vector.shape_cast %214 : vector<1x1x32xf32> to vector<1x32xf32>
    %216 = vector.shape_cast %213 : vector<1x32xf32> to vector<1x1x32xf32>
    tpu.vector_store %arg12[%c2_157, %c4_158, %c4_159], %216 {strides = array<i32>} : memref<10x10x40xf32, #tpu.memory_space<vmem>>, vector<1x1x32xf32>,
    %217 = vector.extract_strided_slice %208 {offsets = [2, 0], sizes = [1, 32], strides = [1, 1]} : vector<16x32xf32> to vector<1x32xf32>
    %c2_160 = arith.constant 2 : index
    %c6_161 = arith.constant 6 : index
    %c4_162 = arith.constant 4 : index
    %218 = vector.load %arg12[%c2_160, %c6_161, %c4_162] : memref<10x10x40xf32, #tpu.memory_space<vmem>>, vector<1x1x32xf32>
    %219 = vector.shape_cast %218 : vector<1x1x32xf32> to vector<1x32xf32>
    %220 = vector.shape_cast %217 : vector<1x32xf32> to vector<1x1x32xf32>
    tpu.vector_store %arg12[%c2_160, %c6_161, %c4_162], %220 {strides = array<i32>} : memref<10x10x40xf32, #tpu.memory_space<vmem>>, vector<1x1x32xf32>,
    %221 = vector.extract_strided_slice %208 {offsets = [3, 0], sizes = [1, 32], strides = [1, 1]} : vector<16x32xf32> to vector<1x32xf32>
    %c2_163 = arith.constant 2 : index
    %c8_164 = arith.constant 8 : index
    %c4_165 = arith.constant 4 : index
    %222 = vector.load %arg12[%c2_163, %c8_164, %c4_165] : memref<10x10x40xf32, #tpu.memory_space<vmem>>, vector<1x1x32xf32>
    %223 = vector.shape_cast %222 : vector<1x1x32xf32> to vector<1x32xf32>
    %224 = vector.shape_cast %221 : vector<1x32xf32> to vector<1x1x32xf32>
    tpu.vector_store %arg12[%c2_163, %c8_164, %c4_165], %224 {strides = array<i32>} : memref<10x10x40xf32, #tpu.memory_space<vmem>>, vector<1x1x32xf32>,
    %225 = vector.extract_strided_slice %208 {offsets = [4, 0], sizes = [1, 32], strides = [1, 1]} : vector<16x32xf32> to vector<1x32xf32>
    %c4_166 = arith.constant 4 : index
    %c2_167 = arith.constant 2 : index
    %c4_168 = arith.constant 4 : index
    %226 = vector.load %arg12[%c4_166, %c2_167, %c4_168] : memref<10x10x40xf32, #tpu.memory_space<vmem>>, vector<1x1x32xf32>
    %227 = vector.shape_cast %226 : vector<1x1x32xf32> to vector<1x32xf32>
    %228 = vector.shape_cast %225 : vector<1x32xf32> to vector<1x1x32xf32>
    tpu.vector_store %arg12[%c4_166, %c2_167, %c4_168], %228 {strides = array<i32>} : memref<10x10x40xf32, #tpu.memory_space<vmem>>, vector<1x1x32xf32>,
    %229 = vector.extract_strided_slice %208 {offsets = [5, 0], sizes = [1, 32], strides = [1, 1]} : vector<16x32xf32> to vector<1x32xf32>
    %c4_169 = arith.constant 4 : index
    %c4_170 = arith.constant 4 : index
    %c4_171 = arith.constant 4 : index
    %230 = vector.load %arg12[%c4_169, %c4_170, %c4_171] : memref<10x10x40xf32, #tpu.memory_space<vmem>>, vector<1x1x32xf32>
    %231 = vector.shape_cast %230 : vector<1x1x32xf32> to vector<1x32xf32>
    %232 = vector.shape_cast %229 : vector<1x32xf32> to vector<1x1x32xf32>
    tpu.vector_store %arg12[%c4_169, %c4_170, %c4_171], %232 {strides = array<i32>} : memref<10x10x40xf32, #tpu.memory_space<vmem>>, vector<1x1x32xf32>,
    %233 = vector.extract_strided_slice %208 {offsets = [6, 0], sizes = [1, 32], strides = [1, 1]} : vector<16x32xf32> to vector<1x32xf32>
    %c4_172 = arith.constant 4 : index
    %c6_173 = arith.constant 6 : index
    %c4_174 = arith.constant 4 : index
    %234 = vector.load %arg12[%c4_172, %c6_173, %c4_174] : memref<10x10x40xf32, #tpu.memory_space<vmem>>, vector<1x1x32xf32>
    %235 = vector.shape_cast %234 : vector<1x1x32xf32> to vector<1x32xf32>
    %236 = vector.shape_cast %233 : vector<1x32xf32> to vector<1x1x32xf32>
    tpu.vector_store %arg12[%c4_172, %c6_173, %c4_174], %236 {strides = array<i32>} : memref<10x10x40xf32, #tpu.memory_space<vmem>>, vector<1x1x32xf32>,
    %237 = vector.extract_strided_slice %208 {offsets = [7, 0], sizes = [1, 32], strides = [1, 1]} : vector<16x32xf32> to vector<1x32xf32>
    %c4_175 = arith.constant 4 : index
    %c8_176 = arith.constant 8 : index
    %c4_177 = arith.constant 4 : index
    %238 = vector.load %arg12[%c4_175, %c8_176, %c4_177] : memref<10x10x40xf32, #tpu.memory_space<vmem>>, vector<1x1x32xf32>
    %239 = vector.shape_cast %238 : vector<1x1x32xf32> to vector<1x32xf32>
    %240 = vector.shape_cast %237 : vector<1x32xf32> to vector<1x1x32xf32>
    tpu.vector_store %arg12[%c4_175, %c8_176, %c4_177], %240 {strides = array<i32>} : memref<10x10x40xf32, #tpu.memory_space<vmem>>, vector<1x1x32xf32>,
    %241 = vector.extract_strided_slice %208 {offsets = [8, 0], sizes = [1, 32], strides = [1, 1]} : vector<16x32xf32> to vector<1x32xf32>
    %c6_178 = arith.constant 6 : index
    %c2_179 = arith.constant 2 : index
    %c4_180 = arith.constant 4 : index
    %242 = vector.load %arg12[%c6_178, %c2_179, %c4_180] : memref<10x10x40xf32, #tpu.memory_space<vmem>>, vector<1x1x32xf32>
    %243 = vector.shape_cast %242 : vector<1x1x32xf32> to vector<1x32xf32>
    %244 = vector.shape_cast %241 : vector<1x32xf32> to vector<1x1x32xf32>
    tpu.vector_store %arg12[%c6_178, %c2_179, %c4_180], %244 {strides = array<i32>} : memref<10x10x40xf32, #tpu.memory_space<vmem>>, vector<1x1x32xf32>,
    %245 = vector.extract_strided_slice %208 {offsets = [9, 0], sizes = [1, 32], strides = [1, 1]} : vector<16x32xf32> to vector<1x32xf32>
    %c6_181 = arith.constant 6 : index
    %c4_182 = arith.constant 4 : index
    %c4_183 = arith.constant 4 : index
    %246 = vector.load %arg12[%c6_181, %c4_182, %c4_183] : memref<10x10x40xf32, #tpu.memory_space<vmem>>, vector<1x1x32xf32>
    %247 = vector.shape_cast %246 : vector<1x1x32xf32> to vector<1x32xf32>
    %248 = vector.shape_cast %245 : vector<1x32xf32> to vector<1x1x32xf32>
    tpu.vector_store %arg12[%c6_181, %c4_182, %c4_183], %248 {strides = array<i32>} : memref<10x10x40xf32, #tpu.memory_space<vmem>>, vector<1x1x32xf32>,
    %249 = vector.extract_strided_slice %208 {offsets = [10, 0], sizes = [1, 32], strides = [1, 1]} : vector<16x32xf32> to vector<1x32xf32>
    %c6_184 = arith.constant 6 : index
    %c6_185 = arith.constant 6 : index
    %c4_186 = arith.constant 4 : index
    %250 = vector.load %arg12[%c6_184, %c6_185, %c4_186] : memref<10x10x40xf32, #tpu.memory_space<vmem>>, vector<1x1x32xf32>
    %251 = vector.shape_cast %250 : vector<1x1x32xf32> to vector<1x32xf32>
    %252 = vector.shape_cast %249 : vector<1x32xf32> to vector<1x1x32xf32>
    tpu.vector_store %arg12[%c6_184, %c6_185, %c4_186], %252 {strides = array<i32>} : memref<10x10x40xf32, #tpu.memory_space<vmem>>, vector<1x1x32xf32>,
    %253 = vector.extract_strided_slice %208 {offsets = [11, 0], sizes = [1, 32], strides = [1, 1]} : vector<16x32xf32> to vector<1x32xf32>
    %c6_187 = arith.constant 6 : index
    %c8_188 = arith.constant 8 : index
    %c4_189 = arith.constant 4 : index
    %254 = vector.load %arg12[%c6_187, %c8_188, %c4_189] : memref<10x10x40xf32, #tpu.memory_space<vmem>>, vector<1x1x32xf32>
    %255 = vector.shape_cast %254 : vector<1x1x32xf32> to vector<1x32xf32>
    %256 = vector.shape_cast %253 : vector<1x32xf32> to vector<1x1x32xf32>
    tpu.vector_store %arg12[%c6_187, %c8_188, %c4_189], %256 {strides = array<i32>} : memref<10x10x40xf32, #tpu.memory_space<vmem>>, vector<1x1x32xf32>,
    %257 = vector.extract_strided_slice %208 {offsets = [12, 0], sizes = [1, 32], strides = [1, 1]} : vector<16x32xf32> to vector<1x32xf32>
    %c8_190 = arith.constant 8 : index
    %c2_191 = arith.constant 2 : index
    %c4_192 = arith.constant 4 : index
    %258 = vector.load %arg12[%c8_190, %c2_191, %c4_192] : memref<10x10x40xf32, #tpu.memory_space<vmem>>, vector<1x1x32xf32>
    %259 = vector.shape_cast %258 : vector<1x1x32xf32> to vector<1x32xf32>
    %260 = vector.shape_cast %257 : vector<1x32xf32> to vector<1x1x32xf32>
    tpu.vector_store %arg12[%c8_190, %c2_191, %c4_192], %260 {strides = array<i32>} : memref<10x10x40xf32, #tpu.memory_space<vmem>>, vector<1x1x32xf32>,
    %261 = vector.extract_strided_slice %208 {offsets = [13, 0], sizes = [1, 32], strides = [1, 1]} : vector<16x32xf32> to vector<1x32xf32>
    %c8_193 = arith.constant 8 : index
    %c4_194 = arith.constant 4 : index
    %c4_195 = arith.constant 4 : index
    %262 = vector.load %arg12[%c8_193, %c4_194, %c4_195] : memref<10x10x40xf32, #tpu.memory_space<vmem>>, vector<1x1x32xf32>
    %263 = vector.shape_cast %262 : vector<1x1x32xf32> to vector<1x32xf32>
    %264 = vector.shape_cast %261 : vector<1x32xf32> to vector<1x1x32xf32>
    tpu.vector_store %arg12[%c8_193, %c4_194, %c4_195], %264 {strides = array<i32>} : memref<10x10x40xf32, #tpu.memory_space<vmem>>, vector<1x1x32xf32>,
    %265 = vector.extract_strided_slice %208 {offsets = [14, 0], sizes = [1, 32], strides = [1, 1]} : vector<16x32xf32> to vector<1x32xf32>
    %c8_196 = arith.constant 8 : index
    %c6_197 = arith.constant 6 : index
    %c4_198 = arith.constant 4 : index
    %266 = vector.load %arg12[%c8_196, %c6_197, %c4_198] : memref<10x10x40xf32, #tpu.memory_space<vmem>>, vector<1x1x32xf32>
    %267 = vector.shape_cast %266 : vector<1x1x32xf32> to vector<1x32xf32>
    %268 = vector.shape_cast %265 : vector<1x32xf32> to vector<1x1x32xf32>
    tpu.vector_store %arg12[%c8_196, %c6_197, %c4_198], %268 {strides = array<i32>} : memref<10x10x40xf32, #tpu.memory_space<vmem>>, vector<1x1x32xf32>,
    %269 = vector.extract_strided_slice %208 {offsets = [15, 0], sizes = [1, 32], strides = [1, 1]} : vector<16x32xf32> to vector<1x32xf32>
    %c8_199 = arith.constant 8 : index
    %c8_200 = arith.constant 8 : index
    %c4_201 = arith.constant 4 : index
    %270 = vector.load %arg12[%c8_199, %c8_200, %c4_201] : memref<10x10x40xf32, #tpu.memory_space<vmem>>, vector<1x1x32xf32>
    %271 = vector.shape_cast %270 : vector<1x1x32xf32> to vector<1x32xf32>
    %272 = vector.shape_cast %269 : vector<1x32xf32> to vector<1x1x32xf32>
    tpu.vector_store %arg12[%c8_199, %c8_200, %c4_201], %272 {strides = array<i32>} : memref<10x10x40xf32, #tpu.memory_space<vmem>>, vector<1x1x32xf32>,
    %cst_202 = arith.constant 0.000000e+00 : f32
    %273 = vector.broadcast %cst_202 : f32 to vector<64x32xf32>
    %c0_203 = arith.constant 0 : index
    %c0_204 = arith.constant 0 : index
    %c0_205 = arith.constant 0 : index
    %274 = vector.load %arg12[%c0_203, %c0_204, %c0_205] : memref<10x10x40xf32, #tpu.memory_space<vmem>>, vector<8x8x40xf32>
    %275 = vector.shape_cast %274 : vector<8x8x40xf32> to vector<64x40xf32>
    %c0_206 = arith.constant 0 : index
    %c0_207 = arith.constant 0 : index
    %c0_208 = arith.constant 0 : index
    %276 = vector.load %arg5[%c0_206, %c0_207, %c0_208] : memref<9x40x32xf32, #tpu.memory_space<vmem>>, vector<1x40x32xf32>
    %277 = vector.shape_cast %276 : vector<1x40x32xf32> to vector<40x32xf32>
    %cst_209 = arith.constant dense<0.000000e+00> : vector<64x32xf32>
    %278 = tpu.matmul %275, %277, %cst_209 {dimension_numbers = #tpu.dot_dimension_numbers<[1], [0], [0], [1], [0, 0, 1, 1], [], []>} : vector<64x40xf32>, vector<40x32xf32>, vector<64x32xf32> -> vector<64x32xf32>
    %279 = arith.addf %273, %278 : vector<64x32xf32>
    %c0_210 = arith.constant 0 : index
    %c1_211 = arith.constant 1 : index
    %c0_212 = arith.constant 0 : index
    %280 = vector.load %arg12[%c0_210, %c1_211, %c0_212] : memref<10x10x40xf32, #tpu.memory_space<vmem>>, vector<8x8x40xf32>
    %281 = vector.shape_cast %280 : vector<8x8x40xf32> to vector<64x40xf32>
    %c1_213 = arith.constant 1 : index
    %c0_214 = arith.constant 0 : index
    %c0_215 = arith.constant 0 : index
    %282 = vector.load %arg5[%c1_213, %c0_214, %c0_215] : memref<9x40x32xf32, #tpu.memory_space<vmem>>, vector<1x40x32xf32>
    %283 = vector.shape_cast %282 : vector<1x40x32xf32> to vector<40x32xf32>
    %cst_216 = arith.constant dense<0.000000e+00> : vector<64x32xf32>
    %284 = tpu.matmul %281, %283, %cst_216 {dimension_numbers = #tpu.dot_dimension_numbers<[1], [0], [0], [1], [0, 0, 1, 1], [], []>} : vector<64x40xf32>, vector<40x32xf32>, vector<64x32xf32> -> vector<64x32xf32>
    %285 = arith.addf %279, %284 : vector<64x32xf32>
    %c0_217 = arith.constant 0 : index
    %c2_218 = arith.constant 2 : index
    %c0_219 = arith.constant 0 : index
    %286 = vector.load %arg12[%c0_217, %c2_218, %c0_219] : memref<10x10x40xf32, #tpu.memory_space<vmem>>, vector<8x8x40xf32>
    %287 = vector.shape_cast %286 : vector<8x8x40xf32> to vector<64x40xf32>
    %c2_220 = arith.constant 2 : index
    %c0_221 = arith.constant 0 : index
    %c0_222 = arith.constant 0 : index
    %288 = vector.load %arg5[%c2_220, %c0_221, %c0_222] : memref<9x40x32xf32, #tpu.memory_space<vmem>>, vector<1x40x32xf32>
    %289 = vector.shape_cast %288 : vector<1x40x32xf32> to vector<40x32xf32>
    %cst_223 = arith.constant dense<0.000000e+00> : vector<64x32xf32>
    %290 = tpu.matmul %287, %289, %cst_223 {dimension_numbers = #tpu.dot_dimension_numbers<[1], [0], [0], [1], [0, 0, 1, 1], [], []>} : vector<64x40xf32>, vector<40x32xf32>, vector<64x32xf32> -> vector<64x32xf32>
    %291 = arith.addf %285, %290 : vector<64x32xf32>
    %c1_224 = arith.constant 1 : index
    %c0_225 = arith.constant 0 : index
    %c0_226 = arith.constant 0 : index
    %292 = vector.load %arg12[%c1_224, %c0_225, %c0_226] : memref<10x10x40xf32, #tpu.memory_space<vmem>>, vector<8x8x40xf32>
    %293 = vector.shape_cast %292 : vector<8x8x40xf32> to vector<64x40xf32>
    %c3_227 = arith.constant 3 : index
    %c0_228 = arith.constant 0 : index
    %c0_229 = arith.constant 0 : index
    %294 = vector.load %arg5[%c3_227, %c0_228, %c0_229] : memref<9x40x32xf32, #tpu.memory_space<vmem>>, vector<1x40x32xf32>
    %295 = vector.shape_cast %294 : vector<1x40x32xf32> to vector<40x32xf32>
    %cst_230 = arith.constant dense<0.000000e+00> : vector<64x32xf32>
    %296 = tpu.matmul %293, %295, %cst_230 {dimension_numbers = #tpu.dot_dimension_numbers<[1], [0], [0], [1], [0, 0, 1, 1], [], []>} : vector<64x40xf32>, vector<40x32xf32>, vector<64x32xf32> -> vector<64x32xf32>
    %297 = arith.addf %291, %296 : vector<64x32xf32>
    %c1_231 = arith.constant 1 : index
    %c1_232 = arith.constant 1 : index
    %c0_233 = arith.constant 0 : index
    %298 = vector.load %arg12[%c1_231, %c1_232, %c0_233] : memref<10x10x40xf32, #tpu.memory_space<vmem>>, vector<8x8x40xf32>
    %299 = vector.shape_cast %298 : vector<8x8x40xf32> to vector<64x40xf32>
    %c4_234 = arith.constant 4 : index
    %c0_235 = arith.constant 0 : index
    %c0_236 = arith.constant 0 : index
    %300 = vector.load %arg5[%c4_234, %c0_235, %c0_236] : memref<9x40x32xf32, #tpu.memory_space<vmem>>, vector<1x40x32xf32>
    %301 = vector.shape_cast %300 : vector<1x40x32xf32> to vector<40x32xf32>
    %cst_237 = arith.constant dense<0.000000e+00> : vector<64x32xf32>
    %302 = tpu.matmul %299, %301, %cst_237 {dimension_numbers = #tpu.dot_dimension_numbers<[1], [0], [0], [1], [0, 0, 1, 1], [], []>} : vector<64x40xf32>, vector<40x32xf32>, vector<64x32xf32> -> vector<64x32xf32>
    %303 = arith.addf %297, %302 : vector<64x32xf32>
    %304 = vector.extract_strided_slice %299 {offsets = [0, 4], sizes = [64, 32], strides = [1, 1]} : vector<64x40xf32> to vector<64x32xf32>
    %c1_238 = arith.constant 1 : index
    %c2_239 = arith.constant 2 : index
    %c0_240 = arith.constant 0 : index
    %305 = vector.load %arg12[%c1_238, %c2_239, %c0_240] : memref<10x10x40xf32, #tpu.memory_space<vmem>>, vector<8x8x40xf32>
    %306 = vector.shape_cast %305 : vector<8x8x40xf32> to vector<64x40xf32>
    %c5_241 = arith.constant 5 : index
    %c0_242 = arith.constant 0 : index
    %c0_243 = arith.constant 0 : index
    %307 = vector.load %arg5[%c5_241, %c0_242, %c0_243] : memref<9x40x32xf32, #tpu.memory_space<vmem>>, vector<1x40x32xf32>
    %308 = vector.shape_cast %307 : vector<1x40x32xf32> to vector<40x32xf32>
    %cst_244 = arith.constant dense<0.000000e+00> : vector<64x32xf32>
    %309 = tpu.matmul %306, %308, %cst_244 {dimension_numbers = #tpu.dot_dimension_numbers<[1], [0], [0], [1], [0, 0, 1, 1], [], []>} : vector<64x40xf32>, vector<40x32xf32>, vector<64x32xf32> -> vector<64x32xf32>
    %310 = arith.addf %303, %309 : vector<64x32xf32>
    %c2_245 = arith.constant 2 : index
    %c0_246 = arith.constant 0 : index
    %c0_247 = arith.constant 0 : index
    %311 = vector.load %arg12[%c2_245, %c0_246, %c0_247] : memref<10x10x40xf32, #tpu.memory_space<vmem>>, vector<8x8x40xf32>
    %312 = vector.shape_cast %311 : vector<8x8x40xf32> to vector<64x40xf32>
    %c6_248 = arith.constant 6 : index
    %c0_249 = arith.constant 0 : index
    %c0_250 = arith.constant 0 : index
    %313 = vector.load %arg5[%c6_248, %c0_249, %c0_250] : memref<9x40x32xf32, #tpu.memory_space<vmem>>, vector<1x40x32xf32>
    %314 = vector.shape_cast %313 : vector<1x40x32xf32> to vector<40x32xf32>
    %cst_251 = arith.constant dense<0.000000e+00> : vector<64x32xf32>
    %315 = tpu.matmul %312, %314, %cst_251 {dimension_numbers = #tpu.dot_dimension_numbers<[1], [0], [0], [1], [0, 0, 1, 1], [], []>} : vector<64x40xf32>, vector<40x32xf32>, vector<64x32xf32> -> vector<64x32xf32>
    %316 = arith.addf %310, %315 : vector<64x32xf32>
    %c2_252 = arith.constant 2 : index
    %c1_253 = arith.constant 1 : index
    %c0_254 = arith.constant 0 : index
    %317 = vector.load %arg12[%c2_252, %c1_253, %c0_254] : memref<10x10x40xf32, #tpu.memory_space<vmem>>, vector<8x8x40xf32>
    %318 = vector.shape_cast %317 : vector<8x8x40xf32> to vector<64x40xf32>
    %c7_255 = arith.constant 7 : index
    %c0_256 = arith.constant 0 : index
    %c0_257 = arith.constant 0 : index
    %319 = vector.load %arg5[%c7_255, %c0_256, %c0_257] : memref<9x40x32xf32, #tpu.memory_space<vmem>>, vector<1x40x32xf32>
    %320 = vector.shape_cast %319 : vector<1x40x32xf32> to vector<40x32xf32>
    %cst_258 = arith.constant dense<0.000000e+00> : vector<64x32xf32>
    %321 = tpu.matmul %318, %320, %cst_258 {dimension_numbers = #tpu.dot_dimension_numbers<[1], [0], [0], [1], [0, 0, 1, 1], [], []>} : vector<64x40xf32>, vector<40x32xf32>, vector<64x32xf32> -> vector<64x32xf32>
    %322 = arith.addf %316, %321 : vector<64x32xf32>
    %c2_259 = arith.constant 2 : index
    %c2_260 = arith.constant 2 : index
    %c0_261 = arith.constant 0 : index
    %323 = vector.load %arg12[%c2_259, %c2_260, %c0_261] : memref<10x10x40xf32, #tpu.memory_space<vmem>>, vector<8x8x40xf32>
    %324 = vector.shape_cast %323 : vector<8x8x40xf32> to vector<64x40xf32>
    %c8_262 = arith.constant 8 : index
    %c0_263 = arith.constant 0 : index
    %c0_264 = arith.constant 0 : index
    %325 = vector.load %arg5[%c8_262, %c0_263, %c0_264] : memref<9x40x32xf32, #tpu.memory_space<vmem>>, vector<1x40x32xf32>
    %326 = vector.shape_cast %325 : vector<1x40x32xf32> to vector<40x32xf32>
    %cst_265 = arith.constant dense<0.000000e+00> : vector<64x32xf32>
    %327 = tpu.matmul %324, %326, %cst_265 {dimension_numbers = #tpu.dot_dimension_numbers<[1], [0], [0], [1], [0, 0, 1, 1], [], []>} : vector<64x40xf32>, vector<40x32xf32>, vector<64x32xf32> -> vector<64x32xf32>
    %328 = arith.addf %322, %327 : vector<64x32xf32>
    %c0_266 = arith.constant 0 : index
    %c0_267 = arith.constant 0 : index
    %329 = vector.load %arg6[%c0_266, %c0_267] : memref<1x32xf32, #tpu.memory_space<vmem>>, vector<1x32xf32>
    %330 = vector.broadcast %329 : vector<1x32xf32> to vector<64x32xf32>
    %331 = arith.addf %328, %330 : vector<64x32xf32>
    %332 = arith.maximumf %304, %331 : vector<64x32xf32>
    %c0_268 = arith.constant 0 : index
    %c0_269 = arith.constant 0 : index
    %c0_270 = arith.constant 0 : index
    %c0_271 = arith.constant 0 : index
    %333 = vector.load %arg2[%c0_268, %c0_269, %c0_270, %c0_271] : memref<1x8x8x32xf32, #tpu.memory_space<vmem>>, vector<1x1x8x32xf32>
    %334 = vector.shape_cast %333 : vector<1x1x8x32xf32> to vector<8x32xf32>
    %c2_272 = arith.constant 2 : index
    %c2_273 = arith.constant 2 : index
    %c8_274 = arith.constant 8 : index
    %335 = vector.load %arg13[%c2_272, %c2_273, %c8_274] : memref<12x12x96xf32, #tpu.memory_space<vmem>>, vector<1x8x32xf32>
    %336 = vector.shape_cast %335 : vector<1x8x32xf32> to vector<8x32xf32>
    %337 = vector.shape_cast %334 : vector<8x32xf32> to vector<1x8x32xf32>
    tpu.vector_store %arg13[%c2_272, %c2_273, %c8_274], %337 {strides = array<i32>} : memref<12x12x96xf32, #tpu.memory_space<vmem>>, vector<1x8x32xf32>,
    %338 = vector.extract_strided_slice %332 {offsets = [0, 0], sizes = [8, 32], strides = [1, 1]} : vector<64x32xf32> to vector<8x32xf32>
    %c2_275 = arith.constant 2 : index
    %c2_276 = arith.constant 2 : index
    %c56 = arith.constant 56 : index
    %339 = vector.load %arg13[%c2_275, %c2_276, %c56] : memref<12x12x96xf32, #tpu.memory_space<vmem>>, vector<1x8x32xf32>
    %340 = vector.shape_cast %339 : vector<1x8x32xf32> to vector<8x32xf32>
    %341 = vector.shape_cast %338 : vector<8x32xf32> to vector<1x8x32xf32>
    tpu.vector_store %arg13[%c2_275, %c2_276, %c56], %341 {strides = array<i32>} : memref<12x12x96xf32, #tpu.memory_space<vmem>>, vector<1x8x32xf32>,
    %c0_277 = arith.constant 0 : index
    %c1_278 = arith.constant 1 : index
    %c0_279 = arith.constant 0 : index
    %c0_280 = arith.constant 0 : index
    %342 = vector.load %arg2[%c0_277, %c1_278, %c0_279, %c0_280] : memref<1x8x8x32xf32, #tpu.memory_space<vmem>>, vector<1x1x8x32xf32>
    %343 = vector.shape_cast %342 : vector<1x1x8x32xf32> to vector<8x32xf32>
    %c3_281 = arith.constant 3 : index
    %c2_282 = arith.constant 2 : index
    %c8_283 = arith.constant 8 : index
    %344 = vector.load %arg13[%c3_281, %c2_282, %c8_283] : memref<12x12x96xf32, #tpu.memory_space<vmem>>, vector<1x8x32xf32>
    %345 = vector.shape_cast %344 : vector<1x8x32xf32> to vector<8x32xf32>
    %346 = vector.shape_cast %343 : vector<8x32xf32> to vector<1x8x32xf32>
    tpu.vector_store %arg13[%c3_281, %c2_282, %c8_283], %346 {strides = array<i32>} : memref<12x12x96xf32, #tpu.memory_space<vmem>>, vector<1x8x32xf32>,
    %347 = vector.extract_strided_slice %332 {offsets = [8, 0], sizes = [8, 32], strides = [1, 1]} : vector<64x32xf32> to vector<8x32xf32>
    %c3_284 = arith.constant 3 : index
    %c2_285 = arith.constant 2 : index
    %c56_286 = arith.constant 56 : index
    %348 = vector.load %arg13[%c3_284, %c2_285, %c56_286] : memref<12x12x96xf32, #tpu.memory_space<vmem>>, vector<1x8x32xf32>
    %349 = vector.shape_cast %348 : vector<1x8x32xf32> to vector<8x32xf32>
    %350 = vector.shape_cast %347 : vector<8x32xf32> to vector<1x8x32xf32>
    tpu.vector_store %arg13[%c3_284, %c2_285, %c56_286], %350 {strides = array<i32>} : memref<12x12x96xf32, #tpu.memory_space<vmem>>, vector<1x8x32xf32>,
    %c0_287 = arith.constant 0 : index
    %c2_288 = arith.constant 2 : index
    %c0_289 = arith.constant 0 : index
    %c0_290 = arith.constant 0 : index
    %351 = vector.load %arg2[%c0_287, %c2_288, %c0_289, %c0_290] : memref<1x8x8x32xf32, #tpu.memory_space<vmem>>, vector<1x1x8x32xf32>
    %352 = vector.shape_cast %351 : vector<1x1x8x32xf32> to vector<8x32xf32>
    %c4_291 = arith.constant 4 : index
    %c2_292 = arith.constant 2 : index
    %c8_293 = arith.constant 8 : index
    %353 = vector.load %arg13[%c4_291, %c2_292, %c8_293] : memref<12x12x96xf32, #tpu.memory_space<vmem>>, vector<1x8x32xf32>
    %354 = vector.shape_cast %353 : vector<1x8x32xf32> to vector<8x32xf32>
    %355 = vector.shape_cast %352 : vector<8x32xf32> to vector<1x8x32xf32>
    tpu.vector_store %arg13[%c4_291, %c2_292, %c8_293], %355 {strides = array<i32>} : memref<12x12x96xf32, #tpu.memory_space<vmem>>, vector<1x8x32xf32>,
    %356 = vector.extract_strided_slice %332 {offsets = [16, 0], sizes = [8, 32], strides = [1, 1]} : vector<64x32xf32> to vector<8x32xf32>
    %c4_294 = arith.constant 4 : index
    %c2_295 = arith.constant 2 : index
    %c56_296 = arith.constant 56 : index
    %357 = vector.load %arg13[%c4_294, %c2_295, %c56_296] : memref<12x12x96xf32, #tpu.memory_space<vmem>>, vector<1x8x32xf32>
    %358 = vector.shape_cast %357 : vector<1x8x32xf32> to vector<8x32xf32>
    %359 = vector.shape_cast %356 : vector<8x32xf32> to vector<1x8x32xf32>
    tpu.vector_store %arg13[%c4_294, %c2_295, %c56_296], %359 {strides = array<i32>} : memref<12x12x96xf32, #tpu.memory_space<vmem>>, vector<1x8x32xf32>,
    %c0_297 = arith.constant 0 : index
    %c3_298 = arith.constant 3 : index
    %c0_299 = arith.constant 0 : index
    %c0_300 = arith.constant 0 : index
    %360 = vector.load %arg2[%c0_297, %c3_298, %c0_299, %c0_300] : memref<1x8x8x32xf32, #tpu.memory_space<vmem>>, vector<1x1x8x32xf32>
    %361 = vector.shape_cast %360 : vector<1x1x8x32xf32> to vector<8x32xf32>
    %c5_301 = arith.constant 5 : index
    %c2_302 = arith.constant 2 : index
    %c8_303 = arith.constant 8 : index
    %362 = vector.load %arg13[%c5_301, %c2_302, %c8_303] : memref<12x12x96xf32, #tpu.memory_space<vmem>>, vector<1x8x32xf32>
    %363 = vector.shape_cast %362 : vector<1x8x32xf32> to vector<8x32xf32>
    %364 = vector.shape_cast %361 : vector<8x32xf32> to vector<1x8x32xf32>
    tpu.vector_store %arg13[%c5_301, %c2_302, %c8_303], %364 {strides = array<i32>} : memref<12x12x96xf32, #tpu.memory_space<vmem>>, vector<1x8x32xf32>,
    %365 = vector.extract_strided_slice %332 {offsets = [24, 0], sizes = [8, 32], strides = [1, 1]} : vector<64x32xf32> to vector<8x32xf32>
    %c5_304 = arith.constant 5 : index
    %c2_305 = arith.constant 2 : index
    %c56_306 = arith.constant 56 : index
    %366 = vector.load %arg13[%c5_304, %c2_305, %c56_306] : memref<12x12x96xf32, #tpu.memory_space<vmem>>, vector<1x8x32xf32>
    %367 = vector.shape_cast %366 : vector<1x8x32xf32> to vector<8x32xf32>
    %368 = vector.shape_cast %365 : vector<8x32xf32> to vector<1x8x32xf32>
    tpu.vector_store %arg13[%c5_304, %c2_305, %c56_306], %368 {strides = array<i32>} : memref<12x12x96xf32, #tpu.memory_space<vmem>>, vector<1x8x32xf32>,
    %c0_307 = arith.constant 0 : index
    %c4_308 = arith.constant 4 : index
    %c0_309 = arith.constant 0 : index
    %c0_310 = arith.constant 0 : index
    %369 = vector.load %arg2[%c0_307, %c4_308, %c0_309, %c0_310] : memref<1x8x8x32xf32, #tpu.memory_space<vmem>>, vector<1x1x8x32xf32>
    %370 = vector.shape_cast %369 : vector<1x1x8x32xf32> to vector<8x32xf32>
    %c6_311 = arith.constant 6 : index
    %c2_312 = arith.constant 2 : index
    %c8_313 = arith.constant 8 : index
    %371 = vector.load %arg13[%c6_311, %c2_312, %c8_313] : memref<12x12x96xf32, #tpu.memory_space<vmem>>, vector<1x8x32xf32>
    %372 = vector.shape_cast %371 : vector<1x8x32xf32> to vector<8x32xf32>
    %373 = vector.shape_cast %370 : vector<8x32xf32> to vector<1x8x32xf32>
    tpu.vector_store %arg13[%c6_311, %c2_312, %c8_313], %373 {strides = array<i32>} : memref<12x12x96xf32, #tpu.memory_space<vmem>>, vector<1x8x32xf32>,
    %374 = vector.extract_strided_slice %332 {offsets = [32, 0], sizes = [8, 32], strides = [1, 1]} : vector<64x32xf32> to vector<8x32xf32>
    %c6_314 = arith.constant 6 : index
    %c2_315 = arith.constant 2 : index
    %c56_316 = arith.constant 56 : index
    %375 = vector.load %arg13[%c6_314, %c2_315, %c56_316] : memref<12x12x96xf32, #tpu.memory_space<vmem>>, vector<1x8x32xf32>
    %376 = vector.shape_cast %375 : vector<1x8x32xf32> to vector<8x32xf32>
    %377 = vector.shape_cast %374 : vector<8x32xf32> to vector<1x8x32xf32>
    tpu.vector_store %arg13[%c6_314, %c2_315, %c56_316], %377 {strides = array<i32>} : memref<12x12x96xf32, #tpu.memory_space<vmem>>, vector<1x8x32xf32>,
    %c0_317 = arith.constant 0 : index
    %c5_318 = arith.constant 5 : index
    %c0_319 = arith.constant 0 : index
    %c0_320 = arith.constant 0 : index
    %378 = vector.load %arg2[%c0_317, %c5_318, %c0_319, %c0_320] : memref<1x8x8x32xf32, #tpu.memory_space<vmem>>, vector<1x1x8x32xf32>
    %379 = vector.shape_cast %378 : vector<1x1x8x32xf32> to vector<8x32xf32>
    %c7_321 = arith.constant 7 : index
    %c2_322 = arith.constant 2 : index
    %c8_323 = arith.constant 8 : index
    %380 = vector.load %arg13[%c7_321, %c2_322, %c8_323] : memref<12x12x96xf32, #tpu.memory_space<vmem>>, vector<1x8x32xf32>
    %381 = vector.shape_cast %380 : vector<1x8x32xf32> to vector<8x32xf32>
    %382 = vector.shape_cast %379 : vector<8x32xf32> to vector<1x8x32xf32>
    tpu.vector_store %arg13[%c7_321, %c2_322, %c8_323], %382 {strides = array<i32>} : memref<12x12x96xf32, #tpu.memory_space<vmem>>, vector<1x8x32xf32>,
    %383 = vector.extract_strided_slice %332 {offsets = [40, 0], sizes = [8, 32], strides = [1, 1]} : vector<64x32xf32> to vector<8x32xf32>
    %c7_324 = arith.constant 7 : index
    %c2_325 = arith.constant 2 : index
    %c56_326 = arith.constant 56 : index
    %384 = vector.load %arg13[%c7_324, %c2_325, %c56_326] : memref<12x12x96xf32, #tpu.memory_space<vmem>>, vector<1x8x32xf32>
    %385 = vector.shape_cast %384 : vector<1x8x32xf32> to vector<8x32xf32>
    %386 = vector.shape_cast %383 : vector<8x32xf32> to vector<1x8x32xf32>
    tpu.vector_store %arg13[%c7_324, %c2_325, %c56_326], %386 {strides = array<i32>} : memref<12x12x96xf32, #tpu.memory_space<vmem>>, vector<1x8x32xf32>,
    %c0_327 = arith.constant 0 : index
    %c6_328 = arith.constant 6 : index
    %c0_329 = arith.constant 0 : index
    %c0_330 = arith.constant 0 : index
    %387 = vector.load %arg2[%c0_327, %c6_328, %c0_329, %c0_330] : memref<1x8x8x32xf32, #tpu.memory_space<vmem>>, vector<1x1x8x32xf32>
    %388 = vector.shape_cast %387 : vector<1x1x8x32xf32> to vector<8x32xf32>
    %c8_331 = arith.constant 8 : index
    %c2_332 = arith.constant 2 : index
    %c8_333 = arith.constant 8 : index
    %389 = vector.load %arg13[%c8_331, %c2_332, %c8_333] : memref<12x12x96xf32, #tpu.memory_space<vmem>>, vector<1x8x32xf32>
    %390 = vector.shape_cast %389 : vector<1x8x32xf32> to vector<8x32xf32>
    %391 = vector.shape_cast %388 : vector<8x32xf32> to vector<1x8x32xf32>
    tpu.vector_store %arg13[%c8_331, %c2_332, %c8_333], %391 {strides = array<i32>} : memref<12x12x96xf32, #tpu.memory_space<vmem>>, vector<1x8x32xf32>,
    %392 = vector.extract_strided_slice %332 {offsets = [48, 0], sizes = [8, 32], strides = [1, 1]} : vector<64x32xf32> to vector<8x32xf32>
    %c8_334 = arith.constant 8 : index
    %c2_335 = arith.constant 2 : index
    %c56_336 = arith.constant 56 : index
    %393 = vector.load %arg13[%c8_334, %c2_335, %c56_336] : memref<12x12x96xf32, #tpu.memory_space<vmem>>, vector<1x8x32xf32>
    %394 = vector.shape_cast %393 : vector<1x8x32xf32> to vector<8x32xf32>
    %395 = vector.shape_cast %392 : vector<8x32xf32> to vector<1x8x32xf32>
    tpu.vector_store %arg13[%c8_334, %c2_335, %c56_336], %395 {strides = array<i32>} : memref<12x12x96xf32, #tpu.memory_space<vmem>>, vector<1x8x32xf32>,
    %c0_337 = arith.constant 0 : index
    %c7_338 = arith.constant 7 : index
    %c0_339 = arith.constant 0 : index
    %c0_340 = arith.constant 0 : index
    %396 = vector.load %arg2[%c0_337, %c7_338, %c0_339, %c0_340] : memref<1x8x8x32xf32, #tpu.memory_space<vmem>>, vector<1x1x8x32xf32>
    %397 = vector.shape_cast %396 : vector<1x1x8x32xf32> to vector<8x32xf32>
    %c9 = arith.constant 9 : index
    %c2_341 = arith.constant 2 : index
    %c8_342 = arith.constant 8 : index
    %398 = vector.load %arg13[%c9, %c2_341, %c8_342] : memref<12x12x96xf32, #tpu.memory_space<vmem>>, vector<1x8x32xf32>
    %399 = vector.shape_cast %398 : vector<1x8x32xf32> to vector<8x32xf32>
    %400 = vector.shape_cast %397 : vector<8x32xf32> to vector<1x8x32xf32>
    tpu.vector_store %arg13[%c9, %c2_341, %c8_342], %400 {strides = array<i32>} : memref<12x12x96xf32, #tpu.memory_space<vmem>>, vector<1x8x32xf32>,
    %401 = vector.extract_strided_slice %332 {offsets = [56, 0], sizes = [8, 32], strides = [1, 1]} : vector<64x32xf32> to vector<8x32xf32>
    %c9_343 = arith.constant 9 : index
    %c2_344 = arith.constant 2 : index
    %c56_345 = arith.constant 56 : index
    %402 = vector.load %arg13[%c9_343, %c2_344, %c56_345] : memref<12x12x96xf32, #tpu.memory_space<vmem>>, vector<1x8x32xf32>
    %403 = vector.shape_cast %402 : vector<1x8x32xf32> to vector<8x32xf32>
    %404 = vector.shape_cast %401 : vector<8x32xf32> to vector<1x8x32xf32>
    tpu.vector_store %arg13[%c9_343, %c2_344, %c56_345], %404 {strides = array<i32>} : memref<12x12x96xf32, #tpu.memory_space<vmem>>, vector<1x8x32xf32>,
    %cst_346 = arith.constant 0.000000e+00 : f32
    %405 = vector.broadcast %cst_346 : f32 to vector<64x32xf32>
    %c0_347 = arith.constant 0 : index
    %c0_348 = arith.constant 0 : index
    %c0_349 = arith.constant 0 : index
    %406 = vector.load %arg13[%c0_347, %c0_348, %c0_349] : memref<12x12x96xf32, #tpu.memory_space<vmem>>, vector<8x8x96xf32>
    %407 = vector.shape_cast %406 : vector<8x8x96xf32> to vector<64x96xf32>
    %c0_350 = arith.constant 0 : index
    %c0_351 = arith.constant 0 : index
    %c0_352 = arith.constant 0 : index
    %408 = vector.load %arg7[%c0_350, %c0_351, %c0_352] : memref<25x96x32xf32, #tpu.memory_space<vmem>>, vector<1x96x32xf32>
    %409 = vector.shape_cast %408 : vector<1x96x32xf32> to vector<96x32xf32>
    %cst_353 = arith.constant dense<0.000000e+00> : vector<64x32xf32>
    %410 = tpu.matmul %407, %409, %cst_353 {dimension_numbers = #tpu.dot_dimension_numbers<[1], [0], [0], [1], [0, 0, 1, 1], [], []>} : vector<64x96xf32>, vector<96x32xf32>, vector<64x32xf32> -> vector<64x32xf32>
    %411 = arith.addf %405, %410 : vector<64x32xf32>
    %c0_354 = arith.constant 0 : index
    %c1_355 = arith.constant 1 : index
    %c0_356 = arith.constant 0 : index
    %412 = vector.load %arg13[%c0_354, %c1_355, %c0_356] : memref<12x12x96xf32, #tpu.memory_space<vmem>>, vector<8x8x96xf32>
    %413 = vector.shape_cast %412 : vector<8x8x96xf32> to vector<64x96xf32>
    %c1_357 = arith.constant 1 : index
    %c0_358 = arith.constant 0 : index
    %c0_359 = arith.constant 0 : index
    %414 = vector.load %arg7[%c1_357, %c0_358, %c0_359] : memref<25x96x32xf32, #tpu.memory_space<vmem>>, vector<1x96x32xf32>
    %415 = vector.shape_cast %414 : vector<1x96x32xf32> to vector<96x32xf32>
    %cst_360 = arith.constant dense<0.000000e+00> : vector<64x32xf32>
    %416 = tpu.matmul %413, %415, %cst_360 {dimension_numbers = #tpu.dot_dimension_numbers<[1], [0], [0], [1], [0, 0, 1, 1], [], []>} : vector<64x96xf32>, vector<96x32xf32>, vector<64x32xf32> -> vector<64x32xf32>
    %417 = arith.addf %411, %416 : vector<64x32xf32>
    %c0_361 = arith.constant 0 : index
    %c2_362 = arith.constant 2 : index
    %c0_363 = arith.constant 0 : index
    %418 = vector.load %arg13[%c0_361, %c2_362, %c0_363] : memref<12x12x96xf32, #tpu.memory_space<vmem>>, vector<8x8x96xf32>
    %419 = vector.shape_cast %418 : vector<8x8x96xf32> to vector<64x96xf32>
    %c2_364 = arith.constant 2 : index
    %c0_365 = arith.constant 0 : index
    %c0_366 = arith.constant 0 : index
    %420 = vector.load %arg7[%c2_364, %c0_365, %c0_366] : memref<25x96x32xf32, #tpu.memory_space<vmem>>, vector<1x96x32xf32>
    %421 = vector.shape_cast %420 : vector<1x96x32xf32> to vector<96x32xf32>
    %cst_367 = arith.constant dense<0.000000e+00> : vector<64x32xf32>
    %422 = tpu.matmul %419, %421, %cst_367 {dimension_numbers = #tpu.dot_dimension_numbers<[1], [0], [0], [1], [0, 0, 1, 1], [], []>} : vector<64x96xf32>, vector<96x32xf32>, vector<64x32xf32> -> vector<64x32xf32>
    %423 = arith.addf %417, %422 : vector<64x32xf32>
    %c0_368 = arith.constant 0 : index
    %c3_369 = arith.constant 3 : index
    %c0_370 = arith.constant 0 : index
    %424 = vector.load %arg13[%c0_368, %c3_369, %c0_370] : memref<12x12x96xf32, #tpu.memory_space<vmem>>, vector<8x8x96xf32>
    %425 = vector.shape_cast %424 : vector<8x8x96xf32> to vector<64x96xf32>
    %c3_371 = arith.constant 3 : index
    %c0_372 = arith.constant 0 : index
    %c0_373 = arith.constant 0 : index
    %426 = vector.load %arg7[%c3_371, %c0_372, %c0_373] : memref<25x96x32xf32, #tpu.memory_space<vmem>>, vector<1x96x32xf32>
    %427 = vector.shape_cast %426 : vector<1x96x32xf32> to vector<96x32xf32>
    %cst_374 = arith.constant dense<0.000000e+00> : vector<64x32xf32>
    %428 = tpu.matmul %425, %427, %cst_374 {dimension_numbers = #tpu.dot_dimension_numbers<[1], [0], [0], [1], [0, 0, 1, 1], [], []>} : vector<64x96xf32>, vector<96x32xf32>, vector<64x32xf32> -> vector<64x32xf32>
    %429 = arith.addf %423, %428 : vector<64x32xf32>
    %c0_375 = arith.constant 0 : index
    %c4_376 = arith.constant 4 : index
    %c0_377 = arith.constant 0 : index
    %430 = vector.load %arg13[%c0_375, %c4_376, %c0_377] : memref<12x12x96xf32, #tpu.memory_space<vmem>>, vector<8x8x96xf32>
    %431 = vector.shape_cast %430 : vector<8x8x96xf32> to vector<64x96xf32>
    %c4_378 = arith.constant 4 : index
    %c0_379 = arith.constant 0 : index
    %c0_380 = arith.constant 0 : index
    %432 = vector.load %arg7[%c4_378, %c0_379, %c0_380] : memref<25x96x32xf32, #tpu.memory_space<vmem>>, vector<1x96x32xf32>
    %433 = vector.shape_cast %432 : vector<1x96x32xf32> to vector<96x32xf32>
    %cst_381 = arith.constant dense<0.000000e+00> : vector<64x32xf32>
    %434 = tpu.matmul %431, %433, %cst_381 {dimension_numbers = #tpu.dot_dimension_numbers<[1], [0], [0], [1], [0, 0, 1, 1], [], []>} : vector<64x96xf32>, vector<96x32xf32>, vector<64x32xf32> -> vector<64x32xf32>
    %435 = arith.addf %429, %434 : vector<64x32xf32>
    %c1_382 = arith.constant 1 : index
    %c0_383 = arith.constant 0 : index
    %c0_384 = arith.constant 0 : index
    %436 = vector.load %arg13[%c1_382, %c0_383, %c0_384] : memref<12x12x96xf32, #tpu.memory_space<vmem>>, vector<8x8x96xf32>
    %437 = vector.shape_cast %436 : vector<8x8x96xf32> to vector<64x96xf32>
    %c5_385 = arith.constant 5 : index
    %c0_386 = arith.constant 0 : index
    %c0_387 = arith.constant 0 : index
    %438 = vector.load %arg7[%c5_385, %c0_386, %c0_387] : memref<25x96x32xf32, #tpu.memory_space<vmem>>, vector<1x96x32xf32>
    %439 = vector.shape_cast %438 : vector<1x96x32xf32> to vector<96x32xf32>
    %cst_388 = arith.constant dense<0.000000e+00> : vector<64x32xf32>
    %440 = tpu.matmul %437, %439, %cst_388 {dimension_numbers = #tpu.dot_dimension_numbers<[1], [0], [0], [1], [0, 0, 1, 1], [], []>} : vector<64x96xf32>, vector<96x32xf32>, vector<64x32xf32> -> vector<64x32xf32>
    %441 = arith.addf %435, %440 : vector<64x32xf32>
    %c1_389 = arith.constant 1 : index
    %c1_390 = arith.constant 1 : index
    %c0_391 = arith.constant 0 : index
    %442 = vector.load %arg13[%c1_389, %c1_390, %c0_391] : memref<12x12x96xf32, #tpu.memory_space<vmem>>, vector<8x8x96xf32>
    %443 = vector.shape_cast %442 : vector<8x8x96xf32> to vector<64x96xf32>
    %c6_392 = arith.constant 6 : index
    %c0_393 = arith.constant 0 : index
    %c0_394 = arith.constant 0 : index
    %444 = vector.load %arg7[%c6_392, %c0_393, %c0_394] : memref<25x96x32xf32, #tpu.memory_space<vmem>>, vector<1x96x32xf32>
    %445 = vector.shape_cast %444 : vector<1x96x32xf32> to vector<96x32xf32>
    %cst_395 = arith.constant dense<0.000000e+00> : vector<64x32xf32>
    %446 = tpu.matmul %443, %445, %cst_395 {dimension_numbers = #tpu.dot_dimension_numbers<[1], [0], [0], [1], [0, 0, 1, 1], [], []>} : vector<64x96xf32>, vector<96x32xf32>, vector<64x32xf32> -> vector<64x32xf32>
    %447 = arith.addf %441, %446 : vector<64x32xf32>
    %c1_396 = arith.constant 1 : index
    %c2_397 = arith.constant 2 : index
    %c0_398 = arith.constant 0 : index
    %448 = vector.load %arg13[%c1_396, %c2_397, %c0_398] : memref<12x12x96xf32, #tpu.memory_space<vmem>>, vector<8x8x96xf32>
    %449 = vector.shape_cast %448 : vector<8x8x96xf32> to vector<64x96xf32>
    %c7_399 = arith.constant 7 : index
    %c0_400 = arith.constant 0 : index
    %c0_401 = arith.constant 0 : index
    %450 = vector.load %arg7[%c7_399, %c0_400, %c0_401] : memref<25x96x32xf32, #tpu.memory_space<vmem>>, vector<1x96x32xf32>
    %451 = vector.shape_cast %450 : vector<1x96x32xf32> to vector<96x32xf32>
    %cst_402 = arith.constant dense<0.000000e+00> : vector<64x32xf32>
    %452 = tpu.matmul %449, %451, %cst_402 {dimension_numbers = #tpu.dot_dimension_numbers<[1], [0], [0], [1], [0, 0, 1, 1], [], []>} : vector<64x96xf32>, vector<96x32xf32>, vector<64x32xf32> -> vector<64x32xf32>
    %453 = arith.addf %447, %452 : vector<64x32xf32>
    %c1_403 = arith.constant 1 : index
    %c3_404 = arith.constant 3 : index
    %c0_405 = arith.constant 0 : index
    %454 = vector.load %arg13[%c1_403, %c3_404, %c0_405] : memref<12x12x96xf32, #tpu.memory_space<vmem>>, vector<8x8x96xf32>
    %455 = vector.shape_cast %454 : vector<8x8x96xf32> to vector<64x96xf32>
    %c8_406 = arith.constant 8 : index
    %c0_407 = arith.constant 0 : index
    %c0_408 = arith.constant 0 : index
    %456 = vector.load %arg7[%c8_406, %c0_407, %c0_408] : memref<25x96x32xf32, #tpu.memory_space<vmem>>, vector<1x96x32xf32>
    %457 = vector.shape_cast %456 : vector<1x96x32xf32> to vector<96x32xf32>
    %cst_409 = arith.constant dense<0.000000e+00> : vector<64x32xf32>
    %458 = tpu.matmul %455, %457, %cst_409 {dimension_numbers = #tpu.dot_dimension_numbers<[1], [0], [0], [1], [0, 0, 1, 1], [], []>} : vector<64x96xf32>, vector<96x32xf32>, vector<64x32xf32> -> vector<64x32xf32>
    %459 = arith.addf %453, %458 : vector<64x32xf32>
    %c1_410 = arith.constant 1 : index
    %c4_411 = arith.constant 4 : index
    %c0_412 = arith.constant 0 : index
    %460 = vector.load %arg13[%c1_410, %c4_411, %c0_412] : memref<12x12x96xf32, #tpu.memory_space<vmem>>, vector<8x8x96xf32>
    %461 = vector.shape_cast %460 : vector<8x8x96xf32> to vector<64x96xf32>
    %c9_413 = arith.constant 9 : index
    %c0_414 = arith.constant 0 : index
    %c0_415 = arith.constant 0 : index
    %462 = vector.load %arg7[%c9_413, %c0_414, %c0_415] : memref<25x96x32xf32, #tpu.memory_space<vmem>>, vector<1x96x32xf32>
    %463 = vector.shape_cast %462 : vector<1x96x32xf32> to vector<96x32xf32>
    %cst_416 = arith.constant dense<0.000000e+00> : vector<64x32xf32>
    %464 = tpu.matmul %461, %463, %cst_416 {dimension_numbers = #tpu.dot_dimension_numbers<[1], [0], [0], [1], [0, 0, 1, 1], [], []>} : vector<64x96xf32>, vector<96x32xf32>, vector<64x32xf32> -> vector<64x32xf32>
    %465 = arith.addf %459, %464 : vector<64x32xf32>
    %c2_417 = arith.constant 2 : index
    %c0_418 = arith.constant 0 : index
    %c0_419 = arith.constant 0 : index
    %466 = vector.load %arg13[%c2_417, %c0_418, %c0_419] : memref<12x12x96xf32, #tpu.memory_space<vmem>>, vector<8x8x96xf32>
    %467 = vector.shape_cast %466 : vector<8x8x96xf32> to vector<64x96xf32>
    %c10 = arith.constant 10 : index
    %c0_420 = arith.constant 0 : index
    %c0_421 = arith.constant 0 : index
    %468 = vector.load %arg7[%c10, %c0_420, %c0_421] : memref<25x96x32xf32, #tpu.memory_space<vmem>>, vector<1x96x32xf32>
    %469 = vector.shape_cast %468 : vector<1x96x32xf32> to vector<96x32xf32>
    %cst_422 = arith.constant dense<0.000000e+00> : vector<64x32xf32>
    %470 = tpu.matmul %467, %469, %cst_422 {dimension_numbers = #tpu.dot_dimension_numbers<[1], [0], [0], [1], [0, 0, 1, 1], [], []>} : vector<64x96xf32>, vector<96x32xf32>, vector<64x32xf32> -> vector<64x32xf32>
    %471 = arith.addf %465, %470 : vector<64x32xf32>
    %c2_423 = arith.constant 2 : index
    %c1_424 = arith.constant 1 : index
    %c0_425 = arith.constant 0 : index
    %472 = vector.load %arg13[%c2_423, %c1_424, %c0_425] : memref<12x12x96xf32, #tpu.memory_space<vmem>>, vector<8x8x96xf32>
    %473 = vector.shape_cast %472 : vector<8x8x96xf32> to vector<64x96xf32>
    %c11 = arith.constant 11 : index
    %c0_426 = arith.constant 0 : index
    %c0_427 = arith.constant 0 : index
    %474 = vector.load %arg7[%c11, %c0_426, %c0_427] : memref<25x96x32xf32, #tpu.memory_space<vmem>>, vector<1x96x32xf32>
    %475 = vector.shape_cast %474 : vector<1x96x32xf32> to vector<96x32xf32>
    %cst_428 = arith.constant dense<0.000000e+00> : vector<64x32xf32>
    %476 = tpu.matmul %473, %475, %cst_428 {dimension_numbers = #tpu.dot_dimension_numbers<[1], [0], [0], [1], [0, 0, 1, 1], [], []>} : vector<64x96xf32>, vector<96x32xf32>, vector<64x32xf32> -> vector<64x32xf32>
    %477 = arith.addf %471, %476 : vector<64x32xf32>
    %c2_429 = arith.constant 2 : index
    %c2_430 = arith.constant 2 : index
    %c0_431 = arith.constant 0 : index
    %478 = vector.load %arg13[%c2_429, %c2_430, %c0_431] : memref<12x12x96xf32, #tpu.memory_space<vmem>>, vector<8x8x96xf32>
    %479 = vector.shape_cast %478 : vector<8x8x96xf32> to vector<64x96xf32>
    %c12 = arith.constant 12 : index
    %c0_432 = arith.constant 0 : index
    %c0_433 = arith.constant 0 : index
    %480 = vector.load %arg7[%c12, %c0_432, %c0_433] : memref<25x96x32xf32, #tpu.memory_space<vmem>>, vector<1x96x32xf32>
    %481 = vector.shape_cast %480 : vector<1x96x32xf32> to vector<96x32xf32>
    %cst_434 = arith.constant dense<0.000000e+00> : vector<64x32xf32>
    %482 = tpu.matmul %479, %481, %cst_434 {dimension_numbers = #tpu.dot_dimension_numbers<[1], [0], [0], [1], [0, 0, 1, 1], [], []>} : vector<64x96xf32>, vector<96x32xf32>, vector<64x32xf32> -> vector<64x32xf32>
    %483 = arith.addf %477, %482 : vector<64x32xf32>
    %c2_435 = arith.constant 2 : index
    %c3_436 = arith.constant 3 : index
    %c0_437 = arith.constant 0 : index
    %484 = vector.load %arg13[%c2_435, %c3_436, %c0_437] : memref<12x12x96xf32, #tpu.memory_space<vmem>>, vector<8x8x96xf32>
    %485 = vector.shape_cast %484 : vector<8x8x96xf32> to vector<64x96xf32>
    %c13 = arith.constant 13 : index
    %c0_438 = arith.constant 0 : index
    %c0_439 = arith.constant 0 : index
    %486 = vector.load %arg7[%c13, %c0_438, %c0_439] : memref<25x96x32xf32, #tpu.memory_space<vmem>>, vector<1x96x32xf32>
    %487 = vector.shape_cast %486 : vector<1x96x32xf32> to vector<96x32xf32>
    %cst_440 = arith.constant dense<0.000000e+00> : vector<64x32xf32>
    %488 = tpu.matmul %485, %487, %cst_440 {dimension_numbers = #tpu.dot_dimension_numbers<[1], [0], [0], [1], [0, 0, 1, 1], [], []>} : vector<64x96xf32>, vector<96x32xf32>, vector<64x32xf32> -> vector<64x32xf32>
    %489 = arith.addf %483, %488 : vector<64x32xf32>
    %c2_441 = arith.constant 2 : index
    %c4_442 = arith.constant 4 : index
    %c0_443 = arith.constant 0 : index
    %490 = vector.load %arg13[%c2_441, %c4_442, %c0_443] : memref<12x12x96xf32, #tpu.memory_space<vmem>>, vector<8x8x96xf32>
    %491 = vector.shape_cast %490 : vector<8x8x96xf32> to vector<64x96xf32>
    %c14 = arith.constant 14 : index
    %c0_444 = arith.constant 0 : index
    %c0_445 = arith.constant 0 : index
    %492 = vector.load %arg7[%c14, %c0_444, %c0_445] : memref<25x96x32xf32, #tpu.memory_space<vmem>>, vector<1x96x32xf32>
    %493 = vector.shape_cast %492 : vector<1x96x32xf32> to vector<96x32xf32>
    %cst_446 = arith.constant dense<0.000000e+00> : vector<64x32xf32>
    %494 = tpu.matmul %491, %493, %cst_446 {dimension_numbers = #tpu.dot_dimension_numbers<[1], [0], [0], [1], [0, 0, 1, 1], [], []>} : vector<64x96xf32>, vector<96x32xf32>, vector<64x32xf32> -> vector<64x32xf32>
    %495 = arith.addf %489, %494 : vector<64x32xf32>
    %c3_447 = arith.constant 3 : index
    %c0_448 = arith.constant 0 : index
    %c0_449 = arith.constant 0 : index
    %496 = vector.load %arg13[%c3_447, %c0_448, %c0_449] : memref<12x12x96xf32, #tpu.memory_space<vmem>>, vector<8x8x96xf32>
    %497 = vector.shape_cast %496 : vector<8x8x96xf32> to vector<64x96xf32>
    %c15 = arith.constant 15 : index
    %c0_450 = arith.constant 0 : index
    %c0_451 = arith.constant 0 : index
    %498 = vector.load %arg7[%c15, %c0_450, %c0_451] : memref<25x96x32xf32, #tpu.memory_space<vmem>>, vector<1x96x32xf32>
    %499 = vector.shape_cast %498 : vector<1x96x32xf32> to vector<96x32xf32>
    %cst_452 = arith.constant dense<0.000000e+00> : vector<64x32xf32>
    %500 = tpu.matmul %497, %499, %cst_452 {dimension_numbers = #tpu.dot_dimension_numbers<[1], [0], [0], [1], [0, 0, 1, 1], [], []>} : vector<64x96xf32>, vector<96x32xf32>, vector<64x32xf32> -> vector<64x32xf32>
    %501 = arith.addf %495, %500 : vector<64x32xf32>
    %c3_453 = arith.constant 3 : index
    %c1_454 = arith.constant 1 : index
    %c0_455 = arith.constant 0 : index
    %502 = vector.load %arg13[%c3_453, %c1_454, %c0_455] : memref<12x12x96xf32, #tpu.memory_space<vmem>>, vector<8x8x96xf32>
    %503 = vector.shape_cast %502 : vector<8x8x96xf32> to vector<64x96xf32>
    %c16 = arith.constant 16 : index
    %c0_456 = arith.constant 0 : index
    %c0_457 = arith.constant 0 : index
    %504 = vector.load %arg7[%c16, %c0_456, %c0_457] : memref<25x96x32xf32, #tpu.memory_space<vmem>>, vector<1x96x32xf32>
    %505 = vector.shape_cast %504 : vector<1x96x32xf32> to vector<96x32xf32>
    %cst_458 = arith.constant dense<0.000000e+00> : vector<64x32xf32>
    %506 = tpu.matmul %503, %505, %cst_458 {dimension_numbers = #tpu.dot_dimension_numbers<[1], [0], [0], [1], [0, 0, 1, 1], [], []>} : vector<64x96xf32>, vector<96x32xf32>, vector<64x32xf32> -> vector<64x32xf32>
    %507 = arith.addf %501, %506 : vector<64x32xf32>
    %c3_459 = arith.constant 3 : index
    %c2_460 = arith.constant 2 : index
    %c0_461 = arith.constant 0 : index
    %508 = vector.load %arg13[%c3_459, %c2_460, %c0_461] : memref<12x12x96xf32, #tpu.memory_space<vmem>>, vector<8x8x96xf32>
    %509 = vector.shape_cast %508 : vector<8x8x96xf32> to vector<64x96xf32>
    %c17 = arith.constant 17 : index
    %c0_462 = arith.constant 0 : index
    %c0_463 = arith.constant 0 : index
    %510 = vector.load %arg7[%c17, %c0_462, %c0_463] : memref<25x96x32xf32, #tpu.memory_space<vmem>>, vector<1x96x32xf32>
    %511 = vector.shape_cast %510 : vector<1x96x32xf32> to vector<96x32xf32>
    %cst_464 = arith.constant dense<0.000000e+00> : vector<64x32xf32>
    %512 = tpu.matmul %509, %511, %cst_464 {dimension_numbers = #tpu.dot_dimension_numbers<[1], [0], [0], [1], [0, 0, 1, 1], [], []>} : vector<64x96xf32>, vector<96x32xf32>, vector<64x32xf32> -> vector<64x32xf32>
    %513 = arith.addf %507, %512 : vector<64x32xf32>
    %c3_465 = arith.constant 3 : index
    %c3_466 = arith.constant 3 : index
    %c0_467 = arith.constant 0 : index
    %514 = vector.load %arg13[%c3_465, %c3_466, %c0_467] : memref<12x12x96xf32, #tpu.memory_space<vmem>>, vector<8x8x96xf32>
    %515 = vector.shape_cast %514 : vector<8x8x96xf32> to vector<64x96xf32>
    %c18 = arith.constant 18 : index
    %c0_468 = arith.constant 0 : index
    %c0_469 = arith.constant 0 : index
    %516 = vector.load %arg7[%c18, %c0_468, %c0_469] : memref<25x96x32xf32, #tpu.memory_space<vmem>>, vector<1x96x32xf32>
    %517 = vector.shape_cast %516 : vector<1x96x32xf32> to vector<96x32xf32>
    %cst_470 = arith.constant dense<0.000000e+00> : vector<64x32xf32>
    %518 = tpu.matmul %515, %517, %cst_470 {dimension_numbers = #tpu.dot_dimension_numbers<[1], [0], [0], [1], [0, 0, 1, 1], [], []>} : vector<64x96xf32>, vector<96x32xf32>, vector<64x32xf32> -> vector<64x32xf32>
    %519 = arith.addf %513, %518 : vector<64x32xf32>
    %c3_471 = arith.constant 3 : index
    %c4_472 = arith.constant 4 : index
    %c0_473 = arith.constant 0 : index
    %520 = vector.load %arg13[%c3_471, %c4_472, %c0_473] : memref<12x12x96xf32, #tpu.memory_space<vmem>>, vector<8x8x96xf32>
    %521 = vector.shape_cast %520 : vector<8x8x96xf32> to vector<64x96xf32>
    %c19 = arith.constant 19 : index
    %c0_474 = arith.constant 0 : index
    %c0_475 = arith.constant 0 : index
    %522 = vector.load %arg7[%c19, %c0_474, %c0_475] : memref<25x96x32xf32, #tpu.memory_space<vmem>>, vector<1x96x32xf32>
    %523 = vector.shape_cast %522 : vector<1x96x32xf32> to vector<96x32xf32>
    %cst_476 = arith.constant dense<0.000000e+00> : vector<64x32xf32>
    %524 = tpu.matmul %521, %523, %cst_476 {dimension_numbers = #tpu.dot_dimension_numbers<[1], [0], [0], [1], [0, 0, 1, 1], [], []>} : vector<64x96xf32>, vector<96x32xf32>, vector<64x32xf32> -> vector<64x32xf32>
    %525 = arith.addf %519, %524 : vector<64x32xf32>
    %c4_477 = arith.constant 4 : index
    %c0_478 = arith.constant 0 : index
    %c0_479 = arith.constant 0 : index
    %526 = vector.load %arg13[%c4_477, %c0_478, %c0_479] : memref<12x12x96xf32, #tpu.memory_space<vmem>>, vector<8x8x96xf32>
    %527 = vector.shape_cast %526 : vector<8x8x96xf32> to vector<64x96xf32>
    %c20 = arith.constant 20 : index
    %c0_480 = arith.constant 0 : index
    %c0_481 = arith.constant 0 : index
    %528 = vector.load %arg7[%c20, %c0_480, %c0_481] : memref<25x96x32xf32, #tpu.memory_space<vmem>>, vector<1x96x32xf32>
    %529 = vector.shape_cast %528 : vector<1x96x32xf32> to vector<96x32xf32>
    %cst_482 = arith.constant dense<0.000000e+00> : vector<64x32xf32>
    %530 = tpu.matmul %527, %529, %cst_482 {dimension_numbers = #tpu.dot_dimension_numbers<[1], [0], [0], [1], [0, 0, 1, 1], [], []>} : vector<64x96xf32>, vector<96x32xf32>, vector<64x32xf32> -> vector<64x32xf32>
    %531 = arith.addf %525, %530 : vector<64x32xf32>
    %c4_483 = arith.constant 4 : index
    %c1_484 = arith.constant 1 : index
    %c0_485 = arith.constant 0 : index
    %532 = vector.load %arg13[%c4_483, %c1_484, %c0_485] : memref<12x12x96xf32, #tpu.memory_space<vmem>>, vector<8x8x96xf32>
    %533 = vector.shape_cast %532 : vector<8x8x96xf32> to vector<64x96xf32>
    %c21 = arith.constant 21 : index
    %c0_486 = arith.constant 0 : index
    %c0_487 = arith.constant 0 : index
    %534 = vector.load %arg7[%c21, %c0_486, %c0_487] : memref<25x96x32xf32, #tpu.memory_space<vmem>>, vector<1x96x32xf32>
    %535 = vector.shape_cast %534 : vector<1x96x32xf32> to vector<96x32xf32>
    %cst_488 = arith.constant dense<0.000000e+00> : vector<64x32xf32>
    %536 = tpu.matmul %533, %535, %cst_488 {dimension_numbers = #tpu.dot_dimension_numbers<[1], [0], [0], [1], [0, 0, 1, 1], [], []>} : vector<64x96xf32>, vector<96x32xf32>, vector<64x32xf32> -> vector<64x32xf32>
    %537 = arith.addf %531, %536 : vector<64x32xf32>
    %c4_489 = arith.constant 4 : index
    %c2_490 = arith.constant 2 : index
    %c0_491 = arith.constant 0 : index
    %538 = vector.load %arg13[%c4_489, %c2_490, %c0_491] : memref<12x12x96xf32, #tpu.memory_space<vmem>>, vector<8x8x96xf32>
    %539 = vector.shape_cast %538 : vector<8x8x96xf32> to vector<64x96xf32>
    %c22 = arith.constant 22 : index
    %c0_492 = arith.constant 0 : index
    %c0_493 = arith.constant 0 : index
    %540 = vector.load %arg7[%c22, %c0_492, %c0_493] : memref<25x96x32xf32, #tpu.memory_space<vmem>>, vector<1x96x32xf32>
    %541 = vector.shape_cast %540 : vector<1x96x32xf32> to vector<96x32xf32>
    %cst_494 = arith.constant dense<0.000000e+00> : vector<64x32xf32>
    %542 = tpu.matmul %539, %541, %cst_494 {dimension_numbers = #tpu.dot_dimension_numbers<[1], [0], [0], [1], [0, 0, 1, 1], [], []>} : vector<64x96xf32>, vector<96x32xf32>, vector<64x32xf32> -> vector<64x32xf32>
    %543 = arith.addf %537, %542 : vector<64x32xf32>
    %c4_495 = arith.constant 4 : index
    %c3_496 = arith.constant 3 : index
    %c0_497 = arith.constant 0 : index
    %544 = vector.load %arg13[%c4_495, %c3_496, %c0_497] : memref<12x12x96xf32, #tpu.memory_space<vmem>>, vector<8x8x96xf32>
    %545 = vector.shape_cast %544 : vector<8x8x96xf32> to vector<64x96xf32>
    %c23 = arith.constant 23 : index
    %c0_498 = arith.constant 0 : index
    %c0_499 = arith.constant 0 : index
    %546 = vector.load %arg7[%c23, %c0_498, %c0_499] : memref<25x96x32xf32, #tpu.memory_space<vmem>>, vector<1x96x32xf32>
    %547 = vector.shape_cast %546 : vector<1x96x32xf32> to vector<96x32xf32>
    %cst_500 = arith.constant dense<0.000000e+00> : vector<64x32xf32>
    %548 = tpu.matmul %545, %547, %cst_500 {dimension_numbers = #tpu.dot_dimension_numbers<[1], [0], [0], [1], [0, 0, 1, 1], [], []>} : vector<64x96xf32>, vector<96x32xf32>, vector<64x32xf32> -> vector<64x32xf32>
    %549 = arith.addf %543, %548 : vector<64x32xf32>
    %c4_501 = arith.constant 4 : index
    %c4_502 = arith.constant 4 : index
    %c0_503 = arith.constant 0 : index
    %550 = vector.load %arg13[%c4_501, %c4_502, %c0_503] : memref<12x12x96xf32, #tpu.memory_space<vmem>>, vector<8x8x96xf32>
    %551 = vector.shape_cast %550 : vector<8x8x96xf32> to vector<64x96xf32>
    %c24 = arith.constant 24 : index
    %c0_504 = arith.constant 0 : index
    %c0_505 = arith.constant 0 : index
    %552 = vector.load %arg7[%c24, %c0_504, %c0_505] : memref<25x96x32xf32, #tpu.memory_space<vmem>>, vector<1x96x32xf32>
    %553 = vector.shape_cast %552 : vector<1x96x32xf32> to vector<96x32xf32>
    %cst_506 = arith.constant dense<0.000000e+00> : vector<64x32xf32>
    %554 = tpu.matmul %551, %553, %cst_506 {dimension_numbers = #tpu.dot_dimension_numbers<[1], [0], [0], [1], [0, 0, 1, 1], [], []>} : vector<64x96xf32>, vector<96x32xf32>, vector<64x32xf32> -> vector<64x32xf32>
    %555 = arith.addf %549, %554 : vector<64x32xf32>
    %c0_507 = arith.constant 0 : index
    %c0_508 = arith.constant 0 : index
    %556 = vector.load %arg8[%c0_507, %c0_508] : memref<1x32xf32, #tpu.memory_space<vmem>>, vector<1x32xf32>
    %557 = vector.broadcast %556 : vector<1x32xf32> to vector<64x32xf32>
    %558 = arith.addf %555, %557 : vector<64x32xf32>
    %cst_509 = arith.constant 0.000000e+00 : f32
    %559 = vector.broadcast %cst_509 : f32 to vector<64x32xf32>
    %560 = arith.maximumf %558, %559 : vector<64x32xf32>
    %561 = vector.extract_strided_slice %560 {offsets = [0, 0], sizes = [8, 32], strides = [1, 1]} : vector<64x32xf32> to vector<8x32xf32>
    %c2_510 = arith.constant 2 : index
    %c2_511 = arith.constant 2 : index
    %c8_512 = arith.constant 8 : index
    %562 = vector.load %arg14[%c2_510, %c2_511, %c8_512] : memref<12x12x48xf32, #tpu.memory_space<vmem>>, vector<1x8x32xf32>
    %563 = vector.shape_cast %562 : vector<1x8x32xf32> to vector<8x32xf32>
    %564 = vector.shape_cast %561 : vector<8x32xf32> to vector<1x8x32xf32>
    tpu.vector_store %arg14[%c2_510, %c2_511, %c8_512], %564 {strides = array<i32>} : memref<12x12x48xf32, #tpu.memory_space<vmem>>, vector<1x8x32xf32>,
    %565 = vector.extract_strided_slice %560 {offsets = [8, 0], sizes = [8, 32], strides = [1, 1]} : vector<64x32xf32> to vector<8x32xf32>
    %c3_513 = arith.constant 3 : index
    %c2_514 = arith.constant 2 : index
    %c8_515 = arith.constant 8 : index
    %566 = vector.load %arg14[%c3_513, %c2_514, %c8_515] : memref<12x12x48xf32, #tpu.memory_space<vmem>>, vector<1x8x32xf32>
    %567 = vector.shape_cast %566 : vector<1x8x32xf32> to vector<8x32xf32>
    %568 = vector.shape_cast %565 : vector<8x32xf32> to vector<1x8x32xf32>
    tpu.vector_store %arg14[%c3_513, %c2_514, %c8_515], %568 {strides = array<i32>} : memref<12x12x48xf32, #tpu.memory_space<vmem>>, vector<1x8x32xf32>,
    %569 = vector.extract_strided_slice %560 {offsets = [16, 0], sizes = [8, 32], strides = [1, 1]} : vector<64x32xf32> to vector<8x32xf32>
    %c4_516 = arith.constant 4 : index
    %c2_517 = arith.constant 2 : index
    %c8_518 = arith.constant 8 : index
    %570 = vector.load %arg14[%c4_516, %c2_517, %c8_518] : memref<12x12x48xf32, #tpu.memory_space<vmem>>, vector<1x8x32xf32>
    %571 = vector.shape_cast %570 : vector<1x8x32xf32> to vector<8x32xf32>
    %572 = vector.shape_cast %569 : vector<8x32xf32> to vector<1x8x32xf32>
    tpu.vector_store %arg14[%c4_516, %c2_517, %c8_518], %572 {strides = array<i32>} : memref<12x12x48xf32, #tpu.memory_space<vmem>>, vector<1x8x32xf32>,
    %573 = vector.extract_strided_slice %560 {offsets = [24, 0], sizes = [8, 32], strides = [1, 1]} : vector<64x32xf32> to vector<8x32xf32>
    %c5_519 = arith.constant 5 : index
    %c2_520 = arith.constant 2 : index
    %c8_521 = arith.constant 8 : index
    %574 = vector.load %arg14[%c5_519, %c2_520, %c8_521] : memref<12x12x48xf32, #tpu.memory_space<vmem>>, vector<1x8x32xf32>
    %575 = vector.shape_cast %574 : vector<1x8x32xf32> to vector<8x32xf32>
    %576 = vector.shape_cast %573 : vector<8x32xf32> to vector<1x8x32xf32>
    tpu.vector_store %arg14[%c5_519, %c2_520, %c8_521], %576 {strides = array<i32>} : memref<12x12x48xf32, #tpu.memory_space<vmem>>, vector<1x8x32xf32>,
    %577 = vector.extract_strided_slice %560 {offsets = [32, 0], sizes = [8, 32], strides = [1, 1]} : vector<64x32xf32> to vector<8x32xf32>
    %c6_522 = arith.constant 6 : index
    %c2_523 = arith.constant 2 : index
    %c8_524 = arith.constant 8 : index
    %578 = vector.load %arg14[%c6_522, %c2_523, %c8_524] : memref<12x12x48xf32, #tpu.memory_space<vmem>>, vector<1x8x32xf32>
    %579 = vector.shape_cast %578 : vector<1x8x32xf32> to vector<8x32xf32>
    %580 = vector.shape_cast %577 : vector<8x32xf32> to vector<1x8x32xf32>
    tpu.vector_store %arg14[%c6_522, %c2_523, %c8_524], %580 {strides = array<i32>} : memref<12x12x48xf32, #tpu.memory_space<vmem>>, vector<1x8x32xf32>,
    %581 = vector.extract_strided_slice %560 {offsets = [40, 0], sizes = [8, 32], strides = [1, 1]} : vector<64x32xf32> to vector<8x32xf32>
    %c7_525 = arith.constant 7 : index
    %c2_526 = arith.constant 2 : index
    %c8_527 = arith.constant 8 : index
    %582 = vector.load %arg14[%c7_525, %c2_526, %c8_527] : memref<12x12x48xf32, #tpu.memory_space<vmem>>, vector<1x8x32xf32>
    %583 = vector.shape_cast %582 : vector<1x8x32xf32> to vector<8x32xf32>
    %584 = vector.shape_cast %581 : vector<8x32xf32> to vector<1x8x32xf32>
    tpu.vector_store %arg14[%c7_525, %c2_526, %c8_527], %584 {strides = array<i32>} : memref<12x12x48xf32, #tpu.memory_space<vmem>>, vector<1x8x32xf32>,
    %585 = vector.extract_strided_slice %560 {offsets = [48, 0], sizes = [8, 32], strides = [1, 1]} : vector<64x32xf32> to vector<8x32xf32>
    %c8_528 = arith.constant 8 : index
    %c2_529 = arith.constant 2 : index
    %c8_530 = arith.constant 8 : index
    %586 = vector.load %arg14[%c8_528, %c2_529, %c8_530] : memref<12x12x48xf32, #tpu.memory_space<vmem>>, vector<1x8x32xf32>
    %587 = vector.shape_cast %586 : vector<1x8x32xf32> to vector<8x32xf32>
    %588 = vector.shape_cast %585 : vector<8x32xf32> to vector<1x8x32xf32>
    tpu.vector_store %arg14[%c8_528, %c2_529, %c8_530], %588 {strides = array<i32>} : memref<12x12x48xf32, #tpu.memory_space<vmem>>, vector<1x8x32xf32>,
    %589 = vector.extract_strided_slice %560 {offsets = [56, 0], sizes = [8, 32], strides = [1, 1]} : vector<64x32xf32> to vector<8x32xf32>
    %c9_531 = arith.constant 9 : index
    %c2_532 = arith.constant 2 : index
    %c8_533 = arith.constant 8 : index
    %590 = vector.load %arg14[%c9_531, %c2_532, %c8_533] : memref<12x12x48xf32, #tpu.memory_space<vmem>>, vector<1x8x32xf32>
    %591 = vector.shape_cast %590 : vector<1x8x32xf32> to vector<8x32xf32>
    %592 = vector.shape_cast %589 : vector<8x32xf32> to vector<1x8x32xf32>
    tpu.vector_store %arg14[%c9_531, %c2_532, %c8_533], %592 {strides = array<i32>} : memref<12x12x48xf32, #tpu.memory_space<vmem>>, vector<1x8x32xf32>,
    %cst_534 = arith.constant 0.000000e+00 : f32
    %593 = vector.broadcast %cst_534 : f32 to vector<64x32xf32>
    %c0_535 = arith.constant 0 : index
    %c0_536 = arith.constant 0 : index
    %c0_537 = arith.constant 0 : index
    %594 = vector.load %arg14[%c0_535, %c0_536, %c0_537] : memref<12x12x48xf32, #tpu.memory_space<vmem>>, vector<8x8x48xf32>
    %595 = vector.shape_cast %594 : vector<8x8x48xf32> to vector<64x48xf32>
    %c0_538 = arith.constant 0 : index
    %c0_539 = arith.constant 0 : index
    %c0_540 = arith.constant 0 : index
    %596 = vector.load %arg9[%c0_538, %c0_539, %c0_540] : memref<25x48x32xf32, #tpu.memory_space<vmem>>, vector<1x48x32xf32>
    %597 = vector.shape_cast %596 : vector<1x48x32xf32> to vector<48x32xf32>
    %cst_541 = arith.constant dense<0.000000e+00> : vector<64x32xf32>
    %598 = tpu.matmul %595, %597, %cst_541 {dimension_numbers = #tpu.dot_dimension_numbers<[1], [0], [0], [1], [0, 0, 1, 1], [], []>} : vector<64x48xf32>, vector<48x32xf32>, vector<64x32xf32> -> vector<64x32xf32>
    %599 = arith.addf %593, %598 : vector<64x32xf32>
    %c0_542 = arith.constant 0 : index
    %c1_543 = arith.constant 1 : index
    %c0_544 = arith.constant 0 : index
    %600 = vector.load %arg14[%c0_542, %c1_543, %c0_544] : memref<12x12x48xf32, #tpu.memory_space<vmem>>, vector<8x8x48xf32>
    %601 = vector.shape_cast %600 : vector<8x8x48xf32> to vector<64x48xf32>
    %c1_545 = arith.constant 1 : index
    %c0_546 = arith.constant 0 : index
    %c0_547 = arith.constant 0 : index
    %602 = vector.load %arg9[%c1_545, %c0_546, %c0_547] : memref<25x48x32xf32, #tpu.memory_space<vmem>>, vector<1x48x32xf32>
    %603 = vector.shape_cast %602 : vector<1x48x32xf32> to vector<48x32xf32>
    %cst_548 = arith.constant dense<0.000000e+00> : vector<64x32xf32>
    %604 = tpu.matmul %601, %603, %cst_548 {dimension_numbers = #tpu.dot_dimension_numbers<[1], [0], [0], [1], [0, 0, 1, 1], [], []>} : vector<64x48xf32>, vector<48x32xf32>, vector<64x32xf32> -> vector<64x32xf32>
    %605 = arith.addf %599, %604 : vector<64x32xf32>
    %c0_549 = arith.constant 0 : index
    %c2_550 = arith.constant 2 : index
    %c0_551 = arith.constant 0 : index
    %606 = vector.load %arg14[%c0_549, %c2_550, %c0_551] : memref<12x12x48xf32, #tpu.memory_space<vmem>>, vector<8x8x48xf32>
    %607 = vector.shape_cast %606 : vector<8x8x48xf32> to vector<64x48xf32>
    %c2_552 = arith.constant 2 : index
    %c0_553 = arith.constant 0 : index
    %c0_554 = arith.constant 0 : index
    %608 = vector.load %arg9[%c2_552, %c0_553, %c0_554] : memref<25x48x32xf32, #tpu.memory_space<vmem>>, vector<1x48x32xf32>
    %609 = vector.shape_cast %608 : vector<1x48x32xf32> to vector<48x32xf32>
    %cst_555 = arith.constant dense<0.000000e+00> : vector<64x32xf32>
    %610 = tpu.matmul %607, %609, %cst_555 {dimension_numbers = #tpu.dot_dimension_numbers<[1], [0], [0], [1], [0, 0, 1, 1], [], []>} : vector<64x48xf32>, vector<48x32xf32>, vector<64x32xf32> -> vector<64x32xf32>
    %611 = arith.addf %605, %610 : vector<64x32xf32>
    %c0_556 = arith.constant 0 : index
    %c3_557 = arith.constant 3 : index
    %c0_558 = arith.constant 0 : index
    %612 = vector.load %arg14[%c0_556, %c3_557, %c0_558] : memref<12x12x48xf32, #tpu.memory_space<vmem>>, vector<8x8x48xf32>
    %613 = vector.shape_cast %612 : vector<8x8x48xf32> to vector<64x48xf32>
    %c3_559 = arith.constant 3 : index
    %c0_560 = arith.constant 0 : index
    %c0_561 = arith.constant 0 : index
    %614 = vector.load %arg9[%c3_559, %c0_560, %c0_561] : memref<25x48x32xf32, #tpu.memory_space<vmem>>, vector<1x48x32xf32>
    %615 = vector.shape_cast %614 : vector<1x48x32xf32> to vector<48x32xf32>
    %cst_562 = arith.constant dense<0.000000e+00> : vector<64x32xf32>
    %616 = tpu.matmul %613, %615, %cst_562 {dimension_numbers = #tpu.dot_dimension_numbers<[1], [0], [0], [1], [0, 0, 1, 1], [], []>} : vector<64x48xf32>, vector<48x32xf32>, vector<64x32xf32> -> vector<64x32xf32>
    %617 = arith.addf %611, %616 : vector<64x32xf32>
    %c0_563 = arith.constant 0 : index
    %c4_564 = arith.constant 4 : index
    %c0_565 = arith.constant 0 : index
    %618 = vector.load %arg14[%c0_563, %c4_564, %c0_565] : memref<12x12x48xf32, #tpu.memory_space<vmem>>, vector<8x8x48xf32>
    %619 = vector.shape_cast %618 : vector<8x8x48xf32> to vector<64x48xf32>
    %c4_566 = arith.constant 4 : index
    %c0_567 = arith.constant 0 : index
    %c0_568 = arith.constant 0 : index
    %620 = vector.load %arg9[%c4_566, %c0_567, %c0_568] : memref<25x48x32xf32, #tpu.memory_space<vmem>>, vector<1x48x32xf32>
    %621 = vector.shape_cast %620 : vector<1x48x32xf32> to vector<48x32xf32>
    %cst_569 = arith.constant dense<0.000000e+00> : vector<64x32xf32>
    %622 = tpu.matmul %619, %621, %cst_569 {dimension_numbers = #tpu.dot_dimension_numbers<[1], [0], [0], [1], [0, 0, 1, 1], [], []>} : vector<64x48xf32>, vector<48x32xf32>, vector<64x32xf32> -> vector<64x32xf32>
    %623 = arith.addf %617, %622 : vector<64x32xf32>
    %c1_570 = arith.constant 1 : index
    %c0_571 = arith.constant 0 : index
    %c0_572 = arith.constant 0 : index
    %624 = vector.load %arg14[%c1_570, %c0_571, %c0_572] : memref<12x12x48xf32, #tpu.memory_space<vmem>>, vector<8x8x48xf32>
    %625 = vector.shape_cast %624 : vector<8x8x48xf32> to vector<64x48xf32>
    %c5_573 = arith.constant 5 : index
    %c0_574 = arith.constant 0 : index
    %c0_575 = arith.constant 0 : index
    %626 = vector.load %arg9[%c5_573, %c0_574, %c0_575] : memref<25x48x32xf32, #tpu.memory_space<vmem>>, vector<1x48x32xf32>
    %627 = vector.shape_cast %626 : vector<1x48x32xf32> to vector<48x32xf32>
    %cst_576 = arith.constant dense<0.000000e+00> : vector<64x32xf32>
    %628 = tpu.matmul %625, %627, %cst_576 {dimension_numbers = #tpu.dot_dimension_numbers<[1], [0], [0], [1], [0, 0, 1, 1], [], []>} : vector<64x48xf32>, vector<48x32xf32>, vector<64x32xf32> -> vector<64x32xf32>
    %629 = arith.addf %623, %628 : vector<64x32xf32>
    %c1_577 = arith.constant 1 : index
    %c1_578 = arith.constant 1 : index
    %c0_579 = arith.constant 0 : index
    %630 = vector.load %arg14[%c1_577, %c1_578, %c0_579] : memref<12x12x48xf32, #tpu.memory_space<vmem>>, vector<8x8x48xf32>
    %631 = vector.shape_cast %630 : vector<8x8x48xf32> to vector<64x48xf32>
    %c6_580 = arith.constant 6 : index
    %c0_581 = arith.constant 0 : index
    %c0_582 = arith.constant 0 : index
    %632 = vector.load %arg9[%c6_580, %c0_581, %c0_582] : memref<25x48x32xf32, #tpu.memory_space<vmem>>, vector<1x48x32xf32>
    %633 = vector.shape_cast %632 : vector<1x48x32xf32> to vector<48x32xf32>
    %cst_583 = arith.constant dense<0.000000e+00> : vector<64x32xf32>
    %634 = tpu.matmul %631, %633, %cst_583 {dimension_numbers = #tpu.dot_dimension_numbers<[1], [0], [0], [1], [0, 0, 1, 1], [], []>} : vector<64x48xf32>, vector<48x32xf32>, vector<64x32xf32> -> vector<64x32xf32>
    %635 = arith.addf %629, %634 : vector<64x32xf32>
    %c1_584 = arith.constant 1 : index
    %c2_585 = arith.constant 2 : index
    %c0_586 = arith.constant 0 : index
    %636 = vector.load %arg14[%c1_584, %c2_585, %c0_586] : memref<12x12x48xf32, #tpu.memory_space<vmem>>, vector<8x8x48xf32>
    %637 = vector.shape_cast %636 : vector<8x8x48xf32> to vector<64x48xf32>
    %c7_587 = arith.constant 7 : index
    %c0_588 = arith.constant 0 : index
    %c0_589 = arith.constant 0 : index
    %638 = vector.load %arg9[%c7_587, %c0_588, %c0_589] : memref<25x48x32xf32, #tpu.memory_space<vmem>>, vector<1x48x32xf32>
    %639 = vector.shape_cast %638 : vector<1x48x32xf32> to vector<48x32xf32>
    %cst_590 = arith.constant dense<0.000000e+00> : vector<64x32xf32>
    %640 = tpu.matmul %637, %639, %cst_590 {dimension_numbers = #tpu.dot_dimension_numbers<[1], [0], [0], [1], [0, 0, 1, 1], [], []>} : vector<64x48xf32>, vector<48x32xf32>, vector<64x32xf32> -> vector<64x32xf32>
    %641 = arith.addf %635, %640 : vector<64x32xf32>
    %c1_591 = arith.constant 1 : index
    %c3_592 = arith.constant 3 : index
    %c0_593 = arith.constant 0 : index
    %642 = vector.load %arg14[%c1_591, %c3_592, %c0_593] : memref<12x12x48xf32, #tpu.memory_space<vmem>>, vector<8x8x48xf32>
    %643 = vector.shape_cast %642 : vector<8x8x48xf32> to vector<64x48xf32>
    %c8_594 = arith.constant 8 : index
    %c0_595 = arith.constant 0 : index
    %c0_596 = arith.constant 0 : index
    %644 = vector.load %arg9[%c8_594, %c0_595, %c0_596] : memref<25x48x32xf32, #tpu.memory_space<vmem>>, vector<1x48x32xf32>
    %645 = vector.shape_cast %644 : vector<1x48x32xf32> to vector<48x32xf32>
    %cst_597 = arith.constant dense<0.000000e+00> : vector<64x32xf32>
    %646 = tpu.matmul %643, %645, %cst_597 {dimension_numbers = #tpu.dot_dimension_numbers<[1], [0], [0], [1], [0, 0, 1, 1], [], []>} : vector<64x48xf32>, vector<48x32xf32>, vector<64x32xf32> -> vector<64x32xf32>
    %647 = arith.addf %641, %646 : vector<64x32xf32>
    %c1_598 = arith.constant 1 : index
    %c4_599 = arith.constant 4 : index
    %c0_600 = arith.constant 0 : index
    %648 = vector.load %arg14[%c1_598, %c4_599, %c0_600] : memref<12x12x48xf32, #tpu.memory_space<vmem>>, vector<8x8x48xf32>
    %649 = vector.shape_cast %648 : vector<8x8x48xf32> to vector<64x48xf32>
    %c9_601 = arith.constant 9 : index
    %c0_602 = arith.constant 0 : index
    %c0_603 = arith.constant 0 : index
    %650 = vector.load %arg9[%c9_601, %c0_602, %c0_603] : memref<25x48x32xf32, #tpu.memory_space<vmem>>, vector<1x48x32xf32>
    %651 = vector.shape_cast %650 : vector<1x48x32xf32> to vector<48x32xf32>
    %cst_604 = arith.constant dense<0.000000e+00> : vector<64x32xf32>
    %652 = tpu.matmul %649, %651, %cst_604 {dimension_numbers = #tpu.dot_dimension_numbers<[1], [0], [0], [1], [0, 0, 1, 1], [], []>} : vector<64x48xf32>, vector<48x32xf32>, vector<64x32xf32> -> vector<64x32xf32>
    %653 = arith.addf %647, %652 : vector<64x32xf32>
    %c2_605 = arith.constant 2 : index
    %c0_606 = arith.constant 0 : index
    %c0_607 = arith.constant 0 : index
    %654 = vector.load %arg14[%c2_605, %c0_606, %c0_607] : memref<12x12x48xf32, #tpu.memory_space<vmem>>, vector<8x8x48xf32>
    %655 = vector.shape_cast %654 : vector<8x8x48xf32> to vector<64x48xf32>
    %c10_608 = arith.constant 10 : index
    %c0_609 = arith.constant 0 : index
    %c0_610 = arith.constant 0 : index
    %656 = vector.load %arg9[%c10_608, %c0_609, %c0_610] : memref<25x48x32xf32, #tpu.memory_space<vmem>>, vector<1x48x32xf32>
    %657 = vector.shape_cast %656 : vector<1x48x32xf32> to vector<48x32xf32>
    %cst_611 = arith.constant dense<0.000000e+00> : vector<64x32xf32>
    %658 = tpu.matmul %655, %657, %cst_611 {dimension_numbers = #tpu.dot_dimension_numbers<[1], [0], [0], [1], [0, 0, 1, 1], [], []>} : vector<64x48xf32>, vector<48x32xf32>, vector<64x32xf32> -> vector<64x32xf32>
    %659 = arith.addf %653, %658 : vector<64x32xf32>
    %c2_612 = arith.constant 2 : index
    %c1_613 = arith.constant 1 : index
    %c0_614 = arith.constant 0 : index
    %660 = vector.load %arg14[%c2_612, %c1_613, %c0_614] : memref<12x12x48xf32, #tpu.memory_space<vmem>>, vector<8x8x48xf32>
    %661 = vector.shape_cast %660 : vector<8x8x48xf32> to vector<64x48xf32>
    %c11_615 = arith.constant 11 : index
    %c0_616 = arith.constant 0 : index
    %c0_617 = arith.constant 0 : index
    %662 = vector.load %arg9[%c11_615, %c0_616, %c0_617] : memref<25x48x32xf32, #tpu.memory_space<vmem>>, vector<1x48x32xf32>
    %663 = vector.shape_cast %662 : vector<1x48x32xf32> to vector<48x32xf32>
    %cst_618 = arith.constant dense<0.000000e+00> : vector<64x32xf32>
    %664 = tpu.matmul %661, %663, %cst_618 {dimension_numbers = #tpu.dot_dimension_numbers<[1], [0], [0], [1], [0, 0, 1, 1], [], []>} : vector<64x48xf32>, vector<48x32xf32>, vector<64x32xf32> -> vector<64x32xf32>
    %665 = arith.addf %659, %664 : vector<64x32xf32>
    %c2_619 = arith.constant 2 : index
    %c2_620 = arith.constant 2 : index
    %c0_621 = arith.constant 0 : index
    %666 = vector.load %arg14[%c2_619, %c2_620, %c0_621] : memref<12x12x48xf32, #tpu.memory_space<vmem>>, vector<8x8x48xf32>
    %667 = vector.shape_cast %666 : vector<8x8x48xf32> to vector<64x48xf32>
    %c12_622 = arith.constant 12 : index
    %c0_623 = arith.constant 0 : index
    %c0_624 = arith.constant 0 : index
    %668 = vector.load %arg9[%c12_622, %c0_623, %c0_624] : memref<25x48x32xf32, #tpu.memory_space<vmem>>, vector<1x48x32xf32>
    %669 = vector.shape_cast %668 : vector<1x48x32xf32> to vector<48x32xf32>
    %cst_625 = arith.constant dense<0.000000e+00> : vector<64x32xf32>
    %670 = tpu.matmul %667, %669, %cst_625 {dimension_numbers = #tpu.dot_dimension_numbers<[1], [0], [0], [1], [0, 0, 1, 1], [], []>} : vector<64x48xf32>, vector<48x32xf32>, vector<64x32xf32> -> vector<64x32xf32>
    %671 = arith.addf %665, %670 : vector<64x32xf32>
    %c2_626 = arith.constant 2 : index
    %c3_627 = arith.constant 3 : index
    %c0_628 = arith.constant 0 : index
    %672 = vector.load %arg14[%c2_626, %c3_627, %c0_628] : memref<12x12x48xf32, #tpu.memory_space<vmem>>, vector<8x8x48xf32>
    %673 = vector.shape_cast %672 : vector<8x8x48xf32> to vector<64x48xf32>
    %c13_629 = arith.constant 13 : index
    %c0_630 = arith.constant 0 : index
    %c0_631 = arith.constant 0 : index
    %674 = vector.load %arg9[%c13_629, %c0_630, %c0_631] : memref<25x48x32xf32, #tpu.memory_space<vmem>>, vector<1x48x32xf32>
    %675 = vector.shape_cast %674 : vector<1x48x32xf32> to vector<48x32xf32>
    %cst_632 = arith.constant dense<0.000000e+00> : vector<64x32xf32>
    %676 = tpu.matmul %673, %675, %cst_632 {dimension_numbers = #tpu.dot_dimension_numbers<[1], [0], [0], [1], [0, 0, 1, 1], [], []>} : vector<64x48xf32>, vector<48x32xf32>, vector<64x32xf32> -> vector<64x32xf32>
    %677 = arith.addf %671, %676 : vector<64x32xf32>
    %c2_633 = arith.constant 2 : index
    %c4_634 = arith.constant 4 : index
    %c0_635 = arith.constant 0 : index
    %678 = vector.load %arg14[%c2_633, %c4_634, %c0_635] : memref<12x12x48xf32, #tpu.memory_space<vmem>>, vector<8x8x48xf32>
    %679 = vector.shape_cast %678 : vector<8x8x48xf32> to vector<64x48xf32>
    %c14_636 = arith.constant 14 : index
    %c0_637 = arith.constant 0 : index
    %c0_638 = arith.constant 0 : index
    %680 = vector.load %arg9[%c14_636, %c0_637, %c0_638] : memref<25x48x32xf32, #tpu.memory_space<vmem>>, vector<1x48x32xf32>
    %681 = vector.shape_cast %680 : vector<1x48x32xf32> to vector<48x32xf32>
    %cst_639 = arith.constant dense<0.000000e+00> : vector<64x32xf32>
    %682 = tpu.matmul %679, %681, %cst_639 {dimension_numbers = #tpu.dot_dimension_numbers<[1], [0], [0], [1], [0, 0, 1, 1], [], []>} : vector<64x48xf32>, vector<48x32xf32>, vector<64x32xf32> -> vector<64x32xf32>
    %683 = arith.addf %677, %682 : vector<64x32xf32>
    %c3_640 = arith.constant 3 : index
    %c0_641 = arith.constant 0 : index
    %c0_642 = arith.constant 0 : index
    %684 = vector.load %arg14[%c3_640, %c0_641, %c0_642] : memref<12x12x48xf32, #tpu.memory_space<vmem>>, vector<8x8x48xf32>
    %685 = vector.shape_cast %684 : vector<8x8x48xf32> to vector<64x48xf32>
    %c15_643 = arith.constant 15 : index
    %c0_644 = arith.constant 0 : index
    %c0_645 = arith.constant 0 : index
    %686 = vector.load %arg9[%c15_643, %c0_644, %c0_645] : memref<25x48x32xf32, #tpu.memory_space<vmem>>, vector<1x48x32xf32>
    %687 = vector.shape_cast %686 : vector<1x48x32xf32> to vector<48x32xf32>
    %cst_646 = arith.constant dense<0.000000e+00> : vector<64x32xf32>
    %688 = tpu.matmul %685, %687, %cst_646 {dimension_numbers = #tpu.dot_dimension_numbers<[1], [0], [0], [1], [0, 0, 1, 1], [], []>} : vector<64x48xf32>, vector<48x32xf32>, vector<64x32xf32> -> vector<64x32xf32>
    %689 = arith.addf %683, %688 : vector<64x32xf32>
    %c3_647 = arith.constant 3 : index
    %c1_648 = arith.constant 1 : index
    %c0_649 = arith.constant 0 : index
    %690 = vector.load %arg14[%c3_647, %c1_648, %c0_649] : memref<12x12x48xf32, #tpu.memory_space<vmem>>, vector<8x8x48xf32>
    %691 = vector.shape_cast %690 : vector<8x8x48xf32> to vector<64x48xf32>
    %c16_650 = arith.constant 16 : index
    %c0_651 = arith.constant 0 : index
    %c0_652 = arith.constant 0 : index
    %692 = vector.load %arg9[%c16_650, %c0_651, %c0_652] : memref<25x48x32xf32, #tpu.memory_space<vmem>>, vector<1x48x32xf32>
    %693 = vector.shape_cast %692 : vector<1x48x32xf32> to vector<48x32xf32>
    %cst_653 = arith.constant dense<0.000000e+00> : vector<64x32xf32>
    %694 = tpu.matmul %691, %693, %cst_653 {dimension_numbers = #tpu.dot_dimension_numbers<[1], [0], [0], [1], [0, 0, 1, 1], [], []>} : vector<64x48xf32>, vector<48x32xf32>, vector<64x32xf32> -> vector<64x32xf32>
    %695 = arith.addf %689, %694 : vector<64x32xf32>
    %c3_654 = arith.constant 3 : index
    %c2_655 = arith.constant 2 : index
    %c0_656 = arith.constant 0 : index
    %696 = vector.load %arg14[%c3_654, %c2_655, %c0_656] : memref<12x12x48xf32, #tpu.memory_space<vmem>>, vector<8x8x48xf32>
    %697 = vector.shape_cast %696 : vector<8x8x48xf32> to vector<64x48xf32>
    %c17_657 = arith.constant 17 : index
    %c0_658 = arith.constant 0 : index
    %c0_659 = arith.constant 0 : index
    %698 = vector.load %arg9[%c17_657, %c0_658, %c0_659] : memref<25x48x32xf32, #tpu.memory_space<vmem>>, vector<1x48x32xf32>
    %699 = vector.shape_cast %698 : vector<1x48x32xf32> to vector<48x32xf32>
    %cst_660 = arith.constant dense<0.000000e+00> : vector<64x32xf32>
    %700 = tpu.matmul %697, %699, %cst_660 {dimension_numbers = #tpu.dot_dimension_numbers<[1], [0], [0], [1], [0, 0, 1, 1], [], []>} : vector<64x48xf32>, vector<48x32xf32>, vector<64x32xf32> -> vector<64x32xf32>
    %701 = arith.addf %695, %700 : vector<64x32xf32>
    %c3_661 = arith.constant 3 : index
    %c3_662 = arith.constant 3 : index
    %c0_663 = arith.constant 0 : index
    %702 = vector.load %arg14[%c3_661, %c3_662, %c0_663] : memref<12x12x48xf32, #tpu.memory_space<vmem>>, vector<8x8x48xf32>
    %703 = vector.shape_cast %702 : vector<8x8x48xf32> to vector<64x48xf32>
    %c18_664 = arith.constant 18 : index
    %c0_665 = arith.constant 0 : index
    %c0_666 = arith.constant 0 : index
    %704 = vector.load %arg9[%c18_664, %c0_665, %c0_666] : memref<25x48x32xf32, #tpu.memory_space<vmem>>, vector<1x48x32xf32>
    %705 = vector.shape_cast %704 : vector<1x48x32xf32> to vector<48x32xf32>
    %cst_667 = arith.constant dense<0.000000e+00> : vector<64x32xf32>
    %706 = tpu.matmul %703, %705, %cst_667 {dimension_numbers = #tpu.dot_dimension_numbers<[1], [0], [0], [1], [0, 0, 1, 1], [], []>} : vector<64x48xf32>, vector<48x32xf32>, vector<64x32xf32> -> vector<64x32xf32>
    %707 = arith.addf %701, %706 : vector<64x32xf32>
    %c3_668 = arith.constant 3 : index
    %c4_669 = arith.constant 4 : index
    %c0_670 = arith.constant 0 : index
    %708 = vector.load %arg14[%c3_668, %c4_669, %c0_670] : memref<12x12x48xf32, #tpu.memory_space<vmem>>, vector<8x8x48xf32>
    %709 = vector.shape_cast %708 : vector<8x8x48xf32> to vector<64x48xf32>
    %c19_671 = arith.constant 19 : index
    %c0_672 = arith.constant 0 : index
    %c0_673 = arith.constant 0 : index
    %710 = vector.load %arg9[%c19_671, %c0_672, %c0_673] : memref<25x48x32xf32, #tpu.memory_space<vmem>>, vector<1x48x32xf32>
    %711 = vector.shape_cast %710 : vector<1x48x32xf32> to vector<48x32xf32>
    %cst_674 = arith.constant dense<0.000000e+00> : vector<64x32xf32>
    %712 = tpu.matmul %709, %711, %cst_674 {dimension_numbers = #tpu.dot_dimension_numbers<[1], [0], [0], [1], [0, 0, 1, 1], [], []>} : vector<64x48xf32>, vector<48x32xf32>, vector<64x32xf32> -> vector<64x32xf32>
    %713 = arith.addf %707, %712 : vector<64x32xf32>
    %c4_675 = arith.constant 4 : index
    %c0_676 = arith.constant 0 : index
    %c0_677 = arith.constant 0 : index
    %714 = vector.load %arg14[%c4_675, %c0_676, %c0_677] : memref<12x12x48xf32, #tpu.memory_space<vmem>>, vector<8x8x48xf32>
    %715 = vector.shape_cast %714 : vector<8x8x48xf32> to vector<64x48xf32>
    %c20_678 = arith.constant 20 : index
    %c0_679 = arith.constant 0 : index
    %c0_680 = arith.constant 0 : index
    %716 = vector.load %arg9[%c20_678, %c0_679, %c0_680] : memref<25x48x32xf32, #tpu.memory_space<vmem>>, vector<1x48x32xf32>
    %717 = vector.shape_cast %716 : vector<1x48x32xf32> to vector<48x32xf32>
    %cst_681 = arith.constant dense<0.000000e+00> : vector<64x32xf32>
    %718 = tpu.matmul %715, %717, %cst_681 {dimension_numbers = #tpu.dot_dimension_numbers<[1], [0], [0], [1], [0, 0, 1, 1], [], []>} : vector<64x48xf32>, vector<48x32xf32>, vector<64x32xf32> -> vector<64x32xf32>
    %719 = arith.addf %713, %718 : vector<64x32xf32>
    %c4_682 = arith.constant 4 : index
    %c1_683 = arith.constant 1 : index
    %c0_684 = arith.constant 0 : index
    %720 = vector.load %arg14[%c4_682, %c1_683, %c0_684] : memref<12x12x48xf32, #tpu.memory_space<vmem>>, vector<8x8x48xf32>
    %721 = vector.shape_cast %720 : vector<8x8x48xf32> to vector<64x48xf32>
    %c21_685 = arith.constant 21 : index
    %c0_686 = arith.constant 0 : index
    %c0_687 = arith.constant 0 : index
    %722 = vector.load %arg9[%c21_685, %c0_686, %c0_687] : memref<25x48x32xf32, #tpu.memory_space<vmem>>, vector<1x48x32xf32>
    %723 = vector.shape_cast %722 : vector<1x48x32xf32> to vector<48x32xf32>
    %cst_688 = arith.constant dense<0.000000e+00> : vector<64x32xf32>
    %724 = tpu.matmul %721, %723, %cst_688 {dimension_numbers = #tpu.dot_dimension_numbers<[1], [0], [0], [1], [0, 0, 1, 1], [], []>} : vector<64x48xf32>, vector<48x32xf32>, vector<64x32xf32> -> vector<64x32xf32>
    %725 = arith.addf %719, %724 : vector<64x32xf32>
    %c4_689 = arith.constant 4 : index
    %c2_690 = arith.constant 2 : index
    %c0_691 = arith.constant 0 : index
    %726 = vector.load %arg14[%c4_689, %c2_690, %c0_691] : memref<12x12x48xf32, #tpu.memory_space<vmem>>, vector<8x8x48xf32>
    %727 = vector.shape_cast %726 : vector<8x8x48xf32> to vector<64x48xf32>
    %c22_692 = arith.constant 22 : index
    %c0_693 = arith.constant 0 : index
    %c0_694 = arith.constant 0 : index
    %728 = vector.load %arg9[%c22_692, %c0_693, %c0_694] : memref<25x48x32xf32, #tpu.memory_space<vmem>>, vector<1x48x32xf32>
    %729 = vector.shape_cast %728 : vector<1x48x32xf32> to vector<48x32xf32>
    %cst_695 = arith.constant dense<0.000000e+00> : vector<64x32xf32>
    %730 = tpu.matmul %727, %729, %cst_695 {dimension_numbers = #tpu.dot_dimension_numbers<[1], [0], [0], [1], [0, 0, 1, 1], [], []>} : vector<64x48xf32>, vector<48x32xf32>, vector<64x32xf32> -> vector<64x32xf32>
    %731 = arith.addf %725, %730 : vector<64x32xf32>
    %c4_696 = arith.constant 4 : index
    %c3_697 = arith.constant 3 : index
    %c0_698 = arith.constant 0 : index
    %732 = vector.load %arg14[%c4_696, %c3_697, %c0_698] : memref<12x12x48xf32, #tpu.memory_space<vmem>>, vector<8x8x48xf32>
    %733 = vector.shape_cast %732 : vector<8x8x48xf32> to vector<64x48xf32>
    %c23_699 = arith.constant 23 : index
    %c0_700 = arith.constant 0 : index
    %c0_701 = arith.constant 0 : index
    %734 = vector.load %arg9[%c23_699, %c0_700, %c0_701] : memref<25x48x32xf32, #tpu.memory_space<vmem>>, vector<1x48x32xf32>
    %735 = vector.shape_cast %734 : vector<1x48x32xf32> to vector<48x32xf32>
    %cst_702 = arith.constant dense<0.000000e+00> : vector<64x32xf32>
    %736 = tpu.matmul %733, %735, %cst_702 {dimension_numbers = #tpu.dot_dimension_numbers<[1], [0], [0], [1], [0, 0, 1, 1], [], []>} : vector<64x48xf32>, vector<48x32xf32>, vector<64x32xf32> -> vector<64x32xf32>
    %737 = arith.addf %731, %736 : vector<64x32xf32>
    %c4_703 = arith.constant 4 : index
    %c4_704 = arith.constant 4 : index
    %c0_705 = arith.constant 0 : index
    %738 = vector.load %arg14[%c4_703, %c4_704, %c0_705] : memref<12x12x48xf32, #tpu.memory_space<vmem>>, vector<8x8x48xf32>
    %739 = vector.shape_cast %738 : vector<8x8x48xf32> to vector<64x48xf32>
    %c24_706 = arith.constant 24 : index
    %c0_707 = arith.constant 0 : index
    %c0_708 = arith.constant 0 : index
    %740 = vector.load %arg9[%c24_706, %c0_707, %c0_708] : memref<25x48x32xf32, #tpu.memory_space<vmem>>, vector<1x48x32xf32>
    %741 = vector.shape_cast %740 : vector<1x48x32xf32> to vector<48x32xf32>
    %cst_709 = arith.constant dense<0.000000e+00> : vector<64x32xf32>
    %742 = tpu.matmul %739, %741, %cst_709 {dimension_numbers = #tpu.dot_dimension_numbers<[1], [0], [0], [1], [0, 0, 1, 1], [], []>} : vector<64x48xf32>, vector<48x32xf32>, vector<64x32xf32> -> vector<64x32xf32>
    %743 = arith.addf %737, %742 : vector<64x32xf32>
    %c0_710 = arith.constant 0 : index
    %c0_711 = arith.constant 0 : index
    %744 = vector.load %arg10[%c0_710, %c0_711] : memref<1x32xf32, #tpu.memory_space<vmem>>, vector<1x32xf32>
    %745 = vector.broadcast %744 : vector<1x32xf32> to vector<64x32xf32>
    %746 = arith.addf %743, %745 : vector<64x32xf32>
    %cst_712 = arith.constant 0.000000e+00 : f32
    %747 = vector.broadcast %cst_712 : f32 to vector<64x32xf32>
    %748 = arith.maximumf %746, %747 : vector<64x32xf32>
    %c0_713 = arith.constant 0 : index
    %c0_714 = arith.constant 0 : index
    %c0_715 = arith.constant 0 : index
    %749 = vector.load %arg11[%c0_713, %c0_714, %c0_715] : memref<1x64x32xf32, #tpu.memory_space<vmem>>, vector<1x64x32xf32>
    %750 = vector.shape_cast %749 : vector<1x64x32xf32> to vector<64x32xf32>
    %751 = vector.shape_cast %748 : vector<64x32xf32> to vector<1x64x32xf32>
    tpu.vector_store %arg11[%c0_713, %c0_714, %c0_715], %751 {strides = array<i32>} : memref<1x64x32xf32, #tpu.memory_space<vmem>>, vector<1x64x32xf32>,
    return
  }
  func.func @transform_0(%arg0: i32) -> (i32, i32, i32) {
    %c0_i32 = arith.constant 0 : i32
    %c0_i32_0 = arith.constant 0 : i32
    %c0_i32_1 = arith.constant 0 : i32
    return %arg0, %c0_i32, %c0_i32_0 : i32, i32, i32
  }
  func.func @transform_1(%arg0: i32) -> (i32, i32, i32, i32) {
    %c0_i32 = arith.constant 0 : i32
    %c0_i32_0 = arith.constant 0 : i32
    %c0_i32_1 = arith.constant 0 : i32
    %c0_i32_2 = arith.constant 0 : i32
    return %arg0, %c0_i32, %c0_i32_0, %c0_i32_1 : i32, i32, i32, i32
  }
  func.func @transform_2(%arg0: i32) -> (i32, i32) {
    %c0_i32 = arith.constant 0 : i32
    %c0_i32_0 = arith.constant 0 : i32
    %c0_i32_1 = arith.constant 0 : i32
    return %c0_i32, %c0_i32_0 : i32, i32
  }
  func.func @transform_3(%arg0: i32) -> (i32, i32) {
    %c0_i32 = arith.constant 0 : i32
    %c0_i32_0 = arith.constant 0 : i32
    %c0_i32_1 = arith.constant 0 : i32
    return %c0_i32, %c0_i32_0 : i32, i32
  }
  func.func @transform_4(%arg0: i32) -> (i32, i32, i32) {
    %c0_i32 = arith.constant 0 : i32
    %c0_i32_0 = arith.constant 0 : i32
    %c0_i32_1 = arith.constant 0 : i32
    %c0_i32_2 = arith.constant 0 : i32
    return %c0_i32, %c0_i32_0, %c0_i32_1 : i32, i32, i32
  }
  func.func @transform_5(%arg0: i32) -> (i32, i32) {
    %c0_i32 = arith.constant 0 : i32
    %c0_i32_0 = arith.constant 0 : i32
    %c0_i32_1 = arith.constant 0 : i32
    return %c0_i32, %c0_i32_0 : i32, i32
  }
  func.func @transform_6(%arg0: i32) -> (i32, i32, i32) {
    %c0_i32 = arith.constant 0 : i32
    %c0_i32_0 = arith.constant 0 : i32
    %c0_i32_1 = arith.constant 0 : i32
    %c0_i32_2 = arith.constant 0 : i32
    return %c0_i32, %c0_i32_0, %c0_i32_1 : i32, i32, i32
  }
  func.func @transform_7(%arg0: i32) -> (i32, i32) {
    %c0_i32 = arith.constant 0 : i32
    %c0_i32_0 = arith.constant 0 : i32
    %c0_i32_1 = arith.constant 0 : i32
    return %c0_i32, %c0_i32_0 : i32, i32
  }
  func.func @transform_8(%arg0: i32) -> (i32, i32, i32) {
    %c0_i32 = arith.constant 0 : i32
    %c0_i32_0 = arith.constant 0 : i32
    %c0_i32_1 = arith.constant 0 : i32
    %c0_i32_2 = arith.constant 0 : i32
    return %c0_i32, %c0_i32_0, %c0_i32_1 : i32, i32, i32
  }
  func.func @transform_9(%arg0: i32) -> (i32, i32) {
    %c0_i32 = arith.constant 0 : i32
    %c0_i32_0 = arith.constant 0 : i32
    %c0_i32_1 = arith.constant 0 : i32
    return %c0_i32, %c0_i32_0 : i32, i32
  }
  func.func @transform_10(%arg0: i32) -> (i32, i32, i32) {
    %c0_i32 = arith.constant 0 : i32
    %c0_i32_0 = arith.constant 0 : i32
    %c0_i32_1 = arith.constant 0 : i32
    return %arg0, %c0_i32, %c0_i32_0 : i32, i32, i32
  }
}

</mosaic_0001>

<bundles_post_ra>
// kernel: mode_decoder_block_forward.1
= control target key start
LH: loop header
LB: loop body
LE: loop exit
PB: predicated region body
PF: predicated region fallthrough
CT: control target
= control target key end

     0   :  { %s7278_s13 = smov 0   ;;  %s10989_s0 = inlined_call_operand.vmem [shape: f32[2,16,32], index: 0, kind: input, shape index: {}]   ;;  %s10990_s1 = inlined_call_operand.vmem [shape: f32[2,8,8,32], index: 1, kind: input, shape index: {}]   ;;  %s10991_s2 = inlined_call_operand.vmem [shape: f32[32,128], index: 2, kind: input, shape index: {}]   ;;  %s10992_s3 = inlined_call_operand.vmem [shape: f32[1,128], index: 3, kind: input, shape index: {}]   ;;  %s10993_s4 = inlined_call_operand.vmem [shape: f32[9,40,32], index: 4, kind: input, shape index: {}]   ;;  %s10994_s5 = inlined_call_operand.vmem [shape: f32[1,32], index: 5, kind: input, shape index: {}]   ;;  %s10995_s6 = inlined_call_operand.vmem [shape: f32[25,96,32], index: 6, kind: input, shape index: {}]   ;;  %s10996_s7 = inlined_call_operand.vmem [shape: f32[1,32], index: 7, kind: input, shape index: {}]   ;;  %s10997_s8 = inlined_call_operand.vmem [shape: f32[25,48,32], index: 8, kind: input, shape index: {}]   ;;  %s10998_s9 = inlined_call_operand.vmem [shape: f32[1,32], index: 9, kind: input, shape index: {}]   ;;  %s10999_s10 = inlined_call_operand.vmem [shape: f32[2,64,32], index: 10, kind: output, shape index: {}]  }
   0x1 LB: > { %s6204_s14 = sadd.s32 4294967295, %s7214_s13   ;;  %p6208_p0 = scmp.ge.s32.totalorder %s7214_s13, 1  ;;  %s7214_s13 = sphi %s7278_s13, %s20_s13  }
   0x2   : > { %p322_p1 = scmp.lt.s32.totalorder %s7214_s13, 3 }
   0x4   : > { %p323_p2 = pnand %p6208_p0, %p322_p1 }
   0x6   : > { %326 = sbr.rel (%p323_p2) target bundleno = 1987 (0x7c3), region = 60 }
   0xb   : > { %v459_v0 = vld [vmem:[%s10991_s2 + $0x18] sm:$0xff]  ;;  %v458_v1 = vld [vmem:[%s10991_s2 + $0x10] sm:$0xff]  ;;  %p365_p3 = scmp.lt.s32.totalorder %s6204_s14, 1  ;;  %v457_v2 = vld [vmem:[%s10991_s2 + $0x8] sm:$0xff]  ;;  %vm464_vm0 = vcmask 261120   ;;  %vm380_vm1 = vcmask 326656  }
   0xc   : > { %483 = vmatpush.msra.mxu0 %v459_v0  ;;  %v456_v3 = vld [vmem:[%s10991_s2] sm:$0xff]  ;;  %v6221_v6 = vld [vmem:[%s10993_s4 + $0x48] sm:$0xff]  ;;  %v11000_v7 = vmov 0.0   ;;  %s7217_s11 = smov 68   ;;  %s7218_s12 = smov 4   ;;  %vm382_vm2 = vcmask 320512  }
   0xd   : > { %s11057_s14 = smov (!%p365_p3, %s6204_s14), 1  ;;  %662 = vmatpush.msra.mxu1 %v6221_v6  ;;  %386 = vst.msk [vmem:[#allocation2 + $0x20] sm:$0xff] %vm380_vm1, %v11000_v7  ;;  %v7203_v8 = vld [vmem:[%s10992_s3] ss:$0 sm:$0xff]  ;;  %s7219_s15 = smov 36   ;;  %v6255_v13 = vld [vmem:[%s10993_s4 + $0x98] sm:$0xff] }
   0xe   : > { %484 = vmatpush.msra.mxu0 %v458_v1  ;;  %s7170_s23 = sshll.u32 %s11057_s14, 4  ;;  %390 = vst.msk [vmem:[#allocation2 + $0x40] sm:$0xff] %vm380_vm1, %v11000_v7  ;;  %s7220_s16 = smov 100   ;;  %v6220_v14 = vld [vmem:[%s10993_s4 + $0x40] sm:$0xff]  ;;  %v6219_v15 = vld [vmem:[%s10993_s4 + $0x38] sm:$0xff]  ;;  %v6254_v16 = vld [vmem:[%s10993_s4 + $0x90] sm:$0xff] }
   0xf   : > { %s369_s26 = scalar_lea.vmem %s10989_s0, %s7170_s23  ;;  %381 = vst.msk [vmem:[#allocation2] sm:$0xff] %vm380_vm1, %v11000_v7  ;;  %663 = vmatpush.msra.mxu1 %v6220_v14  ;;  %v6218_v17 = vld [vmem:[%s10993_s4 + $0x30] sm:$0xff]  ;;  %v612_v18 = vld [vmem:[%s10993_s4 + $0x20] sm:$0xff]  ;;  %v6253_v20 = vld [vmem:[%s10993_s4 + $0x88] sm:$0xff]  ;;  %vm499_vm3 = vcmask 286752   ;;  %vm501_vm4 = vcmask 287777  }
  0x10   : > { %485 = vmatpush.msra.mxu0 %v457_v2  ;;  %v454_v4 = vld [vmem:[%s369_s26] sm:$0xff]  ;;  %v455_v5 = vld [vmem:[%s369_s26 + $0x8] sm:$0xff]  ;;  %384 = vst.msk [vmem:[#allocation2 + $0x10] sm:$0xff] %vm380_vm1, %v11000_v7  ;;  %v7359_v19 = vld [vmem:[%s10993_s4 + $0x70] sm:$0xff]  ;;  %7173 = vmatpush.msra.mxu2 %v612_v18  ;;  %vm503_vm5 = vcmask 288802   ;;  %vm505_vm6 = vcmask 289827  }
  0x11   : > { %388 = vst.msk [vmem:[#allocation2 + $0x30] sm:$0xff] %vm380_vm1, %v11000_v7  ;;  %664 = vmatpush.msra.mxu1 %v6219_v15  ;;  %v6217_v21 = vld [vmem:[%s10993_s4 + $0x28] sm:$0xff]  ;;  %7178 = vmatpush.msra.mxu3 %v7359_v19  ;;  %v611_v24 = vld [vmem:[%s10993_s4 + $0x18] sm:$0xff]  ;;  %v6252_v26 = vld [vmem:[%s10993_s4 + $0x80] sm:$0xff]  ;;  %vm508_vm7 = vcmask 290852   ;;  %vm510_vm8 = vcmask 291877  }
  0x12   : > { %486 = vmatpush.msra.mxu0 %v456_v3  ;;  %392 = vst.msk [vmem:[#allocation2 + $0x50] sm:$0xff] %vm380_vm1, %v11000_v7  ;;  %v6241_v25 = vld [vmem:[%s10993_s4 + $0x68] sm:$0xff]  ;;  %7174 = vmatpush.msra.mxu2 %v611_v24  ;;  %v610_v27 = vld [vmem:[%s10993_s4 + $0x10] sm:$0xff]  ;;  %v6240_v28 = vld [vmem:[%s10993_s4 + $0x60] sm:$0xff]  ;;  %vm512_vm9 = vcmask 292902   ;;  %vm514_vm10 = vcmask 293927  }
  0x13   : > { %6215 = vmatmul.msk.f32.vlgmr.msra.gmra.mxu0 %vm464_vm0, %v454_v4  ;;  %394 = vst.msk [vmem:[#allocation2 + $0x60] sm:$0xff] %vm380_vm1, %v11000_v7  ;;  %665 = vmatpush.msra.mxu1 %v6218_v17  ;;  %v609_v29 = vld [vmem:[%s10993_s4 + $0x8] sm:$0xff]  ;;  %v6239_v30 = vld [vmem:[%s10993_s4 + $0x58] sm:$0xff]  ;;  %v608_v32 = vld [vmem:[%s10993_s4] sm:$0xff]  ;;  %s7171_s22 = sshll.u32 %s11057_s14, 6  ;;  %s7221_s26 = smov 8  }
  0x14   : > { %396 = vst.msk [vmem:[#allocation2 + $0x70] sm:$0xff] %vm380_vm1, %v11000_v7  ;;  %893 = vmatpush.msrb.mxu0 %v6255_v13  ;;  %7179 = vmatpush.msra.mxu3 %v6241_v25  ;;  %v6251_v31 = vld [vmem:[%s10993_s4 + $0x78] sm:$0xff]  ;;  %v6238_v33 = vld [vmem:[%s10993_s4 + $0x50] sm:$0xff]  ;;  %v6305_v40 = vld [vmem:[%s10993_s4 + $0x128] sm:$0xff]  ;;  %s7802_s25 = scalar_lea.vmem %s10990_s1, %s7171_s22  ;;  %s7222_s27 = smov 52   ;;  %vm402_vm11 = vcmask 785408  }
  0x15   : > { %398 = vst.msk [vmem:[#allocation2 + $0x80] sm:$0xff] %vm380_vm1, %v11000_v7  ;;  %666 = vmatpush.msra.mxu1 %v6217_v21  ;;  %7175 = vmatpush.msra.mxu2 %v610_v27  ;;  %v6307_v35 = vld [vmem:[%s10993_s4 + $0x138] sm:$0xff]  ;;  %v6306_v37 = vld [vmem:[%s10993_s4 + $0x130] sm:$0xff]  ;;  %v6304_v44 = vld [vmem:[%s10993_s4 + $0x120] sm:$0xff]  ;;  %vm404_vm12 = vcmask 781312   ;;  %vm1424_vm13 = vcmask 326720  }
  0x16   : > { %400 = vst.msk [vmem:[#allocation2 + $0x90] sm:$0xff] %vm380_vm1, %v11000_v7  ;;  %894 = vmatpush.msrb.mxu0 %v6254_v16  ;;  %7180 = vmatpush.msra.mxu3 %v6240_v28  ;;  %v6281_v49 = vld [vmem:[%s10993_s4 + $0xe8] sm:$0xff]  ;;  %v6294_v50 = vld [vmem:[%s10993_s4 + $0x110] sm:$0xff]  ;;  %v6280_v55 = vld [vmem:[%s10993_s4 + $0xe0] sm:$0xff]  ;;  %vm1430_vm14 = vcmask 720320   ;;  %vm428_vm15 = vcmask 392192  }
  0x17   : > { %387 = vst.msk [vmem:[#allocation2 + $0x28] sm:$0x3] %vm382_vm2, %v11000_v7  ;;  %727 = vmatpush.msrb.mxu1 %v612_v18  ;;  %7176 = vmatpush.msra.mxu2 %v609_v29  ;;  %v6293_v56 = vld [vmem:[%s10993_s4 + $0x108] sm:$0xff]  ;;  %v6279_v57 = vld [vmem:[%s10993_s4 + $0xd8] sm:$0xff]  ;;  %v6292_v58 = vld [vmem:[%s10993_s4 + $0x100] sm:$0xff] }
  0x18   : > { %391 = vst.msk [vmem:[#allocation2 + $0x48] sm:$0x3] %vm382_vm2, %v11000_v7  ;;  %895 = vmatpush.msrb.mxu0 %v6253_v20  ;;  %7181 = vmatpush.msra.mxu3 %v6239_v30  ;;  %v6303_v59 = vld [vmem:[%s10993_s4 + $0x118] sm:$0xff]  ;;  %v6278_v61 = vld [vmem:[%s10993_s4 + $0xd0] sm:$0xff]  ;;  %v6277_v0 = vld [vmem:[%s10993_s4 + $0xc8] sm:$0xff] }
  0x19   : > { %383 = vst.msk [vmem:[#allocation2 + $0x8] sm:$0x3] %vm382_vm2, %v11000_v7  ;;  %728 = vmatpush.msrb.mxu1 %v611_v24  ;;  %7177 = vmatpush.msra.mxu2 %v608_v32  ;;  %v6291_v62 = vld [vmem:[%s10993_s4 + $0xf8] sm:$0xff]  ;;  %v6290_v1 = vld [vmem:[%s10993_s4 + $0xf0] sm:$0xff]  ;;  %v600_v16 = vld [vmem:[#allocation2] sm:$0xff] }
  0x1a   : > { %385 = vst.msk [vmem:[#allocation2 + $0x18] sm:$0x3] %vm382_vm2, %v11000_v7  ;;  %896 = vmatpush.msrb.mxu0 %v6252_v26  ;;  %7182 = vmatpush.msra.mxu3 %v6238_v33  ;;  %v6268_v18 = vld [vmem:[%s10993_s4 + $0xc0] sm:$0xff]  ;;  %v6318_v20 = vld [vmem:[%s10993_s4 + $0x150] sm:$0xff] }
  0x1b   : > { %6216 = vmatmul.msk.f32.gmra.mxu0 %vm464_vm0, %v455_v5  ;;  %389 = vst.msk [vmem:[#allocation2 + $0x38] sm:$0x3] %vm382_vm2, %v11000_v7  ;;  %729 = vmatpush.msrb.mxu1 %v610_v27  ;;  %v6266_v21 = vld [vmem:[%s10993_s4 + $0xb0] sm:$0xff]  ;;  %v6264_v24 = vld [vmem:[%s10993_s4 + $0xa0] sm:$0xff] }
  0x1c   : > { %393 = vst.msk [vmem:[#allocation2 + $0x58] sm:$0x3] %vm382_vm2, %v11000_v7  ;;  %897 = vmatpush.msrb.mxu0 %v6251_v31  ;;  %1067 = vmatpush.msrb.mxu2 %v6281_v49  ;;  %v6316_v26 = vld [vmem:[%s10993_s4 + $0x140] sm:$0xff] }
  0x1d   : > { %395 = vst.msk [vmem:[#allocation2 + $0x68] sm:$0x3] %vm382_vm2, %v11000_v7  ;;  %730 = vmatpush.msrb.mxu1 %v609_v29  ;;  %1154 = vmatpush.msrb.mxu3 %v6294_v50  ;;  %v1112_v27 = vld [vmem:[#allocation2 + $0x90] sm:$0xff] }
  0x1e   : > { %397 = vst.msk [vmem:[#allocation2 + $0x78] sm:$0x3] %vm382_vm2, %v11000_v7  ;;  %1241 = vmatpush.msra.mxu0 %v6307_v35  ;;  %1068 = vmatpush.msrb.mxu2 %v6280_v55 }
  0x1f   : > { %399 = vst.msk [vmem:[#allocation2 + $0x88] sm:$0x3] %vm382_vm2, %v11000_v7  ;;  %731 = vmatpush.msrb.mxu1 %v608_v32  ;;  %1155 = vmatpush.msrb.mxu3 %v6293_v56 }
  0x20   : > { %401 = vst.msk [vmem:[#allocation2 + $0x98] sm:$0x3] %vm382_vm2, %v11000_v7  ;;  %v613_v22 = vld [vmem:[#allocation2 + $0x1] sm:$0xff]  ;;  %1242 = vmatpush.msra.mxu0 %v6306_v37  ;;  %1069 = vmatpush.msrb.mxu2 %v6279_v57 }
  0x21   : > { %6222 = vmatmul.msk.f32.vlgmr.msra.gmra.mxu1 %vm380_vm1, %v613_v22  ;;  %1156 = vmatpush.msrb.mxu3 %v6292_v58  ;;  %v757_v22 = vld [vmem:[#allocation2 + $0x2] sm:$0xff] }
  0x22   : > { %806 = vmatpush.msra.mxu1 %v7359_v19  ;;  %1243 = vmatpush.msra.mxu0 %v6305_v40  ;;  %v6267_v19 = vld [vmem:[%s10993_s4 + $0xb8] sm:$0xff] }
  0x23   : > { %1070 = vmatpush.msrb.mxu2 %v6278_v61  ;;  %1157 = vmatpush.msrb.mxu3 %v6291_v62 }
  0x24   : > { %807 = vmatpush.msra.mxu1 %v6241_v25  ;;  %1244 = vmatpush.msra.mxu0 %v6304_v44  ;;  %v6317_v25 = vld [vmem:[%s10993_s4 + $0x148] sm:$0xff] }
  0x25   : > { %1071 = vmatpush.msrb.mxu2 %v6277_v0  ;;  %1158 = vmatpush.msrb.mxu3 %v6290_v1 }
  0x26   : > { %808 = vmatpush.msra.mxu1 %v6240_v28  ;;  %1245 = vmatpush.msra.mxu0 %v6303_v59 }
  0x27   : > { %v1199_v31 = vld [vmem:[#allocation2 + $0x91] sm:$0xff] }
  0x28   : > { %809 = vmatpush.msra.mxu1 %v6239_v30 }
  0x2a   : > { %810 = vmatpush.msra.mxu1 %v6238_v33 }
  0x90   : > { %v488_v9 = vpop.f32.mrf.mxu0 }
  0x91   : > { %v489_v10 = vadd.f32 %v7203_v8, %v488_v9 }
  0x93   : > { %552 = vrot.lane.b32.xlu1 %v489_v10, %s7217_s11  ;;  %495 = vrot.lane.b32.xlu0 %v489_v10, %s7218_s12 }
  0x98   : > { %v491_v11 = vpop.f32.mrf.mxu0 }
  0x99   : > { %v492_v12 = vadd.f32 %v7203_v8, %v491_v11  ;;  %v6320_v8 = vld [vmem:[%s10993_s4 + $0x160] sm:$0xff] }
  0x9b   : > { %578 = vrot.lane.b32.xlu1 %v489_v10, %s7219_s15  ;;  %530 = vrot.lane.b32.xlu0 %v489_v10, %s7220_s16 }
  0x9c   : > { %517 = vrot.lane.b32.xlu2 %v492_v12, %s7218_s12 }
  0x9e   : > { %v668_v30 = vpop.f32.mrf.mxu1 }
  0xa3   : > { %589 = vrot.lane.b32.xlu1 %v492_v12, %s7219_s15  ;;  %565 = vrot.lane.b32.xlu0 %v492_v12, %s7217_s11 }
  0xa4   : > { %541 = vrot.lane.b32.xlu2 %v492_v12, %s7220_s16  ;;  %v6319_v12 = vld [vmem:[%s10993_s4 + $0x158] sm:$0xff]  ;;  %s10942_s16 = scalar_lea.vmem %s10999_s10, %s7171_s22 }
  0xf6   : > { %v518_v39 = vpop.permute.xlu2 %517 }
  0xf7   : > { %521 = vst.msk [vmem:[#allocation2 + $0x51] sm:$0x1] %vm499_vm3, %v518_v39 }
  0xf8   : > { %522 = vst.msk [vmem:[#allocation2 + $0x52] sm:$0x2] %vm501_vm4, %v518_v39 }
  0xf9   : > { %523 = vst.msk [vmem:[#allocation2 + $0x53] sm:$0x4] %vm503_vm5, %v518_v39 }
  0xfa   : > { %524 = vst.msk [vmem:[#allocation2 + $0x54] sm:$0x8] %vm505_vm6, %v518_v39 }
  0xfb   : > { %526 = vst.msk [vmem:[#allocation2 + $0x6d] sm:$0x10] %vm508_vm7, %v518_v39 }
  0xfc   : > { %527 = vst.msk [vmem:[#allocation2 + $0x6e] sm:$0x20] %vm510_vm8, %v518_v39 }
  0xfd   : > { %528 = vst.msk [vmem:[#allocation2 + $0x6f] sm:$0x40] %vm512_vm9, %v518_v39 }
  0xfe   : > { %v542_v45 = vpop.permute.xlu2 %541  ;;  %529 = vst.msk [vmem:[#allocation2 + $0x70] sm:$0x80] %vm514_vm10, %v518_v39 }
  0xff   : > { %544 = vst.msk [vmem:[#allocation2 + $0x52] sm:$0x1] %vm499_vm3, %v542_v45 }
 0x100   : > { %545 = vst.msk [vmem:[#allocation2 + $0x53] sm:$0x2] %vm501_vm4, %v542_v45 }
 0x101   : > { %546 = vst.msk [vmem:[#allocation2 + $0x54] sm:$0x4] %vm503_vm5, %v542_v45 }
 0x102   : > { %547 = vst.msk [vmem:[#allocation2 + $0x55] sm:$0x8] %vm505_vm6, %v542_v45 }
 0x103   : > { %548 = vst.msk [vmem:[#allocation2 + $0x6e] sm:$0x10] %vm508_vm7, %v542_v45 }
 0x104   : > { %549 = vst.msk [vmem:[#allocation2 + $0x6f] sm:$0x20] %vm510_vm8, %v542_v45 }
 0x105   : > { %v553_v23 = vpop.permute.xlu1 %552  ;;  %v496_v34 = vpop.permute.xlu0 %495  ;;  %550 = vst.msk [vmem:[#allocation2 + $0x70] sm:$0x40] %vm512_vm9, %v542_v45 }
 0x106   : > { %556 = vst.msk [vmem:[#allocation2 + $0x21] sm:$0x1] %vm499_vm3, %v553_v23 }
 0x107   : > { %557 = vst.msk [vmem:[#allocation2 + $0x22] sm:$0x2] %vm501_vm4, %v553_v23 }
 0x108   : > { %558 = vst.msk [vmem:[#allocation2 + $0x23] sm:$0x4] %vm503_vm5, %v553_v23  ;;  %v605_v4 = vld [vmem:[#allocation2 + $0x50] sm:$0xff] }
 0x109   : > { %559 = vst.msk [vmem:[#allocation2 + $0x24] sm:$0x8] %vm505_vm6, %v553_v23  ;;  %v7577_v5 = vld [vmem:[#allocation2 + $0x51] sm:$0xff] }
 0x10a   : > { %561 = vst.msk [vmem:[#allocation2 + $0x3d] sm:$0x10] %vm508_vm7, %v553_v23  ;;  %v7580_v6 = vld [vmem:[#allocation2 + $0x52] sm:$0xff] }
 0x10b   : > { %562 = vst.msk [vmem:[#allocation2 + $0x3e] sm:$0x20] %vm510_vm8, %v553_v23 }
 0x10c   : > { %563 = vst.msk [vmem:[#allocation2 + $0x3f] sm:$0x40] %vm512_vm9, %v553_v23  ;;  %v607_v13 = vld [vmem:[#allocation2 + $0x70] sm:$0xff] }
 0x10d   : > { %564 = vst.msk [vmem:[#allocation2 + $0x40] sm:$0x80] %vm514_vm10, %v553_v23  ;;  %v579_v36 = vpop.permute.xlu1 %578  ;;  %v531_v38 = vpop.permute.xlu0 %530  ;;  %v6265_v23 = vld [vmem:[%s10993_s4 + $0xa8] sm:$0xff] }
 0x10e   : > { %500 = vst.msk [vmem:[#allocation2 + $0x11] sm:$0x1] %vm499_vm3, %v496_v34 }
 0x10f   : > { %502 = vst.msk [vmem:[#allocation2 + $0x12] sm:$0x2] %vm501_vm4, %v496_v34 }
 0x110   : > { %504 = vst.msk [vmem:[#allocation2 + $0x13] sm:$0x4] %vm503_vm5, %v496_v34 }
 0x111   : > { %506 = vst.msk [vmem:[#allocation2 + $0x14] sm:$0x8] %vm505_vm6, %v496_v34 }
 0x112   : > { %509 = vst.msk [vmem:[#allocation2 + $0x2d] sm:$0x10] %vm508_vm7, %v496_v34 }
 0x113   : > { %511 = vst.msk [vmem:[#allocation2 + $0x2e] sm:$0x20] %vm510_vm8, %v496_v34 }
 0x114   : > { %513 = vst.msk [vmem:[#allocation2 + $0x2f] sm:$0x40] %vm512_vm9, %v496_v34 }
 0x115   : > { %515 = vst.msk [vmem:[#allocation2 + $0x30] sm:$0x80] %vm514_vm10, %v496_v34  ;;  %v590_v51 = vpop.permute.xlu1 %589  ;;  %v566_v60 = vpop.permute.xlu0 %565 }
 0x116   : > { %581 = vst.msk [vmem:[#allocation2 + $0x22] sm:$0x1] %vm499_vm3, %v579_v36 }
 0x117   : > { %582 = vst.msk [vmem:[#allocation2 + $0x23] sm:$0x2] %vm501_vm4, %v579_v36 }
 0x118   : > { %583 = vst.msk [vmem:[#allocation2 + $0x24] sm:$0x4] %vm503_vm5, %v579_v36 }
 0x119   : > { %584 = vst.msk [vmem:[#allocation2 + $0x25] sm:$0x8] %vm505_vm6, %v579_v36 }
 0x11a   : > { %585 = vst.msk [vmem:[#allocation2 + $0x3e] sm:$0x10] %vm508_vm7, %v579_v36 }
 0x11b   : > { %586 = vst.msk [vmem:[#allocation2 + $0x3f] sm:$0x20] %vm510_vm8, %v579_v36 }
 0x11c   : > { %587 = vst.msk [vmem:[#allocation2 + $0x40] sm:$0x40] %vm512_vm9, %v579_v36 }
 0x11d   : > { %588 = vst.msk [vmem:[#allocation2 + $0x41] sm:$0x80] %vm514_vm10, %v579_v36 }
 0x11e   : > { %533 = vst.msk [vmem:[#allocation2 + $0x12] sm:$0x1] %vm499_vm3, %v531_v38 }
 0x11f   : > { %534 = vst.msk [vmem:[#allocation2 + $0x13] sm:$0x2] %vm501_vm4, %v531_v38  ;;  %v7480_v46 = vld [vmem:[#allocation2 + $0x20] sm:$0xff] }
 0x120   : > { %535 = vst.msk [vmem:[#allocation2 + $0x14] sm:$0x4] %vm503_vm5, %v531_v38  ;;  %v7483_v47 = vld [vmem:[#allocation2 + $0x21] sm:$0xff] }
 0x121   : > { %536 = vst.msk [vmem:[#allocation2 + $0x15] sm:$0x8] %vm505_vm6, %v531_v38  ;;  %v7487_v48 = vld [vmem:[#allocation2 + $0x22] sm:$0xff] }
 0x122   : > { %537 = vst.msk [vmem:[#allocation2 + $0x2e] sm:$0x10] %vm508_vm7, %v531_v38 }
 0x123   : > { %538 = vst.msk [vmem:[#allocation2 + $0x2f] sm:$0x20] %vm510_vm8, %v531_v38  ;;  %v7550_v63 = vld [vmem:[#allocation2 + $0x40] sm:$0xff] }
 0x124   : > { %539 = vst.msk [vmem:[#allocation2 + $0x30] sm:$0x40] %vm512_vm9, %v531_v38  ;;  %v7559_v2 = vld [vmem:[#allocation2 + $0x41] sm:$0xff] }
 0x125   : > { %540 = vst.msk [vmem:[#allocation2 + $0x31] sm:$0x80] %vm514_vm10, %v531_v38  ;;  %v7563_v3 = vld [vmem:[#allocation2 + $0x42] sm:$0xff] }
 0x126   : > { %551 = vst.msk [vmem:[#allocation2 + $0x71] sm:$0x80] %vm514_vm10, %v542_v45 }
 0x127   : > { %v601_v41 = vld [vmem:[#allocation2 + $0x10] sm:$0xff]  ;;  %592 = vst.msk [vmem:[#allocation2 + $0x62] sm:$0x1] %vm499_vm3, %v590_v51 }
 0x128   : > { %v7460_v42 = vld [vmem:[#allocation2 + $0x11] sm:$0xff]  ;;  %6231 = vmatmul.msk.f32.vlgmr.msra.gmra.mxu2 %vm380_vm1, %v601_v41  ;;  %6256 = vmatmul.msk.f32.vlgmr.msrb.gmra.mxu0 %vm380_vm1, %v601_v41  ;;  %593 = vst.msk [vmem:[#allocation2 + $0x63] sm:$0x2] %vm501_vm4, %v590_v51 }
 0x129   : > { %v7463_v43 = vld [vmem:[#allocation2 + $0x12] sm:$0xff]  ;;  %6223 = vmatmul.msk.f32.gmra.mxu1 %vm380_vm1, %v7460_v42  ;;  %594 = vst.msk [vmem:[#allocation2 + $0x64] sm:$0x4] %vm503_vm5, %v590_v51  ;;  %1328 = vmatpush.msrb.mxu0 %v6320_v8 }
 0x12a   : > { %6244 = vmatmul.msk.f32.vlgmr.msra.gmra.mxu3 %vm380_vm1, %v7463_v43  ;;  %595 = vst.msk [vmem:[#allocation2 + $0x65] sm:$0x8] %vm505_vm6, %v590_v51 }
 0x12b   : > { %v7507_v52 = vld [vmem:[#allocation2 + $0x30] sm:$0xff]  ;;  %596 = vst.msk [vmem:[#allocation2 + $0x7e] sm:$0x10] %vm508_vm7, %v590_v51  ;;  %1329 = vmatpush.msrb.mxu0 %v6319_v12 }
 0x12c   : > { %v7510_v53 = vld [vmem:[#allocation2 + $0x31] sm:$0xff]  ;;  %597 = vst.msk [vmem:[#allocation2 + $0x7f] sm:$0x20] %vm510_vm8, %v590_v51 }
 0x12d   : > { %v7514_v54 = vld [vmem:[#allocation2 + $0x32] sm:$0xff]  ;;  %598 = vst.msk [vmem:[#allocation2 + $0x80] sm:$0x40] %vm512_vm9, %v590_v51  ;;  %1330 = vmatpush.msrb.mxu0 %v6318_v20 }
 0x12e   : > { %599 = vst.msk [vmem:[#allocation2 + $0x81] sm:$0x80] %vm514_vm10, %v590_v51  ;;  %v7603_v14 = vld [vmem:[#allocation2 + $0x71] sm:$0xff] }
 0x12f   : > { %569 = vst.msk [vmem:[#allocation2 + $0x61] sm:$0x1] %vm499_vm3, %v566_v60  ;;  %v7606_v15 = vld [vmem:[#allocation2 + $0x72] sm:$0xff]  ;;  %1331 = vmatpush.msrb.mxu0 %v6317_v25 }
 0x130   : > { %6232 = vmatmul.msk.f32.gmra.mxu2 %vm380_vm1, %v7480_v46  ;;  %6257 = vmatmul.msk.f32.gmra.mxu0 %vm380_vm1, %v7480_v46  ;;  %570 = vst.msk [vmem:[#allocation2 + $0x62] sm:$0x2] %vm501_vm4, %v566_v60 }
 0x131   : > { %6224 = vmatmul.msk.f32.gmra.mxu1 %vm380_vm1, %v7483_v47  ;;  %571 = vst.msk [vmem:[#allocation2 + $0x63] sm:$0x4] %vm503_vm5, %v566_v60  ;;  %1332 = vmatpush.msrb.mxu0 %v6316_v26 }
 0x132   : > { %6245 = vmatmul.msk.f32.gmra.mxu3 %vm380_vm1, %v7487_v48  ;;  %572 = vst.msk [vmem:[#allocation2 + $0x64] sm:$0x8] %vm505_vm6, %v566_v60 }
 0x133   : > { %574 = vst.msk [vmem:[#allocation2 + $0x7d] sm:$0x10] %vm508_vm7, %v566_v60 }
 0x134   : > { %575 = vst.msk [vmem:[#allocation2 + $0x7e] sm:$0x20] %vm510_vm8, %v566_v60 }
 0x135   : > { %576 = vst.msk [vmem:[#allocation2 + $0x7f] sm:$0x40] %vm512_vm9, %v566_v60 }
 0x136   : > { %577 = vst.msk [vmem:[#allocation2 + $0x80] sm:$0x80] %vm514_vm10, %v566_v60 }
 0x137   : > { %11006 = vst [vmem:[#allocation5_spill] sm:$0xff] %v7577_v5 }
 0x138   : > { %6233 = vmatmul.msk.f32.gmra.mxu2 %vm380_vm1, %v7507_v52  ;;  %6258 = vmatmul.msk.f32.gmra.mxu0 %vm380_vm1, %v7507_v52 }
 0x139   : > { %6225 = vmatmul.msk.f32.gmra.mxu1 %vm380_vm1, %v7510_v53  ;;  %v606_v9 = vld [vmem:[#allocation2 + $0x60] sm:$0xff] }
 0x13a   : > { %6246 = vmatmul.msk.f32.gmra.mxu3 %vm380_vm1, %v7514_v54  ;;  %v7590_v10 = vld [vmem:[#allocation2 + $0x61] sm:$0xff] }
 0x13b   : > { %11007 = vst [vmem:[#allocation6_spill] sm:$0xff] %v7590_v10  ;;  %v7592_v11 = vld [vmem:[#allocation2 + $0x62] sm:$0xff] }
 0x13d   : > { %v851_v17 = vld [vmem:[#allocation2 + $0x80] sm:$0xff] }
 0x13e   : > { %v1025_v28 = vld [vmem:[#allocation2 + $0x82] sm:$0xff] }
 0x13f   : > { %v7686_v29 = vld [vmem:[#allocation2 + $0x81] sm:$0xff] }
 0x140   : > { %6234 = vmatmul.msk.f32.gmra.mxu2 %vm380_vm1, %v7550_v63  ;;  %6259 = vmatmul.msk.f32.gmra.mxu0 %vm380_vm1, %v7550_v63  ;;  %11008 = vst [vmem:[#allocation7_spill] sm:$0xff] %v7686_v29 }
 0x141   : > { %6226 = vmatmul.msk.f32.gmra.mxu1 %vm380_vm1, %v7559_v2 }
 0x142   : > { %6247 = vmatmul.msk.f32.gmra.mxu3 %vm380_vm1, %v7563_v3 }
 0x148   : > { %6235 = vmatmul.msk.f32.gmra.mxu2 %vm380_vm1, %v605_v4  ;;  %6260 = vmatmul.msk.f32.gmra.mxu0 %vm380_vm1, %v605_v4 }
 0x149   : > { %6227 = vmatmul.msk.f32.gmra.mxu1 %vm380_vm1, %v7577_v5 }
 0x14a   : > { %6248 = vmatmul.msk.f32.gmra.mxu3 %vm380_vm1, %v7580_v6 }
 0x150   : > { %6236 = vmatmul.msk.f32.gmra.mxu2 %vm380_vm1, %v606_v9  ;;  %6261 = vmatmul.msk.f32.gmra.mxu0 %vm380_vm1, %v606_v9 }
 0x151   : > { %6228 = vmatmul.msk.f32.gmra.mxu1 %vm380_vm1, %v7590_v10 }
 0x152   : > { %6249 = vmatmul.msk.f32.gmra.mxu3 %vm380_vm1, %v7592_v11 }
 0x158   : > { %6237 = vmatmul.msk.f32.gmra.mxu2 %vm380_vm1, %v607_v13  ;;  %6262 = vmatmul.msk.f32.gmra.mxu0 %vm380_vm1, %v607_v13 }
 0x159   : > { %6229 = vmatmul.msk.f32.gmra.mxu1 %vm380_vm1, %v7603_v14 }
 0x15a   : > { %6250 = vmatmul.msk.f32.gmra.mxu3 %vm380_vm1, %v7606_v15 }
 0x160   : > { %6263 = vmatmul.msk.f32.gmra.mxu0 %vm380_vm1, %v851_v17  ;;  %6282 = vmatmul.msk.f32.vlgmr.msrb.gmra.mxu2 %vm380_vm1, %v7463_v43  ;;  %v1286_v43 = vld [vmem:[#allocation2 + $0x92] sm:$0xff] }
 0x161   : > { %6230 = vmatmul.msk.f32.vlgmr.msrb.gmra.mxu1 %vm380_vm1, %v600_v16 }
 0x162   : > { %6295 = vmatmul.msk.f32.vlgmr.msrb.gmra.mxu3 %vm380_vm1, %v7480_v46  ;;  %980 = vmatpush.msrb.mxu1 %v6268_v18 }
 0x164   : > { %981 = vmatpush.msrb.mxu1 %v6267_v19 }
 0x166   : > { %982 = vmatpush.msrb.mxu1 %v6266_v21 }
 0x168   : > { %6283 = vmatmul.msk.f32.gmra.mxu2 %vm380_vm1, %v7487_v48  ;;  %6308 = vmatmul.msk.f32.vlgmr.msra.gmra.mxu0 %vm380_vm1, %v7483_v47 }
 0x169   : > { %6243 = vmatmul.msk.f32.vlgmr.msra.gmra.mxu1 %vm380_vm1, %v757_v22 }
 0x16a   : > { %6296 = vmatmul.msk.f32.gmra.mxu3 %vm380_vm1, %v7507_v52  ;;  %983 = vmatpush.msrb.mxu1 %v6265_v23 }
 0x16c   : > { %984 = vmatpush.msrb.mxu1 %v6264_v24 }
 0x16e   : > { %7183 = vmatpush.msra.mxu1 %v6320_v8 }
 0x170   : > { %7184 = vmatpush.msra.mxu1 %v6319_v12  ;;  %6284 = vmatmul.msk.f32.gmra.mxu2 %vm380_vm1, %v7514_v54 }
 0x171   : > { %6309 = vmatmul.msk.f32.gmra.mxu0 %vm380_vm1, %v7510_v53  ;;  %6269 = vmatmul.msk.f32.vlgmr.msrb.gmra.mxu1 %vm380_vm1, %v7460_v42 }
 0x172   : > { %6297 = vmatmul.msk.f32.gmra.mxu3 %vm380_vm1, %v7550_v63  ;;  %7185 = vmatpush.msra.mxu1 %v6318_v20 }
 0x174   : > { %7186 = vmatpush.msra.mxu1 %v6317_v25 }
 0x176   : > { %7187 = vmatpush.msra.mxu1 %v6316_v26 }
 0x178   : > { %6285 = vmatmul.msk.f32.gmra.mxu2 %vm380_vm1, %v7563_v3 }
 0x179   : > { %6310 = vmatmul.msk.f32.gmra.mxu0 %vm380_vm1, %v7559_v2  ;;  %6270 = vmatmul.msk.f32.gmra.mxu1 %vm380_vm1, %v7483_v47 }
 0x17a   : > { %6298 = vmatmul.msk.f32.gmra.mxu3 %vm380_vm1, %v605_v4 }
 0x180   : > { %6286 = vmatmul.msk.f32.gmra.mxu2 %vm380_vm1, %v7580_v6 }
 0x181   : > { %6311 = vmatmul.msk.f32.gmra.mxu0 %vm380_vm1, %v7577_v5  ;;  %6271 = vmatmul.msk.f32.gmra.mxu1 %vm380_vm1, %v7510_v53 }
 0x182   : > { %6299 = vmatmul.msk.f32.gmra.mxu3 %vm380_vm1, %v606_v9 }
 0x188   : > { %6287 = vmatmul.msk.f32.gmra.mxu2 %vm380_vm1, %v7592_v11 }
 0x189   : > { %6312 = vmatmul.msk.f32.gmra.mxu0 %vm380_vm1, %v7590_v10  ;;  %6272 = vmatmul.msk.f32.gmra.mxu1 %vm380_vm1, %v7559_v2 }
 0x18a   : > { %6300 = vmatmul.msk.f32.gmra.mxu3 %vm380_vm1, %v607_v13 }
 0x190   : > { %6288 = vmatmul.msk.f32.gmra.mxu2 %vm380_vm1, %v7606_v15 }
 0x191   : > { %6313 = vmatmul.msk.f32.gmra.mxu0 %vm380_vm1, %v7603_v14  ;;  %6273 = vmatmul.msk.f32.gmra.mxu1 %vm380_vm1, %v7577_v5 }
 0x192   : > { %6301 = vmatmul.msk.f32.gmra.mxu3 %vm380_vm1, %v851_v17 }
 0x198   : > { %6289 = vmatmul.msk.f32.gmra.mxu2 %vm380_vm1, %v1025_v28 }
 0x199   : > { %6314 = vmatmul.msk.f32.gmra.mxu0 %vm380_vm1, %v7686_v29  ;;  %6274 = vmatmul.msk.f32.gmra.mxu1 %vm380_vm1, %v7590_v10 }
 0x19a   : > { %6302 = vmatmul.msk.f32.gmra.mxu3 %vm380_vm1, %v1112_v27 }
 0x1a1   : > { %6315 = vmatmul.msk.f32.gmra.mxu0 %vm380_vm1, %v1199_v31  ;;  %6275 = vmatmul.msk.f32.gmra.mxu1 %vm380_vm1, %v7603_v14 }
 0x1a5   : > { %v899_v32 = vpop.f32.mrf.mxu0 }
 0x1a6   : > { %v671_v33 = vpop.f32.mrf.mxu1 }
 0x1a9   : > { %6321 = vmatmul.msk.f32.vlgmr.msrb.gmra.mxu0 %vm380_vm1, %v7487_v48  ;;  %6276 = vmatmul.msk.f32.gmra.mxu1 %vm380_vm1, %v7686_v29 }
 0x1ab   : > { %v736_v38 = vpop.f32.mrf.mxu2 }
 0x1ac   : > { %v737_v26 = vadd.f32 %v736_v38, %v671_v33 }
 0x1ad   : > { %v7701_v34 = vpop.f32.mrf.mxu0  ;;  %v815_v39 = vpop.f32.mrf.mxu3 }
 0x1ae   : > { %v7703_v35 = vpop.f32.mrf.mxu1 }
 0x1b1   : > { %6322 = vmatmul.msk.f32.gmra.mxu0 %vm380_vm1, %v7514_v54  ;;  %6326 = vmatmul.msk.f32.vlgmr.msra.gmra.mxu1 %vm380_vm1, %v7606_v15 }
 0x1b3   : > { %v739_v44 = vpop.f32.mrf.mxu2 }
 0x1b5   : > { %v7709_v36 = vpop.f32.mrf.mxu0  ;;  %v818_v48 = vpop.f32.mrf.mxu3 }
 0x1b6   : > { %v7711_v37 = vpop.f32.mrf.mxu1 }
 0x1b9   : > { %6323 = vmatmul.msk.f32.gmra.mxu0 %vm380_vm1, %v7563_v3  ;;  %6327 = vmatmul.msk.f32.gmra.mxu1 %vm380_vm1, %v1025_v28 }
 0x1bb   : > { %v742_v49 = vpop.f32.mrf.mxu2 }
 0x1bd   : > { %v7716_v40 = vpop.f32.mrf.mxu0  ;;  %v821_v52 = vpop.f32.mrf.mxu3 }
 0x1be   : > { %v7718_v41 = vpop.f32.mrf.mxu1 }
 0x1c1   : > { %6324 = vmatmul.msk.f32.gmra.mxu0 %vm380_vm1, %v7580_v6  ;;  %6328 = vmatmul.msk.f32.gmra.mxu1 %vm380_vm1, %v1286_v43  ;;  %v837_v43 = vadd.f32 %v815_v39, %v737_v26 }
 0x1c3   : > { %v7735_v56 = vpop.f32.mrf.mxu2 }
 0x1c5   : > { %v7723_v45 = vpop.f32.mrf.mxu0  ;;  %v7737_v57 = vpop.f32.mrf.mxu3 }
 0x1c6   : > { %v683_v46 = vpop.f32.mrf.mxu1 }
 0x1c9   : > { %6325 = vmatmul.msk.f32.gmra.mxu0 %vm380_vm1, %v7592_v11  ;;  %vm430_vm1 = vcmask 388096  }
 0x1cb   : > { %v748_v60 = vpop.f32.mrf.mxu2 }
 0x1cd   : > { %v7727_v50 = vpop.f32.mrf.mxu0  ;;  %v827_v61 = vpop.f32.mrf.mxu3 }
 0x1ce   : > { %v7729_v51 = vpop.f32.mrf.mxu1 }
 0x1d3   : > { %v7741_v0 = vpop.f32.mrf.mxu2 }
 0x1d5   : > { %v7731_v54 = vpop.f32.mrf.mxu0  ;;  %v7743_v4 = vpop.f32.mrf.mxu3 }
 0x1d6   : > { %v7733_v55 = vpop.f32.mrf.mxu1 }
 0x1db   : > { %v7745_v6 = vpop.f32.mrf.mxu2 }
 0x1dc   : > { %11010 = vst [vmem:[#allocation9_spill] sm:$0xff] %v7745_v6  ;;  %v749_v6 = vadd.f32 %v748_v60, %v683_v46 }
 0x1dd   : > { %v7739_v58 = vpop.f32.mrf.mxu0  ;;  %v7749_v11 = vpop.f32.mrf.mxu3 }
 0x1de   : > { %11009 = vst [vmem:[#allocation8_spill] sm:$0xff] %v7739_v58  ;;  %v733_v59 = vpop.f32.mrf.mxu1  ;;  %v924_v58 = vadd.f32 %v7701_v34, %v837_v43  ;;  %v743_v34 = vadd.f32 %v742_v49, %v7711_v37  ;;  %v746_v37 = vadd.f32 %v7735_v56, %v7718_v41 }
 0x1df   : > { %11011 = vst [vmem:[#allocation10_spill] sm:$0xff] %v7749_v11  ;;  %v734_v21 = vadd.f32 %v733_v59, %v668_v30  ;;  %v740_v11 = vadd.f32 %v739_v44, %v7703_v35 }
 0x1e0   : > { %v839_v60 = vadd.f32 %v821_v52, %v743_v34  ;;  %v6330_v34 = vld [vmem:[%s7802_s25 + $0x10] sm:$0xff] }
 0x1e3   : > { %v1073_v14 = vpop.f32.mrf.mxu2 }
 0x1e5   : > { %v1247_v62 = vpop.f32.mrf.mxu0  ;;  %v1160_v15 = vpop.f32.mrf.mxu3 }
 0x1e6   : > { %v812_v63 = vpop.f32.mrf.mxu1 }
 0x1e7   : > { %v836_v23 = vadd.f32 %v812_v63, %v734_v21  ;;  %v838_v21 = vadd.f32 %v818_v48, %v740_v11 }
 0x1e9   : > { %v923_v27 = vadd.f32 %v899_v32, %v836_v23  ;;  %v7766_v32 = vld [vmem:[%s10994_s5] ss:$0 sm:$0xff]  ;;  %v840_v23 = vadd.f32 %v7737_v57, %v746_v37  ;;  %v6395_v37 = vld [vmem:[%s10995_s6 + $0x178] sm:$0xff] }
 0x1ea   : > { %1837 = vmatpush.msrb.mxu1 %v6395_v37  ;;  %v6365_v37 = vld [vmem:[%s10995_s6 + $0xc8] sm:$0xff] }
 0x1eb   : > { %v1076_v18 = vpop.f32.mrf.mxu2 }
 0x1ed   : > { %v1163_v19 = vpop.f32.mrf.mxu3 }
 0x1ee   : > { %v1250_v1 = vpop.f32.mrf.mxu0  ;;  %v986_v3 = vpop.f32.mrf.mxu1 }
 0x1ef   : > { %v1010_v31 = vadd.f32 %v986_v3, %v923_v27  ;;  %v925_v3 = vadd.f32 %v7709_v36, %v838_v21  ;;  %v926_v36 = vadd.f32 %v7716_v40, %v839_v60 }
 0x1f1   : > { %v1097_v29 = vadd.f32 %v1073_v14, %v1010_v31 }
 0x1f3   : > { %v1079_v24 = vpop.f32.mrf.mxu2  ;;  %v1184_v59 = vadd.f32 %v1160_v15, %v1097_v29  ;;  %v841_v29 = vadd.f32 %v827_v61, %v749_v6 }
 0x1f5   : > { %v1166_v28 = vpop.f32.mrf.mxu3  ;;  %v1271_v33 = vadd.f32 %v1247_v62, %v1184_v59 }
 0x1f6   : > { %v7747_v8 = vpop.f32.mrf.mxu0  ;;  %v989_v9 = vpop.f32.mrf.mxu1 }
 0x1f7   : > { %v1011_v30 = vadd.f32 %v989_v9, %v924_v58  ;;  %v928_v9 = vadd.f32 %v7727_v50, %v841_v29 }
 0x1fb   : > { %v1082_v5 = vpop.f32.mrf.mxu2 }
 0x1fd   : > { %v1169_v63 = vpop.f32.mrf.mxu3 }
 0x1fe   : > { %v7751_v12 = vpop.f32.mrf.mxu0  ;;  %v992_v13 = vpop.f32.mrf.mxu1 }
 0x1ff   : > { %v1012_v58 = vadd.f32 %v992_v13, %v925_v3 }
 0x201   : > { %v1099_v11 = vadd.f32 %v1079_v24, %v1012_v58  ;;  %v6333_v58 = vld [vmem:[%s7802_s25 + $0x28] sm:$0xff] }
 0x203   : > { %v1085_v44 = vpop.f32.mrf.mxu2 }
 0x205   : > { %v1172_v62 = vpop.f32.mrf.mxu3 }
 0x206   : > { %v7753_v16 = vpop.f32.mrf.mxu0  ;;  %v995_v17 = vpop.f32.mrf.mxu1 }
 0x207   : > { %v1013_v13 = vadd.f32 %v995_v17, %v926_v36 }
 0x20d   : > { %v1175_v24 = vpop.f32.mrf.mxu3 }
 0x20e   : > { %v7755_v20 = vpop.f32.mrf.mxu0  ;;  %v998_v22 = vpop.f32.mrf.mxu1 }
 0x216   : > { %v7757_v25 = vpop.f32.mrf.mxu0  ;;  %v1001_v7 = vpop.f32.mrf.mxu1 }
 0x217   : > { %11012 = vst [vmem:[#allocation11_spill] sm:$0xff] %v7757_v25  ;;  %v1098_v25 = vadd.f32 %v1076_v18, %v1011_v30  ;;  %v1015_v49 = vadd.f32 %v1001_v7, %v928_v9  ;;  %v1186_v18 = vadd.f32 %v1166_v28, %v1099_v11  ;;  %v927_v7 = vadd.f32 %v7723_v45, %v840_v23  ;;  %v6345_v11 = vld [vmem:[%s10995_s6 + $0xa8] sm:$0xff] }
 0x219   : > { %v1185_v48 = vadd.f32 %v1163_v19, %v1098_v25  ;;  %v1088_v19 = vpop.f32.mrf.mxu2  ;;  %v1273_v40 = vadd.f32 %v7747_v8, %v1186_v18  ;;  %v1014_v26 = vadd.f32 %v998_v22, %v927_v7  ;;  %v6393_v18 = vld [vmem:[%s10995_s6 + $0x168] sm:$0xff]  ;;  %v1538_v7 = vld [vmem:[%s10995_s6 + $0x38] sm:$0xff] }
 0x21a   : > { %v1102_v50 = vadd.f32 %v1088_v19, %v1015_v49  ;;  %v1541_v49 = vld [vmem:[%s10995_s6 + $0x50] sm:$0xff]  ;;  %v6343_v19 = vld [vmem:[%s10995_s6 + $0x98] sm:$0xff] }
 0x21b   : > { %v1272_v14 = vadd.f32 %v1250_v1, %v1185_v48  ;;  %v1100_v1 = vadd.f32 %v1082_v5, %v1013_v13  ;;  %v1101_v57 = vadd.f32 %v1085_v44, %v1014_v26  ;;  %v752_v48 = vadd.f32 %v7741_v0, %v7729_v51  ;;  %v6344_v51 = vld [vmem:[%s10995_s6 + $0xa0] sm:$0xff]  ;;  %v6375_v0 = vld [vmem:[%s10995_s6 + $0x118] sm:$0xff]  ;;  %v6373_v13 = vld [vmem:[%s10995_s6 + $0x108] sm:$0xff] }
 0x21c   : > { %v1189_v41 = vadd.f32 %v1175_v24, %v1102_v50  ;;  %1743 = vmatpush.msra.mxu0 %v6375_v0  ;;  %v6332_v50 = vld [vmem:[%s7802_s25 + $0x20] sm:$0xff]  ;;  %v6371_v26 = vld [vmem:[%s10995_s6 + $0xf8] sm:$0xff]  ;;  %v6386_v0 = vld [vmem:[%s10995_s6 + $0x130] sm:$0xff] }
 0x21d   : > { %v1187_v27 = vadd.f32 %v1169_v63, %v1100_v1  ;;  %v1188_v59 = vadd.f32 %v1172_v62, %v1101_v57  ;;  %v842_v62 = vadd.f32 %v7743_v4, %v752_v48  ;;  %v11013_v4 = vmov 0.0   ;;  %v11015_v1 = vld [vmem:[#allocation10_spill] sm:$0xff]  ;;  %v6372_v24 = vld [vmem:[%s10995_s6 + $0x100] sm:$0xff]  ;;  %v11016_v57 = vld [vmem:[#allocation8_spill] sm:$0xff] }
 0x21e   : > { %v7759_v10 = vpop.f32.mrf.mxu0  ;;  %v7768_v38 = vpop.f32.mrf.mxu1  ;;  %v1276_v31 = vadd.f32 %v7755_v20, %v1189_v41  ;;  %403 = vst.msk [vmem:[#allocation3] sm:$0xff] %vm402_vm11, %v11013_v4  ;;  %v6342_v41 = vld [vmem:[%s10995_s6 + $0x90] sm:$0xff] }
 0x21f   : > { %v1274_v8 = vadd.f32 %v7751_v12, %v1187_v27  ;;  %v1275_v20 = vadd.f32 %v7753_v16, %v1188_v59  ;;  %v6329_v12 = vld [vmem:[%s7802_s25 + $0x8] sm:$0xff]  ;;  %v1418_v16 = vld [vmem:[%s7802_s25] sm:$0xff]  ;;  %405 = vst.msk [vmem:[#allocation3 + $0x8] sm:$0xf] %vm404_vm12, %v11013_v4  ;;  %v1178_v27 = vpop.f32.mrf.mxu3 }
 0x220   : > { %406 = vst.msk [vmem:[#allocation3 + $0x10] sm:$0xff] %vm402_vm11, %v11013_v4 }
 0x221   : > { %407 = vst.msk [vmem:[#allocation3 + $0x18] sm:$0xf] %vm404_vm12, %v11013_v4  ;;  %v1091_v23 = vpop.f32.mrf.mxu2 }
 0x222   : > { %408 = vst.msk [vmem:[#allocation3 + $0x20] sm:$0xff] %vm402_vm11, %v11013_v4 }
 0x223   : > { %409 = vst.msk [vmem:[#allocation3 + $0x28] sm:$0xf] %vm404_vm12, %v11013_v4 }
 0x224   : > { %410 = vst.msk [vmem:[#allocation3 + $0x30] sm:$0xff] %vm402_vm11, %v11013_v4 }
 0x225   : > { %411 = vst.msk [vmem:[#allocation3 + $0x38] sm:$0xf] %vm404_vm12, %v11013_v4 }
 0x226   : > { %v1334_v39 = vpop.f32.mrf.mxu0  ;;  %v7778_v6 = vpop.f32.mrf.mxu1  ;;  %412 = vst.msk [vmem:[#allocation3 + $0x40] sm:$0xff] %vm402_vm11, %v11013_v4 }
 0x227   : > { %v1358_v35 = vadd.f32 %v1334_v39, %v1271_v33  ;;  %413 = vst.msk [vmem:[#allocation3 + $0x48] sm:$0xf] %vm404_vm12, %v11013_v4 }
 0x228   : > { %414 = vst.msk [vmem:[#allocation3 + $0x50] sm:$0xff] %vm402_vm11, %v11013_v4 }
 0x229   : > { %v1370_v46 = vadd.f32 %v7766_v32, %v1358_v35  ;;  %415 = vst.msk [vmem:[#allocation3 + $0x58] sm:$0xf] %vm404_vm12, %v11013_v4 }
 0x22a   : > { %416 = vst.msk [vmem:[#allocation3 + $0x60] sm:$0xff] %vm402_vm11, %v11013_v4 }
 0x22b   : > { %1386 = vrot.lane.b32.xlu2 %v1370_v46, %s7218_s12  ;;  %417 = vst.msk [vmem:[#allocation3 + $0x68] sm:$0xf] %vm404_vm12, %v11013_v4 }
 0x22c   : > { %418 = vst.msk [vmem:[#allocation3 + $0x70] sm:$0xff] %vm402_vm11, %v11013_v4 }
 0x22d   : > { %419 = vst.msk [vmem:[#allocation3 + $0x78] sm:$0xf] %vm404_vm12, %v11013_v4 }
 0x22e   : > { %v1337_v15 = vpop.f32.mrf.mxu0  ;;  %v1349_v28 = vpop.f32.mrf.mxu1  ;;  %420 = vst.msk [vmem:[#allocation3 + $0x80] sm:$0xff] %vm402_vm11, %v11013_v4 }
 0x22f   : > { %v1359_v61 = vadd.f32 %v1337_v15, %v1272_v14  ;;  %v1363_v5 = vadd.f32 %v1349_v28, %v1276_v31  ;;  %v929_v14 = vadd.f32 %v7731_v54, %v842_v62  ;;  %v11014_v15 = vld [vmem:[#allocation9_spill] sm:$0xff]  ;;  %v6394_v54 = vld [vmem:[%s10995_s6 + $0x170] sm:$0xff]  ;;  %v6341_v31 = vld [vmem:[%s10995_s6 + $0x88] sm:$0xff]  ;;  %v1181_v62 = vpop.f32.mrf.mxu3  ;;  %421 = vst.msk [vmem:[#allocation3 + $0x88] sm:$0xf] %vm404_vm12, %v11013_v4 }
 0x230   : > { %v755_v36 = vadd.f32 %v11014_v15, %v7733_v55  ;;  %v1540_v55 = vld [vmem:[%s10995_s6 + $0x48] sm:$0xff]  ;;  %1838 = vmatpush.msrb.mxu1 %v6394_v54  ;;  %v1537_v28 = vld [vmem:[%s10995_s6 + $0x30] sm:$0xff]  ;;  %422 = vst.msk [vmem:[#allocation3 + $0x90] sm:$0xff] %vm402_vm11, %v11013_v4  ;;  %v6336_v54 = vld [vmem:[%s10995_s6 + $0x60] sm:$0xff] }
 0x231   : > { %v1371_v52 = vadd.f32 %v7766_v32, %v1359_v61  ;;  %v1375_v45 = vadd.f32 %v7766_v32, %v1363_v5  ;;  %v6374_v61 = vld [vmem:[%s10995_s6 + $0x110] sm:$0xff]  ;;  %423 = vst.msk [vmem:[#allocation3 + $0x98] sm:$0xf] %vm404_vm12, %v11013_v4 }
 0x232   : > { %1744 = vmatpush.msra.mxu0 %v6374_v61  ;;  %1839 = vmatpush.msrb.mxu1 %v6393_v18  ;;  %424 = vst.msk [vmem:[#allocation3 + $0xa0] sm:$0xff] %vm402_vm11, %v11013_v4  ;;  %v6384_v18 = vld [vmem:[%s10995_s6 + $0x120] sm:$0xff] }
 0x233   : > { %1388 = vrot.lane.b32.xlu0 %v1371_v52, %s7218_s12  ;;  %v1016_v52 = vadd.f32 %v7768_v38, %v929_v14  ;;  %v1539_v38 = vld [vmem:[%s10995_s6 + $0x40] sm:$0xff]  ;;  %v6337_v14 = vld [vmem:[%s10995_s6 + $0x68] sm:$0xff]  ;;  %425 = vst.msk [vmem:[#allocation3 + $0xa8] sm:$0xf] %vm404_vm12, %v11013_v4 }
 0x234   : > { %1745 = vmatpush.msra.mxu0 %v6373_v13  ;;  %426 = vst.msk [vmem:[#allocation3 + $0xb0] sm:$0xff] %vm402_vm11, %v11013_v4 }
 0x235   : > { %427 = vst.msk [vmem:[#allocation3 + $0xb8] sm:$0xf] %vm404_vm12, %v11013_v4 }
 0x236   : > { %v1340_v25 = vpop.f32.mrf.mxu0  ;;  %1746 = vmatpush.msra.mxu0 %v6372_v24 }
 0x237   : > { %v1360_v56 = vadd.f32 %v1340_v25, %v1273_v40  ;;  %v843_v40 = vadd.f32 %v11015_v1, %v755_v36  ;;  %v6392_v25 = vld [vmem:[%s10995_s6 + $0x160] sm:$0xff]  ;;  %v1532_v36 = vld [vmem:[%s10995_s6 + $0x8] sm:$0xff] }
 0x238   : > { %1840 = vmatpush.msrb.mxu1 %v6392_v25  ;;  %1747 = vmatpush.msra.mxu0 %v6371_v26  ;;  %v1788_v1 = vld [vmem:[#allocation3 + $0x3] sm:$0xff]  ;;  %v8041_v25 = vld [vmem:[#allocation3 + $0x11] sm:$0xff] }
 0x239   : > { %v1372_v17 = vadd.f32 %v7766_v32, %v1360_v56  ;;  %v1103_v56 = vadd.f32 %v1091_v23, %v1016_v52  ;;  %v930_v5 = vadd.f32 %v11016_v57, %v843_v40  ;;  %v6364_v52 = vld [vmem:[%s10995_s6 + $0xc0] sm:$0xff]  ;;  %v6415_v26 = vld [vmem:[%s10995_s6 + $0x1d8] sm:$0xff] }
 0x23a   : > { %v1543_v23 = vld [vmem:[#allocation3 + $0x1] sm:$0xff]  ;;  %v6411_v57 = vld [vmem:[%s10995_s6 + $0x1b8] sm:$0xff] }
 0x23b   : > { %1390 = vrot.lane.b32.xlu1 %v1372_v17, %s7218_s12  ;;  %v6391_v17 = vld [vmem:[%s10995_s6 + $0x158] sm:$0xff]  ;;  %v1017_v59 = vadd.f32 %v7778_v6, %v930_v5  ;;  %v11017_v6 = vld [vmem:[#allocation6_spill] sm:$0xff] }
 0x23c   : > { %1841 = vmatpush.msrb.mxu1 %v6391_v17  ;;  %v6414_v17 = vld [vmem:[%s10995_s6 + $0x1d0] sm:$0xff] }
 0x23e   : > { %v1343_v43 = vpop.f32.mrf.mxu0 }
 0x23f   : > { %v1361_v30 = vadd.f32 %v1343_v43, %v1274_v8  ;;  %v6370_v8 = vld [vmem:[%s10995_s6 + $0xf0] sm:$0xff] }
 0x240   : > { %v6390_v43 = vld [vmem:[%s10995_s6 + $0x150] sm:$0xff]  ;;  %1748 = vmatpush.msra.mxu0 %v6370_v8 }
 0x241   : > { %v1373_v22 = vadd.f32 %v7766_v32, %v1361_v30  ;;  %1842 = vmatpush.msrb.mxu1 %v6390_v43 }
 0x243   : > { %1392 = vrot.lane.b32.xlu2 %v1373_v22, %s7218_s12  ;;  %1396 = vrot.lane.b32.xlu1 %v1375_v45, %s7218_s12  ;;  %v1536_v45 = vld [vmem:[%s10995_s6 + $0x28] sm:$0xff]  ;;  %v6340_v22 = vld [vmem:[%s10995_s6 + $0x80] sm:$0xff] }
 0x246   : > { %v1346_v63 = vpop.f32.mrf.mxu0 }
 0x247   : > { %v1362_v21 = vadd.f32 %v1346_v63, %v1275_v20  ;;  %v1190_v20 = vadd.f32 %v1178_v27, %v1103_v56  ;;  %v6369_v63 = vld [vmem:[%s10995_s6 + $0xe8] sm:$0xff] }
 0x248   : > { %1749 = vmatpush.msra.mxu0 %v6369_v63  ;;  %v6413_v27 = vld [vmem:[%s10995_s6 + $0x1c8] sm:$0xff] }
 0x249   : > { %v1374_v33 = vadd.f32 %v7766_v32, %v1362_v21  ;;  %v6389_v21 = vld [vmem:[%s10995_s6 + $0x148] sm:$0xff] }
 0x24a   : > { %1843 = vmatpush.msrb.mxu1 %v6389_v21 }
 0x24b   : > { %1394 = vrot.lane.b32.xlu0 %v1374_v33, %s7218_s12  ;;  %1435 = vrot.lane.b32.xlu1 %v6329_v12, %s7221_s26  ;;  %v1352_v33 = vpop.f32.mrf.mxu1 }
 0x24c   : > { %1420 = vrot.lane.b32.xlu2 %v1418_v16, %s7221_s26 }
 0x253   : > { %v1355_v13 = vpop.f32.mrf.mxu1 }
 0x285   : > { %v1387_v39 = vpop.permute.xlu2 %1386 }
 0x286   : > { %v1410_v3 = vmax.f32 %v7460_v42, %v1387_v39  ;;  %v6347_v42 = vld [vmem:[%s10995_s6 + $0xb8] sm:$0xff]  ;;  %v11018_v39 = vld [vmem:[#allocation5_spill] sm:$0xff] }
 0x287   : > { %1592 = vmatpush.msra.mxu2 %v6347_v42  ;;  %v11019_v42 = vld [vmem:[#allocation11_spill] sm:$0xff] }
 0x288   : > { %1427 = vrot.lane.b32.xlu0 %v1410_v3, %s7222_s27  ;;  %v1277_v48 = vadd.f32 %v11019_v42, %v1190_v20  ;;  %v6410_v20 = vld [vmem:[%s10995_s6 + $0x1b0] sm:$0xff] }
 0x289   : > { %v6454_v42 = vld [vmem:[%s10995_s6 + $0x290] sm:$0xff] }
 0x290   : > { %1448 = vrot.lane.b32.xlu0 %v6330_v34, %s7221_s26  ;;  %v1535_v34 = vld [vmem:[%s10995_s6 + $0x20] sm:$0xff] }
 0x29d   : > { %v1393_v35 = vpop.permute.xlu2 %1392 }
 0x29e   : > { %v1413_v44 = vmax.f32 %v7559_v2, %v1393_v35  ;;  %v6331_v2 = vld [vmem:[%s7802_s25 + $0x18] sm:$0xff]  ;;  %v6368_v35 = vld [vmem:[%s10995_s6 + $0xe0] sm:$0xff] }
 0x29f   : > { %1750 = vmatpush.msra.mxu0 %v6368_v35  ;;  %v6435_v35 = vld [vmem:[%s10995_s6 + $0x238] sm:$0xff] }
 0x2a0   : > { %1467 = vrot.lane.b32.xlu0 %v1413_v44, %s7222_s27  ;;  %v1094_v44 = vpop.f32.mrf.mxu2 }
 0x2a5   : > { %v1389_v29 = vpop.permute.xlu0 %1388 }
 0x2a6   : > { %v1411_v46 = vmax.f32 %v7483_v47, %v1389_v29  ;;  %v6346_v47 = vld [vmem:[%s10995_s6 + $0xb0] sm:$0xff]  ;;  %v6388_v29 = vld [vmem:[%s10995_s6 + $0x140] sm:$0xff]  ;;  %v1421_v24 = vpop.permute.xlu2 %1420 }
 0x2a7   : > { %1593 = vmatpush.msra.mxu2 %v6346_v47  ;;  %v6338_v47 = vld [vmem:[%s10995_s6 + $0x70] sm:$0xff]  ;;  %1844 = vmatpush.msrb.mxu1 %v6388_v29  ;;  %1425 = vst.msk [vmem:[#allocation3 + $0x22] sm:$0xff] %vm1424_vm13, %v1421_v24  ;;  %v6475_v29 = vld [vmem:[%s10995_s6 + $0x2f8] sm:$0xff] }
 0x2a8   : > { %1441 = vrot.lane.b32.xlu2 %v1411_v46, %s7222_s27  ;;  %1487 = vrot.lane.b32.xlu0 %v6333_v58, %s7221_s26  ;;  %v6339_v58 = vld [vmem:[%s10995_s6 + $0x78] sm:$0xff]  ;;  %v1104_v46 = vadd.f32 %v1094_v44, %v1017_v59  ;;  %v6334_v59 = vld [vmem:[%s7802_s25 + $0x30] sm:$0xff] }
 0x2a9   : > { %1594 = vmatpush.msra.mxu2 %v6345_v11  ;;  %v1364_v11 = vadd.f32 %v1352_v33, %v1277_v48  ;;  %v6455_v44 = vld [vmem:[%s10995_s6 + $0x298] sm:$0xff]  ;;  %v6474_v48 = vld [vmem:[%s10995_s6 + $0x2f0] sm:$0xff] }
 0x2aa   : > { %v1191_v15 = vadd.f32 %v1181_v62, %v1104_v46  ;;  %v6434_v46 = vld [vmem:[%s10995_s6 + $0x230] sm:$0xff]  ;;  %v6473_v62 = vld [vmem:[%s10995_s6 + $0x2e8] sm:$0xff]  ;;  %v6447_v24 = vld [vmem:[%s10995_s6 + $0x258] sm:$0xff] }
 0x2ab   : > { %1595 = vmatpush.msra.mxu2 %v6344_v51  ;;  %v1533_v51 = vld [vmem:[%s10995_s6 + $0x10] sm:$0xff]  ;;  %v1376_v61 = vadd.f32 %v7766_v32, %v1364_v11  ;;  %v6472_v11 = vld [vmem:[%s10995_s6 + $0x2e0] sm:$0xff] }
 0x2ad   : > { %v1391_v60 = vpop.permute.xlu1 %1390  ;;  %1596 = vmatpush.msra.mxu2 %v6343_v19  ;;  %v1278_v19 = vadd.f32 %v7759_v10, %v1191_v15  ;;  %v6451_v15 = vld [vmem:[%s10995_s6 + $0x278] sm:$0xff] }
 0x2ae   : > { %v1412_v9 = vmax.f32 %v7510_v53, %v1391_v60  ;;  %v1542_v53 = vld [vmem:[%s10995_s6 + $0x58] sm:$0xff] }
 0x2af   : > { %1657 = vmatpush.msra.mxu3 %v1542_v53  ;;  %1597 = vmatpush.msra.mxu2 %v6342_v41  ;;  %v1534_v60 = vld [vmem:[%s10995_s6 + $0x18] sm:$0xff]  ;;  %v6366_v53 = vld [vmem:[%s10995_s6 + $0xd0] sm:$0xff]  ;;  %v1365_v40 = vadd.f32 %v1355_v13, %v1278_v19  ;;  %v6469_v13 = vld [vmem:[%s10995_s6 + $0x2c8] sm:$0xff] }
 0x2b0   : > { %1454 = vrot.lane.b32.xlu1 %v1412_v9, %s7222_s27  ;;  %1461 = vrot.lane.b32.xlu2 %v6331_v2, %s7221_s26  ;;  %v6367_v2 = vld [vmem:[%s10995_s6 + $0xd8] sm:$0xff]  ;;  %v6448_v19 = vld [vmem:[%s10995_s6 + $0x260] sm:$0xff] }
 0x2b1   : > { %1658 = vmatpush.msra.mxu3 %v1541_v49  ;;  %1598 = vmatpush.msra.mxu2 %v6341_v31  ;;  %v6387_v9 = vld [vmem:[%s10995_s6 + $0x138] sm:$0xff]  ;;  %v6385_v49 = vld [vmem:[%s10995_s6 + $0x128] sm:$0xff]  ;;  %v1377_v10 = vadd.f32 %v7766_v32, %v1365_v40  ;;  %v6412_v31 = vld [vmem:[%s10995_s6 + $0x1c0] sm:$0xff] }
 0x2b2   : > { %1751 = vmatpush.msra.mxu0 %v6367_v2  ;;  %1845 = vmatpush.msrb.mxu1 %v6387_v9  ;;  %v8045_v41 = vld [vmem:[#allocation3 + $0x12] sm:$0xff]  ;;  %v6453_v2 = vld [vmem:[%s10995_s6 + $0x288] sm:$0xff]  ;;  %v6432_v9 = vld [vmem:[%s10995_s6 + $0x220] sm:$0xff] }
 0x2b3   : > { %1659 = vmatpush.msra.mxu3 %v1540_v55  ;;  %1599 = vmatpush.msra.mxu2 %v6340_v22  ;;  %v1531_v55 = vld [vmem:[%s10995_s6] sm:$0xff]  ;;  %v8051_v32 = vld [vmem:[#allocation3 + $0x13] sm:$0xff] }
 0x2b4   : > { %1752 = vmatpush.msra.mxu0 %v6366_v53  ;;  %1846 = vmatpush.msrb.mxu1 %v6386_v0  ;;  %v6406_v0 = vld [vmem:[%s10995_s6 + $0x190] sm:$0xff] }
 0x2b5   : > { %1660 = vmatpush.msra.mxu3 %v1539_v38  ;;  %v1397_v30 = vpop.permute.xlu1 %1396  ;;  %1600 = vmatpush.msra.mxu2 %v6339_v58  ;;  %v1694_v38 = vld [vmem:[#allocation3 + $0x2] sm:$0xff]  ;;  %v6407_v58 = vld [vmem:[%s10995_s6 + $0x198] sm:$0xff] }
 0x2b6   : > { %v1415_v16 = vmax.f32 %v11017_v6, %v1397_v30  ;;  %1753 = vmatpush.msra.mxu0 %v6365_v37  ;;  %1847 = vmatpush.msrb.mxu1 %v6385_v49  ;;  %v6430_v37 = vld [vmem:[%s10995_s6 + $0x210] sm:$0xff] }
 0x2b7   : > { %1661 = vmatpush.msra.mxu3 %v1538_v7  ;;  %1601 = vmatpush.msra.mxu2 %v6338_v47  ;;  %v8043_v7 = vld [vmem:[#allocation3 + $0x10] sm:$0xff]  ;;  %v6452_v47 = vld [vmem:[%s10995_s6 + $0x280] sm:$0xff] }
 0x2b8   : > { %1474 = vrot.lane.b32.xlu1 %v6332_v50, %s7221_s26  ;;  %v1523_v50 = vld [vmem:[#allocation3] sm:$0xff]  ;;  %1754 = vmatpush.msra.mxu0 %v6364_v52  ;;  %v6450_v49 = vld [vmem:[%s10995_s6 + $0x270] sm:$0xff]  ;;  %v6405_v52 = vld [vmem:[%s10995_s6 + $0x188] sm:$0xff] }
 0x2b9   : > { %1662 = vmatpush.msra.mxu3 %v1537_v28  ;;  %1602 = vmatpush.msra.mxu2 %v6337_v14  ;;  %v6431_v14 = vld [vmem:[%s10995_s6 + $0x218] sm:$0xff] }
 0x2ba   : > { %1848 = vmatpush.msrb.mxu1 %v6384_v18  ;;  %6376 = vmatmul.msk.f32.vlgmr.msra.gmra.mxu0 %vm402_vm11, %v1694_v38  ;;  %v6428_v18 = vld [vmem:[%s10995_s6 + $0x200] sm:$0xff] }
 0x2bb   : > { %1663 = vmatpush.msra.mxu3 %v1536_v45  ;;  %1603 = vmatpush.msra.mxu2 %v6336_v54  ;;  %v6429_v54 = vld [vmem:[%s10995_s6 + $0x208] sm:$0xff] }
 0x2bc   : > { %6348 = vmatmul.msk.f32.vlgmr.msra.gmra.mxu2 %vm402_vm11, %v1543_v23  ;;  %6396 = vmatmul.msk.f32.vlgmr.msrb.gmra.mxu1 %vm402_vm11, %v1788_v1  ;;  %v6468_v23 = vld [vmem:[%s10995_s6 + $0x2c0] sm:$0xff]  ;;  %v7207_v1 = vld [vmem:[#allocation2 + $0x71] sm:$0xff] }
 0x2bd   : > { %v1395_v12 = vpop.permute.xlu0 %1394  ;;  %1664 = vmatpush.msra.mxu3 %v1535_v34  ;;  %v1436_v56 = vpop.permute.xlu1 %1435  ;;  %1931 = vmatpush.msrb.mxu2 %v6415_v26  ;;  %v6404_v26 = vld [vmem:[%s10995_s6 + $0x180] sm:$0xff] }
 0x2be   : > { %v1414_v3 = vmax.f32 %v11018_v39, %v1395_v12  ;;  %1439 = vst.msk [vmem:[#allocation3 + $0x32] sm:$0xff] %vm1424_vm13, %v1436_v56  ;;  %1500 = vrot.lane.b32.xlu0 %v6334_v59, %s7221_s26  ;;  %v6335_v39 = vld [vmem:[%s7802_s25 + $0x38] sm:$0xff]  ;;  %2120 = vmatpush.msrb.mxu0 %v6455_v44  ;;  %v6444_v44 = vld [vmem:[%s10995_s6 + $0x240] sm:$0xff] }
 0x2bf   : > { %1665 = vmatpush.msra.mxu3 %v1534_v60  ;;  %1932 = vmatpush.msrb.mxu2 %v6414_v17  ;;  %v6433_v60 = vld [vmem:[%s10995_s6 + $0x228] sm:$0xff]  ;;  %v6467_v56 = vld [vmem:[%s10995_s6 + $0x2b8] sm:$0xff]  ;;  %v6426_v17 = vld [vmem:[%s10995_s6 + $0x1f0] sm:$0xff] }
 0x2c0   : > { %1480 = vrot.lane.b32.xlu2 %v1414_v3, %s7222_s27  ;;  %1493 = vrot.lane.b32.xlu1 %v1415_v16, %s7222_s27  ;;  %v6409_v16 = vld [vmem:[%s10995_s6 + $0x1a8] sm:$0xff]  ;;  %v6408_v3 = vld [vmem:[%s10995_s6 + $0x1a0] sm:$0xff] }
 0x2c1   : > { %1666 = vmatpush.msra.mxu3 %v1533_v51  ;;  %1933 = vmatpush.msrb.mxu2 %v6413_v27  ;;  %v6446_v27 = vld [vmem:[%s10995_s6 + $0x250] sm:$0xff] }
 0x2c2   : > { %6377 = vmatmul.msk.f32.gmra.mxu0 %vm402_vm11, %v8045_v41  ;;  %2214 = vmatpush.msra.mxu1 %v6475_v29  ;;  %v6464_v29 = vld [vmem:[%s10995_s6 + $0x2a0] sm:$0xff] }
 0x2c3   : > { %1667 = vmatpush.msra.mxu3 %v1532_v36  ;;  %1934 = vmatpush.msrb.mxu2 %v6412_v31  ;;  %v6471_v36 = vld [vmem:[%s10995_s6 + $0x2d8] sm:$0xff]  ;;  %v6425_v31 = vld [vmem:[%s10995_s6 + $0x1e8] sm:$0xff] }
 0x2c4   : > { %6349 = vmatmul.msk.f32.gmra.mxu2 %vm402_vm11, %v8041_v25  ;;  %6397 = vmatmul.msk.f32.gmra.mxu1 %vm402_vm11, %v8051_v32 }
 0x2c5   : > { %1668 = vmatpush.msra.mxu3 %v1531_v55  ;;  %1935 = vmatpush.msrb.mxu2 %v6411_v57  ;;  %v6449_v55 = vld [vmem:[%s10995_s6 + $0x268] sm:$0xff] }
 0x2c6   : > { %6356 = vmatmul.msk.f32.vlgmr.msra.gmra.mxu3 %vm402_vm11, %v1523_v50  ;;  %1513 = vrot.lane.b32.xlu0 %v6335_v39, %s7221_s26  ;;  %v6445_v57 = vld [vmem:[%s10995_s6 + $0x248] sm:$0xff] }
 0x2c7   : > { %1936 = vmatpush.msrb.mxu2 %v6410_v20  ;;  %2026 = vmatpush.msrb.mxu3 %v6435_v35 }
 0x2c8   : > { %1398 = vrot.lane.b32.xlu2 %v1376_v61, %s7218_s12  ;;  %2121 = vmatpush.msrb.mxu0 %v6454_v42  ;;  %v6470_v61 = vld [vmem:[%s10995_s6 + $0x2d0] sm:$0xff] }
 0x2c9   : > { %1937 = vmatpush.msrb.mxu2 %v6409_v16  ;;  %2027 = vmatpush.msrb.mxu3 %v6434_v46  ;;  %v6494_v46 = vld [vmem:[%s10995_s6 + $0x350] sm:$0xff] }
 0x2ca   : > { %2215 = vmatpush.msra.mxu1 %v6474_v48  ;;  %2122 = vmatpush.msrb.mxu0 %v6453_v2 }
 0x2cb   : > { %1938 = vmatpush.msrb.mxu2 %v6408_v3  ;;  %2028 = vmatpush.msrb.mxu3 %v6433_v60  ;;  %v11020_v3 = vld [vmem:[#allocation7_spill] sm:$0xff] }
 0x2cc   : > { %2216 = vmatpush.msra.mxu1 %v6473_v62  ;;  %2123 = vmatpush.msrb.mxu0 %v6452_v47 }
 0x2cd   : > { %1939 = vmatpush.msrb.mxu2 %v6407_v58  ;;  %2029 = vmatpush.msrb.mxu3 %v6432_v9  ;;  %v6495_v58 = vld [vmem:[%s10995_s6 + $0x358] sm:$0xff]  ;;  %v6493_v9 = vld [vmem:[%s10995_s6 + $0x348] sm:$0xff] }
 0x2ce   : > { %6357 = vmatmul.msk.f32.gmra.mxu3 %vm402_vm11, %v8043_v7  ;;  %2217 = vmatpush.msra.mxu1 %v6472_v11 }
 0x2cf   : > { %1940 = vmatpush.msrb.mxu2 %v6406_v0  ;;  %2030 = vmatpush.msrb.mxu3 %v6431_v14  ;;  %v6492_v0 = vld [vmem:[%s10995_s6 + $0x340] sm:$0xff]  ;;  %v6491_v14 = vld [vmem:[%s10995_s6 + $0x338] sm:$0xff] }
 0x2d0   : > { %1400 = vrot.lane.b32.xlu2 %v1377_v10, %s7218_s12  ;;  %2124 = vmatpush.msrb.mxu0 %v6451_v15  ;;  %v6427_v10 = vld [vmem:[%s10995_s6 + $0x1f8] sm:$0xff] }
 0x2d1   : > { %2218 = vmatpush.msra.mxu1 %v6471_v36  ;;  %2031 = vmatpush.msrb.mxu3 %v6430_v37 }
 0x2d2   : > { %2125 = vmatpush.msrb.mxu0 %v6450_v49  ;;  %1941 = vmatpush.msrb.mxu2 %v6405_v52  ;;  %v8349_v52 = vld [vmem:[#allocation3 + $0x14] sm:$0xff] }
 0x2d3   : > { %2219 = vmatpush.msra.mxu1 %v6470_v61  ;;  %2032 = vmatpush.msrb.mxu3 %v6429_v54  ;;  %v6490_v61 = vld [vmem:[%s10995_s6 + $0x330] sm:$0xff]  ;;  %v1882_v54 = vld [vmem:[#allocation3 + $0x4] sm:$0xff] }
 0x2d4   : > { %2126 = vmatpush.msrb.mxu0 %v6449_v55  ;;  %1942 = vmatpush.msrb.mxu2 %v6404_v26  ;;  %v6489_v55 = vld [vmem:[%s10995_s6 + $0x328] sm:$0xff] }
 0x2d5   : > { %2220 = vmatpush.msra.mxu1 %v6469_v13  ;;  %2033 = vmatpush.msrb.mxu3 %v6428_v18  ;;  %v6488_v13 = vld [vmem:[%s10995_s6 + $0x320] sm:$0xff]  ;;  %v6485_v18 = vld [vmem:[%s10995_s6 + $0x308] sm:$0xff] }
 0x2d6   : > { %2127 = vmatpush.msrb.mxu0 %v6448_v19  ;;  %2308 = vmatpush.msra.mxu2 %v6495_v58  ;;  %v6551_v58 = vld [vmem:[%s10995_s6 + $0x458] sm:$0xff] }
 0x2d7   : > { %2221 = vmatpush.msra.mxu1 %v6468_v23  ;;  %2034 = vmatpush.msrb.mxu3 %v6427_v10  ;;  %v6515_v23 = vld [vmem:[%s10995_s6 + $0x3b8] sm:$0xff] }
 0x2d8   : > { %2128 = vmatpush.msrb.mxu0 %v6447_v24  ;;  %2309 = vmatpush.msra.mxu2 %v6494_v46  ;;  %v6535_v10 = vld [vmem:[%s10995_s6 + $0x418] sm:$0xff]  ;;  %v6510_v46 = vld [vmem:[%s10995_s6 + $0x390] sm:$0xff] }
 0x2d9   : > { %2222 = vmatpush.msra.mxu1 %v6467_v56  ;;  %2035 = vmatpush.msrb.mxu3 %v6426_v17  ;;  %v6555_v24 = vld [vmem:[%s10995_s6 + $0x478] sm:$0xff]  ;;  %v6513_v56 = vld [vmem:[%s10995_s6 + $0x3a8] sm:$0xff]  ;;  %v6574_v17 = vld [vmem:[%s10995_s6 + $0x4d0] sm:$0xff] }
 0x2da   : > { %2129 = vmatpush.msrb.mxu0 %v6446_v27  ;;  %2310 = vmatpush.msra.mxu2 %v6493_v9  ;;  %v6534_v27 = vld [vmem:[%s10995_s6 + $0x410] sm:$0xff] }
 0x2db   : > { %2036 = vmatpush.msrb.mxu3 %v6425_v31  ;;  %v6512_v31 = vld [vmem:[%s10995_s6 + $0x3a0] sm:$0xff]  ;;  %v6550_v9 = vld [vmem:[%s10995_s6 + $0x450] sm:$0xff] }
 0x2dc   : > { %2130 = vmatpush.msrb.mxu0 %v6445_v57  ;;  %2311 = vmatpush.msra.mxu2 %v6492_v0  ;;  %v6533_v57 = vld [vmem:[%s10995_s6 + $0x408] sm:$0xff]  ;;  %v6572_v0 = vld [vmem:[%s10995_s6 + $0x4c0] sm:$0xff] }
 0x2de   : > { %2131 = vmatpush.msrb.mxu0 %v6444_v44  ;;  %2312 = vmatpush.msra.mxu2 %v6491_v14  ;;  %v6509_v14 = vld [vmem:[%s10995_s6 + $0x388] sm:$0xff] }
 0x2e0   : > { %2313 = vmatpush.msra.mxu2 %v6490_v61  ;;  %2496 = vmatpush.msra.mxu0 %v6535_v10  ;;  %v6529_v61 = vld [vmem:[%s10995_s6 + $0x3e8] sm:$0xff]  ;;  %v6506_v10 = vld [vmem:[%s10995_s6 + $0x370] sm:$0xff] }
 0x2e2   : > { %2314 = vmatpush.msra.mxu2 %v6489_v55  ;;  %2497 = vmatpush.msra.mxu0 %v6534_v27  ;;  %v6570_v27 = vld [vmem:[%s10995_s6 + $0x4b0] sm:$0xff] }
 0x2e4   : > { %2315 = vmatpush.msra.mxu2 %v6488_v13  ;;  %2498 = vmatpush.msra.mxu0 %v6533_v57  ;;  %v6508_v13 = vld [vmem:[%s10995_s6 + $0x380] sm:$0xff] }
 0x2e5   : > { %v6504_v57 = vld [vmem:[%s10995_s6 + $0x360] sm:$0xff] }
 0x2fa   : > { %v1428_v28 = vpop.permute.xlu0 %1427 }
 0x2fb   : > { %1431 = vst.msk [vmem:[#allocation3 + $0x22] sm:$0xff] %vm1430_vm14, %v1428_v28  ;;  %v6466_v28 = vld [vmem:[%s10995_s6 + $0x2b0] sm:$0xff] }
 0x2fc   : > { %2223 = vmatpush.msra.mxu1 %v6466_v28  ;;  %v6554_v28 = vld [vmem:[%s10995_s6 + $0x470] sm:$0xff] }
 0x302   : > { %v1442_v5 = vpop.permute.xlu2 %1441  ;;  %v8074_v8 = vld [vmem:[#allocation3 + $0x21] sm:$0xff]  ;;  %v1449_v22 = vpop.permute.xlu0 %1448 }
 0x303   : > { %v8076_v43 = vld [vmem:[#allocation3 + $0x20] sm:$0xff]  ;;  %1444 = vst.msk [vmem:[#allocation3 + $0x32] sm:$0xff] %vm1430_vm14, %v1442_v5  ;;  %6350 = vmatmul.msk.f32.gmra.mxu2 %vm402_vm11, %v8074_v8  ;;  %v6465_v5 = vld [vmem:[%s10995_s6 + $0x2a8] sm:$0xff] }
 0x304   : > { %v8078_v30 = vld [vmem:[#allocation3 + $0x22] sm:$0xff]  ;;  %6358 = vmatmul.msk.f32.gmra.mxu3 %vm402_vm11, %v8076_v43  ;;  %1452 = vst.msk [vmem:[#allocation3 + $0x42] sm:$0xff] %vm1424_vm13, %v1449_v22  ;;  %2224 = vmatpush.msra.mxu1 %v6465_v5 }
 0x305   : > { %v8085_v45 = vld [vmem:[#allocation3 + $0x23] sm:$0xff]  ;;  %6378 = vmatmul.msk.f32.gmra.mxu0 %vm402_vm11, %v8078_v30 }
 0x306   : > { %6398 = vmatmul.msk.f32.gmra.mxu1 %vm402_vm11, %v8085_v45  ;;  %v6424_v22 = vld [vmem:[%s10995_s6 + $0x1e0] sm:$0xff]  ;;  %v6573_v5 = vld [vmem:[%s10995_s6 + $0x4c8] sm:$0xff] }
 0x307   : > { %2037 = vmatpush.msrb.mxu3 %v6424_v22  ;;  %2225 = vmatpush.msra.mxu1 %v6464_v29  ;;  %v6553_v22 = vld [vmem:[%s10995_s6 + $0x468] sm:$0xff]  ;;  %v6531_v29 = vld [vmem:[%s10995_s6 + $0x3f8] sm:$0xff] }
 0x309   : > { %2402 = vmatpush.msra.mxu3 %v6515_v23  ;;  %2590 = vmatpush.msrb.mxu1 %v6555_v24  ;;  %v6526_v24 = vld [vmem:[%s10995_s6 + $0x3d0] sm:$0xff] }
 0x30a   : > { %v8097_v63 = vld [vmem:[#allocation3 + $0x31] sm:$0xff]  ;;  %v1462_v12 = vpop.permute.xlu2 %1461 }
 0x30b   : > { %v8099_v21 = vld [vmem:[#allocation3 + $0x30] sm:$0xff]  ;;  %6351 = vmatmul.msk.f32.gmra.mxu2 %vm402_vm11, %v8097_v63  ;;  %1465 = vst.msk [vmem:[#allocation3 + $0x52] sm:$0xff] %vm1424_vm13, %v1462_v12  ;;  %2591 = vmatpush.msrb.mxu1 %v6554_v28  ;;  %v6525_v28 = vld [vmem:[%s10995_s6 + $0x3c8] sm:$0xff] }
 0x30c   : > { %v8101_v33 = vld [vmem:[#allocation3 + $0x32] sm:$0xff]  ;;  %6359 = vmatmul.msk.f32.gmra.mxu3 %vm402_vm11, %v8099_v21 }
 0x30d   : > { %v8107_v6 = vld [vmem:[#allocation3 + $0x33] sm:$0xff]  ;;  %6379 = vmatmul.msk.f32.gmra.mxu0 %vm402_vm11, %v8101_v33  ;;  %2592 = vmatpush.msrb.mxu1 %v6553_v22  ;;  %v6524_v22 = vld [vmem:[%s10995_s6 + $0x3c0] sm:$0xff] }
 0x30e   : > { %6399 = vmatmul.msk.f32.gmra.mxu1 %vm402_vm11, %v8107_v6  ;;  %v8378_v19 = vld [vmem:[#allocation3 + $0x34] sm:$0xff] }
 0x312   : > { %v1468_v34 = vpop.permute.xlu0 %1467 }
 0x313   : > { %1470 = vst.msk [vmem:[#allocation3 + $0x52] sm:$0xff] %vm1430_vm14, %v1468_v34 }
 0x31a   : > { %v8162_v51 = vpop.permute.xlu2 %1480  ;;  %v1488_v53 = vpop.permute.xlu0 %1487  ;;  %v8275_v48 = vld [vmem:[#allocation3 + $0x51] sm:$0xff] }
 0x31b   : > { %1491 = vst.msk [vmem:[#allocation3 + $0x72] sm:$0xff] %vm1424_vm13, %v1488_v53  ;;  %v8277_v60 = vld [vmem:[#allocation3 + $0x50] sm:$0xff] }
 0x31c   : > { %v8284_v2 = vld [vmem:[#allocation3 + $0x52] sm:$0xff] }
 0x31d   : > { %v8286_v62 = vld [vmem:[#allocation3 + $0x53] sm:$0xff] }
 0x31e   : > { %v8419_v26 = vld [vmem:[#allocation3 + $0x54] sm:$0xff] }
 0x322   : > { %v1455_v50 = vpop.permute.xlu1 %1454  ;;  %v1399_v38 = vpop.permute.xlu2 %1398 }
 0x323   : > { %1457 = vst.msk [vmem:[#allocation3 + $0x42] sm:$0xff] %vm1430_vm14, %v1455_v50  ;;  %v1416_v40 = vmax.f32 %v7207_v1, %v1399_v38  ;;  %v6484_v50 = vld [vmem:[%s10995_s6 + $0x300] sm:$0xff]  ;;  %v6514_v1 = vld [vmem:[%s10995_s6 + $0x3b0] sm:$0xff] }
 0x324   : > { %2403 = vmatpush.msra.mxu3 %v6514_v1  ;;  %v6571_v1 = vld [vmem:[%s10995_s6 + $0x4b8] sm:$0xff] }
 0x325   : > { %1506 = vrot.lane.b32.xlu1 %v1416_v40, %s7222_s27  ;;  %v6575_v40 = vld [vmem:[%s10995_s6 + $0x4d8] sm:$0xff] }
 0x326   : > { %2404 = vmatpush.msra.mxu3 %v6513_v56  ;;  %v6546_v56 = vld [vmem:[%s10995_s6 + $0x430] sm:$0xff] }
 0x328   : > { %2405 = vmatpush.msra.mxu3 %v6512_v31  ;;  %v6545_v31 = vld [vmem:[%s10995_s6 + $0x428] sm:$0xff] }
 0x32a   : > { %v1475_v59 = vpop.permute.xlu1 %1474  ;;  %v1401_v20 = vpop.permute.xlu2 %1400  ;;  %v8242_v12 = vld [vmem:[#allocation3 + $0x41] sm:$0xff] }
 0x32b   : > { %v8244_v16 = vld [vmem:[#allocation3 + $0x40] sm:$0xff]  ;;  %1478 = vst.msk [vmem:[#allocation3 + $0x62] sm:$0xff] %vm1424_vm13, %v1475_v59  ;;  %v1417_v34 = vmax.f32 %v11020_v3, %v1401_v20  ;;  %6352 = vmatmul.msk.f32.gmra.mxu2 %vm402_vm11, %v8242_v12 }
 0x32c   : > { %v8246_v39 = vld [vmem:[#allocation3 + $0x42] sm:$0xff]  ;;  %6360 = vmatmul.msk.f32.gmra.mxu3 %vm402_vm11, %v8244_v16  ;;  %1483 = vst.msk [vmem:[#allocation3 + $0x62] sm:$0xff] %vm1430_vm14, %v8162_v51 }
 0x32d   : > { %v8254_v35 = vld [vmem:[#allocation3 + $0x43] sm:$0xff]  ;;  %6380 = vmatmul.msk.f32.gmra.mxu0 %vm402_vm11, %v8246_v39  ;;  %1519 = vrot.lane.b32.xlu1 %v1417_v34, %s7222_s27  ;;  %v6511_v34 = vld [vmem:[%s10995_s6 + $0x398] sm:$0xff] }
 0x32e   : > { %6400 = vmatmul.msk.f32.gmra.mxu1 %vm402_vm11, %v8254_v35  ;;  %v8394_v38 = vld [vmem:[#allocation3 + $0x44] sm:$0xff]  ;;  %2406 = vmatpush.msra.mxu3 %v6511_v34 }
 0x32f   : > { %v6532_v59 = vld [vmem:[%s10995_s6 + $0x400] sm:$0xff] }
 0x330   : > { %v1501_v20 = vpop.permute.xlu0 %1500  ;;  %v6552_v3 = vld [vmem:[%s10995_s6 + $0x460] sm:$0xff]  ;;  %2499 = vmatpush.msra.mxu0 %v6532_v59  ;;  %2407 = vmatpush.msra.mxu3 %v6510_v46 }
 0x331   : > { %1504 = vst.msk [vmem:[#allocation3 + $0x82] sm:$0xff] %vm1424_vm13, %v1501_v20  ;;  %2593 = vmatpush.msrb.mxu1 %v6552_v3  ;;  %v6544_v59 = vld [vmem:[%s10995_s6 + $0x420] sm:$0xff]  ;;  %v6569_v3 = vld [vmem:[%s10995_s6 + $0x4a8] sm:$0xff] }
 0x332   : > { %v1494_v42 = vpop.permute.xlu1 %1493  ;;  %2500 = vmatpush.msra.mxu0 %v6531_v29  ;;  %2408 = vmatpush.msra.mxu3 %v6509_v14 }
 0x333   : > { %1496 = vst.msk [vmem:[#allocation3 + $0x72] sm:$0xff] %vm1430_vm14, %v1494_v42  ;;  %6353 = vmatmul.msk.f32.gmra.mxu2 %vm402_vm11, %v8275_v48  ;;  %v8295_v47 = vld [vmem:[#allocation3 + $0x61] sm:$0xff]  ;;  %v6530_v42 = vld [vmem:[%s10995_s6 + $0x3f0] sm:$0xff]  ;;  %2594 = vmatpush.msrb.mxu1 %v6551_v58 }
 0x334   : > { %6361 = vmatmul.msk.f32.gmra.mxu3 %vm402_vm11, %v8277_v60  ;;  %v8297_v11 = vld [vmem:[#allocation3 + $0x60] sm:$0xff]  ;;  %2501 = vmatpush.msra.mxu0 %v6530_v42 }
 0x335   : > { %6381 = vmatmul.msk.f32.gmra.mxu0 %vm402_vm11, %v8284_v2  ;;  %v8303_v51 = vld [vmem:[#allocation3 + $0x62] sm:$0xff]  ;;  %2595 = vmatpush.msrb.mxu1 %v6550_v9 }
 0x336   : > { %6401 = vmatmul.msk.f32.gmra.mxu1 %vm402_vm11, %v8286_v62  ;;  %v8305_v53 = vld [vmem:[#allocation3 + $0x63] sm:$0xff]  ;;  %2502 = vmatpush.msra.mxu0 %v6529_v61 }
 0x337   : > { %v8460_v44 = vld [vmem:[#allocation3 + $0x64] sm:$0xff]  ;;  %2409 = vmatpush.msra.mxu3 %v6508_v13  ;;  %v8555_v20 = vpop.f32.mrf.mxu0 }
 0x338   : > { %v1514_v55 = vpop.permute.xlu0 %1513  ;;  %v6568_v58 = vld [vmem:[%s10995_s6 + $0x4a0] sm:$0xff] }
 0x339   : > { %1517 = vst.msk [vmem:[#allocation3 + $0x92] sm:$0xff] %vm1424_vm13, %v1514_v55  ;;  %v8562_v34 = vpop.f32.mrf.mxu1 }
 0x33a   : > { %v8317_v15 = vld [vmem:[#allocation3 + $0x71] sm:$0xff] }
 0x33b   : > { %6354 = vmatmul.msk.f32.gmra.mxu2 %vm402_vm11, %v8295_v47  ;;  %v8319_v36 = vld [vmem:[#allocation3 + $0x70] sm:$0xff] }
 0x33c   : > { %6362 = vmatmul.msk.f32.gmra.mxu3 %vm402_vm11, %v8297_v11  ;;  %v8325_v37 = vld [vmem:[#allocation3 + $0x72] sm:$0xff] }
 0x33d   : > { %6382 = vmatmul.msk.f32.gmra.mxu0 %vm402_vm11, %v8303_v51  ;;  %v8327_v49 = vld [vmem:[#allocation3 + $0x73] sm:$0xff] }
 0x33e   : > { %6402 = vmatmul.msk.f32.gmra.mxu1 %vm402_vm11, %v8305_v53  ;;  %v8510_v23 = vld [vmem:[#allocation3 + $0x74] sm:$0xff] }
 0x341   : > { %v8575_v42 = vpop.f32.mrf.mxu1 }
 0x343   : > { %6355 = vmatmul.msk.f32.gmra.mxu2 %vm402_vm11, %v8317_v15 }
 0x344   : > { %6363 = vmatmul.msk.f32.gmra.mxu3 %vm402_vm11, %v8319_v36 }
 0x345   : > { %6383 = vmatmul.msk.f32.gmra.mxu0 %vm402_vm11, %v8325_v37 }
 0x346   : > { %6403 = vmatmul.msk.f32.gmra.mxu1 %vm402_vm11, %v8327_v49 }
 0x349   : > { %v8564_v29 = vpop.f32.mrf.mxu3 }
 0x34b   : > { %6416 = vmatmul.msk.f32.vlgmr.msrb.gmra.mxu2 %vm402_vm11, %v1882_v54  ;;  %v6549_v54 = vld [vmem:[%s10995_s6 + $0x448] sm:$0xff] }
 0x34c   : > { %6436 = vmatmul.msk.f32.vlgmr.msrb.gmra.mxu3 %vm402_vm11, %v8043_v7  ;;  %v8362_v7 = vld [vmem:[#allocation3 + $0x24] sm:$0xff]  ;;  %2596 = vmatpush.msrb.mxu1 %v6549_v54 }
 0x34d   : > { %6456 = vmatmul.msk.f32.vlgmr.msrb.gmra.mxu0 %vm402_vm11, %v8041_v25  ;;  %v6487_v25 = vld [vmem:[%s10995_s6 + $0x318] sm:$0xff] }
 0x34e   : > { %6476 = vmatmul.msk.f32.vlgmr.msra.gmra.mxu1 %vm402_vm11, %v8045_v41  ;;  %2316 = vmatpush.msra.mxu2 %v6487_v25  ;;  %v6486_v41 = vld [vmem:[%s10995_s6 + $0x310] sm:$0xff]  ;;  %v6528_v25 = vld [vmem:[%s10995_s6 + $0x3e0] sm:$0xff] }
 0x34f   : > { %2503 = vmatpush.msra.mxu0 %v6528_v25 }
 0x350   : > { %2317 = vmatpush.msra.mxu2 %v6486_v41  ;;  %v6548_v41 = vld [vmem:[%s10995_s6 + $0x440] sm:$0xff] }
 0x351   : > { %2597 = vmatpush.msrb.mxu1 %v6548_v41  ;;  %v8581_v14 = vpop.f32.mrf.mxu3 }
 0x352   : > { %2318 = vmatpush.msra.mxu2 %v6485_v18  ;;  %v6507_v18 = vld [vmem:[%s10995_s6 + $0x378] sm:$0xff] }
 0x353   : > { %6417 = vmatmul.msk.f32.gmra.mxu2 %vm402_vm11, %v8349_v52  ;;  %2410 = vmatpush.msra.mxu3 %v6507_v18 }
 0x354   : > { %6437 = vmatmul.msk.f32.gmra.mxu3 %vm402_vm11, %v8076_v43  ;;  %2319 = vmatpush.msra.mxu2 %v6484_v50  ;;  %v6527_v50 = vld [vmem:[%s10995_s6 + $0x3d8] sm:$0xff] }
 0x355   : > { %6457 = vmatmul.msk.f32.gmra.mxu0 %vm402_vm11, %v8074_v8  ;;  %2411 = vmatpush.msra.mxu3 %v6506_v10 }
 0x356   : > { %6477 = vmatmul.msk.f32.gmra.mxu1 %vm402_vm11, %v8078_v30  ;;  %2684 = vmatpush.msrb.mxu2 %v6575_v40  ;;  %v6547_v40 = vld [vmem:[%s10995_s6 + $0x438] sm:$0xff] }
 0x357   : > { %2504 = vmatpush.msra.mxu0 %v6527_v50  ;;  %2598 = vmatpush.msrb.mxu1 %v6547_v40  ;;  %v6595_v50 = vld [vmem:[%s10995_s6 + $0x538] sm:$0xff] }
 0x358   : > { %2685 = vmatpush.msrb.mxu2 %v6574_v17  ;;  %v6505_v17 = vld [vmem:[%s10995_s6 + $0x368] sm:$0xff] }
 0x359   : > { %2505 = vmatpush.msra.mxu0 %v6526_v24  ;;  %2599 = vmatpush.msrb.mxu1 %v6546_v56 }
 0x35a   : > { %2686 = vmatpush.msrb.mxu2 %v6573_v5  ;;  %v8547_v5 = vpop.f32.mrf.mxu2  ;;  %2412 = vmatpush.msra.mxu3 %v6505_v17 }
 0x35b   : > { %6418 = vmatmul.msk.f32.gmra.mxu2 %vm402_vm11, %v8362_v7  ;;  %2506 = vmatpush.msra.mxu0 %v6525_v28  ;;  %v6635_v28 = vld [vmem:[%s10995_s6 + $0x5f8] sm:$0xff] }
 0x35c   : > { %6438 = vmatmul.msk.f32.gmra.mxu3 %vm402_vm11, %v8099_v21  ;;  %2687 = vmatpush.msrb.mxu2 %v6572_v0  ;;  %v6567_v0 = vld [vmem:[%s10995_s6 + $0x498] sm:$0xff] }
 0x35d   : > { %6458 = vmatmul.msk.f32.gmra.mxu0 %vm402_vm11, %v8097_v63  ;;  %2600 = vmatpush.msrb.mxu1 %v6545_v31  ;;  %v6593_v31 = vld [vmem:[%s10995_s6 + $0x528] sm:$0xff] }
 0x35e   : > { %6478 = vmatmul.msk.f32.gmra.mxu1 %vm402_vm11, %v8101_v33  ;;  %2688 = vmatpush.msrb.mxu2 %v6571_v1 }
 0x35f   : > { %2413 = vmatpush.msra.mxu3 %v6504_v57  ;;  %2507 = vmatpush.msra.mxu0 %v6524_v22  ;;  %v6592_v57 = vld [vmem:[%s10995_s6 + $0x520] sm:$0xff]  ;;  %v6613_v22 = vld [vmem:[%s10995_s6 + $0x588] sm:$0xff] }
 0x360   : > { %2689 = vmatpush.msrb.mxu2 %v6570_v27  ;;  %2601 = vmatpush.msrb.mxu1 %v6544_v59 }
 0x361   : > { %2778 = vmatpush.msrb.mxu3 %v6595_v50  ;;  %v6590_v50 = vld [vmem:[%s10995_s6 + $0x510] sm:$0xff] }
 0x362   : > { %2690 = vmatpush.msrb.mxu2 %v6569_v3  ;;  %v8569_v46 = vpop.f32.mrf.mxu2  ;;  %2966 = vmatpush.msra.mxu1 %v6635_v28  ;;  %v6589_v28 = vld [vmem:[%s10995_s6 + $0x508] sm:$0xff] }
 0x363   : > { %6419 = vmatmul.msk.f32.gmra.mxu2 %vm402_vm11, %v8378_v19 }
 0x364   : > { %6439 = vmatmul.msk.f32.gmra.mxu3 %vm402_vm11, %v8244_v16  ;;  %2691 = vmatpush.msrb.mxu2 %v6568_v58  ;;  %v6633_v58 = vld [vmem:[%s10995_s6 + $0x5e8] sm:$0xff] }
 0x365   : > { %6459 = vmatmul.msk.f32.gmra.mxu0 %vm402_vm11, %v8242_v12 }
 0x366   : > { %6479 = vmatmul.msk.f32.gmra.mxu1 %vm402_vm11, %v8246_v39  ;;  %2692 = vmatpush.msrb.mxu2 %v6567_v0  ;;  %v6653_v0 = vld [vmem:[%s10995_s6 + $0x648] sm:$0xff] }
 0x36b   : > { %6420 = vmatmul.msk.f32.gmra.mxu2 %vm402_vm11, %v8394_v38 }
 0x36c   : > { %6440 = vmatmul.msk.f32.gmra.mxu3 %vm402_vm11, %v8277_v60 }
 0x36d   : > { %6460 = vmatmul.msk.f32.gmra.mxu0 %vm402_vm11, %v8275_v48 }
 0x36e   : > { %6480 = vmatmul.msk.f32.gmra.mxu1 %vm402_vm11, %v8284_v2 }
 0x373   : > { %6421 = vmatmul.msk.f32.gmra.mxu2 %vm402_vm11, %v8419_v26 }
 0x374   : > { %6441 = vmatmul.msk.f32.gmra.mxu3 %vm402_vm11, %v8297_v11 }
 0x375   : > { %6461 = vmatmul.msk.f32.gmra.mxu0 %vm402_vm11, %v8295_v47 }
 0x376   : > { %6481 = vmatmul.msk.f32.gmra.mxu1 %vm402_vm11, %v8303_v51 }
 0x37b   : > { %6422 = vmatmul.msk.f32.gmra.mxu2 %vm402_vm11, %v8460_v44 }
 0x37c   : > { %6442 = vmatmul.msk.f32.gmra.mxu3 %vm402_vm11, %v8319_v36 }
 0x37d   : > { %6462 = vmatmul.msk.f32.gmra.mxu0 %vm402_vm11, %v8317_v15 }
 0x37e   : > { %6482 = vmatmul.msk.f32.gmra.mxu1 %vm402_vm11, %v8325_v37 }
 0x383   : > { %6423 = vmatmul.msk.f32.gmra.mxu2 %vm402_vm11, %v8510_v23  ;;  %v8598_v18 = vpop.f32.mrf.mxu1 }
 0x386   : > { %v8588_v61 = vpop.f32.mrf.mxu2 }
 0x387   : > { %v8615_v1 = vpop.f32.mrf.mxu3 }
 0x38b   : > { %6496 = vmatmul.msk.f32.vlgmr.msra.gmra.mxu2 %vm402_vm11, %v8051_v32  ;;  %v8573_v32 = vpop.f32.mrf.mxu0  ;;  %v8630_v24 = vpop.f32.mrf.mxu1 }
 0x38e   : > { %v8617_v40 = vpop.f32.mrf.mxu2 }
 0x38f   : > { %v8645_v17 = vpop.f32.mrf.mxu3 }
 0x393   : > { %6497 = vmatmul.msk.f32.gmra.mxu2 %vm402_vm11, %v8085_v45  ;;  %v6566_v45 = vld [vmem:[%s10995_s6 + $0x490] sm:$0xff]  ;;  %v8590_v54 = vpop.f32.mrf.mxu0 }
 0x394   : > { %2693 = vmatpush.msrb.mxu2 %v6566_v45  ;;  %v6612_v45 = vld [vmem:[%s10995_s6 + $0x580] sm:$0xff] }
 0x397   : > { %v1507_v9 = vpop.permute.xlu1 %1506 }
 0x398   : > { %1509 = vst.msk [vmem:[#allocation3 + $0x82] sm:$0xff] %vm1430_vm14, %v1507_v9 }
 0x39b   : > { %6498 = vmatmul.msk.f32.gmra.mxu2 %vm402_vm11, %v8107_v6  ;;  %v6565_v6 = vld [vmem:[%s10995_s6 + $0x488] sm:$0xff]  ;;  %v8623_v10 = vpop.f32.mrf.mxu0 }
 0x39c   : > { %2694 = vmatpush.msrb.mxu2 %v6565_v6  ;;  %v6631_v6 = vld [vmem:[%s10995_s6 + $0x5d8] sm:$0xff] }
 0x39f   : > { %v1520_v55 = vpop.permute.xlu1 %1519  ;;  %v8592_v13 = vld [vmem:[#allocation3 + $0x80] sm:$0xff] }
 0x3a0   : > { %v8594_v25 = vld [vmem:[#allocation3 + $0x81] sm:$0xff]  ;;  %1522 = vst.msk [vmem:[#allocation3 + $0x92] sm:$0xff] %vm1430_vm14, %v1520_v55  ;;  %6443 = vmatmul.msk.f32.gmra.mxu3 %vm402_vm11, %v8592_v13 }
 0x3a1   : > { %v8596_v41 = vld [vmem:[#allocation3 + $0x82] sm:$0xff]  ;;  %6463 = vmatmul.msk.f32.gmra.mxu0 %vm402_vm11, %v8594_v25 }
 0x3a2   : > { %6483 = vmatmul.msk.f32.gmra.mxu1 %vm402_vm11, %v8596_v41 }
 0x3a3   : > { %6499 = vmatmul.msk.f32.gmra.mxu2 %vm402_vm11, %v8254_v35  ;;  %v6564_v35 = vld [vmem:[%s10995_s6 + $0x480] sm:$0xff] }
 0x3a4   : > { %2695 = vmatpush.msrb.mxu2 %v6564_v35 }
 0x3a8   : > { %6516 = vmatmul.msk.f32.vlgmr.msra.gmra.mxu3 %vm402_vm11, %v8349_v52  ;;  %v6594_v52 = vld [vmem:[%s10995_s6 + $0x530] sm:$0xff] }
 0x3a9   : > { %6536 = vmatmul.msk.f32.vlgmr.msra.gmra.mxu0 %vm402_vm11, %v8076_v43  ;;  %v6655_v43 = vld [vmem:[%s10995_s6 + $0x658] sm:$0xff]  ;;  %2779 = vmatpush.msrb.mxu3 %v6594_v52  ;;  %v6610_v52 = vld [vmem:[%s10995_s6 + $0x570] sm:$0xff] }
 0x3aa   : > { %6556 = vmatmul.msk.f32.vlgmr.msrb.gmra.mxu1 %vm402_vm11, %v8074_v8  ;;  %v6615_v8 = vld [vmem:[%s10995_s6 + $0x598] sm:$0xff]  ;;  %3060 = vmatpush.msra.mxu2 %v6655_v43  ;;  %v6630_v43 = vld [vmem:[%s10995_s6 + $0x5d0] sm:$0xff] }
 0x3ab   : > { %6500 = vmatmul.msk.f32.gmra.mxu2 %vm402_vm11, %v8286_v62  ;;  %2872 = vmatpush.msrb.mxu0 %v6615_v8  ;;  %v8651_v62 = vpop.f32.mrf.mxu0  ;;  %v8655_v27 = vpop.f32.mrf.mxu1  ;;  %v6652_v8 = vld [vmem:[%s10995_s6 + $0x640] sm:$0xff] }
 0x3ac   : > { %2780 = vmatpush.msrb.mxu3 %v6593_v31 }
 0x3ae   : > { %v8643_v56 = vpop.f32.mrf.mxu2  ;;  %2781 = vmatpush.msrb.mxu3 %v6592_v57  ;;  %v6628_v57 = vld [vmem:[%s10995_s6 + $0x5c0] sm:$0xff] }
 0x3af   : > { %v8682_v3 = vpop.f32.mrf.mxu3 }
 0x3b0   : > { %6517 = vmatmul.msk.f32.gmra.mxu3 %vm402_vm11, %v8362_v7 }
 0x3b1   : > { %6537 = vmatmul.msk.f32.gmra.mxu0 %vm402_vm11, %v8099_v21  ;;  %v6654_v21 = vld [vmem:[%s10995_s6 + $0x650] sm:$0xff] }
 0x3b2   : > { %6557 = vmatmul.msk.f32.gmra.mxu1 %vm402_vm11, %v8097_v63  ;;  %v6614_v63 = vld [vmem:[%s10995_s6 + $0x590] sm:$0xff]  ;;  %3061 = vmatpush.msra.mxu2 %v6654_v21  ;;  %v6609_v21 = vld [vmem:[%s10995_s6 + $0x568] sm:$0xff] }
 0x3b3   : > { %6501 = vmatmul.msk.f32.gmra.mxu2 %vm402_vm11, %v8305_v53  ;;  %v6634_v53 = vld [vmem:[%s10995_s6 + $0x5f0] sm:$0xff]  ;;  %2873 = vmatpush.msrb.mxu0 %v6614_v63  ;;  %v8693_v9 = vpop.f32.mrf.mxu0  ;;  %v8706_v55 = vpop.f32.mrf.mxu1  ;;  %v6629_v63 = vld [vmem:[%s10995_s6 + $0x5c8] sm:$0xff] }
 0x3b4   : > { %2967 = vmatpush.msra.mxu1 %v6634_v53  ;;  %3062 = vmatpush.msra.mxu2 %v6653_v0  ;;  %v8748_v53 = vld [vmem:[#allocation3 + $0x83] sm:$0xff]  ;;  %v6651_v0 = vld [vmem:[%s10995_s6 + $0x638] sm:$0xff] }
 0x3b5   : > { %2874 = vmatpush.msrb.mxu0 %v6613_v22  ;;  %v6587_v22 = vld [vmem:[%s10995_s6 + $0x4f8] sm:$0xff] }
 0x3b6   : > { %v8680_v59 = vpop.f32.mrf.mxu2  ;;  %2968 = vmatpush.msra.mxu1 %v6633_v58  ;;  %3063 = vmatpush.msra.mxu2 %v6652_v8 }
 0x3b7   : > { %2875 = vmatpush.msrb.mxu0 %v6612_v45  ;;  %v8738_v31 = vpop.f32.mrf.mxu3 }
 0x3b8   : > { %6518 = vmatmul.msk.f32.gmra.mxu3 %vm402_vm11, %v8378_v19  ;;  %3064 = vmatpush.msra.mxu2 %v6651_v0  ;;  %v6648_v0 = vld [vmem:[%s10995_s6 + $0x620] sm:$0xff] }
 0x3b9   : > { %6538 = vmatmul.msk.f32.gmra.mxu0 %vm402_vm11, %v8244_v16  ;;  %v6632_v16 = vld [vmem:[%s10995_s6 + $0x5e0] sm:$0xff] }
 0x3ba   : > { %6558 = vmatmul.msk.f32.gmra.mxu1 %vm402_vm11, %v8242_v12  ;;  %v6591_v12 = vld [vmem:[%s10995_s6 + $0x518] sm:$0xff] }
 0x3bb   : > { %6502 = vmatmul.msk.f32.gmra.mxu2 %vm402_vm11, %v8327_v49  ;;  %v6611_v49 = vld [vmem:[%s10995_s6 + $0x578] sm:$0xff]  ;;  %2969 = vmatpush.msra.mxu1 %v6632_v16  ;;  %v8764_v58 = vpop.f32.mrf.mxu0  ;;  %v8769_v45 = vpop.f32.mrf.mxu1 }
 0x3bc   : > { %2782 = vmatpush.msrb.mxu3 %v6591_v12  ;;  %2876 = vmatpush.msrb.mxu0 %v6611_v49  ;;  %v6607_v12 = vld [vmem:[%s10995_s6 + $0x558] sm:$0xff] }
 0x3bd   : > { %2970 = vmatpush.msra.mxu1 %v6631_v6  ;;  %v6627_v49 = vld [vmem:[%s10995_s6 + $0x5b8] sm:$0xff]  ;;  %v6586_v6 = vld [vmem:[%s10995_s6 + $0x4f0] sm:$0xff] }
 0x3be   : > { %v8720_v35 = vpop.f32.mrf.mxu2  ;;  %2783 = vmatpush.msrb.mxu3 %v6590_v50  ;;  %2877 = vmatpush.msrb.mxu0 %v6610_v52  ;;  %v6606_v50 = vld [vmem:[%s10995_s6 + $0x550] sm:$0xff] }
 0x3bf   : > { %2971 = vmatpush.msra.mxu1 %v6630_v43  ;;  %v6626_v52 = vld [vmem:[%s10995_s6 + $0x5b0] sm:$0xff]  ;;  %v6585_v43 = vld [vmem:[%s10995_s6 + $0x4e8] sm:$0xff]  ;;  %v8800_v8 = vpop.f32.mrf.mxu3 }
 0x3c0   : > { %6519 = vmatmul.msk.f32.gmra.mxu3 %vm402_vm11, %v8394_v38  ;;  %2878 = vmatpush.msrb.mxu0 %v6609_v21  ;;  %v6584_v21 = vld [vmem:[%s10995_s6 + $0x4e0] sm:$0xff] }
 0x3c1   : > { %6539 = vmatmul.msk.f32.gmra.mxu0 %vm402_vm11, %v8277_v60  ;;  %2784 = vmatpush.msrb.mxu3 %v6589_v28  ;;  %v6608_v60 = vld [vmem:[%s10995_s6 + $0x560] sm:$0xff]  ;;  %v6650_v28 = vld [vmem:[%s10995_s6 + $0x630] sm:$0xff] }
 0x3c2   : > { %6559 = vmatmul.msk.f32.gmra.mxu1 %vm402_vm11, %v8275_v48  ;;  %v6588_v48 = vld [vmem:[%s10995_s6 + $0x500] sm:$0xff]  ;;  %2879 = vmatpush.msrb.mxu0 %v6608_v60 }
 0x3c3   : > { %6503 = vmatmul.msk.f32.gmra.mxu2 %vm402_vm11, %v8748_v53  ;;  %2972 = vmatpush.msra.mxu1 %v6629_v63  ;;  %v6604_v63 = vld [vmem:[%s10995_s6 + $0x540] sm:$0xff]  ;;  %v8821_v60 = vpop.f32.mrf.mxu0 }
 0x3c4   : > { %2785 = vmatpush.msrb.mxu3 %v6588_v48  ;;  %2880 = vmatpush.msrb.mxu0 %v6607_v12 }
 0x3c5   : > { %2973 = vmatpush.msra.mxu1 %v6628_v57  ;;  %3065 = vmatpush.msra.mxu2 %v6650_v28  ;;  %v6624_v57 = vld [vmem:[%s10995_s6 + $0x5a0] sm:$0xff]  ;;  %v6645_v28 = vld [vmem:[%s10995_s6 + $0x608] sm:$0xff] }
 0x3c6   : > { %v8771_v16 = vpop.f32.mrf.mxu2  ;;  %2786 = vmatpush.msrb.mxu3 %v6587_v22  ;;  %2881 = vmatpush.msrb.mxu0 %v6606_v50  ;;  %v8826_v22 = vpop.f32.mrf.mxu1 }
 0x3c7   : > { %2974 = vmatpush.msra.mxu1 %v6627_v49  ;;  %v8839_v12 = vpop.f32.mrf.mxu3 }
 0x3c8   : > { %6520 = vmatmul.msk.f32.gmra.mxu3 %vm402_vm11, %v8419_v26 }
 0x3c9   : > { %6540 = vmatmul.msk.f32.gmra.mxu0 %vm402_vm11, %v8297_v11  ;;  %2787 = vmatpush.msrb.mxu3 %v6586_v6  ;;  %v6605_v11 = vld [vmem:[%s10995_s6 + $0x548] sm:$0xff]  ;;  %v6646_v6 = vld [vmem:[%s10995_s6 + $0x610] sm:$0xff] }
 0x3ca   : > { %6560 = vmatmul.msk.f32.gmra.mxu1 %vm402_vm11, %v8295_v47  ;;  %v6625_v47 = vld [vmem:[%s10995_s6 + $0x5a8] sm:$0xff]  ;;  %2882 = vmatpush.msrb.mxu0 %v6605_v11  ;;  %v8867_v11 = vld [vmem:[#allocation3 + $0x90] sm:$0xff] }
 0x3cb   : > { %6576 = vmatmul.msk.f32.vlgmr.msrb.gmra.mxu2 %vm402_vm11, %v8078_v30  ;;  %2975 = vmatpush.msra.mxu1 %v6626_v52  ;;  %v6649_v30 = vld [vmem:[%s10995_s6 + $0x628] sm:$0xff] }
 0x3cc   : > { %2788 = vmatpush.msrb.mxu3 %v6585_v43  ;;  %2883 = vmatpush.msrb.mxu0 %v6604_v63  ;;  %v8865_v43 = vld [vmem:[#allocation3 + $0x84] sm:$0xff] }
 0x3cd   : > { %2976 = vmatpush.msra.mxu1 %v6625_v47  ;;  %3066 = vmatpush.msra.mxu2 %v6649_v30  ;;  %v1683_v30 = vadd.f32 %v8682_v3, %v8643_v56  ;;  %v6674_v56 = vld [vmem:[%s10995_s6 + $0x6b0] sm:$0xff]  ;;  %v6735_v3 = vld [vmem:[%s10995_s6 + $0x7d8] sm:$0xff] }
 0x3ce   : > { %v8819_v48 = vpop.f32.mrf.mxu2  ;;  %2789 = vmatpush.msrb.mxu3 %v6584_v21  ;;  %v6675_v21 = vld [vmem:[%s10995_s6 + $0x6b8] sm:$0xff] }
 0x3cf   : > { %2977 = vmatpush.msra.mxu1 %v6624_v57  ;;  %3067 = vmatpush.msra.mxu2 %v6648_v0  ;;  %v8863_v52 = vpop.f32.mrf.mxu3  ;;  %v2729_v0 = vld [vmem:[#allocation3 + $0x23] sm:$0xff] }
 0x3d0   : > { %6521 = vmatmul.msk.f32.gmra.mxu3 %vm402_vm11, %v8460_v44 }
 0x3d1   : > { %6541 = vmatmul.msk.f32.gmra.mxu0 %vm402_vm11, %v8319_v36  ;;  %v6647_v36 = vld [vmem:[%s10995_s6 + $0x618] sm:$0xff]  ;;  %3154 = vmatpush.msra.mxu3 %v6675_v21 }
 0x3d2   : > { %6561 = vmatmul.msk.f32.gmra.mxu1 %vm402_vm11, %v8317_v15  ;;  %v8847_v15 = vpop.f32.mrf.mxu0  ;;  %3068 = vmatpush.msra.mxu2 %v6647_v36  ;;  %v2917_v36 = vld [vmem:[#allocation3 + $0x30] sm:$0xff] }
 0x3d3   : > { %6577 = vmatmul.msk.f32.gmra.mxu2 %vm402_vm11, %v8101_v33  ;;  %v8851_v33 = vpop.f32.mrf.mxu1  ;;  %3155 = vmatpush.msra.mxu3 %v6674_v56  ;;  %v6715_v56 = vld [vmem:[%s10995_s6 + $0x778] sm:$0xff] }
 0x3d4   : > { %3069 = vmatpush.msra.mxu2 %v6646_v6  ;;  %v1784_v6 = vadd.f32 %v8651_v62, %v1683_v30  ;;  %v1686_v62 = vadd.f32 %v8738_v31, %v8680_v59  ;;  %v8932_v59 = vld [vmem:[#allocation3 + $0x40] sm:$0xff]  ;;  %v6673_v31 = vld [vmem:[%s10995_s6 + $0x6a8] sm:$0xff]  ;;  %3342 = vmatpush.msrb.mxu1 %v6715_v56 }
 0x3d5   : > { %3156 = vmatpush.msra.mxu3 %v6673_v31  ;;  %v8965_v31 = vld [vmem:[#allocation3 + $0x43] sm:$0xff] }
 0x3d6   : > { %v8841_v49 = vpop.f32.mrf.mxu2  ;;  %3070 = vmatpush.msra.mxu2 %v6645_v28 }
 0x3d7   : > { %v8900_v28 = vpop.f32.mrf.mxu3 }
 0x3d8   : > { %6522 = vmatmul.msk.f32.gmra.mxu3 %vm402_vm11, %v8510_v23 }
 0x3d9   : > { %6542 = vmatmul.msk.f32.gmra.mxu0 %vm402_vm11, %v8592_v13 }
 0x3da   : > { %6562 = vmatmul.msk.f32.gmra.mxu1 %vm402_vm11, %v8594_v25  ;;  %v8877_v47 = vpop.f32.mrf.mxu0 }
 0x3db   : > { %6578 = vmatmul.msk.f32.gmra.mxu2 %vm402_vm11, %v8246_v39  ;;  %v8873_v39 = vld [vmem:[#allocation3 + $0x91] sm:$0xff]  ;;  %v8887_v63 = vpop.f32.mrf.mxu1 }
 0x3de   : > { %v8861_v50 = vpop.f32.mrf.mxu2 }
 0x3e0   : > { %6523 = vmatmul.msk.f32.gmra.mxu3 %vm402_vm11, %v8865_v43 }
 0x3e1   : > { %6543 = vmatmul.msk.f32.gmra.mxu0 %vm402_vm11, %v8867_v11 }
 0x3e2   : > { %6563 = vmatmul.msk.f32.gmra.mxu1 %vm402_vm11, %v8873_v39  ;;  %v8916_v21 = vpop.f32.mrf.mxu0 }
 0x3e3   : > { %6579 = vmatmul.msk.f32.gmra.mxu2 %vm402_vm11, %v8284_v2  ;;  %v6644_v2 = vld [vmem:[%s10995_s6 + $0x600] sm:$0xff]  ;;  %v8919_v30 = vpop.f32.mrf.mxu1 }
 0x3e4   : > { %3071 = vmatpush.msra.mxu2 %v6644_v2 }
 0x3e6   : > { %v8891_v57 = vpop.f32.mrf.mxu2  ;;  %3436 = vmatpush.msrb.mxu2 %v6735_v3  ;;  %v8943_v3 = vpop.f32.mrf.mxu3 }
 0x3e8   : > { %6596 = vmatmul.msk.f32.vlgmr.msrb.gmra.mxu3 %vm402_vm11, %v2729_v0 }
 0x3e9   : > { %6616 = vmatmul.msk.f32.vlgmr.msrb.gmra.mxu0 %vm402_vm11, %v8362_v7  ;;  %v6695_v7 = vld [vmem:[%s10995_s6 + $0x718] sm:$0xff] }
 0x3ea   : > { %6636 = vmatmul.msk.f32.vlgmr.msra.gmra.mxu1 %vm402_vm11, %v2917_v36  ;;  %3248 = vmatpush.msra.mxu0 %v6695_v7  ;;  %v8923_v36 = vld [vmem:[#allocation3 + $0x33] sm:$0xff]  ;;  %v6672_v7 = vld [vmem:[%s10995_s6 + $0x6a0] sm:$0xff] }
 0x3eb   : > { %6580 = vmatmul.msk.f32.gmra.mxu2 %vm402_vm11, %v8303_v51  ;;  %v1878_v51 = vadd.f32 %v8655_v27, %v1784_v6  ;;  %v1785_v27 = vadd.f32 %v8693_v9, %v1686_v62  ;;  %v6734_v6 = vld [vmem:[%s10995_s6 + $0x7d0] sm:$0xff]  ;;  %v6693_v62 = vld [vmem:[%s10995_s6 + $0x708] sm:$0xff]  ;;  %3157 = vmatpush.msra.mxu3 %v6672_v7  ;;  %v6691_v7 = vld [vmem:[%s10995_s6 + $0x6f8] sm:$0xff] }
 0x3ec   : > { %v6714_v9 = vld [vmem:[%s10995_s6 + $0x770] sm:$0xff]  ;;  %3437 = vmatpush.msrb.mxu2 %v6734_v6  ;;  %v1671_v6 = vadd.f32 %v8564_v29, %v8547_v5 }
 0x3ed   : > { %3343 = vmatpush.msrb.mxu1 %v6714_v9  ;;  %v8988_v5 = vld [vmem:[#allocation3 + $0x50] sm:$0xff]  ;;  %v6671_v9 = vld [vmem:[%s10995_s6 + $0x698] sm:$0xff] }
 0x3ee   : > { %v1956_v0 = vpop.f32.mrf.mxu2  ;;  %3158 = vmatpush.msra.mxu3 %v6671_v9  ;;  %v6668_v9 = vld [vmem:[%s10995_s6 + $0x680] sm:$0xff] }
 0x3ef   : > { %v8921_v2 = vadd.f32 %v1956_v0, %v1878_v51  ;;  %v1689_v51 = vadd.f32 %v8800_v8, %v8720_v35  ;;  %v1879_v0 = vadd.f32 %v8706_v55, %v1785_v27  ;;  %v6733_v35 = vld [vmem:[%s10995_s6 + $0x7c8] sm:$0xff]  ;;  %v6692_v55 = vld [vmem:[%s10995_s6 + $0x700] sm:$0xff]  ;;  %v8982_v27 = vpop.f32.mrf.mxu1 }
 0x3f0   : > { %6597 = vmatmul.msk.f32.gmra.mxu3 %vm402_vm11, %v8923_v36  ;;  %v6712_v8 = vld [vmem:[%s10995_s6 + $0x760] sm:$0xff]  ;;  %3438 = vmatpush.msrb.mxu2 %v6733_v35  ;;  %v6669_v35 = vld [vmem:[%s10995_s6 + $0x688] sm:$0xff] }
 0x3f1   : > { %6617 = vmatmul.msk.f32.gmra.mxu0 %vm402_vm11, %v8378_v19  ;;  %v6694_v19 = vld [vmem:[%s10995_s6 + $0x710] sm:$0xff]  ;;  %v1786_v29 = vadd.f32 %v8764_v58, %v1689_v51  ;;  %v1780_v58 = vadd.f32 %v8555_v20, %v1671_v6  ;;  %v6732_v20 = vld [vmem:[%s10995_s6 + $0x7c0] sm:$0xff] }
 0x3f2   : > { %6637 = vmatmul.msk.f32.gmra.mxu1 %vm402_vm11, %v8932_v59  ;;  %3249 = vmatpush.msra.mxu0 %v6694_v19  ;;  %v8969_v19 = vpop.f32.mrf.mxu0  ;;  %v6710_v51 = vld [vmem:[%s10995_s6 + $0x750] sm:$0xff] }
 0x3f3   : > { %6581 = vmatmul.msk.f32.gmra.mxu2 %vm402_vm11, %v8325_v37  ;;  %v6713_v37 = vld [vmem:[%s10995_s6 + $0x768] sm:$0xff] }
 0x3f4   : > { %3250 = vmatpush.msra.mxu0 %v6693_v62  ;;  %3344 = vmatpush.msrb.mxu1 %v6713_v37  ;;  %v6670_v62 = vld [vmem:[%s10995_s6 + $0x690] sm:$0xff] }
 0x3f5   : > { %v6690_v37 = vld [vmem:[%s10995_s6 + $0x6f0] sm:$0xff]  ;;  %3159 = vmatpush.msra.mxu3 %v6670_v62  ;;  %3439 = vmatpush.msrb.mxu2 %v6732_v20  ;;  %v6707_v20 = vld [vmem:[%s10995_s6 + $0x738] sm:$0xff] }
 0x3f6   : > { %v1959_v56 = vpop.f32.mrf.mxu2  ;;  %3251 = vmatpush.msra.mxu0 %v6692_v55  ;;  %3345 = vmatpush.msrb.mxu1 %v6712_v8  ;;  %v6689_v55 = vld [vmem:[%s10995_s6 + $0x6e8] sm:$0xff] }
 0x3f7   : > { %v8971_v4 = vadd.f32 %v1959_v56, %v1879_v0  ;;  %v9019_v0 = vpop.f32.mrf.mxu3  ;;  %v1880_v56 = vadd.f32 %v8769_v45, %v1786_v29  ;;  %v9033_v45 = vld [vmem:[#allocation3 + $0x53] sm:$0xff]  ;;  %3160 = vmatpush.msra.mxu3 %v6669_v35  ;;  %v6709_v29 = vld [vmem:[%s10995_s6 + $0x748] sm:$0xff]  ;;  %v9062_v62 = vpop.f32.mrf.mxu1 }
 0x3f8   : > { %6598 = vmatmul.msk.f32.gmra.mxu3 %vm402_vm11, %v8965_v31  ;;  %3252 = vmatpush.msra.mxu0 %v6691_v7  ;;  %v9080_v35 = vld [vmem:[#allocation3 + $0x63] sm:$0xff] }
 0x3f9   : > { %6618 = vmatmul.msk.f32.gmra.mxu0 %vm402_vm11, %v8394_v38  ;;  %v6711_v38 = vld [vmem:[%s10995_s6 + $0x758] sm:$0xff]  ;;  %3161 = vmatpush.msra.mxu3 %v6668_v9  ;;  %v6665_v9 = vld [vmem:[%s10995_s6 + $0x668] sm:$0xff] }
 0x3fa   : > { %6638 = vmatmul.msk.f32.gmra.mxu1 %vm402_vm11, %v8988_v5  ;;  %3253 = vmatpush.msra.mxu0 %v6690_v37  ;;  %v9064_v37 = vld [vmem:[#allocation3 + $0x92] sm:$0xff] }
 0x3fb   : > { %6582 = vmatmul.msk.f32.gmra.mxu2 %vm402_vm11, %v8596_v41  ;;  %3346 = vmatpush.msrb.mxu1 %v6711_v38  ;;  %v1692_v41 = vadd.f32 %v8839_v12, %v8771_v16  ;;  %v1674_v16 = vadd.f32 %v8581_v14, %v8569_v46  ;;  %v1874_v12 = vadd.f32 %v8562_v34, %v1780_v58  ;;  %v9045_v34 = vld [vmem:[#allocation3 + $0x60] sm:$0xff]  ;;  %v9052_v38 = vpop.f32.mrf.mxu0  ;;  %v6667_v58 = vld [vmem:[%s10995_s6 + $0x678] sm:$0xff] }
 0x3fc   : > { %v6688_v46 = vld [vmem:[%s10995_s6 + $0x6e0] sm:$0xff]  ;;  %3254 = vmatpush.msra.mxu0 %v6689_v55  ;;  %3162 = vmatpush.msra.mxu3 %v6667_v58  ;;  %v6686_v55 = vld [vmem:[%s10995_s6 + $0x6d0] sm:$0xff] }
 0x3fd   : > { %3347 = vmatpush.msrb.mxu1 %v6710_v51  ;;  %v1787_v14 = vadd.f32 %v8821_v60, %v1692_v41  ;;  %v1968_v7 = vadd.f32 %v8819_v48, %v1874_v12  ;;  %v6687_v48 = vld [vmem:[%s10995_s6 + $0x6d8] sm:$0xff]  ;;  %v1781_v51 = vadd.f32 %v8573_v32, %v1674_v16  ;;  %v6666_v32 = vld [vmem:[%s10995_s6 + $0x670] sm:$0xff]  ;;  %v1677_v16 = vadd.f32 %v8615_v1, %v8588_v61  ;;  %v6685_v61 = vld [vmem:[%s10995_s6 + $0x6c8] sm:$0xff] }
 0x3fe   : > { %v1962_v6 = vpop.f32.mrf.mxu2  ;;  %v6731_v60 = vld [vmem:[%s10995_s6 + $0x7b8] sm:$0xff]  ;;  %3255 = vmatpush.msra.mxu0 %v6688_v46  ;;  %3163 = vmatpush.msra.mxu3 %v6666_v32  ;;  %v6664_v1 = vld [vmem:[%s10995_s6 + $0x660] sm:$0xff] }
 0x3ff   : > { %v9031_v8 = vadd.f32 %v1962_v6, %v1880_v56  ;;  %3348 = vmatpush.msrb.mxu1 %v6709_v29  ;;  %v2063_v41 = vadd.f32 %v8863_v52, %v1968_v7  ;;  %v1881_v56 = vadd.f32 %v8826_v22, %v1787_v14  ;;  %3440 = vmatpush.msrb.mxu2 %v6731_v60  ;;  %v9091_v22 = vpop.f32.mrf.mxu3  ;;  %v6706_v29 = vld [vmem:[%s10995_s6 + $0x730] sm:$0xff]  ;;  %v6705_v7 = vld [vmem:[%s10995_s6 + $0x728] sm:$0xff]  ;;  %v9133_v60 = vpop.f32.mrf.mxu1 }
 0x400   : > { %6599 = vmatmul.msk.f32.gmra.mxu3 %vm402_vm11, %v9033_v45  ;;  %3256 = vmatpush.msra.mxu0 %v6687_v48  ;;  %v1875_v52 = vadd.f32 %v8575_v42, %v1781_v51  ;;  %v9108_v42 = vld [vmem:[#allocation3 + $0x70] sm:$0xff]  ;;  %v6704_v48 = vld [vmem:[%s10995_s6 + $0x720] sm:$0xff] }
 0x401   : > { %6619 = vmatmul.msk.f32.gmra.mxu0 %vm402_vm11, %v8419_v26  ;;  %v6708_v26 = vld [vmem:[%s10995_s6 + $0x740] sm:$0xff]  ;;  %v2157_v46 = vadd.f32 %v8847_v15, %v2063_v41  ;;  %3164 = vmatpush.msra.mxu3 %v6665_v9 }
 0x402   : > { %6639 = vmatmul.msk.f32.gmra.mxu1 %vm402_vm11, %v9045_v34  ;;  %3257 = vmatpush.msra.mxu0 %v6686_v55  ;;  %v1969_v14 = vadd.f32 %v8841_v49, %v1875_v52  ;;  %v6684_v15 = vld [vmem:[%s10995_s6 + $0x6c0] sm:$0xff]  ;;  %v1782_v49 = vadd.f32 %v8590_v54, %v1677_v16  ;;  %v6729_v54 = vld [vmem:[%s10995_s6 + $0x7a8] sm:$0xff]  ;;  %v9145_v55 = vld [vmem:[#allocation3 + $0x73] sm:$0xff] }
 0x403   : > { %6583 = vmatmul.msk.f32.gmra.mxu2 %vm402_vm11, %v9064_v37  ;;  %3349 = vmatpush.msrb.mxu1 %v6708_v26  ;;  %v3011_v26 = vld [vmem:[#allocation3 + $0x31] sm:$0xff]  ;;  %v9127_v58 = vpop.f32.mrf.mxu0 }
 0x404   : > { %3258 = vmatpush.msra.mxu0 %v6685_v61  ;;  %3165 = vmatpush.msra.mxu3 %v6664_v1  ;;  %v2064_v51 = vadd.f32 %v8900_v28, %v1969_v14 }
 0x405   : > { %3350 = vmatpush.msrb.mxu1 %v6707_v20  ;;  %v2251_v20 = vadd.f32 %v8851_v33, %v2157_v46 }
 0x406   : > { %v1965_v6 = vpop.f32.mrf.mxu2  ;;  %3259 = vmatpush.msra.mxu0 %v6684_v15  ;;  %v2158_v33 = vadd.f32 %v8877_v47, %v2064_v51  ;;  %v9200_v15 = vld [vmem:[#allocation3 + $0x93] sm:$0xff] }
 0x407   : > { %v9093_v12 = vadd.f32 %v1965_v6, %v1881_v56  ;;  %3351 = vmatpush.msrb.mxu1 %v6706_v29  ;;  %v1680_v56 = vadd.f32 %v8645_v17, %v8617_v40  ;;  %v1876_v6 = vadd.f32 %v8598_v18, %v1782_v49  ;;  %v9153_v16 = vpop.f32.mrf.mxu3  ;;  %v6728_v18 = vld [vmem:[%s10995_s6 + $0x7a0] sm:$0xff]  ;;  %v9169_v52 = vpop.f32.mrf.mxu1  ;;  %v9202_v49 = vld [vmem:[#allocation3 + $0x94] sm:$0xff] }
 0x408   : > { %6600 = vmatmul.msk.f32.gmra.mxu3 %vm402_vm11, %v9080_v35  ;;  %v9160_v40 = vld [vmem:[#allocation3 + $0x41] sm:$0xff]  ;;  %v2252_v47 = vadd.f32 %v8887_v63, %v2158_v33 }
 0x409   : > { %6620 = vmatmul.msk.f32.gmra.mxu0 %vm402_vm11, %v8460_v44  ;;  %v6730_v44 = vld [vmem:[%s10995_s6 + $0x7b0] sm:$0xff]  ;;  %3352 = vmatpush.msrb.mxu1 %v6705_v7  ;;  %v1970_v28 = vadd.f32 %v8861_v50, %v1876_v6  ;;  %v1783_v17 = vadd.f32 %v8623_v10, %v1680_v56  ;;  %v6727_v10 = vld [vmem:[%s10995_s6 + $0x798] sm:$0xff] }
 0x40a   : > { %6640 = vmatmul.msk.f32.gmra.mxu1 %vm402_vm11, %v9108_v42  ;;  %3441 = vmatpush.msrb.mxu2 %v6730_v44  ;;  %v9193_v44 = vld [vmem:[#allocation3 + $0xa0] sm:$0xff] }
 0x40b   : > { %6656 = vmatmul.msk.f32.vlgmr.msra.gmra.mxu2 %vm402_vm11, %v3011_v26  ;;  %3353 = vmatpush.msrb.mxu1 %v6704_v48  ;;  %v9166_v50 = vpop.f32.mrf.mxu0  ;;  %v1877_v29 = vadd.f32 %v8630_v24, %v1783_v17  ;;  %v9185_v24 = vld [vmem:[#allocation3 + $0x51] sm:$0xff]  ;;  %v9214_v48 = vld [vmem:[#allocation3 + $0x61] sm:$0xff] }
 0x40c   : > { %3442 = vmatpush.msrb.mxu2 %v6729_v54  ;;  %v3105_v17 = vld [vmem:[#allocation3 + $0x32] sm:$0xff] }
 0x40d   : > { %v1971_v63 = vadd.f32 %v8891_v57, %v1877_v29  ;;  %v6726_v57 = vld [vmem:[%s10995_s6 + $0x790] sm:$0xff]  ;;  %v2068_v29 = vadd.f32 %v9153_v16, %v8971_v4  ;;  %v9256_v4 = vld [vmem:[#allocation3 + $0x42] sm:$0xff] }
 0x40e   : > { %v2321_v41 = vpop.f32.mrf.mxu2  ;;  %3443 = vmatpush.msrb.mxu2 %v6728_v18  ;;  %v9265_v16 = vld [vmem:[#allocation3 + $0x44] sm:$0xff] }
 0x40f   : > { %v9143_v32 = vadd.f32 %v2321_v41, %v2251_v20  ;;  %v9187_v61 = vpop.f32.mrf.mxu3  ;;  %v2066_v1 = vadd.f32 %v9019_v0, %v1971_v63  ;;  %v6725_v0 = vld [vmem:[%s10995_s6 + $0x788] sm:$0xff]  ;;  %v2067_v41 = vadd.f32 %v9091_v22, %v8921_v2  ;;  %v3293_v2 = vld [vmem:[#allocation3 + $0x34] sm:$0xff] }
 0x410   : > { %6601 = vmatmul.msk.f32.gmra.mxu3 %vm402_vm11, %v9145_v55  ;;  %3444 = vmatpush.msrb.mxu2 %v6727_v10 }
 0x411   : > { %6621 = vmatmul.msk.f32.gmra.mxu0 %vm402_vm11, %v8510_v23  ;;  %v2065_v23 = vadd.f32 %v8943_v3, %v1970_v28  ;;  %v6755_v28 = vld [vmem:[%s10995_s6 + $0x838] sm:$0xff]  ;;  %v2161_v22 = vadd.f32 %v9052_v38, %v2067_v41 }
 0x412   : > { %6641 = vmatmul.msk.f32.gmra.mxu1 %vm402_vm11, %v8592_v13  ;;  %3445 = vmatpush.msrb.mxu2 %v6726_v57  ;;  %v6753_v57 = vld [vmem:[%s10995_s6 + $0x828] sm:$0xff] }
 0x413   : > { %6657 = vmatmul.msk.f32.gmra.mxu2 %vm402_vm11, %v9160_v40  ;;  %v2159_v3 = vadd.f32 %v8916_v21, %v2065_v23  ;;  %3530 = vmatpush.msrb.mxu3 %v6755_v28  ;;  %v9237_v23 = vld [vmem:[#allocation3 + $0x71] sm:$0xff]  ;;  %v2255_v10 = vadd.f32 %v9062_v62, %v2161_v22  ;;  %v6772_v22 = vld [vmem:[%s10995_s6 + $0x880] sm:$0xff] }
 0x414   : > { %3446 = vmatpush.msrb.mxu2 %v6725_v0  ;;  %v6795_v62 = vld [vmem:[%s10995_s6 + $0x8f8] sm:$0xff] }
 0x415   : > { %v2253_v14 = vadd.f32 %v8919_v30, %v2159_v3  ;;  %v2160_v30 = vadd.f32 %v8969_v19, %v2066_v1  ;;  %v6754_v1 = vld [vmem:[%s10995_s6 + $0x830] sm:$0xff]  ;;  %3718 = vmatpush.msra.mxu1 %v6795_v62  ;;  %v9344_v62 = vld [vmem:[#allocation3 + $0x62] sm:$0xff] }
 0x416   : > { %v2324_v13 = vpop.f32.mrf.mxu2  ;;  %3531 = vmatpush.msrb.mxu3 %v6754_v1  ;;  %v9307_v28 = vld [vmem:[#allocation3 + $0x54] sm:$0xff] }
 0x417   : > { %v9172_v9 = vadd.f32 %v2324_v13, %v2252_v47  ;;  %v2254_v54 = vadd.f32 %v8982_v27, %v2160_v30  ;;  %v6814_v30 = vld [vmem:[%s10995_s6 + $0x950] sm:$0xff] }
 0x418   : > { %6602 = vmatmul.msk.f32.gmra.mxu3 %vm402_vm11, %v8748_v53 }
 0x419   : > { %6622 = vmatmul.msk.f32.gmra.mxu0 %vm402_vm11, %v8865_v43  ;;  %3532 = vmatpush.msrb.mxu3 %v6753_v57  ;;  %v9356_v57 = vld [vmem:[#allocation3 + $0x64] sm:$0xff] }
 0x41a   : > { %6642 = vmatmul.msk.f32.gmra.mxu1 %vm402_vm11, %v8867_v11 }
 0x41b   : > { %6658 = vmatmul.msk.f32.gmra.mxu2 %vm402_vm11, %v9185_v24 }
 0x41e   : > { %v2154_v46 = vpop.f32.mrf.mxu0  ;;  %v2327_v21 = vpop.f32.mrf.mxu2 }
 0x41f   : > { %v2248_v7 = vpop.f32.mrf.mxu1  ;;  %v9198_v26 = vadd.f32 %v2327_v21, %v2253_v14  ;;  %v2162_v21 = vadd.f32 %v9127_v58, %v2068_v29  ;;  %v6771_v29 = vld [vmem:[%s10995_s6 + $0x878] sm:$0xff] }
 0x420   : > { %6603 = vmatmul.msk.f32.gmra.mxu3 %vm402_vm11, %v9200_v15 }
 0x421   : > { %6623 = vmatmul.msk.f32.gmra.mxu0 %vm402_vm11, %v9202_v49  ;;  %v2256_v41 = vadd.f32 %v9133_v60, %v2162_v21  ;;  %v6773_v60 = vld [vmem:[%s10995_s6 + $0x888] sm:$0xff]  ;;  %v6812_v21 = vld [vmem:[%s10995_s6 + $0x940] sm:$0xff] }
 0x422   : > { %6643 = vmatmul.msk.f32.gmra.mxu1 %vm402_vm11, %v9193_v44 }
 0x423   : > { %v2060_v51 = vpop.f32.mrf.mxu3  ;;  %6659 = vmatmul.msk.f32.gmra.mxu2 %vm402_vm11, %v9214_v48 }
 0x424   : > { %v2070_v20 = vadd.f32 %v2060_v51, %v9093_v12  ;;  %v6724_v12 = vld [vmem:[%s10995_s6 + $0x780] sm:$0xff]  ;;  %v2069_v51 = vadd.f32 %v9187_v61, %v9031_v8  ;;  %v9295_v8 = vld [vmem:[#allocation3 + $0x52] sm:$0xff]  ;;  %v6793_v61 = vld [vmem:[%s10995_s6 + $0x8e8] sm:$0xff] }
 0x425   : > { %3447 = vmatpush.msrb.mxu2 %v6724_v12 }
 0x426   : > { %v2509_v19 = vpop.f32.mrf.mxu0  ;;  %v2164_v56 = vadd.f32 %v2154_v46, %v2070_v20  ;;  %v2330_v33 = vpop.f32.mrf.mxu2  ;;  %v6815_v46 = vld [vmem:[%s10995_s6 + $0x958] sm:$0xff]  ;;  %v2163_v12 = vadd.f32 %v9166_v50, %v2069_v51  ;;  %v6792_v50 = vld [vmem:[%s10995_s6 + $0x8e0] sm:$0xff]  ;;  %v6769_v51 = vld [vmem:[%s10995_s6 + $0x868] sm:$0xff] }
 0x427   : > { %v2603_v6 = vpop.f32.mrf.mxu1  ;;  %v9225_v18 = vadd.f32 %v2330_v33, %v2254_v54  ;;  %3812 = vmatpush.msra.mxu2 %v6815_v46  ;;  %v6750_v46 = vld [vmem:[%s10995_s6 + $0x810] sm:$0xff] }
 0x428   : > { %6676 = vmatmul.msk.f32.vlgmr.msra.gmra.mxu3 %vm402_vm11, %v3105_v17  ;;  %v9233_v27 = vadd.f32 %v2248_v7, %v2164_v56 }
 0x429   : > { %6696 = vmatmul.msk.f32.vlgmr.msra.gmra.mxu0 %vm402_vm11, %v8923_v36  ;;  %3813 = vmatpush.msra.mxu2 %v6814_v30  ;;  %v9358_v30 = vld [vmem:[#allocation3 + $0xa1] sm:$0xff] }
 0x42a   : > { %6716 = vmatmul.msk.f32.vlgmr.msrb.gmra.mxu1 %vm402_vm11, %v3293_v2  ;;  %v6813_v2 = vld [vmem:[%s10995_s6 + $0x948] sm:$0xff] }
 0x42b   : > { %v2415_v47 = vpop.f32.mrf.mxu3  ;;  %6660 = vmatmul.msk.f32.gmra.mxu2 %vm402_vm11, %v9237_v23 }
 0x42c   : > { %v2439_v13 = vadd.f32 %v2415_v47, %v9143_v32  ;;  %v6775_v32 = vld [vmem:[%s10995_s6 + $0x898] sm:$0xff]  ;;  %3814 = vmatpush.msra.mxu2 %v6813_v2 }
 0x42d   : > { %3624 = vmatpush.msrb.mxu0 %v6775_v32  ;;  %v6751_v47 = vld [vmem:[%s10995_s6 + $0x818] sm:$0xff] }
 0x42e   : > { %v2512_v36 = vpop.f32.mrf.mxu0  ;;  %v2533_v3 = vadd.f32 %v2509_v19, %v2439_v13  ;;  %v2333_v38 = vpop.f32.mrf.mxu2  ;;  %3815 = vmatpush.msra.mxu2 %v6812_v21 }
 0x42f   : > { %v2606_v63 = vpop.f32.mrf.mxu1  ;;  %v9254_v14 = vadd.f32 %v2333_v38, %v2255_v10  ;;  %v6791_v10 = vld [vmem:[%s10995_s6 + $0x8d8] sm:$0xff] }
 0x430   : > { %6677 = vmatmul.msk.f32.gmra.mxu3 %vm402_vm11, %v9256_v4  ;;  %v9267_v7 = vadd.f32 %v2603_v6, %v2533_v3  ;;  %v6774_v6 = vld [vmem:[%s10995_s6 + $0x890] sm:$0xff] }
 0x431   : > { %6697 = vmatmul.msk.f32.gmra.mxu0 %vm402_vm11, %v8965_v31 }
 0x432   : > { %6717 = vmatmul.msk.f32.gmra.mxu1 %vm402_vm11, %v9265_v16  ;;  %3625 = vmatpush.msrb.mxu0 %v6774_v6  ;;  %v6811_v6 = vld [vmem:[%s10995_s6 + $0x938] sm:$0xff] }
 0x433   : > { %v2418_v0 = vpop.f32.mrf.mxu3  ;;  %6661 = vmatmul.msk.f32.gmra.mxu2 %vm402_vm11, %v8594_v25  ;;  %v6794_v25 = vld [vmem:[%s10995_s6 + $0x8f0] sm:$0xff] }
 0x434   : > { %v2440_v58 = vadd.f32 %v2418_v0, %v9172_v9  ;;  %v6752_v9 = vld [vmem:[%s10995_s6 + $0x820] sm:$0xff]  ;;  %3719 = vmatpush.msra.mxu1 %v6794_v25  ;;  %3626 = vmatpush.msrb.mxu0 %v6773_v60  ;;  %v6749_v0 = vld [vmem:[%s10995_s6 + $0x808] sm:$0xff] }
 0x435   : > { %3533 = vmatpush.msrb.mxu3 %v6752_v9  ;;  %v6747_v9 = vld [vmem:[%s10995_s6 + $0x7f8] sm:$0xff]  ;;  %3816 = vmatpush.msra.mxu2 %v6811_v6 }
 0x436   : > { %v2515_v20 = vpop.f32.mrf.mxu0  ;;  %v2534_v19 = vadd.f32 %v2512_v36, %v2440_v58  ;;  %v2336_v56 = vpop.f32.mrf.mxu2  ;;  %3720 = vmatpush.msra.mxu1 %v6793_v61  ;;  %3627 = vmatpush.msrb.mxu0 %v6772_v22  ;;  %v6767_v22 = vld [vmem:[%s10995_s6 + $0x858] sm:$0xff] }
 0x437   : > { %v2609_v54 = vpop.f32.mrf.mxu1  ;;  %v9293_v33 = vadd.f32 %v2336_v56, %v2256_v41  ;;  %3534 = vmatpush.msrb.mxu3 %v6751_v47  ;;  %v6748_v41 = vld [vmem:[%s10995_s6 + $0x800] sm:$0xff]  ;;  %v9397_v47 = vld [vmem:[#allocation3 + $0x72] sm:$0xff] }
 0x438   : > { %6678 = vmatmul.msk.f32.gmra.mxu3 %vm402_vm11, %v9295_v8  ;;  %v9309_v17 = vadd.f32 %v2606_v63, %v2534_v19  ;;  %v2257_v63 = vadd.f32 %v9169_v52, %v2163_v12  ;;  %3721 = vmatpush.msra.mxu1 %v6792_v50  ;;  %v6790_v52 = vld [vmem:[%s10995_s6 + $0x8d0] sm:$0xff]  ;;  %v6788_v56 = vld [vmem:[%s10995_s6 + $0x8c0] sm:$0xff]  ;;  %v6787_v50 = vld [vmem:[%s10995_s6 + $0x8b8] sm:$0xff] }
 0x439   : > { %6698 = vmatmul.msk.f32.gmra.mxu0 %vm402_vm11, %v9033_v45  ;;  %3535 = vmatpush.msrb.mxu3 %v6750_v46  ;;  %v6744_v46 = vld [vmem:[%s10995_s6 + $0x7e0] sm:$0xff] }
 0x43a   : > { %6718 = vmatmul.msk.f32.gmra.mxu1 %vm402_vm11, %v9307_v28  ;;  %3628 = vmatpush.msrb.mxu0 %v6771_v29  ;;  %v9409_v29 = vld [vmem:[#allocation3 + $0x74] sm:$0xff] }
 0x43b   : > { %v2421_v13 = vpop.f32.mrf.mxu3  ;;  %6662 = vmatmul.msk.f32.gmra.mxu2 %vm402_vm11, %v8873_v39  ;;  %3722 = vmatpush.msra.mxu1 %v6791_v10  ;;  %v6786_v10 = vld [vmem:[%s10995_s6 + $0x8b0] sm:$0xff] }
 0x43c   : > { %v2441_v36 = vadd.f32 %v2421_v13, %v9198_v26  ;;  %v6770_v26 = vld [vmem:[%s10995_s6 + $0x870] sm:$0xff]  ;;  %3536 = vmatpush.msrb.mxu3 %v6749_v0 }
 0x43d   : > { %3629 = vmatpush.msrb.mxu0 %v6770_v26  ;;  %3723 = vmatpush.msra.mxu1 %v6790_v52  ;;  %v6746_v13 = vld [vmem:[%s10995_s6 + $0x7f0] sm:$0xff]  ;;  %v6764_v52 = vld [vmem:[%s10995_s6 + $0x840] sm:$0xff] }
 0x43e   : > { %v2518_v3 = vpop.f32.mrf.mxu0  ;;  %v2535_v38 = vadd.f32 %v2515_v20, %v2441_v36  ;;  %v2339_v39 = vpop.f32.mrf.mxu2  ;;  %v6789_v20 = vld [vmem:[%s10995_s6 + $0x8c8] sm:$0xff]  ;;  %3537 = vmatpush.msrb.mxu3 %v6748_v41 }
 0x43f   : > { %v2612_v1 = vpop.f32.mrf.mxu1  ;;  %v9342_v32 = vadd.f32 %v2339_v39, %v2257_v63  ;;  %3630 = vmatpush.msrb.mxu0 %v6769_v51  ;;  %3724 = vmatpush.msra.mxu1 %v6789_v20  ;;  %v6765_v63 = vld [vmem:[%s10995_s6 + $0x848] sm:$0xff] }
 0x440   : > { %6679 = vmatmul.msk.f32.gmra.mxu3 %vm402_vm11, %v9344_v62  ;;  %v9363_v58 = vadd.f32 %v2609_v54, %v2535_v38  ;;  %v6768_v54 = vld [vmem:[%s10995_s6 + $0x860] sm:$0xff]  ;;  %v6810_v38 = vld [vmem:[%s10995_s6 + $0x930] sm:$0xff]  ;;  %v6785_v39 = vld [vmem:[%s10995_s6 + $0x8a8] sm:$0xff] }
 0x441   : > { %6699 = vmatmul.msk.f32.gmra.mxu0 %vm402_vm11, %v9080_v35  ;;  %3725 = vmatpush.msra.mxu1 %v6788_v56  ;;  %v6809_v20 = vld [vmem:[%s10995_s6 + $0x928] sm:$0xff] }
 0x442   : > { %6719 = vmatmul.msk.f32.gmra.mxu1 %vm402_vm11, %v9356_v57  ;;  %3631 = vmatpush.msrb.mxu0 %v6768_v54  ;;  %v9448_v41 = vld [vmem:[#allocation3 + $0x82] sm:$0xff] }
 0x443   : > { %v2424_v19 = vpop.f32.mrf.mxu3  ;;  %6663 = vmatmul.msk.f32.gmra.mxu2 %vm402_vm11, %v9358_v30  ;;  %3538 = vmatpush.msrb.mxu3 %v6747_v9 }
 0x444   : > { %v2442_v25 = vadd.f32 %v2424_v19, %v9225_v18  ;;  %3632 = vmatpush.msrb.mxu0 %v6767_v22  ;;  %3726 = vmatpush.msra.mxu1 %v6787_v50  ;;  %v6784_v19 = vld [vmem:[%s10995_s6 + $0x8a0] sm:$0xff] }
 0x445   : > { %3539 = vmatpush.msrb.mxu3 %v6746_v13  ;;  %3817 = vmatpush.msra.mxu2 %v6810_v38  ;;  %v9482_v22 = vld [vmem:[#allocation3 + $0xa3] sm:$0xff] }
 0x446   : > { %v2521_v60 = vpop.f32.mrf.mxu0  ;;  %v2536_v61 = vadd.f32 %v2518_v3, %v2442_v25  ;;  %v2342_v2 = vpop.f32.mrf.mxu2  ;;  %v6745_v3 = vld [vmem:[%s10995_s6 + $0x7e8] sm:$0xff]  ;;  %3727 = vmatpush.msra.mxu1 %v6786_v10 }
 0x447   : > { %v2615_v12 = vpop.f32.mrf.mxu1  ;;  %v9395_v18 = vadd.f32 %v2342_v2, %v9233_v27  ;;  %v6766_v27 = vld [vmem:[%s10995_s6 + $0x850] sm:$0xff]  ;;  %3540 = vmatpush.msrb.mxu3 %v6745_v3  ;;  %3818 = vmatpush.msra.mxu2 %v6809_v20  ;;  %v9480_v2 = vld [vmem:[#allocation3 + $0xa2] sm:$0xff] }
 0x448   : > { %6680 = vmatmul.msk.f32.gmra.mxu3 %vm402_vm11, %v9397_v47  ;;  %v9414_v36 = vadd.f32 %v2612_v1, %v2536_v61  ;;  %3633 = vmatpush.msrb.mxu0 %v6766_v27  ;;  %v9484_v10 = vld [vmem:[#allocation3 + $0xa4] sm:$0xff]  ;;  %v6806_v3 = vld [vmem:[%s10995_s6 + $0x910] sm:$0xff] }
 0x449   : > { %6700 = vmatmul.msk.f32.gmra.mxu0 %vm402_vm11, %v9145_v55  ;;  %3728 = vmatpush.msra.mxu1 %v6785_v39 }
 0x44a   : > { %6720 = vmatmul.msk.f32.gmra.mxu1 %vm402_vm11, %v9409_v29  ;;  %3634 = vmatpush.msrb.mxu0 %v6765_v63 }
 0x44b   : > { %v2427_v1 = vpop.f32.mrf.mxu3  ;;  %6736 = vmatmul.msk.f32.vlgmr.msrb.gmra.mxu2 %vm402_vm11, %v8932_v59  ;;  %3541 = vmatpush.msrb.mxu3 %v6744_v46 }
 0x44c   : > { %v2443_v26 = vadd.f32 %v2427_v1, %v9254_v14  ;;  %3635 = vmatpush.msrb.mxu0 %v6764_v52  ;;  %3729 = vmatpush.msra.mxu1 %v6784_v19 }
 0x44e   : > { %v2524_v21 = vpop.f32.mrf.mxu0  ;;  %v2537_v59 = vadd.f32 %v2521_v60, %v2443_v26  ;;  %v2697_v51 = vpop.f32.mrf.mxu2 }
 0x44f   : > { %v2618_v0 = vpop.f32.mrf.mxu1  ;;  %v9446_v14 = vadd.f32 %v2697_v51, %v9267_v7  ;;  %v6808_v7 = vld [vmem:[%s10995_s6 + $0x920] sm:$0xff] }
 0x450   : > { %6681 = vmatmul.msk.f32.gmra.mxu3 %vm402_vm11, %v9448_v41  ;;  %v2631_v54 = vadd.f32 %v2615_v12, %v2537_v59  ;;  %3819 = vmatpush.msra.mxu2 %v6808_v7 }
 0x451   : > { %6701 = vmatmul.msk.f32.gmra.mxu0 %vm402_vm11, %v8748_v53 }
 0x452   : > { %6721 = vmatmul.msk.f32.gmra.mxu1 %vm402_vm11, %v8865_v43  ;;  %v6807_v43 = vld [vmem:[%s10995_s6 + $0x918] sm:$0xff] }
 0x453   : > { %v2430_v56 = vpop.f32.mrf.mxu3  ;;  %6737 = vmatmul.msk.f32.gmra.mxu2 %vm402_vm11, %v8988_v5 }
 0x454   : > { %v2444_v6 = vadd.f32 %v2430_v56, %v9293_v33  ;;  %3820 = vmatpush.msra.mxu2 %v6807_v43 }
 0x456   : > { %v2527_v25 = vpop.f32.mrf.mxu0  ;;  %v2538_v9 = vadd.f32 %v2524_v21, %v2444_v6  ;;  %v2700_v53 = vpop.f32.mrf.mxu2  ;;  %3821 = vmatpush.msra.mxu2 %v6806_v3  ;;  %v6804_v21 = vld [vmem:[%s10995_s6 + $0x900] sm:$0xff] }
 0x457   : > { %v2621_v60 = vpop.f32.mrf.mxu1  ;;  %v9466_v61 = vadd.f32 %v2700_v53, %v9309_v17  ;;  %v3486_v53 = vld [vmem:[#allocation3 + $0x91] sm:$0xff] }
 0x458   : > { %6682 = vmatmul.msk.f32.gmra.mxu3 %vm402_vm11, %v9064_v37  ;;  %v2632_v5 = vadd.f32 %v2618_v0, %v2538_v9 }
 0x459   : > { %6702 = vmatmul.msk.f32.gmra.mxu0 %vm402_vm11, %v9200_v15 }
 0x45a   : > { %6722 = vmatmul.msk.f32.gmra.mxu1 %vm402_vm11, %v9202_v49 }
 0x45b   : > { %v2433_v33 = vpop.f32.mrf.mxu3  ;;  %6738 = vmatmul.msk.f32.gmra.mxu2 %vm402_vm11, %v9045_v34 }
 0x45c   : > { %v2445_v17 = vadd.f32 %v2433_v33, %v9342_v32  ;;  %v6805_v32 = vld [vmem:[%s10995_s6 + $0x908] sm:$0xff] }
 0x45d   : > { %3822 = vmatpush.msra.mxu2 %v6805_v32 }
 0x45e   : > { %v2530_v12 = vpop.f32.mrf.mxu0  ;;  %v2539_v50 = vadd.f32 %v2527_v25, %v2445_v17  ;;  %v2703_v27 = vpop.f32.mrf.mxu2  ;;  %v3485_v25 = vld [vmem:[#allocation3 + $0x81] sm:$0xff]  ;;  %v3676_v17 = vld [vmem:[#allocation3 + $0xb3] sm:$0xff] }
 0x45f   : > { %v2624_v13 = vpop.f32.mrf.mxu1  ;;  %v9490_v63 = vadd.f32 %v2703_v27, %v9363_v58  ;;  %3823 = vmatpush.msra.mxu2 %v6804_v21  ;;  %v3770_v21 = vld [vmem:[#allocation3 + $0xb4] sm:$0xff] }
 0x460   : > { %6683 = vmatmul.msk.f32.gmra.mxu3 %vm402_vm11, %v9480_v2  ;;  %v2633_v34 = vadd.f32 %v2621_v60, %v2539_v50  ;;  %v3767_v50 = vld [vmem:[#allocation3 + $0x84] sm:$0xff] }
 0x461   : > { %6703 = vmatmul.msk.f32.gmra.mxu0 %vm402_vm11, %v9482_v22 }
 0x462   : > { %6723 = vmatmul.msk.f32.gmra.mxu1 %vm402_vm11, %v9484_v10 }
 0x463   : > { %v2436_v38 = vpop.f32.mrf.mxu3  ;;  %6739 = vmatmul.msk.f32.gmra.mxu2 %vm402_vm11, %v9108_v42 }
 0x464   : > { %v2446_v58 = vadd.f32 %v2436_v38, %v9395_v18  ;;  %v3391_v18 = vld [vmem:[#allocation3 + $0x80] sm:$0xff] }
 0x466   : > { %v9504_v1 = vpop.f32.mrf.mxu0  ;;  %v2540_v39 = vadd.f32 %v2530_v12, %v2446_v58  ;;  %v2706_v26 = vpop.f32.mrf.mxu2 }
 0x467   : > { %v9506_v46 = vpop.f32.mrf.mxu1  ;;  %v9509_v52 = vadd.f32 %v2706_v26, %v9414_v36 }
 0x468   : > { %6756 = vmatmul.msk.f32.vlgmr.msrb.gmra.mxu3 %vm402_vm11, %v9160_v40  ;;  %v2634_v42 = vadd.f32 %v2624_v13, %v2540_v39 }
 0x469   : > { %6776 = vmatmul.msk.f32.vlgmr.msrb.gmra.mxu0 %vm402_vm11, %v9256_v4 }
 0x46a   : > { %6796 = vmatmul.msk.f32.vlgmr.msra.gmra.mxu1 %vm402_vm11, %v8965_v31 }
 0x46b   : > { %v9520_v59 = vpop.f32.mrf.mxu3  ;;  %6740 = vmatmul.msk.f32.gmra.mxu2 %vm402_vm11, %v3391_v18 }
 0x46e   : > { %v9523_v36 = vpop.f32.mrf.mxu0  ;;  %v2709_v51 = vpop.f32.mrf.mxu2 }
 0x46f   : > { %v9525_v0 = vpop.f32.mrf.mxu1  ;;  %v9527_v20 = vadd.f32 %v2709_v51, %v2631_v54 }
 0x470   : > { %6757 = vmatmul.msk.f32.gmra.mxu3 %vm402_vm11, %v9185_v24 }
 0x471   : > { %6777 = vmatmul.msk.f32.gmra.mxu0 %vm402_vm11, %v9295_v8 }
 0x472   : > { %6797 = vmatmul.msk.f32.gmra.mxu1 %vm402_vm11, %v9033_v45 }
 0x473   : > { %v9535_v31 = vpop.f32.mrf.mxu3  ;;  %6741 = vmatmul.msk.f32.gmra.mxu2 %vm402_vm11, %v8867_v11 }
 0x476   : > { %v9539_v40 = vpop.f32.mrf.mxu0  ;;  %v2712_v19 = vpop.f32.mrf.mxu2 }
 0x477   : > { %v9541_v4 = vpop.f32.mrf.mxu1  ;;  %v9543_v54 = vadd.f32 %v2712_v19, %v2632_v5 }
 0x478   : > { %6758 = vmatmul.msk.f32.gmra.mxu3 %vm402_vm11, %v9214_v48  ;;  %v3394_v48 = vld [vmem:[#allocation3 + $0xb0] sm:$0xff] }
 0x479   : > { %6778 = vmatmul.msk.f32.gmra.mxu0 %vm402_vm11, %v9344_v62 }
 0x47a   : > { %6798 = vmatmul.msk.f32.gmra.mxu1 %vm402_vm11, %v9080_v35 }
 0x47b   : > { %v9551_v45 = vpop.f32.mrf.mxu3  ;;  %6742 = vmatmul.msk.f32.gmra.mxu2 %vm402_vm11, %v9193_v44 }
 0x47e   : > { %v9555_v11 = vpop.f32.mrf.mxu0  ;;  %v2715_v8 = vpop.f32.mrf.mxu2 }
 0x47f   : > { %v9557_v24 = vpop.f32.mrf.mxu1  ;;  %v9559_v7 = vadd.f32 %v2715_v8, %v2633_v34 }
 0x480   : > { %6759 = vmatmul.msk.f32.gmra.mxu3 %vm402_vm11, %v9237_v23  ;;  %v3673_v23 = vld [vmem:[#allocation3 + $0x83] sm:$0xff] }
 0x481   : > { %6779 = vmatmul.msk.f32.gmra.mxu0 %vm402_vm11, %v9397_v47 }
 0x482   : > { %6799 = vmatmul.msk.f32.gmra.mxu1 %vm402_vm11, %v9145_v55 }
 0x483   : > { %v9567_v35 = vpop.f32.mrf.mxu3  ;;  %6743 = vmatmul.msk.f32.gmra.mxu2 %vm402_vm11, %v3394_v48 }
 0x486   : > { %v9570_v44 = vpop.f32.mrf.mxu0  ;;  %v2718_v56 = vpop.f32.mrf.mxu2 }
 0x487   : > { %v9572_v62 = vpop.f32.mrf.mxu1  ;;  %v9574_v6 = vadd.f32 %v2718_v56, %v2634_v42 }
 0x488   : > { %6760 = vmatmul.msk.f32.gmra.mxu3 %vm402_vm11, %v3485_v25 }
 0x489   : > { %11021 = vst [vmem:[#allocation9_spill] sm:$0xff] %v9574_v6  ;;  %6780 = vmatmul.msk.f32.gmra.mxu0 %vm402_vm11, %v9448_v41 }
 0x48a   : > { %6800 = vmatmul.msk.f32.gmra.mxu1 %vm402_vm11, %v3673_v23 }
 0x48b   : > { %v9580_v55 = vpop.f32.mrf.mxu3  ;;  %6816 = vmatmul.msk.f32.vlgmr.msra.gmra.mxu2 %vm402_vm11, %v9265_v16 }
 0x48e   : > { %v9584_v47 = vpop.f32.mrf.mxu0  ;;  %v9586_v9 = vpop.f32.mrf.mxu2 }
 0x48f   : > { %v9588_v60 = vpop.f32.mrf.mxu1 }
 0x490   : > { %6761 = vmatmul.msk.f32.gmra.mxu3 %vm402_vm11, %v3486_v53 }
 0x491   : > { %6781 = vmatmul.msk.f32.gmra.mxu0 %vm402_vm11, %v9064_v37 }
 0x492   : > { %6801 = vmatmul.msk.f32.gmra.mxu1 %vm402_vm11, %v9200_v15  ;;  %v3488_v15 = vld [vmem:[#allocation3 + $0xb1] sm:$0xff] }
 0x493   : > { %v9595_v41 = vpop.f32.mrf.mxu3  ;;  %6817 = vmatmul.msk.f32.gmra.mxu2 %vm402_vm11, %v9307_v28  ;;  %v3582_v28 = vld [vmem:[#allocation3 + $0xb2] sm:$0xff] }
 0x496   : > { %v9599_v16 = vpop.f32.mrf.mxu0  ;;  %v9601_v43 = vpop.f32.mrf.mxu2 }
 0x497   : > { %v9607_v5 = vpop.f32.mrf.mxu1 }
 0x498   : > { %6762 = vmatmul.msk.f32.gmra.mxu3 %vm402_vm11, %v9358_v30  ;;  %11022 = vst [vmem:[#allocation10_spill] sm:$0xff] %v9607_v5 }
 0x499   : > { %6782 = vmatmul.msk.f32.gmra.mxu0 %vm402_vm11, %v9480_v2 }
 0x49a   : > { %6802 = vmatmul.msk.f32.gmra.mxu1 %vm402_vm11, %v9482_v22 }
 0x49b   : > { %v9611_v37 = vpop.f32.mrf.mxu3  ;;  %6818 = vmatmul.msk.f32.gmra.mxu2 %vm402_vm11, %v9356_v57 }
 0x49e   : > { %v9615_v33 = vpop.f32.mrf.mxu2  ;;  %v9617_v12 = vpop.f32.mrf.mxu0 }
 0x49f   : > { %11023 = vst [vmem:[#allocation8_spill] sm:$0xff] %v9617_v12  ;;  %v9622_v30 = vpop.f32.mrf.mxu1  ;;  %v2815_v12 = vadd.f32 %v9520_v59, %v9446_v14 }
 0x4a0   : > { %6763 = vmatmul.msk.f32.gmra.mxu3 %vm402_vm11, %v3488_v15  ;;  %11024 = vst [vmem:[#allocation6_spill] sm:$0xff] %v9622_v30 }
 0x4a1   : > { %6783 = vmatmul.msk.f32.gmra.mxu0 %vm402_vm11, %v3582_v28 }
 0x4a2   : > { %6803 = vmatmul.msk.f32.gmra.mxu1 %vm402_vm11, %v3676_v17 }
 0x4a3   : > { %v9624_v2 = vpop.f32.mrf.mxu3  ;;  %6819 = vmatmul.msk.f32.gmra.mxu2 %vm402_vm11, %v9409_v29 }
 0x4a4   : > { %11025 = vst [vmem:[#allocation5_spill] sm:$0xff] %v9624_v2 }
 0x4a6   : > { %v9628_v57 = vpop.f32.mrf.mxu2  ;;  %v3261_v22 = vpop.f32.mrf.mxu0 }
 0x4a7   : > { %v3355_v27 = vpop.f32.mrf.mxu1 }
 0x4ab   : > { %v3167_v13 = vpop.f32.mrf.mxu3  ;;  %6820 = vmatmul.msk.f32.gmra.mxu2 %vm402_vm11, %v3767_v50 }
 0x4ae   : > { %v9631_v3 = vpop.f32.mrf.mxu2  ;;  %v3264_v32 = vpop.f32.mrf.mxu0 }
 0x4af   : > { %v3358_v58 = vpop.f32.mrf.mxu1 }
 0x4b3   : > { %v3170_v34 = vpop.f32.mrf.mxu3  ;;  %6821 = vmatmul.msk.f32.gmra.mxu2 %vm402_vm11, %v9202_v49 }
 0x4b6   : > { %v9635_v38 = vpop.f32.mrf.mxu2  ;;  %v9639_v29 = vpop.f32.mrf.mxu0 }
 0x4b7   : > { %v9643_v42 = vpop.f32.mrf.mxu1 }
 0x4bb   : > { %v3173_v39 = vpop.f32.mrf.mxu3  ;;  %6822 = vmatmul.msk.f32.gmra.mxu2 %vm402_vm11, %v9484_v10 }
 0x4be   : > { %v9641_v26 = vpop.f32.mrf.mxu2  ;;  %v9650_v51 = vpop.f32.mrf.mxu0 }
 0x4bf   : > { %11026 = vst [vmem:[#allocation11_spill] sm:$0xff] %v9641_v26  ;;  %v9652_v19 = vpop.f32.mrf.mxu1 }
 0x4c3   : > { %v9645_v18 = vpop.f32.mrf.mxu3  ;;  %6823 = vmatmul.msk.f32.gmra.mxu2 %vm402_vm11, %v3770_v21 }
 0x4c6   : > { %v9648_v49 = vpop.f32.mrf.mxu2  ;;  %v9656_v48 = vpop.f32.mrf.mxu0 }
 0x4c7   : > { %11027 = vst [vmem:[#allocation7_spill] sm:$0xff] %v9648_v49  ;;  %v9658_v56 = vpop.f32.mrf.mxu1 }
 0x4c8   : > { %11028 = vst [vmem:[#allocation12_spill] sm:$0xff] %v9658_v56 }
 0x4cb   : > { %v9654_v8 = vpop.f32.mrf.mxu3 }
 0x4ce   : > { %v3449_v10 = vpop.f32.mrf.mxu2  ;;  %v9662_v53 = vpop.f32.mrf.mxu0 }
 0x4cf   : > { %11029 = vst [vmem:[#allocation13_spill] sm:$0xff] %v9662_v53  ;;  %v9664_v28 = vpop.f32.mrf.mxu1  ;;  %v2909_v53 = vadd.f32 %v9504_v1, %v2815_v12 }
 0x4d0   : > { %11030 = vst [vmem:[#allocation14_spill] sm:$0xff] %v9664_v28 }
 0x4d1   : > { %v3003_v2 = vadd.f32 %v9506_v46, %v2909_v53 }
 0x4d3   : > { %v9660_v25 = vpop.f32.mrf.mxu3 }
 0x4d6   : > { %v3452_v23 = vpop.f32.mrf.mxu2  ;;  %v9668_v50 = vpop.f32.mrf.mxu0 }
 0x4d7   : > { %11032 = vst [vmem:[#allocation16_spill] sm:$0xff] %v9668_v50  ;;  %v9672_v49 = vpop.f32.mrf.mxu1  ;;  %v2816_v50 = vadd.f32 %v9535_v31, %v9466_v61 }
 0x4d8   : > { %11033 = vst [vmem:[#allocation17_spill] sm:$0xff] %v9672_v49 }
 0x4d9   : > { %v2910_v14 = vadd.f32 %v9523_v36, %v2816_v50 }
 0x4db   : > { %v9666_v17 = vpop.f32.mrf.mxu3  ;;  %v3004_v1 = vadd.f32 %v9525_v0, %v2910_v14 }
 0x4dc   : > { %11031 = vst [vmem:[#allocation15_spill] sm:$0xff] %v9666_v17 }
 0x4dd   : > { %v3098_v61 = vadd.f32 %v9601_v43, %v3004_v1 }
 0x4de   : > { %v3455_v15 = vpop.f32.mrf.mxu2  ;;  %v9680_v5 = vpop.f32.mrf.mxu0 }
 0x4df   : > { %11036 = vst [vmem:[#allocation20_spill] sm:$0xff] %v9680_v5  ;;  %v9683_v28 = vpop.f32.mrf.mxu1  ;;  %v2817_v5 = vadd.f32 %v9551_v45, %v9490_v63  ;;  %v3192_v31 = vadd.f32 %v3170_v34, %v3098_v61 }
 0x4e0   : > { %11037 = vst [vmem:[#allocation21_spill] sm:$0xff] %v9683_v28 }
 0x4e1   : > { %v2911_v46 = vadd.f32 %v9539_v40, %v2817_v5  ;;  %v3286_v45 = vadd.f32 %v3264_v32, %v3192_v31 }
 0x4e3   : > { %v9674_v30 = vpop.f32.mrf.mxu3  ;;  %v3005_v63 = vadd.f32 %v9541_v4, %v2911_v46  ;;  %v3380_v5 = vadd.f32 %v3358_v58, %v3286_v45 }
 0x4e4   : > { %11034 = vst [vmem:[#allocation18_spill] sm:$0xff] %v9674_v30  ;;  %v3097_v30 = vadd.f32 %v9586_v9, %v3003_v2 }
 0x4e5   : > { %v3474_v34 = vadd.f32 %v3452_v23, %v3380_v5 }
 0x4e6   : > { %v9670_v21 = vpop.f32.mrf.mxu2  ;;  %v3191_v59 = vadd.f32 %v3167_v13, %v3097_v30  ;;  %v3637_v6 = vpop.f32.mrf.mxu0  ;;  %v2818_v30 = vadd.f32 %v9567_v35, %v9509_v52  ;;  %v3099_v13 = vadd.f32 %v9615_v33, %v3005_v63  ;;  %v9713_v33 = vld [vmem:[%s10996_s7] ss:$0 sm:$0xff] }
 0x4e7   : > { %v3731_v28 = vpop.f32.mrf.mxu1 }
 0x4e8   : > { %v3285_v12 = vadd.f32 %v3261_v22, %v3191_v59  ;;  %v2912_v43 = vadd.f32 %v9555_v11, %v2818_v30  ;;  %v3193_v40 = vadd.f32 %v3173_v39, %v3099_v13  ;;  %v2820_v59 = vadd.f32 %v9595_v41, %v9543_v54 }
 0x4ea   : > { %v3379_v9 = vadd.f32 %v3355_v27, %v3285_v12  ;;  %v3006_v52 = vadd.f32 %v9557_v24, %v2912_v43  ;;  %v3287_v4 = vadd.f32 %v9639_v29, %v3193_v40  ;;  %v2914_v46 = vadd.f32 %v9584_v47, %v2820_v59  ;;  %v6828_v59 = vld [vmem:[%s10997_s8 + $0x50] sm:$0xff] }
 0x4eb   : > { %v3543_v17 = vpop.f32.mrf.mxu3 }
 0x4ec   : > { %v3473_v2 = vadd.f32 %v3449_v10, %v3379_v9  ;;  %v2819_v10 = vadd.f32 %v9580_v55, %v9527_v20  ;;  %v3100_v58 = vadd.f32 %v9628_v57, %v3006_v52  ;;  %v3381_v24 = vadd.f32 %v9643_v42, %v3287_v4 }
 0x4ee   : > { %v9678_v26 = vpop.f32.mrf.mxu2  ;;  %v3640_v36 = vpop.f32.mrf.mxu0  ;;  %v3567_v0 = vadd.f32 %v3543_v17, %v3473_v2  ;;  %v2913_v39 = vadd.f32 %v9570_v44, %v2819_v10  ;;  %v3194_v20 = vadd.f32 %v9645_v18, %v3100_v58 }
 0x4ef   : > { %11035 = vst [vmem:[#allocation19_spill] sm:$0xff] %v9678_v26  ;;  %v3734_v53 = vpop.f32.mrf.mxu1 }
 0x4f0   : > { %v3661_v27 = vadd.f32 %v3637_v6, %v3567_v0  ;;  %v3007_v1 = vadd.f32 %v9572_v62, %v2913_v39  ;;  %v3288_v57 = vadd.f32 %v9650_v51, %v3194_v20  ;;  %v11045_v20 = vld [vmem:[#allocation8_spill] sm:$0xff] }
 0x4f2   : > { %v3755_v32 = vadd.f32 %v3731_v28, %v3661_v27  ;;  %v3475_v28 = vadd.f32 %v3455_v15, %v3381_v24  ;;  %v3101_v42 = vadd.f32 %v9631_v3, %v3007_v1  ;;  %v3382_v9 = vadd.f32 %v9652_v19, %v3288_v57  ;;  %v11041_v27 = vld [vmem:[#allocation5_spill] sm:$0xff] }
 0x4f3   : > { %v3546_v26 = vpop.f32.mrf.mxu3  ;;  %v3008_v3 = vadd.f32 %v9588_v60, %v2914_v46  ;;  %v6829_v60 = vld [vmem:[%s10997_s8 + $0x58] sm:$0xff] }
 0x4f4   : > { %v3568_v35 = vadd.f32 %v3546_v26, %v3474_v34  ;;  %v3195_v15 = vadd.f32 %v9654_v8, %v3101_v42  ;;  %v3476_v41 = vadd.f32 %v9670_v21, %v3382_v9  ;;  %3988 = vmatpush.msra.mxu3 %v6829_v60  ;;  %v3938_v9 = vld [vmem:[%s10997_s8 + $0x28] sm:$0xff] }
 0x4f5   : > { %v3102_v45 = vadd.f32 %v9635_v38, %v3008_v3  ;;  %v11040_v38 = vld [vmem:[#allocation9_spill] sm:$0xff]  ;;  %4053 = vmatpush.msra.mxu0 %v3938_v9 }
 0x4f6   : > { %v9688_v49 = vpop.f32.mrf.mxu2  ;;  %v3643_v17 = vpop.f32.mrf.mxu0  ;;  %v3662_v55 = vadd.f32 %v3640_v36, %v3568_v35  ;;  %v2821_v36 = vadd.f32 %v9611_v37, %v9559_v7  ;;  %v3289_v47 = vadd.f32 %v9656_v48, %v3195_v15  ;;  %v11039_v43 = vld [vmem:[#allocation19_spill] sm:$0xff]  ;;  %v2822_v34 = vadd.f32 %v11041_v27, %v11040_v38  ;;  %3989 = vmatpush.msra.mxu3 %v6828_v59  ;;  %v6827_v15 = vld [vmem:[%s10997_s8 + $0x48] sm:$0xff]  ;;  %v6862_v27 = vld [vmem:[%s10997_s8 + $0xa0] sm:$0xff] }
 0x4f7   : > { %v3737_v29 = vpop.f32.mrf.mxu1  ;;  %v3196_v13 = vadd.f32 %v9660_v25, %v3102_v45  ;;  %v11043_v25 = vld [vmem:[#allocation13_spill] sm:$0xff] }
 0x4f8   : > { %v3756_v44 = vadd.f32 %v3734_v53, %v3662_v55  ;;  %v2915_v21 = vadd.f32 %v9599_v16, %v2821_v36  ;;  %v11038_v53 = vld [vmem:[#allocation12_spill] sm:$0xff]  ;;  %v11042_v16 = vld [vmem:[#allocation10_spill] sm:$0xff]  ;;  %v2916_v24 = vadd.f32 %v11045_v20, %v2822_v34  ;;  %v11046_v55 = vld [vmem:[#allocation15_spill] sm:$0xff]  ;;  %3990 = vmatpush.msra.mxu3 %v6827_v15 }
 0x4f9   : > { %v3290_v52 = vadd.f32 %v11043_v25, %v3196_v13  ;;  %v11051_v36 = vld [vmem:[#allocation7_spill] sm:$0xff]  ;;  %v6849_v13 = vld [vmem:[%s10997_s8 + $0x78] sm:$0xff]  ;;  %v3934_v34 = vld [vmem:[%s10997_s8 + $0x8] sm:$0xff] }
 0x4fa   : > { %v3009_v10 = vadd.f32 %v11042_v16, %v2915_v21  ;;  %v6824_v16 = vld [vmem:[%s10997_s8 + $0x30] sm:$0xff]  ;;  %v11054_v25 = vld [vmem:[#allocation20_spill] sm:$0xff] }
 0x4fb   : > { %v3549_v50 = vpop.f32.mrf.mxu3 }
 0x4fc   : > { %v3569_v12 = vadd.f32 %v3549_v50, %v3475_v28  ;;  %v3383_v50 = vadd.f32 %v11038_v53, %v3289_v47  ;;  %v6864_v47 = vld [vmem:[%s10997_s8 + $0xb0] sm:$0xff]  ;;  %v6863_v53 = vld [vmem:[%s10997_s8 + $0xa8] sm:$0xff] }
 0x4fe   : > { %v9695_v56 = vpop.f32.mrf.mxu2  ;;  %v3646_v31 = vpop.f32.mrf.mxu0  ;;  %v3663_v54 = vadd.f32 %v3643_v17, %v3569_v12  ;;  %v3477_v40 = vadd.f32 %v11039_v43, %v3383_v50  ;;  %v11044_v17 = vld [vmem:[#allocation11_spill] sm:$0xff]  ;;  %v11048_v12 = vld [vmem:[#allocation6_spill] sm:$0xff]  ;;  %v6825_v43 = vld [vmem:[%s10997_s8 + $0x38] sm:$0xff] }
 0x4ff   : > { %v3740_v51 = vpop.f32.mrf.mxu1  ;;  %v11053_v50 = vld [vmem:[#allocation18_spill] sm:$0xff] }
 0x500   : > { %v3757_v8 = vadd.f32 %v3737_v29, %v3663_v54 }
 0x503   : > { %v3552_v23 = vpop.f32.mrf.mxu3 }
 0x504   : > { %v3570_v63 = vadd.f32 %v3552_v23, %v3476_v41  ;;  %v3937_v41 = vld [vmem:[%s10997_s8 + $0x20] sm:$0xff] }
 0x505   : > { %4054 = vmatpush.msra.mxu0 %v3937_v41 }
 0x506   : > { %v9702_v22 = vpop.f32.mrf.mxu2  ;;  %v3664_v7 = vadd.f32 %v3646_v31, %v3570_v63  ;;  %v3649_v48 = vpop.f32.mrf.mxu0  ;;  %v6826_v63 = vld [vmem:[%s10997_s8 + $0x40] sm:$0xff] }
 0x507   : > { %v3743_v4 = vpop.f32.mrf.mxu1  ;;  %3991 = vmatpush.msra.mxu3 %v6826_v63 }
 0x509   : > { %3992 = vmatpush.msra.mxu3 %v6825_v43  ;;  %v6874_v43 = vld [vmem:[%s10997_s8 + $0xc0] sm:$0xff] }
 0x50b   : > { %v3555_v30 = vpop.f32.mrf.mxu3  ;;  %3993 = vmatpush.msra.mxu3 %v6824_v16 }
 0x50c   : > { %v3571_v35 = vadd.f32 %v3555_v30, %v3477_v40  ;;  %v6848_v40 = vld [vmem:[%s10997_s8 + $0x70] sm:$0xff] }
 0x50e   : > { %v3825_v11 = vpop.f32.mrf.mxu2  ;;  %v3665_v28 = vadd.f32 %v3649_v48, %v3571_v35  ;;  %v3935_v48 = vld [vmem:[%s10997_s8 + $0x10] sm:$0xff] }
 0x50f   : > { %v3849_v6 = vadd.f32 %v3825_v11, %v3755_v32  ;;  %v3758_v32 = vadd.f32 %v3740_v51, %v3664_v7  ;;  %v3103_v11 = vadd.f32 %v11044_v17, %v3009_v10  ;;  %v6850_v51 = vld [vmem:[%s10997_s8 + $0x80] sm:$0xff] }
 0x510   : > { %v3759_v31 = vadd.f32 %v3743_v4, %v3665_v28  ;;  %v3933_v17 = vld [vmem:[%s10997_s8] sm:$0xff] }
 0x511   : > { %v3861_v26 = vadd.f32 %v9713_v33, %v3849_v6  ;;  %v3197_v29 = vadd.f32 %v11046_v55, %v3103_v11 }
 0x513   : > { %v3869_v14 = vmax.f32 %v3861_v26, 0.0  ;;  %v3558_v58 = vpop.f32.mrf.mxu3  ;;  %v11047_v26 = vld [vmem:[#allocation14_spill] sm:$0xff] }
 0x514   : > { %v3384_v23 = vadd.f32 %v11047_v26, %v3290_v52 }
 0x515   : > { %3878 = vrot.lane.b32.xlu2 %v3869_v14, %s7221_s26 }
 0x516   : > { %v3828_v18 = vpop.f32.mrf.mxu2  ;;  %v3478_v1 = vadd.f32 %v9688_v49, %v3384_v23  ;;  %v6851_v49 = vld [vmem:[%s10997_s8 + $0x88] sm:$0xff]  ;;  %v11055_v23 = vld [vmem:[#allocation21_spill] sm:$0xff] }
 0x517   : > { %v3850_v61 = vadd.f32 %v3828_v18, %v3756_v44  ;;  %v3010_v44 = vadd.f32 %v11048_v12, %v2916_v24  ;;  %v11049_v18 = vld [vmem:[#allocation16_spill] sm:$0xff]  ;;  %4133 = vmatpush.msrb.mxu1 %v6851_v49  ;;  %v6860_v24 = vld [vmem:[%s10997_s8 + $0x90] sm:$0xff] }
 0x518   : > { %v3291_v42 = vadd.f32 %v11049_v18, %v3197_v29  ;;  %v3572_v46 = vadd.f32 %v3558_v58, %v3478_v1  ;;  %v6846_v58 = vld [vmem:[%s10997_s8 + $0x60] sm:$0xff] }
 0x519   : > { %v3862_v62 = vadd.f32 %v9713_v33, %v3850_v61  ;;  %v3652_v61 = vpop.f32.mrf.mxu0  ;;  %v3104_v30 = vadd.f32 %v11051_v36, %v3010_v44  ;;  %4134 = vmatpush.msrb.mxu1 %v6850_v51 }
 0x51b   : > { %v3870_v2 = vmax.f32 %v3862_v62, 0.0  ;;  %v6865_v62 = vld [vmem:[%s10997_s8 + $0xb8] sm:$0xff]  ;;  %v3561_v21 = vpop.f32.mrf.mxu3  ;;  %v3198_v7 = vadd.f32 %v11053_v50, %v3104_v30  ;;  %4135 = vmatpush.msrb.mxu1 %v6849_v13  ;;  %v6876_v13 = vld [vmem:[%s10997_s8 + $0xd0] sm:$0xff]  ;;  %v6875_v50 = vld [vmem:[%s10997_s8 + $0xc8] sm:$0xff] }
 0x51c   : > { %4221 = vmatpush.msrb.mxu2 %v6865_v62 }
 0x51d   : > { %3884 = vrot.lane.b32.xlu0 %v3870_v2, %s7221_s26  ;;  %v11050_v2 = vmov 0.0   ;;  %v3292_v52 = vadd.f32 %v11054_v25, %v3198_v7  ;;  %4136 = vmatpush.msrb.mxu1 %v6848_v40  ;;  %v6892_v40 = vld [vmem:[%s10997_s8 + $0x110] sm:$0xff]  ;;  %v6891_v25 = vld [vmem:[%s10997_s8 + $0x108] sm:$0xff] }
 0x51e   : > { %v3831_v19 = vpop.f32.mrf.mxu2  ;;  %429 = vst.msk [vmem:[#allocation4] sm:$0xff] %vm428_vm15, %v11050_v2  ;;  %4222 = vmatpush.msrb.mxu2 %v6864_v47  ;;  %v6878_v47 = vld [vmem:[%s10997_s8 + $0xe0] sm:$0xff] }
 0x51f   : > { %v3851_v0 = vadd.f32 %v3831_v19, %v3757_v8  ;;  %v3936_v8 = vld [vmem:[%s10997_s8 + $0x18] sm:$0xff]  ;;  %431 = vst.msk [vmem:[#allocation4 + $0x8] sm:$0xf] %vm430_vm1, %v11050_v2  ;;  %v11052_v19 = vld [vmem:[#allocation17_spill] sm:$0xff]  ;;  %v3386_v28 = vadd.f32 %v11055_v23, %v3292_v52 }
 0x520   : > { %v3385_v45 = vadd.f32 %v11052_v19, %v3291_v42  ;;  %432 = vst.msk [vmem:[#allocation4 + $0x10] sm:$0xff] %vm428_vm15, %v11050_v2  ;;  %4055 = vmatpush.msra.mxu0 %v3936_v8  ;;  %4223 = vmatpush.msrb.mxu2 %v6863_v53  ;;  %v6877_v8 = vld [vmem:[%s10997_s8 + $0xd8] sm:$0xff] }
 0x521   : > { %v3863_v37 = vadd.f32 %v9713_v33, %v3851_v0  ;;  %v3746_v0 = vpop.f32.mrf.mxu1  ;;  %433 = vst.msk [vmem:[#allocation4 + $0x18] sm:$0xf] %vm430_vm1, %v11050_v2  ;;  %v3655_v10 = vpop.f32.mrf.mxu0  ;;  %v6905_v52 = vld [vmem:[%s10997_s8 + $0x138] sm:$0xff] }
 0x522   : > { %434 = vst.msk [vmem:[#allocation4 + $0x20] sm:$0xff] %vm428_vm15, %v11050_v2  ;;  %4056 = vmatpush.msra.mxu0 %v3935_v48  ;;  %4224 = vmatpush.msrb.mxu2 %v6862_v27  ;;  %v6921_v48 = vld [vmem:[%s10997_s8 + $0x178] sm:$0xff] }
 0x523   : > { %v3871_v5 = vmax.f32 %v3863_v37, 0.0  ;;  %v3666_v37 = vadd.f32 %v3652_v61, %v3572_v46  ;;  %435 = vst.msk [vmem:[#allocation4 + $0x28] sm:$0xf] %vm430_vm1, %v11050_v2  ;;  %v3564_v1 = vpop.f32.mrf.mxu3 }
 0x524   : > { %436 = vst.msk [vmem:[#allocation4 + $0x30] sm:$0xff] %vm428_vm15, %v11050_v2  ;;  %4057 = vmatpush.msra.mxu0 %v3934_v34 }
 0x525   : > { %3890 = vrot.lane.b32.xlu1 %v3871_v5, %s7221_s26  ;;  %v3479_v5 = vadd.f32 %v9695_v56, %v3385_v45  ;;  %v6847_v56 = vld [vmem:[%s10997_s8 + $0x68] sm:$0xff]  ;;  %v3760_v35 = vadd.f32 %v3746_v0, %v3666_v37  ;;  %437 = vst.msk [vmem:[#allocation4 + $0x38] sm:$0xf] %vm430_vm1, %v11050_v2  ;;  %v6893_v37 = vld [vmem:[%s10997_s8 + $0x118] sm:$0xff] }
 0x526   : > { %v3834_v6 = vpop.f32.mrf.mxu2  ;;  %438 = vst.msk [vmem:[#allocation4 + $0x40] sm:$0xff] %vm428_vm15, %v11050_v2  ;;  %4137 = vmatpush.msrb.mxu1 %v6847_v56  ;;  %v4084_v55 = vld [vmem:[#allocation4 + $0x2] sm:$0xff]  ;;  %4058 = vmatpush.msra.mxu0 %v3933_v17 }
 0x527   : > { %v3852_v39 = vadd.f32 %v3834_v6, %v3758_v32  ;;  %v3573_v4 = vadd.f32 %v3561_v21, %v3479_v5  ;;  %v6861_v32 = vld [vmem:[%s10997_s8 + $0x98] sm:$0xff]  ;;  %v3939_v6 = vld [vmem:[#allocation4 + $0x1] sm:$0xff]  ;;  %439 = vst.msk [vmem:[#allocation4 + $0x48] sm:$0xf] %vm430_vm1, %v11050_v2  ;;  %v9897_v30 = vld [vmem:[#allocation4 + $0x10] sm:$0xff] }
 0x528   : > { %6830 = vmatmul.msk.f32.vlgmr.msra.gmra.mxu3 %vm428_vm15, %v3939_v6  ;;  %4225 = vmatpush.msrb.mxu2 %v6861_v32  ;;  %440 = vst.msk [vmem:[#allocation4 + $0x50] sm:$0xff] %vm428_vm15, %v11050_v2  ;;  %v4172_v26 = vld [vmem:[#allocation4 + $0x3] sm:$0xff]  ;;  %v9895_v36 = vld [vmem:[#allocation4 + $0x11] sm:$0xff] }
 0x529   : > { %v3864_v14 = vadd.f32 %v9713_v33, %v3852_v39  ;;  %v3925_v39 = vld [vmem:[#allocation4] sm:$0xff]  ;;  %v3749_v29 = vpop.f32.mrf.mxu1  ;;  %4138 = vmatpush.msrb.mxu1 %v6846_v58  ;;  %441 = vst.msk [vmem:[#allocation4 + $0x58] sm:$0xf] %vm430_vm1, %v11050_v2  ;;  %v3658_v42 = vpop.f32.mrf.mxu0  ;;  %4398 = vmatpush.msrb.mxu0 %v6893_v37  ;;  %v6904_v32 = vld [vmem:[%s10997_s8 + $0x130] sm:$0xff]  ;;  %v6903_v58 = vld [vmem:[%s10997_s8 + $0x128] sm:$0xff] }
 0x52a   : > { %6838 = vmatmul.msk.f32.vlgmr.msra.gmra.mxu0 %vm428_vm15, %v3925_v39  ;;  %4226 = vmatpush.msrb.mxu2 %v6860_v24  ;;  %442 = vst.msk [vmem:[#allocation4 + $0x60] sm:$0xff] %vm428_vm15, %v11050_v2  ;;  %v6906_v5 = vld [vmem:[%s10997_s8 + $0x140] sm:$0xff]  ;;  %v6917_v6 = vld [vmem:[%s10997_s8 + $0x158] sm:$0xff]  ;;  %v6888_v39 = vld [vmem:[%s10997_s8 + $0xf0] sm:$0xff] }
 0x52b   : > { %v3872_v57 = vmax.f32 %v3864_v14, 0.0  ;;  %v3667_v14 = vadd.f32 %v3655_v10, %v3573_v4  ;;  %6852 = vmatmul.msk.f32.vlgmr.msrb.gmra.mxu1 %vm428_vm15, %v4084_v55  ;;  %443 = vst.msk [vmem:[#allocation4 + $0x68] sm:$0xf] %vm430_vm1, %v11050_v2  ;;  %6866 = vmatmul.msk.f32.vlgmr.msrb.gmra.mxu2 %vm428_vm15, %v4172_v26  ;;  %v6919_v4 = vld [vmem:[%s10997_s8 + $0x168] sm:$0xff]  ;;  %v6918_v17 = vld [vmem:[%s10997_s8 + $0x160] sm:$0xff]  ;;  %v6976_v37 = vld [vmem:[%s10997_s8 + $0x230] sm:$0xff] }
 0x52c   : > { %444 = vst.msk [vmem:[#allocation4 + $0x70] sm:$0xff] %vm428_vm15, %v11050_v2  ;;  %4574 = vmatpush.msra.mxu2 %v6921_v48  ;;  %4399 = vmatpush.msrb.mxu0 %v6892_v40  ;;  %v6961_v48 = vld [vmem:[%s10997_s8 + $0x1f8] sm:$0xff] }
 0x52d   : > { %3896 = vrot.lane.b32.xlu2 %v3872_v57, %s7221_s26  ;;  %v3480_v57 = vadd.f32 %v9702_v22, %v3386_v28  ;;  %v3761_v44 = vadd.f32 %v3749_v29, %v3667_v14  ;;  %445 = vst.msk [vmem:[#allocation4 + $0x78] sm:$0xf] %vm430_vm1, %v11050_v2  ;;  %v6916_v28 = vld [vmem:[%s10997_s8 + $0x150] sm:$0xff]  ;;  %v6935_v14 = vld [vmem:[%s10997_s8 + $0x1a8] sm:$0xff] }
 0x52e   : > { %v3837_v54 = vpop.f32.mrf.mxu2  ;;  %446 = vst.msk [vmem:[#allocation4 + $0x80] sm:$0xff] %vm428_vm15, %v11050_v2  ;;  %4400 = vmatpush.msrb.mxu0 %v6891_v25  ;;  %v6945_v25 = vld [vmem:[%s10997_s8 + $0x1b8] sm:$0xff] }
 0x52f   : > { %v3853_v3 = vadd.f32 %v3837_v54, %v3759_v31  ;;  %v3574_v18 = vadd.f32 %v3564_v1, %v3480_v57  ;;  %447 = vst.msk [vmem:[#allocation4 + $0x88] sm:$0xf] %vm430_vm1, %v11050_v2 }
 0x530   : > { %448 = vst.msk [vmem:[#allocation4 + $0x90] sm:$0xff] %vm428_vm15, %v11050_v2  ;;  %6831 = vmatmul.msk.f32.gmra.mxu3 %vm428_vm15, %v9895_v36 }
 0x531   : > { %v3865_v60 = vadd.f32 %v9713_v33, %v3853_v3  ;;  %v3668_v46 = vadd.f32 %v3658_v42, %v3574_v18  ;;  %449 = vst.msk [vmem:[#allocation4 + $0x98] sm:$0xf] %vm430_vm1, %v11050_v2  ;;  %v3752_v15 = vpop.f32.mrf.mxu1  ;;  %v9899_v3 = vld [vmem:[#allocation4 + $0x12] sm:$0xff]  ;;  %v6934_v18 = vld [vmem:[%s10997_s8 + $0x1a0] sm:$0xff] }
 0x532   : > { %450 = vst.msk [vmem:[#allocation4 + $0xa0] sm:$0xff] %vm428_vm15, %v11050_v2  ;;  %6839 = vmatmul.msk.f32.gmra.mxu0 %vm428_vm15, %v9897_v30 }
 0x533   : > { %v3873_v38 = vmax.f32 %v3865_v60, 0.0  ;;  %451 = vst.msk [vmem:[#allocation4 + $0xa8] sm:$0xf] %vm430_vm1, %v11050_v2  ;;  %v3762_v49 = vadd.f32 %v3752_v15, %v3668_v46  ;;  %6853 = vmatmul.msk.f32.gmra.mxu1 %vm428_vm15, %v9899_v3  ;;  %v6907_v60 = vld [vmem:[%s10997_s8 + $0x148] sm:$0xff]  ;;  %v6933_v15 = vld [vmem:[%s10997_s8 + $0x198] sm:$0xff] }
 0x534   : > { %452 = vst.msk [vmem:[#allocation4 + $0xb0] sm:$0xff] %vm428_vm15, %v11050_v2  ;;  %4486 = vmatpush.msra.mxu1 %v6907_v60  ;;  %v6947_v60 = vld [vmem:[%s10997_s8 + $0x1c8] sm:$0xff] }
 0x535   : > { %3902 = vrot.lane.b32.xlu0 %v3873_v38, %s7221_s26  ;;  %453 = vst.msk [vmem:[#allocation4 + $0xb8] sm:$0xf] %vm430_vm1, %v11050_v2  ;;  %v9905_v2 = vld [vmem:[#allocation4 + $0x13] sm:$0xff] }
 0x536   : > { %v3840_v11 = vpop.f32.mrf.mxu2  ;;  %6867 = vmatmul.msk.f32.gmra.mxu2 %vm428_vm15, %v9905_v2  ;;  %v6920_v38 = vld [vmem:[%s10997_s8 + $0x170] sm:$0xff]  ;;  %4487 = vmatpush.msra.mxu1 %v6906_v5  ;;  %v6946_v5 = vld [vmem:[%s10997_s8 + $0x1c0] sm:$0xff] }
 0x537   : > { %v3854_v20 = vadd.f32 %v3840_v11, %v3760_v35  ;;  %4575 = vmatpush.msra.mxu2 %v6920_v38  ;;  %v6890_v35 = vld [vmem:[%s10997_s8 + $0x100] sm:$0xff]  ;;  %v6889_v11 = vld [vmem:[%s10997_s8 + $0xf8] sm:$0xff]  ;;  %v6960_v38 = vld [vmem:[%s10997_s8 + $0x1f0] sm:$0xff] }
 0x538   : > { %4488 = vmatpush.msra.mxu1 %v6905_v52  ;;  %4401 = vmatpush.msrb.mxu0 %v6890_v35  ;;  %v6959_v52 = vld [vmem:[%s10997_s8 + $0x1e8] sm:$0xff]  ;;  %v6944_v35 = vld [vmem:[%s10997_s8 + $0x1b0] sm:$0xff] }
 0x539   : > { %v3866_v59 = vadd.f32 %v9713_v33, %v3854_v20  ;;  %4576 = vmatpush.msra.mxu2 %v6919_v4  ;;  %v6902_v20 = vld [vmem:[%s10997_s8 + $0x120] sm:$0xff]  ;;  %v6973_v4 = vld [vmem:[%s10997_s8 + $0x218] sm:$0xff] }
 0x53a   : > { %4489 = vmatpush.msra.mxu1 %v6904_v32  ;;  %4402 = vmatpush.msrb.mxu0 %v6889_v11  ;;  %v6958_v32 = vld [vmem:[%s10997_s8 + $0x1e0] sm:$0xff]  ;;  %v6972_v11 = vld [vmem:[%s10997_s8 + $0x210] sm:$0xff] }
 0x53b   : > { %v3874_v12 = vmax.f32 %v3866_v59, 0.0  ;;  %4577 = vmatpush.msra.mxu2 %v6918_v17  ;;  %v6991_v17 = vld [vmem:[%s10997_s8 + $0x268] sm:$0xff] }
 0x53c   : > { %4490 = vmatpush.msra.mxu1 %v6903_v58  ;;  %4403 = vmatpush.msrb.mxu0 %v6888_v39 }
 0x53d   : > { %3908 = vrot.lane.b32.xlu1 %v3874_v12, %s7221_s26  ;;  %4578 = vmatpush.msra.mxu2 %v6917_v6  ;;  %v6990_v6 = vld [vmem:[%s10997_s8 + $0x260] sm:$0xff] }
 0x53e   : > { %v3843_v61 = vpop.f32.mrf.mxu2  ;;  %4491 = vmatpush.msra.mxu1 %v6902_v20  ;;  %v6989_v20 = vld [vmem:[%s10997_s8 + $0x258] sm:$0xff] }
 0x53f   : > { %v3855_v22 = vadd.f32 %v3843_v61, %v3761_v44  ;;  %4579 = vmatpush.msra.mxu2 %v6916_v28 }
 0x541   : > { %v3867_v31 = vadd.f32 %v9713_v33, %v3855_v22 }
 0x543   : > { %v3875_v9 = vmax.f32 %v3867_v31, 0.0 }
 0x545   : > { %3914 = vrot.lane.b32.xlu2 %v3875_v9, %s7221_s26 }
 0x546   : > { %v3846_v54 = vpop.f32.mrf.mxu2 }
 0x547   : > { %v3856_v62 = vadd.f32 %v3846_v54, %v3762_v49 }
 0x549   : > { %v3868_v41 = vadd.f32 %v9713_v33, %v3856_v62  ;;  %v6879_v33 = vld [vmem:[%s10997_s8 + $0xe8] sm:$0xff] }
 0x54a   : > { %4309 = vmatpush.msrb.mxu3 %v6879_v33  ;;  %v6932_v33 = vld [vmem:[%s10997_s8 + $0x190] sm:$0xff] }
 0x54b   : > { %v3876_v51 = vmax.f32 %v3868_v41, 0.0  ;;  %v4260_v41 = vld [vmem:[#allocation4 + $0x4] sm:$0xff] }
 0x54c   : > { %4310 = vmatpush.msrb.mxu3 %v6878_v47  ;;  %v10106_v47 = vld [vmem:[#allocation4 + $0x14] sm:$0xff] }
 0x54d   : > { %3920 = vrot.lane.b32.xlu0 %v3876_v51, %s7221_s26 }
 0x54e   : > { %4311 = vmatpush.msrb.mxu3 %v6877_v8 }
 0x550   : > { %4312 = vmatpush.msrb.mxu3 %v6876_v13  ;;  %v6977_v13 = vld [vmem:[%s10997_s8 + $0x238] sm:$0xff] }
 0x551   : > { %4926 = vmatpush.msrb.mxu2 %v6977_v13 }
 0x552   : > { %4313 = vmatpush.msrb.mxu3 %v6875_v50  ;;  %v6948_v50 = vld [vmem:[%s10997_s8 + $0x1d0] sm:$0xff] }
 0x553   : > { %4927 = vmatpush.msrb.mxu2 %v6976_v37  ;;  %v6986_v37 = vld [vmem:[%s10997_s8 + $0x240] sm:$0xff] }
 0x554   : > { %4314 = vmatpush.msrb.mxu3 %v6874_v43  ;;  %v6975_v43 = vld [vmem:[%s10997_s8 + $0x228] sm:$0xff] }
 0x555   : > { %4928 = vmatpush.msrb.mxu2 %v6975_v43  ;;  %v7032_v43 = vld [vmem:[%s10997_s8 + $0x2f0] sm:$0xff] }
 0x556   : > { %4662 = vmatpush.msra.mxu3 %v6935_v14 }
 0x558   : > { %4663 = vmatpush.msra.mxu3 %v6934_v18 }
 0x55a   : > { %4664 = vmatpush.msra.mxu3 %v6933_v15 }
 0x55c   : > { %4665 = vmatpush.msra.mxu3 %v6932_v33 }
 0x56f   : > { %v3879_v63 = vpop.permute.xlu2 %3878 }
 0x570   : > { %3882 = vst.msk [vmem:[#allocation4 + $0x22] sm:$0xff] %vm1424_vm13, %v3879_v63  ;;  %v6963_v63 = vld [vmem:[%s10997_s8 + $0x208] sm:$0xff] }
 0x571   : > { %4838 = vmatpush.msrb.mxu1 %v6963_v63 }
 0x577   : > { %v9921_v19 = vld [vmem:[#allocation4 + $0x21] sm:$0xff] }
 0x578   : > { %v9923_v45 = vld [vmem:[#allocation4 + $0x20] sm:$0xff]  ;;  %6832 = vmatmul.msk.f32.gmra.mxu3 %vm428_vm15, %v9921_v19 }
 0x579   : > { %v9925_v0 = vld [vmem:[#allocation4 + $0x22] sm:$0xff]  ;;  %6840 = vmatmul.msk.f32.gmra.mxu0 %vm428_vm15, %v9923_v45 }
 0x57a   : > { %v9931_v21 = vld [vmem:[#allocation4 + $0x23] sm:$0xff]  ;;  %6854 = vmatmul.msk.f32.gmra.mxu1 %vm428_vm15, %v9925_v0 }
 0x57b   : > { %6868 = vmatmul.msk.f32.gmra.mxu2 %vm428_vm15, %v9931_v21 }
 0x587   : > { %v3897_v53 = vpop.permute.xlu2 %3896 }
 0x588   : > { %3900 = vst.msk [vmem:[#allocation4 + $0x52] sm:$0xff] %vm1424_vm13, %v3897_v53  ;;  %v6930_v53 = vld [vmem:[%s10997_s8 + $0x180] sm:$0xff] }
 0x58f   : > { %v3885_v7 = vpop.permute.xlu0 %3884  ;;  %v10039_v1 = vld [vmem:[#allocation4 + $0x51] sm:$0xff] }
 0x590   : > { %3888 = vst.msk [vmem:[#allocation4 + $0x32] sm:$0xff] %vm1424_vm13, %v3885_v7  ;;  %v10041_v57 = vld [vmem:[#allocation4 + $0x50] sm:$0xff]  ;;  %v6962_v7 = vld [vmem:[%s10997_s8 + $0x200] sm:$0xff] }
 0x591   : > { %v10048_v12 = vld [vmem:[#allocation4 + $0x52] sm:$0xff]  ;;  %4839 = vmatpush.msrb.mxu1 %v6962_v7 }
 0x592   : > { %v10050_v44 = vld [vmem:[#allocation4 + $0x53] sm:$0xff] }
 0x593   : > { %4840 = vmatpush.msrb.mxu1 %v6961_v48  ;;  %v10209_v58 = vld [vmem:[#allocation4 + $0x54] sm:$0xff]  ;;  %v7018_v48 = vld [vmem:[%s10997_s8 + $0x2c0] sm:$0xff] }
 0x594   : > { %v7033_v7 = vld [vmem:[%s10997_s8 + $0x2f8] sm:$0xff] }
 0x595   : > { %4841 = vmatpush.msrb.mxu1 %v6960_v38  ;;  %v7017_v38 = vld [vmem:[%s10997_s8 + $0x2b8] sm:$0xff] }
 0x597   : > { %v3891_v27 = vpop.permute.xlu1 %3890  ;;  %v9966_v34 = vld [vmem:[#allocation4 + $0x31] sm:$0xff]  ;;  %4842 = vmatpush.msrb.mxu1 %v6959_v52  ;;  %v7031_v52 = vld [vmem:[%s10997_s8 + $0x2e8] sm:$0xff] }
 0x598   : > { %v9968_v16 = vld [vmem:[#allocation4 + $0x30] sm:$0xff]  ;;  %3894 = vst.msk [vmem:[#allocation4 + $0x42] sm:$0xff] %vm1424_vm13, %v3891_v27  ;;  %6833 = vmatmul.msk.f32.gmra.mxu3 %vm428_vm15, %v9966_v34  ;;  %v6974_v27 = vld [vmem:[%s10997_s8 + $0x220] sm:$0xff] }
 0x599   : > { %v9970_v10 = vld [vmem:[#allocation4 + $0x32] sm:$0xff]  ;;  %6841 = vmatmul.msk.f32.gmra.mxu0 %vm428_vm15, %v9968_v16  ;;  %4929 = vmatpush.msrb.mxu2 %v6974_v27 }
 0x59a   : > { %v9977_v56 = vld [vmem:[#allocation4 + $0x33] sm:$0xff]  ;;  %6855 = vmatmul.msk.f32.gmra.mxu1 %vm428_vm15, %v9970_v10 }
 0x59b   : > { %6869 = vmatmul.msk.f32.gmra.mxu2 %vm428_vm15, %v9977_v56  ;;  %v10135_v8 = vld [vmem:[#allocation4 + $0x34] sm:$0xff]  ;;  %4843 = vmatpush.msrb.mxu1 %v6958_v32 }
 0x59c   : > { %4930 = vmatpush.msrb.mxu2 %v6973_v4 }
 0x59e   : > { %4931 = vmatpush.msrb.mxu2 %v6972_v11  ;;  %v7002_v11 = vld [vmem:[%s10997_s8 + $0x280] sm:$0xff] }
 0x59f   : > { %v3915_v24 = vpop.permute.xlu2 %3914  ;;  %v10016_v55 = vld [vmem:[#allocation4 + $0x41] sm:$0xff] }
 0x5a0   : > { %v10018_v29 = vld [vmem:[#allocation4 + $0x40] sm:$0xff]  ;;  %3918 = vst.msk [vmem:[#allocation4 + $0x82] sm:$0xff] %vm1424_vm13, %v3915_v24  ;;  %6834 = vmatmul.msk.f32.gmra.mxu3 %vm428_vm15, %v10016_v55 }
 0x5a1   : > { %v10020_v26 = vld [vmem:[#allocation4 + $0x42] sm:$0xff]  ;;  %6842 = vmatmul.msk.f32.gmra.mxu0 %vm428_vm15, %v10018_v29 }
 0x5a2   : > { %v10027_v23 = vld [vmem:[#allocation4 + $0x43] sm:$0xff]  ;;  %6856 = vmatmul.msk.f32.gmra.mxu1 %vm428_vm15, %v10020_v26 }
 0x5a3   : > { %6870 = vmatmul.msk.f32.gmra.mxu2 %vm428_vm15, %v10027_v23  ;;  %v10169_v40 = vld [vmem:[#allocation4 + $0x44] sm:$0xff] }
 0x5a7   : > { %v3903_v59 = vpop.permute.xlu0 %3902  ;;  %v10237_v28 = vld [vmem:[#allocation4 + $0x80] sm:$0xff]  ;;  %v10247_v18 = vpop.f32.mrf.mxu0 }
 0x5a8   : > { %3906 = vst.msk [vmem:[#allocation4 + $0x62] sm:$0xff] %vm1424_vm13, %v3903_v59  ;;  %6835 = vmatmul.msk.f32.gmra.mxu3 %vm428_vm15, %v10039_v1  ;;  %v10243_v14 = vld [vmem:[#allocation4 + $0x81] sm:$0xff] }
 0x5a9   : > { %6843 = vmatmul.msk.f32.gmra.mxu0 %vm428_vm15, %v10041_v57  ;;  %v10245_v59 = vld [vmem:[#allocation4 + $0x82] sm:$0xff] }
 0x5aa   : > { %6857 = vmatmul.msk.f32.gmra.mxu1 %vm428_vm15, %v10048_v12 }
 0x5ab   : > { %6871 = vmatmul.msk.f32.gmra.mxu2 %vm428_vm15, %v10050_v44  ;;  %v10255_v15 = vpop.f32.mrf.mxu3 }
 0x5af   : > { %v3909_v42 = vpop.permute.xlu1 %3908  ;;  %v10059_v61 = vld [vmem:[#allocation4 + $0x61] sm:$0xff]  ;;  %v10270_v33 = vpop.f32.mrf.mxu0 }
 0x5b0   : > { %v10061_v22 = vld [vmem:[#allocation4 + $0x60] sm:$0xff]  ;;  %3912 = vst.msk [vmem:[#allocation4 + $0x72] sm:$0xff] %vm1424_vm13, %v3909_v42  ;;  %6836 = vmatmul.msk.f32.gmra.mxu3 %vm428_vm15, %v10059_v61  ;;  %v10253_v42 = vpop.f32.mrf.mxu1 }
 0x5b1   : > { %v10063_v46 = vld [vmem:[#allocation4 + $0x62] sm:$0xff]  ;;  %6844 = vmatmul.msk.f32.gmra.mxu0 %vm428_vm15, %v10061_v22 }
 0x5b2   : > { %v10070_v31 = vld [vmem:[#allocation4 + $0x63] sm:$0xff]  ;;  %6858 = vmatmul.msk.f32.gmra.mxu1 %vm428_vm15, %v10063_v46 }
 0x5b3   : > { %6872 = vmatmul.msk.f32.gmra.mxu2 %vm428_vm15, %v10070_v31  ;;  %v10222_v39 = vld [vmem:[#allocation4 + $0x64] sm:$0xff] }
 0x5b7   : > { %v10079_v9 = vld [vmem:[#allocation4 + $0x71] sm:$0xff] }
 0x5b8   : > { %v10081_v49 = vld [vmem:[#allocation4 + $0x70] sm:$0xff]  ;;  %6837 = vmatmul.msk.f32.gmra.mxu3 %vm428_vm15, %v10079_v9 }
 0x5b9   : > { %v10083_v54 = vld [vmem:[#allocation4 + $0x72] sm:$0xff]  ;;  %6845 = vmatmul.msk.f32.gmra.mxu0 %vm428_vm15, %v10081_v49 }
 0x5ba   : > { %v10089_v62 = vld [vmem:[#allocation4 + $0x73] sm:$0xff]  ;;  %6859 = vmatmul.msk.f32.gmra.mxu1 %vm428_vm15, %v10083_v54 }
 0x5bb   : > { %6873 = vmatmul.msk.f32.gmra.mxu2 %vm428_vm15, %v10089_v62  ;;  %v10235_v24 = vld [vmem:[#allocation4 + $0x74] sm:$0xff] }
 0x5bf   : > { %v3921_v51 = vpop.permute.xlu0 %3920 }
 0x5c0   : > { %3924 = vst.msk [vmem:[#allocation4 + $0x92] sm:$0xff] %vm1424_vm13, %v3921_v51  ;;  %6880 = vmatmul.msk.f32.vlgmr.msrb.gmra.mxu3 %vm428_vm15, %v4260_v41  ;;  %v10257_v41 = vpop.f32.mrf.mxu2  ;;  %v6988_v51 = vld [vmem:[%s10997_s8 + $0x250] sm:$0xff] }
 0x5c1   : > { %6894 = vmatmul.msk.f32.vlgmr.msrb.gmra.mxu0 %vm428_vm15, %v9897_v30  ;;  %v10119_v30 = vld [vmem:[#allocation4 + $0x24] sm:$0xff] }
 0x5c2   : > { %6908 = vmatmul.msk.f32.vlgmr.msra.gmra.mxu1 %vm428_vm15, %v9895_v36  ;;  %v6931_v36 = vld [vmem:[%s10997_s8 + $0x188] sm:$0xff] }
 0x5c3   : > { %6922 = vmatmul.msk.f32.vlgmr.msra.gmra.mxu2 %vm428_vm15, %v9899_v3  ;;  %4666 = vmatpush.msra.mxu3 %v6931_v36  ;;  %v6949_v3 = vld [vmem:[%s10997_s8 + $0x1d8] sm:$0xff]  ;;  %v10272_v36 = vpop.f32.mrf.mxu1 }
 0x5c4   : > { %4750 = vmatpush.msra.mxu0 %v6949_v3  ;;  %v6987_v3 = vld [vmem:[%s10997_s8 + $0x248] sm:$0xff]  ;;  %5278 = vmatpush.msra.mxu2 %v7033_v7 }
 0x5c5   : > { %4667 = vmatpush.msra.mxu3 %v6930_v53 }
 0x5c6   : > { %4751 = vmatpush.msra.mxu0 %v6948_v50  ;;  %v7005_v50 = vld [vmem:[%s10997_s8 + $0x298] sm:$0xff]  ;;  %5279 = vmatpush.msra.mxu2 %v7032_v43 }
 0x5c7   : > { %5014 = vmatpush.msrb.mxu3 %v6991_v17 }
 0x5c8   : > { %6881 = vmatmul.msk.f32.gmra.mxu3 %vm428_vm15, %v10106_v47  ;;  %4752 = vmatpush.msra.mxu0 %v6947_v60  ;;  %v7004_v60 = vld [vmem:[%s10997_s8 + $0x290] sm:$0xff] }
 0x5c9   : > { %6895 = vmatmul.msk.f32.gmra.mxu0 %vm428_vm15, %v9923_v45  ;;  %5015 = vmatpush.msrb.mxu3 %v6990_v6  ;;  %v7016_v6 = vld [vmem:[%s10997_s8 + $0x2b0] sm:$0xff] }
 0x5ca   : > { %6909 = vmatmul.msk.f32.gmra.mxu1 %vm428_vm15, %v9921_v19  ;;  %4753 = vmatpush.msra.mxu0 %v6946_v5 }
 0x5cb   : > { %6923 = vmatmul.msk.f32.gmra.mxu2 %vm428_vm15, %v9925_v0  ;;  %5016 = vmatpush.msrb.mxu3 %v6989_v20  ;;  %v7030_v20 = vld [vmem:[%s10997_s8 + $0x2e0] sm:$0xff] }
 0x5cc   : > { %4754 = vmatpush.msra.mxu0 %v6945_v25  ;;  %5280 = vmatpush.msra.mxu2 %v7031_v52 }
 0x5cd   : > { %5017 = vmatpush.msrb.mxu3 %v6988_v51  ;;  %v7001_v51 = vld [vmem:[%s10997_s8 + $0x278] sm:$0xff] }
 0x5ce   : > { %4755 = vmatpush.msra.mxu0 %v6944_v35  ;;  %5281 = vmatpush.msra.mxu2 %v7030_v20 }
 0x5cf   : > { %5018 = vmatpush.msrb.mxu3 %v6987_v3  ;;  %v7015_v3 = vld [vmem:[%s10997_s8 + $0x2a8] sm:$0xff] }
 0x5d0   : > { %6882 = vmatmul.msk.f32.gmra.mxu3 %vm428_vm15, %v10119_v30  ;;  %5102 = vmatpush.msrb.mxu0 %v7005_v50  ;;  %v7014_v50 = vld [vmem:[%s10997_s8 + $0x2a0] sm:$0xff] }
 0x5d1   : > { %6896 = vmatmul.msk.f32.gmra.mxu0 %vm428_vm15, %v9968_v16  ;;  %5019 = vmatpush.msrb.mxu3 %v6986_v37 }
 0x5d2   : > { %6910 = vmatmul.msk.f32.gmra.mxu1 %vm428_vm15, %v9966_v34  ;;  %5103 = vmatpush.msrb.mxu0 %v7004_v60  ;;  %v7028_v60 = vld [vmem:[%s10997_s8 + $0x2d0] sm:$0xff] }
 0x5d3   : > { %6924 = vmatmul.msk.f32.gmra.mxu2 %vm428_vm15, %v9970_v10 }
 0x5d8   : > { %6883 = vmatmul.msk.f32.gmra.mxu3 %vm428_vm15, %v10135_v8 }
 0x5d9   : > { %6897 = vmatmul.msk.f32.gmra.mxu0 %vm428_vm15, %v10018_v29 }
 0x5da   : > { %6911 = vmatmul.msk.f32.gmra.mxu1 %vm428_vm15, %v10016_v55 }
 0x5db   : > { %6925 = vmatmul.msk.f32.gmra.mxu2 %vm428_vm15, %v10020_v26 }
 0x5e0   : > { %6884 = vmatmul.msk.f32.gmra.mxu3 %vm428_vm15, %v10169_v40 }
 0x5e1   : > { %6898 = vmatmul.msk.f32.gmra.mxu0 %vm428_vm15, %v10041_v57 }
 0x5e2   : > { %6912 = vmatmul.msk.f32.gmra.mxu1 %vm428_vm15, %v10039_v1 }
 0x5e3   : > { %6926 = vmatmul.msk.f32.gmra.mxu2 %vm428_vm15, %v10048_v12 }
 0x5e8   : > { %6885 = vmatmul.msk.f32.gmra.mxu3 %vm428_vm15, %v10209_v58 }
 0x5e9   : > { %6899 = vmatmul.msk.f32.gmra.mxu0 %vm428_vm15, %v10061_v22 }
 0x5ea   : > { %6913 = vmatmul.msk.f32.gmra.mxu1 %vm428_vm15, %v10059_v61 }
 0x5eb   : > { %6927 = vmatmul.msk.f32.gmra.mxu2 %vm428_vm15, %v10063_v46 }
 0x5f0   : > { %6886 = vmatmul.msk.f32.gmra.mxu3 %vm428_vm15, %v10222_v39 }
 0x5f1   : > { %6900 = vmatmul.msk.f32.gmra.mxu0 %vm428_vm15, %v10081_v49 }
 0x5f2   : > { %6914 = vmatmul.msk.f32.gmra.mxu1 %vm428_vm15, %v10079_v9 }
 0x5f3   : > { %6928 = vmatmul.msk.f32.gmra.mxu2 %vm428_vm15, %v10083_v54 }
 0x5f8   : > { %6887 = vmatmul.msk.f32.gmra.mxu3 %vm428_vm15, %v10235_v24 }
 0x5f9   : > { %6901 = vmatmul.msk.f32.gmra.mxu0 %vm428_vm15, %v10237_v28 }
 0x5fa   : > { %6915 = vmatmul.msk.f32.gmra.mxu1 %vm428_vm15, %v10243_v14 }
 0x5fb   : > { %6929 = vmatmul.msk.f32.gmra.mxu2 %vm428_vm15, %v10245_v59 }
 0x600   : > { %6936 = vmatmul.msk.f32.vlgmr.msra.gmra.mxu3 %vm428_vm15, %v9905_v2  ;;  %v10278_v2 = vpop.f32.mrf.mxu3 }
 0x601   : > { %6950 = vmatmul.msk.f32.vlgmr.msra.gmra.mxu0 %vm428_vm15, %v10106_v47  ;;  %v10288_v47 = vpop.f32.mrf.mxu1 }
 0x602   : > { %6964 = vmatmul.msk.f32.vlgmr.msrb.gmra.mxu1 %vm428_vm15, %v9923_v45  ;;  %v10286_v45 = vpop.f32.mrf.mxu0 }
 0x603   : > { %6978 = vmatmul.msk.f32.vlgmr.msrb.gmra.mxu2 %vm428_vm15, %v9921_v19  ;;  %v10284_v19 = vpop.f32.mrf.mxu2 }
 0x608   : > { %6937 = vmatmul.msk.f32.gmra.mxu3 %vm428_vm15, %v9931_v21 }
 0x609   : > { %6951 = vmatmul.msk.f32.gmra.mxu0 %vm428_vm15, %v10119_v30 }
 0x60a   : > { %6965 = vmatmul.msk.f32.gmra.mxu1 %vm428_vm15, %v9968_v16 }
 0x60b   : > { %6979 = vmatmul.msk.f32.gmra.mxu2 %vm428_vm15, %v9966_v34  ;;  %v10301_v34 = vpop.f32.mrf.mxu3  ;;  %v10303_v63 = vpop.f32.mrf.mxu2 }
 0x610   : > { %6938 = vmatmul.msk.f32.gmra.mxu3 %vm428_vm15, %v9977_v56 }
 0x611   : > { %6952 = vmatmul.msk.f32.gmra.mxu0 %vm428_vm15, %v10135_v8 }
 0x612   : > { %6966 = vmatmul.msk.f32.gmra.mxu1 %vm428_vm15, %v10018_v29 }
 0x613   : > { %6980 = vmatmul.msk.f32.gmra.mxu2 %vm428_vm15, %v10016_v55  ;;  %v7019_v55 = vld [vmem:[%s10997_s8 + $0x2c8] sm:$0xff] }
 0x614   : > { %5190 = vmatpush.msra.mxu1 %v7019_v55  ;;  %v7047_v55 = vld [vmem:[%s10997_s8 + $0x328] sm:$0xff] }
 0x615   : > { %5366 = vmatpush.msra.mxu3 %v7047_v55  ;;  %v10416_v55 = vld [vmem:[#allocation4 + $0x90] sm:$0xff] }
 0x616   : > { %v4069_v13 = vpop.f32.mrf.mxu0  ;;  %5191 = vmatpush.msra.mxu1 %v7018_v48 }
 0x617   : > { %v4149_v53 = vpop.f32.mrf.mxu1 }
 0x618   : > { %6939 = vmatmul.msk.f32.gmra.mxu3 %vm428_vm15, %v10027_v23  ;;  %5192 = vmatpush.msra.mxu1 %v7017_v38 }
 0x619   : > { %6953 = vmatmul.msk.f32.gmra.mxu0 %vm428_vm15, %v10169_v40 }
 0x61a   : > { %6967 = vmatmul.msk.f32.gmra.mxu1 %vm428_vm15, %v10041_v57 }
 0x61b   : > { %6981 = vmatmul.msk.f32.gmra.mxu2 %vm428_vm15, %v10039_v1  ;;  %v4004_v5 = vpop.f32.mrf.mxu3  ;;  %v7003_v1 = vld [vmem:[%s10997_s8 + $0x288] sm:$0xff]  ;;  %5193 = vmatpush.msra.mxu1 %v7016_v6 }
 0x61c   : > { %v4070_v27 = vadd.f32 %v4069_v13, %v4004_v5  ;;  %5104 = vmatpush.msrb.mxu0 %v7003_v1  ;;  %v7029_v13 = vld [vmem:[%s10997_s8 + $0x2d8] sm:$0xff] }
 0x61d   : > { %5194 = vmatpush.msra.mxu1 %v7015_v3  ;;  %5282 = vmatpush.msra.mxu2 %v7029_v13 }
 0x61e   : > { %v4237_v25 = vpop.f32.mrf.mxu2  ;;  %v4072_v4 = vpop.f32.mrf.mxu0  ;;  %v4167_v35 = vadd.f32 %v4149_v53, %v4070_v27  ;;  %5105 = vmatpush.msrb.mxu0 %v7002_v11 }
 0x61f   : > { %v4152_v32 = vpop.f32.mrf.mxu1  ;;  %5195 = vmatpush.msra.mxu1 %v7014_v50  ;;  %5283 = vmatpush.msra.mxu2 %v7028_v60  ;;  %v7045_v60 = vld [vmem:[%s10997_s8 + $0x318] sm:$0xff] }
 0x620   : > { %v10343_v17 = vadd.f32 %v4237_v25, %v4167_v35  ;;  %6940 = vmatmul.msk.f32.gmra.mxu3 %vm428_vm15, %v10050_v44  ;;  %5106 = vmatpush.msrb.mxu0 %v7001_v51 }
 0x621   : > { %6954 = vmatmul.msk.f32.gmra.mxu0 %vm428_vm15, %v10209_v58 }
 0x622   : > { %6968 = vmatmul.msk.f32.gmra.mxu1 %vm428_vm15, %v10061_v22 }
 0x623   : > { %6982 = vmatmul.msk.f32.gmra.mxu2 %vm428_vm15, %v10059_v61  ;;  %v4007_v53 = vpop.f32.mrf.mxu3  ;;  %v7000_v61 = vld [vmem:[%s10997_s8 + $0x270] sm:$0xff] }
 0x624   : > { %v4073_v7 = vadd.f32 %v4072_v4, %v4007_v53  ;;  %5107 = vmatpush.msrb.mxu0 %v7000_v61  ;;  %v10406_v53 = vld [vmem:[#allocation4 + $0x83] sm:$0xff] }
 0x625   : > { %v10408_v61 = vld [vmem:[#allocation4 + $0x84] sm:$0xff] }
 0x626   : > { %v4240_v37 = vpop.f32.mrf.mxu2  ;;  %v4075_v48 = vpop.f32.mrf.mxu0  ;;  %v4168_v43 = vadd.f32 %v4152_v32, %v4073_v7  ;;  %v10418_v7 = vld [vmem:[#allocation4 + $0x91] sm:$0xff] }
 0x627   : > { %v4155_v5 = vpop.f32.mrf.mxu1 }
 0x628   : > { %v10383_v1 = vadd.f32 %v4240_v37, %v4168_v43  ;;  %6941 = vmatmul.msk.f32.gmra.mxu3 %vm428_vm15, %v10070_v31  ;;  %v4061_v37 = vadd.f32 %v10247_v18, %v10255_v15  ;;  %v7044_v15 = vld [vmem:[%s10997_s8 + $0x310] sm:$0xff] }
 0x629   : > { %6955 = vmatmul.msk.f32.gmra.mxu0 %vm428_vm15, %v10222_v39 }
 0x62a   : > { %6969 = vmatmul.msk.f32.gmra.mxu1 %vm428_vm15, %v10081_v49 }
 0x62b   : > { %6983 = vmatmul.msk.f32.gmra.mxu2 %vm428_vm15, %v10079_v9  ;;  %v4010_v38 = vpop.f32.mrf.mxu3  ;;  %v7046_v9 = vld [vmem:[%s10997_s8 + $0x320] sm:$0xff] }
 0x62c   : > { %v4076_v27 = vadd.f32 %v4075_v48, %v4010_v38  ;;  %5367 = vmatpush.msra.mxu3 %v7046_v9 }
 0x62e   : > { %v4243_v25 = vpop.f32.mrf.mxu2  ;;  %v4078_v52 = vpop.f32.mrf.mxu0  ;;  %v4169_v4 = vadd.f32 %v4155_v5, %v4076_v27  ;;  %5368 = vmatpush.msra.mxu3 %v7045_v60  ;;  %v4164_v27 = vadd.f32 %v10253_v42, %v4061_v37  ;;  %v4064_v42 = vadd.f32 %v10270_v33, %v10278_v2 }
 0x62f   : > { %v4158_v35 = vpop.f32.mrf.mxu1 }
 0x630   : > { %v10393_v32 = vadd.f32 %v4243_v25, %v4169_v4  ;;  %6942 = vmatmul.msk.f32.gmra.mxu3 %vm428_vm15, %v10089_v62  ;;  %v4252_v18 = vadd.f32 %v10257_v41, %v4164_v27  ;;  %v4067_v41 = vadd.f32 %v10286_v45, %v10301_v34  ;;  %v7043_v45 = vld [vmem:[%s10997_s8 + $0x308] sm:$0xff]  ;;  %v7074_v27 = vld [vmem:[%s10997_s8 + $0x380] sm:$0xff] }
 0x631   : > { %6956 = vmatmul.msk.f32.gmra.mxu0 %vm428_vm15, %v10235_v24  ;;  %5369 = vmatpush.msra.mxu3 %v7044_v15 }
 0x632   : > { %6970 = vmatmul.msk.f32.gmra.mxu1 %vm428_vm15, %v10237_v28 }
 0x633   : > { %6984 = vmatmul.msk.f32.gmra.mxu2 %vm428_vm15, %v10243_v14  ;;  %v4013_v11 = vpop.f32.mrf.mxu3  ;;  %5370 = vmatpush.msra.mxu3 %v7043_v45 }
 0x634   : > { %v4079_v6 = vadd.f32 %v4078_v52, %v4013_v11  ;;  %v4165_v11 = vadd.f32 %v10272_v36, %v4064_v42  ;;  %v7059_v42 = vld [vmem:[%s10997_s8 + $0x348] sm:$0xff] }
 0x636   : > { %v4246_v20 = vpop.f32.mrf.mxu2  ;;  %v4081_v51 = vpop.f32.mrf.mxu0  ;;  %v4170_v3 = vadd.f32 %v4158_v35, %v4079_v6 }
 0x637   : > { %v4161_v13 = vpop.f32.mrf.mxu1 }
 0x638   : > { %v10410_v50 = vadd.f32 %v4246_v20, %v4170_v3  ;;  %6943 = vmatmul.msk.f32.gmra.mxu3 %vm428_vm15, %v10406_v53  ;;  %v4166_v3 = vadd.f32 %v10288_v47, %v4067_v41  ;;  %v7056_v41 = vld [vmem:[%s10997_s8 + $0x330] sm:$0xff] }
 0x639   : > { %6957 = vmatmul.msk.f32.gmra.mxu0 %vm428_vm15, %v10408_v61 }
 0x63a   : > { %6971 = vmatmul.msk.f32.gmra.mxu1 %vm428_vm15, %v10416_v55 }
 0x63b   : > { %6985 = vmatmul.msk.f32.gmra.mxu2 %vm428_vm15, %v10418_v7  ;;  %v4016_v48 = vpop.f32.mrf.mxu3 }
 0x63c   : > { %v4082_v43 = vadd.f32 %v4081_v51, %v4016_v48 }
 0x63e   : > { %v4249_v5 = vpop.f32.mrf.mxu2  ;;  %v4405_v38 = vpop.f32.mrf.mxu0  ;;  %v4171_v25 = vadd.f32 %v4161_v13, %v4082_v43 }
 0x63f   : > { %v4493_v52 = vpop.f32.mrf.mxu1 }
 0x640   : > { %v10430_v4 = vadd.f32 %v4249_v5, %v4171_v25  ;;  %6992 = vmatmul.msk.f32.vlgmr.msrb.gmra.mxu3 %vm428_vm15, %v9925_v0  ;;  %v7075_v5 = vld [vmem:[%s10997_s8 + $0x388] sm:$0xff] }
 0x641   : > { %7006 = vmatmul.msk.f32.vlgmr.msrb.gmra.mxu0 %vm428_vm15, %v9931_v21  ;;  %5542 = vmatpush.msrb.mxu1 %v7075_v5 }
 0x642   : > { %7020 = vmatmul.msk.f32.vlgmr.msra.gmra.mxu1 %vm428_vm15, %v10119_v30 }
 0x643   : > { %7034 = vmatmul.msk.f32.vlgmr.msra.gmra.mxu2 %vm428_vm15, %v9968_v16  ;;  %v4316_v35 = vpop.f32.mrf.mxu3  ;;  %v4253_v16 = vadd.f32 %v10284_v19, %v4165_v11  ;;  %5543 = vmatpush.msrb.mxu1 %v7074_v27  ;;  %v7058_v11 = vld [vmem:[%s10997_s8 + $0x340] sm:$0xff] }
 0x644   : > { %v4340_v0 = vadd.f32 %v4316_v35, %v4252_v18  ;;  %v7088_v18 = vld [vmem:[%s10997_s8 + $0x3b0] sm:$0xff]  ;;  %v7073_v35 = vld [vmem:[%s10997_s8 + $0x378] sm:$0xff] }
 0x645   : > { %5544 = vmatpush.msrb.mxu1 %v7073_v35 }
 0x646   : > { %v4581_v9 = vpop.f32.mrf.mxu2  ;;  %v4408_v21 = vpop.f32.mrf.mxu0  ;;  %v4429_v30 = vadd.f32 %v4405_v38, %v4340_v0  ;;  %v7060_v38 = vld [vmem:[%s10997_s8 + $0x350] sm:$0xff] }
 0x647   : > { %v4496_v6 = vpop.f32.mrf.mxu1 }
 0x648   : > { %v4517_v20 = vadd.f32 %v4493_v52, %v4429_v30  ;;  %6993 = vmatmul.msk.f32.gmra.mxu3 %vm428_vm15, %v9970_v10  ;;  %v7072_v30 = vld [vmem:[%s10997_s8 + $0x370] sm:$0xff] }
 0x649   : > { %7007 = vmatmul.msk.f32.gmra.mxu0 %vm428_vm15, %v9977_v56  ;;  %5545 = vmatpush.msrb.mxu1 %v7072_v30  ;;  %v5493_v30 = vld [vmem:[#allocation4 + $0x33] sm:$0xff] }
 0x64a   : > { %7021 = vmatmul.msk.f32.gmra.mxu1 %vm428_vm15, %v10135_v8  ;;  %v10458_v33 = vadd.f32 %v4581_v9, %v4517_v20  ;;  %v7087_v9 = vld [vmem:[%s10997_s8 + $0x3a8] sm:$0xff] }
 0x64b   : > { %7035 = vmatmul.msk.f32.gmra.mxu2 %vm428_vm15, %v10018_v29  ;;  %v4319_v36 = vpop.f32.mrf.mxu3  ;;  %v4254_v29 = vadd.f32 %v10303_v63, %v4166_v3  ;;  %v7061_v63 = vld [vmem:[%s10997_s8 + $0x358] sm:$0xff] }
 0x64c   : > { %v4341_v2 = vadd.f32 %v4319_v36, %v4253_v16  ;;  %5454 = vmatpush.msra.mxu0 %v7061_v63  ;;  %v7085_v16 = vld [vmem:[%s10997_s8 + $0x398] sm:$0xff] }
 0x64e   : > { %v4584_v51 = vpop.f32.mrf.mxu2  ;;  %v4411_v10 = vpop.f32.mrf.mxu0  ;;  %v4430_v56 = vadd.f32 %v4408_v21, %v4341_v2  ;;  %5455 = vmatpush.msra.mxu0 %v7060_v38  ;;  %v10586_v38 = vld [vmem:[#allocation4 + $0x93] sm:$0xff] }
 0x64f   : > { %v4499_v13 = vpop.f32.mrf.mxu1 }
 0x650   : > { %v4518_v37 = vadd.f32 %v4496_v6, %v4430_v56  ;;  %6994 = vmatmul.msk.f32.gmra.mxu3 %vm428_vm15, %v10020_v26  ;;  %5456 = vmatpush.msra.mxu0 %v7059_v42 }
 0x651   : > { %7008 = vmatmul.msk.f32.gmra.mxu0 %vm428_vm15, %v10027_v23 }
 0x652   : > { %7022 = vmatmul.msk.f32.gmra.mxu1 %vm428_vm15, %v10169_v40  ;;  %v10470_v19 = vadd.f32 %v4584_v51, %v4518_v37  ;;  %5457 = vmatpush.msra.mxu0 %v7058_v11  ;;  %v7070_v51 = vld [vmem:[%s10997_s8 + $0x360] sm:$0xff] }
 0x653   : > { %7036 = vmatmul.msk.f32.gmra.mxu2 %vm428_vm15, %v10041_v57  ;;  %v4322_v47 = vpop.f32.mrf.mxu3 }
 0x654   : > { %v4342_v26 = vadd.f32 %v4322_v47, %v4254_v29 }
 0x656   : > { %v4587_v34 = vpop.f32.mrf.mxu2  ;;  %v4414_v60 = vpop.f32.mrf.mxu0  ;;  %v4431_v23 = vadd.f32 %v4411_v10, %v4342_v26  ;;  %v7103_v10 = vld [vmem:[%s10997_s8 + $0x3e8] sm:$0xff] }
 0x657   : > { %v4502_v48 = vpop.f32.mrf.mxu1 }
 0x658   : > { %v4519_v43 = vadd.f32 %v4499_v13, %v4431_v23  ;;  %6995 = vmatmul.msk.f32.gmra.mxu3 %vm428_vm15, %v10048_v12  ;;  %v7089_v12 = vld [vmem:[%s10997_s8 + $0x3b8] sm:$0xff] }
 0x659   : > { %7009 = vmatmul.msk.f32.gmra.mxu0 %vm428_vm15, %v10050_v44  ;;  %5630 = vmatpush.msrb.mxu2 %v7089_v12 }
 0x65a   : > { %7023 = vmatmul.msk.f32.gmra.mxu1 %vm428_vm15, %v10209_v58  ;;  %v10483_v57 = vadd.f32 %v4587_v34, %v4519_v43 }
 0x65b   : > { %7037 = vmatmul.msk.f32.gmra.mxu2 %vm428_vm15, %v10061_v22  ;;  %v4325_v44 = vpop.f32.mrf.mxu3  ;;  %v7042_v22 = vld [vmem:[%s10997_s8 + $0x300] sm:$0xff] }
 0x65c   : > { %v4343_v25 = vadd.f32 %v4325_v44, %v10343_v17  ;;  %5371 = vmatpush.msra.mxu3 %v7042_v22  ;;  %5631 = vmatpush.msrb.mxu2 %v7088_v18  ;;  %v10582_v44 = vld [vmem:[#allocation4 + $0xa0] sm:$0xff]  ;;  %v10584_v22 = vld [vmem:[#allocation4 + $0x92] sm:$0xff] }
 0x65e   : > { %v4590_v52 = vpop.f32.mrf.mxu2  ;;  %v4417_v15 = vpop.f32.mrf.mxu0  ;;  %v4432_v0 = vadd.f32 %v4414_v60, %v4343_v25  ;;  %5632 = vmatpush.msrb.mxu2 %v7087_v9  ;;  %5718 = vmatpush.msrb.mxu3 %v7103_v10  ;;  %v10592_v25 = vld [vmem:[#allocation4 + $0x94] sm:$0xff] }
 0x65f   : > { %v4505_v17 = vpop.f32.mrf.mxu1  ;;  %v5317_v9 = vld [vmem:[#allocation4 + $0x31] sm:$0xff] }
 0x660   : > { %v4520_v21 = vadd.f32 %v4502_v48, %v4432_v0  ;;  %6996 = vmatmul.msk.f32.gmra.mxu3 %vm428_vm15, %v10063_v46  ;;  %v7086_v46 = vld [vmem:[%s10997_s8 + $0x3a0] sm:$0xff] }
 0x661   : > { %7010 = vmatmul.msk.f32.gmra.mxu0 %vm428_vm15, %v10070_v31  ;;  %v7057_v31 = vld [vmem:[%s10997_s8 + $0x338] sm:$0xff]  ;;  %5633 = vmatpush.msrb.mxu2 %v7086_v46 }
 0x662   : > { %7024 = vmatmul.msk.f32.gmra.mxu1 %vm428_vm15, %v10222_v39  ;;  %v10533_v6 = vadd.f32 %v4590_v52, %v4520_v21  ;;  %5458 = vmatpush.msra.mxu0 %v7057_v31  ;;  %v7101_v52 = vld [vmem:[%s10997_s8 + $0x3d8] sm:$0xff] }
 0x663   : > { %7038 = vmatmul.msk.f32.gmra.mxu2 %vm428_vm15, %v10081_v49  ;;  %v7071_v49 = vld [vmem:[%s10997_s8 + $0x368] sm:$0xff]  ;;  %v4328_v20 = vpop.f32.mrf.mxu3  ;;  %v5405_v21 = vld [vmem:[#allocation4 + $0x32] sm:$0xff] }
 0x664   : > { %v4344_v36 = vadd.f32 %v4328_v20, %v10383_v1  ;;  %5546 = vmatpush.msrb.mxu1 %v7071_v49  ;;  %5634 = vmatpush.msrb.mxu2 %v7085_v16  ;;  %v7084_v1 = vld [vmem:[%s10997_s8 + $0x390] sm:$0xff] }
 0x665   : > { %5459 = vmatpush.msra.mxu0 %v7056_v41 }
 0x666   : > { %v4593_v2 = vpop.f32.mrf.mxu2  ;;  %v4420_v3 = vpop.f32.mrf.mxu0  ;;  %v4433_v56 = vadd.f32 %v4417_v15, %v4344_v36  ;;  %5547 = vmatpush.msrb.mxu1 %v7070_v51  ;;  %5635 = vmatpush.msrb.mxu2 %v7084_v1  ;;  %v10617_v51 = vld [vmem:[#allocation4 + $0x42] sm:$0xff] }
 0x667   : > { %v4508_v13 = vpop.f32.mrf.mxu1 }
 0x668   : > { %v4521_v37 = vadd.f32 %v4505_v17, %v4433_v56  ;;  %6997 = vmatmul.msk.f32.gmra.mxu3 %vm428_vm15, %v10083_v54 }
 0x669   : > { %7011 = vmatmul.msk.f32.gmra.mxu0 %vm428_vm15, %v10089_v62 }
 0x66a   : > { %7025 = vmatmul.msk.f32.gmra.mxu1 %vm428_vm15, %v10235_v24  ;;  %v10565_v29 = vadd.f32 %v4593_v2, %v4521_v37  ;;  %v10615_v2 = vld [vmem:[#allocation4 + $0x41] sm:$0xff] }
 0x66b   : > { %7039 = vmatmul.msk.f32.gmra.mxu2 %vm428_vm15, %v10237_v28  ;;  %v4331_v45 = vpop.f32.mrf.mxu3  ;;  %v7102_v28 = vld [vmem:[%s10997_s8 + $0x3e0] sm:$0xff] }
 0x66c   : > { %v4345_v47 = vadd.f32 %v4331_v45, %v10393_v32  ;;  %5719 = vmatpush.msrb.mxu3 %v7102_v28 }
 0x66e   : > { %v4596_v26 = vpop.f32.mrf.mxu2  ;;  %v4423_v34 = vpop.f32.mrf.mxu0  ;;  %v4434_v60 = vadd.f32 %v4420_v3, %v4345_v47  ;;  %5720 = vmatpush.msrb.mxu3 %v7101_v52  ;;  %v10632_v47 = vld [vmem:[#allocation4 + $0x51] sm:$0xff]  ;;  %v7131_v52 = vld [vmem:[%s10997_s8 + $0x448] sm:$0xff] }
 0x66f   : > { %v4511_v23 = vpop.f32.mrf.mxu1  ;;  %5894 = vmatpush.msra.mxu1 %v7131_v52 }
 0x670   : > { %v4522_v54 = vadd.f32 %v4508_v13, %v4434_v60  ;;  %6998 = vmatmul.msk.f32.gmra.mxu3 %vm428_vm15, %v10245_v59  ;;  %v7099_v60 = vld [vmem:[%s10997_s8 + $0x3c8] sm:$0xff] }
 0x671   : > { %7012 = vmatmul.msk.f32.gmra.mxu0 %vm428_vm15, %v10406_v53 }
 0x672   : > { %7026 = vmatmul.msk.f32.gmra.mxu1 %vm428_vm15, %v10408_v61  ;;  %v10576_v62 = vadd.f32 %v4596_v26, %v4522_v54  ;;  %v10634_v26 = vld [vmem:[#allocation4 + $0x52] sm:$0xff] }
 0x673   : > { %7040 = vmatmul.msk.f32.gmra.mxu2 %vm428_vm15, %v10416_v55  ;;  %v4334_v32 = vpop.f32.mrf.mxu3 }
 0x674   : > { %v4346_v48 = vadd.f32 %v4334_v32, %v10410_v50 }
 0x676   : > { %v4599_v43 = vpop.f32.mrf.mxu2  ;;  %v4426_v63 = vpop.f32.mrf.mxu0  ;;  %v4435_v5 = vadd.f32 %v4423_v34, %v4346_v48 }
 0x677   : > { %v4514_v12 = vpop.f32.mrf.mxu1 }
 0x678   : > { %v4523_v27 = vadd.f32 %v4511_v23, %v4435_v5  ;;  %6999 = vmatmul.msk.f32.gmra.mxu3 %vm428_vm15, %v10584_v22  ;;  %v10654_v5 = vld [vmem:[#allocation4 + $0x62] sm:$0xff] }
 0x679   : > { %7013 = vmatmul.msk.f32.gmra.mxu0 %vm428_vm15, %v10586_v38 }
 0x67a   : > { %7027 = vmatmul.msk.f32.gmra.mxu1 %vm428_vm15, %v10592_v25  ;;  %v10598_v50 = vadd.f32 %v4599_v43, %v4523_v27  ;;  %v7117_v27 = vld [vmem:[%s10997_s8 + $0x418] sm:$0xff] }
 0x67b   : > { %7041 = vmatmul.msk.f32.gmra.mxu2 %vm428_vm15, %v10582_v44  ;;  %v4337_v18 = vpop.f32.mrf.mxu3  ;;  %5806 = vmatpush.msrb.mxu0 %v7117_v27 }
 0x67c   : > { %v4347_v42 = vadd.f32 %v4337_v18, %v10430_v4  ;;  %v7100_v4 = vld [vmem:[%s10997_s8 + $0x3d0] sm:$0xff]  ;;  %v7145_v18 = vld [vmem:[%s10997_s8 + $0x478] sm:$0xff] }
 0x67d   : > { %5721 = vmatpush.msrb.mxu3 %v7100_v4  ;;  %5982 = vmatpush.msra.mxu2 %v7145_v18 }
 0x67e   : > { %v4602_v15 = vpop.f32.mrf.mxu2  ;;  %v4757_v35 = vpop.f32.mrf.mxu0  ;;  %v4436_v0 = vadd.f32 %v4426_v63, %v4347_v42  ;;  %v10652_v63 = vld [vmem:[#allocation4 + $0x61] sm:$0xff] }
 0x67f   : > { %v4845_v17 = vpop.f32.mrf.mxu1  ;;  %5722 = vmatpush.msrb.mxu3 %v7099_v60 }
 0x680   : > { %v4524_v11 = vadd.f32 %v4514_v12, %v4436_v0  ;;  %7048 = vmatmul.msk.f32.vlgmr.msra.gmra.mxu3 %vm428_vm15, %v5317_v9  ;;  %v7144_v9 = vld [vmem:[%s10997_s8 + $0x470] sm:$0xff] }
 0x681   : > { %7062 = vmatmul.msk.f32.vlgmr.msra.gmra.mxu0 %vm428_vm15, %v5405_v21  ;;  %5983 = vmatpush.msra.mxu2 %v7144_v9  ;;  %v10771_v9 = vld [vmem:[#allocation4 + $0xa1] sm:$0xff] }
 0x682   : > { %7076 = vmatmul.msk.f32.vlgmr.msrb.gmra.mxu1 %vm428_vm15, %v5493_v30  ;;  %v10609_v46 = vadd.f32 %v4602_v15, %v4524_v11  ;;  %v7116_v15 = vld [vmem:[%s10997_s8 + $0x410] sm:$0xff]  ;;  %v7115_v11 = vld [vmem:[%s10997_s8 + $0x408] sm:$0xff] }
 0x683   : > { %7090 = vmatmul.msk.f32.vlgmr.msrb.gmra.mxu2 %vm428_vm15, %v10135_v8  ;;  %v4669_v31 = vpop.f32.mrf.mxu3  ;;  %v10623_v8 = vld [vmem:[#allocation4 + $0x43] sm:$0xff]  ;;  %5807 = vmatpush.msrb.mxu0 %v7116_v15 }
 0x684   : > { %v4693_v49 = vadd.f32 %v4669_v31, %v10458_v33  ;;  %v10696_v31 = vld [vmem:[#allocation4 + $0x71] sm:$0xff] }
 0x685   : > { %5808 = vmatpush.msrb.mxu0 %v7115_v11 }
 0x686   : > { %v4933_v20 = vpop.f32.mrf.mxu2  ;;  %v4760_v16 = vpop.f32.mrf.mxu0  ;;  %v4781_v41 = vadd.f32 %v4757_v35, %v4693_v49  ;;  %v7130_v35 = vld [vmem:[%s10997_s8 + $0x440] sm:$0xff]  ;;  %v10698_v49 = vld [vmem:[#allocation4 + $0x72] sm:$0xff] }
 0x687   : > { %v4848_v36 = vpop.f32.mrf.mxu1  ;;  %5895 = vmatpush.msra.mxu1 %v7130_v35 }
 0x688   : > { %v4869_v10 = vadd.f32 %v4845_v17, %v4781_v41  ;;  %7049 = vmatmul.msk.f32.gmra.mxu3 %vm428_vm15, %v10615_v2  ;;  %v10707_v41 = vld [vmem:[#allocation4 + $0x73] sm:$0xff] }
 0x689   : > { %7063 = vmatmul.msk.f32.gmra.mxu0 %vm428_vm15, %v10617_v51 }
 0x68a   : > { %7077 = vmatmul.msk.f32.gmra.mxu1 %vm428_vm15, %v10623_v8  ;;  %v10629_v33 = vadd.f32 %v4933_v20, %v4869_v10  ;;  %v7143_v20 = vld [vmem:[%s10997_s8 + $0x468] sm:$0xff]  ;;  %v7128_v10 = vld [vmem:[%s10997_s8 + $0x430] sm:$0xff] }
 0x68b   : > { %7091 = vmatmul.msk.f32.gmra.mxu2 %vm428_vm15, %v10169_v40  ;;  %v4672_v3 = vpop.f32.mrf.mxu3  ;;  %v10640_v40 = vld [vmem:[#allocation4 + $0x53] sm:$0xff] }
 0x68c   : > { %v4694_v56 = vadd.f32 %v4672_v3, %v10470_v19  ;;  %v7142_v3 = vld [vmem:[%s10997_s8 + $0x460] sm:$0xff]  ;;  %5984 = vmatpush.msra.mxu2 %v7143_v20 }
 0x68e   : > { %v4936_v13 = vpop.f32.mrf.mxu2  ;;  %v4763_v1 = vpop.f32.mrf.mxu0  ;;  %v4782_v37 = vadd.f32 %v4760_v16, %v4694_v56  ;;  %5985 = vmatpush.msra.mxu2 %v7142_v3 }
 0x68f   : > { %v4851_v45 = vpop.f32.mrf.mxu1 }
 0x690   : > { %v4870_v34 = vadd.f32 %v4848_v36, %v4782_v37  ;;  %7050 = vmatmul.msk.f32.gmra.mxu3 %vm428_vm15, %v10632_v47  ;;  %v7114_v36 = vld [vmem:[%s10997_s8 + $0x400] sm:$0xff]  ;;  %v7141_v37 = vld [vmem:[%s10997_s8 + $0x458] sm:$0xff] }
 0x691   : > { %7064 = vmatmul.msk.f32.gmra.mxu0 %vm428_vm15, %v10634_v26  ;;  %5986 = vmatpush.msra.mxu2 %v7141_v37  ;;  %v5669_v37 = vld [vmem:[#allocation4 + $0x40] sm:$0xff] }
 0x692   : > { %7078 = vmatmul.msk.f32.gmra.mxu1 %vm428_vm15, %v10640_v40  ;;  %v10646_v19 = vadd.f32 %v4936_v13, %v4870_v34  ;;  %5809 = vmatpush.msrb.mxu0 %v7114_v36  ;;  %v7127_v13 = vld [vmem:[%s10997_s8 + $0x428] sm:$0xff] }
 0x693   : > { %7092 = vmatmul.msk.f32.gmra.mxu2 %vm428_vm15, %v10209_v58  ;;  %v4675_v23 = vpop.f32.mrf.mxu3  ;;  %v10660_v58 = vld [vmem:[#allocation4 + $0x63] sm:$0xff] }
 0x694   : > { %v4695_v54 = vadd.f32 %v4675_v23, %v10483_v57  ;;  %v7126_v23 = vld [vmem:[%s10997_s8 + $0x420] sm:$0xff] }
 0x696   : > { %v4939_v28 = vpop.f32.mrf.mxu2  ;;  %v4766_v32 = vpop.f32.mrf.mxu0  ;;  %v4783_v48 = vadd.f32 %v4763_v1, %v4695_v54  ;;  %v7159_v54 = vld [vmem:[%s10997_s8 + $0x4a8] sm:$0xff] }
 0x697   : > { %v4854_v43 = vpop.f32.mrf.mxu1 }
 0x698   : > { %v4871_v12 = vadd.f32 %v4851_v45, %v4783_v48  ;;  %7051 = vmatmul.msk.f32.gmra.mxu3 %vm428_vm15, %v10652_v63  ;;  %v7112_v45 = vld [vmem:[%s10997_s8 + $0x3f0] sm:$0xff] }
 0x699   : > { %7065 = vmatmul.msk.f32.gmra.mxu0 %vm428_vm15, %v10654_v5 }
 0x69a   : > { %7079 = vmatmul.msk.f32.gmra.mxu1 %vm428_vm15, %v10660_v58  ;;  %v10666_v57 = vadd.f32 %v4939_v28, %v4871_v12 }
 0x69b   : > { %7093 = vmatmul.msk.f32.gmra.mxu2 %vm428_vm15, %v10222_v39  ;;  %v4678_v42 = vpop.f32.mrf.mxu3  ;;  %v7098_v39 = vld [vmem:[%s10997_s8 + $0x3c0] sm:$0xff] }
 0x69c   : > { %v4696_v0 = vadd.f32 %v4678_v42, %v10533_v6  ;;  %5723 = vmatpush.msrb.mxu3 %v7098_v39  ;;  %v7129_v6 = vld [vmem:[%s10997_s8 + $0x438] sm:$0xff] }
 0x69d   : > { %5896 = vmatpush.msra.mxu1 %v7129_v6  ;;  %v10777_v6 = vld [vmem:[#allocation4 + $0xa4] sm:$0xff] }
 0x69e   : > { %v4942_v17 = vpop.f32.mrf.mxu2  ;;  %v4769_v21 = vpop.f32.mrf.mxu0  ;;  %v4784_v30 = vadd.f32 %v4766_v32, %v4696_v0  ;;  %6070 = vmatpush.msra.mxu3 %v7159_v54 }
 0x69f   : > { %v4857_v4 = vpop.f32.mrf.mxu1  ;;  %5897 = vmatpush.msra.mxu1 %v7128_v10 }
 0x6a0   : > { %v4872_v16 = vadd.f32 %v4854_v43, %v4784_v30  ;;  %7052 = vmatmul.msk.f32.gmra.mxu3 %vm428_vm15, %v10696_v31 }
 0x6a1   : > { %7066 = vmatmul.msk.f32.gmra.mxu0 %vm428_vm15, %v10698_v49  ;;  %5898 = vmatpush.msra.mxu1 %v7127_v13 }
 0x6a2   : > { %7080 = vmatmul.msk.f32.gmra.mxu1 %vm428_vm15, %v10707_v41  ;;  %v10722_v56 = vadd.f32 %v4942_v17, %v4872_v16  ;;  %v7157_v16 = vld [vmem:[%s10997_s8 + $0x498] sm:$0xff] }
 0x6a3   : > { %7094 = vmatmul.msk.f32.gmra.mxu2 %vm428_vm15, %v10235_v24  ;;  %v7113_v24 = vld [vmem:[%s10997_s8 + $0x3f8] sm:$0xff]  ;;  %v4681_v1 = vpop.f32.mrf.mxu3  ;;  %5899 = vmatpush.msra.mxu1 %v7126_v23 }
 0x6a4   : > { %v4697_v34 = vadd.f32 %v4681_v1, %v10565_v29  ;;  %5810 = vmatpush.msrb.mxu0 %v7113_v24  ;;  %v7140_v29 = vld [vmem:[%s10997_s8 + $0x450] sm:$0xff] }
 0x6a5   : > { %5987 = vmatpush.msra.mxu2 %v7140_v29 }
 0x6a6   : > { %v4945_v60 = vpop.f32.mrf.mxu2  ;;  %v4772_v28 = vpop.f32.mrf.mxu0  ;;  %v4785_v32 = vadd.f32 %v4769_v21, %v4697_v34  ;;  %5811 = vmatpush.msrb.mxu0 %v7112_v45  ;;  %v10773_v21 = vld [vmem:[#allocation4 + $0xa2] sm:$0xff] }
 0x6a7   : > { %v4860_v48 = vpop.f32.mrf.mxu1 }
 0x6a8   : > { %v4873_v43 = vadd.f32 %v4857_v4, %v4785_v32  ;;  %7053 = vmatmul.msk.f32.gmra.mxu3 %vm428_vm15, %v10243_v14  ;;  %v10775_v4 = vld [vmem:[#allocation4 + $0xa3] sm:$0xff] }
 0x6a9   : > { %7067 = vmatmul.msk.f32.gmra.mxu0 %vm428_vm15, %v10245_v59 }
 0x6aa   : > { %7081 = vmatmul.msk.f32.gmra.mxu1 %vm428_vm15, %v10406_v53  ;;  %v10754_v12 = vadd.f32 %v4945_v60, %v4873_v43 }
 0x6ab   : > { %7095 = vmatmul.msk.f32.gmra.mxu2 %vm428_vm15, %v10408_v61  ;;  %v4684_v27 = vpop.f32.mrf.mxu3  ;;  %v7158_v61 = vld [vmem:[%s10997_s8 + $0x4a0] sm:$0xff] }
 0x6ac   : > { %v4698_v52 = vadd.f32 %v4684_v27, %v10576_v62  ;;  %6071 = vmatpush.msra.mxu3 %v7158_v61 }
 0x6ae   : > { %v4948_v18 = vpop.f32.mrf.mxu2  ;;  %v4775_v42 = vpop.f32.mrf.mxu0  ;;  %v4786_v39 = vadd.f32 %v4772_v28, %v4698_v52  ;;  %6072 = vmatpush.msra.mxu3 %v7157_v16 }
 0x6af   : > { %v4863_v15 = vpop.f32.mrf.mxu1 }
 0x6b0   : > { %v4874_v14 = vadd.f32 %v4860_v48, %v4786_v39  ;;  %7054 = vmatmul.msk.f32.gmra.mxu3 %vm428_vm15, %v10418_v7  ;;  %v5670_v48 = vld [vmem:[#allocation4 + $0x50] sm:$0xff] }
 0x6b1   : > { %7068 = vmatmul.msk.f32.gmra.mxu0 %vm428_vm15, %v10584_v22 }
 0x6b2   : > { %7082 = vmatmul.msk.f32.gmra.mxu1 %vm428_vm15, %v10586_v38  ;;  %v10765_v59 = vadd.f32 %v4948_v18, %v4874_v14 }
 0x6b3   : > { %7096 = vmatmul.msk.f32.gmra.mxu2 %vm428_vm15, %v10592_v25  ;;  %v4687_v62 = vpop.f32.mrf.mxu3 }
 0x6b4   : > { %v4699_v35 = vadd.f32 %v4687_v62, %v10598_v50  ;;  %v5672_v62 = vld [vmem:[#allocation4 + $0x70] sm:$0xff] }
 0x6b6   : > { %v4951_v0 = vpop.f32.mrf.mxu2  ;;  %v4778_v17 = vpop.f32.mrf.mxu0  ;;  %v4787_v11 = vadd.f32 %v4775_v42, %v4699_v35  ;;  %v5671_v42 = vld [vmem:[#allocation4 + $0x60] sm:$0xff] }
 0x6b7   : > { %v4866_v30 = vpop.f32.mrf.mxu1 }
 0x6b8   : > { %v4875_v20 = vadd.f32 %v4863_v15, %v4787_v11  ;;  %7055 = vmatmul.msk.f32.gmra.mxu3 %vm428_vm15, %v10771_v9 }
 0x6b9   : > { %7069 = vmatmul.msk.f32.gmra.mxu0 %vm428_vm15, %v10773_v21 }
 0x6ba   : > { %7083 = vmatmul.msk.f32.gmra.mxu1 %vm428_vm15, %v10775_v4  ;;  %v10787_v50 = vadd.f32 %v4951_v0, %v4875_v20  ;;  %v5761_v20 = vld [vmem:[#allocation4 + $0x81] sm:$0xff] }
 0x6bb   : > { %7097 = vmatmul.msk.f32.gmra.mxu2 %vm428_vm15, %v10777_v6  ;;  %v4690_v36 = vpop.f32.mrf.mxu3 }
 0x6bc   : > { %v4700_v10 = vadd.f32 %v4690_v36, %v10609_v46  ;;  %v7156_v46 = vld [vmem:[%s10997_s8 + $0x490] sm:$0xff] }
 0x6bd   : > { %6073 = vmatpush.msra.mxu3 %v7156_v46 }
 0x6be   : > { %v4954_v3 = vpop.f32.mrf.mxu2  ;;  %v5109_v24 = vpop.f32.mrf.mxu0  ;;  %v4788_v13 = vadd.f32 %v4778_v17, %v4700_v10 }
 0x6bf   : > { %v5197_v1 = vpop.f32.mrf.mxu1 }
 0x6c0   : > { %v4876_v45 = vadd.f32 %v4866_v30, %v4788_v13  ;;  %7104 = vmatmul.msk.f32.vlgmr.msrb.gmra.mxu3 %vm428_vm15, %v5669_v37 }
 0x6c1   : > { %7118 = vmatmul.msk.f32.vlgmr.msrb.gmra.mxu0 %vm428_vm15, %v10615_v2 }
 0x6c2   : > { %7132 = vmatmul.msk.f32.vlgmr.msra.gmra.mxu1 %vm428_vm15, %v10617_v51  ;;  %v10800_v34 = vadd.f32 %v4954_v3, %v4876_v45 }
 0x6c3   : > { %7146 = vmatmul.msk.f32.vlgmr.msra.gmra.mxu2 %vm428_vm15, %v10623_v8  ;;  %v5021_v60 = vpop.f32.mrf.mxu3 }
 0x6c4   : > { %v5045_v23 = vadd.f32 %v5021_v60, %v10629_v33 }
 0x6c6   : > { %v5285_v54 = vpop.f32.mrf.mxu2  ;;  %v5112_v28 = vpop.f32.mrf.mxu0  ;;  %v5133_v32 = vadd.f32 %v5109_v24, %v5045_v23 }
 0x6c7   : > { %v5200_v2 = vpop.f32.mrf.mxu1 }
 0x6c8   : > { %v5221_v29 = vadd.f32 %v5197_v1, %v5133_v32  ;;  %7105 = vmatmul.msk.f32.gmra.mxu3 %vm428_vm15, %v5670_v48 }
 0x6c9   : > { %7119 = vmatmul.msk.f32.gmra.mxu0 %vm428_vm15, %v10632_v47 }
 0x6ca   : > { %7133 = vmatmul.msk.f32.gmra.mxu1 %vm428_vm15, %v10634_v26  ;;  %v10813_v51 = vadd.f32 %v5285_v54, %v5221_v29  ;;  %v7155_v26 = vld [vmem:[%s10997_s8 + $0x488] sm:$0xff]  ;;  %v5676_v54 = vld [vmem:[#allocation4 + $0xb0] sm:$0xff] }
 0x6cb   : > { %7147 = vmatmul.msk.f32.gmra.mxu2 %vm428_vm15, %v10640_v40  ;;  %v5024_v8 = vpop.f32.mrf.mxu3  ;;  %6074 = vmatpush.msra.mxu3 %v7155_v26  ;;  %v6022_v26 = vld [vmem:[#allocation4 + $0x54] sm:$0xff] }
 0x6cc   : > { %v5046_v33 = vadd.f32 %v5024_v8, %v10646_v19 }
 0x6ce   : > { %v5288_v43 = vpop.f32.mrf.mxu2  ;;  %v5115_v27 = vpop.f32.mrf.mxu0  ;;  %v5134_v52 = vadd.f32 %v5112_v28, %v5046_v33  ;;  %v5764_v28 = vld [vmem:[#allocation4 + $0xb1] sm:$0xff] }
 0x6cf   : > { %v5203_v18 = vpop.f32.mrf.mxu1 }
 0x6d0   : > { %v5222_v39 = vadd.f32 %v5200_v2, %v5134_v52  ;;  %7106 = vmatmul.msk.f32.gmra.mxu3 %vm428_vm15, %v5671_v42  ;;  %v5940_v2 = vld [vmem:[#allocation4 + $0xb3] sm:$0xff] }
 0x6d1   : > { %7120 = vmatmul.msk.f32.gmra.mxu0 %vm428_vm15, %v10652_v63 }
 0x6d2   : > { %7134 = vmatmul.msk.f32.gmra.mxu1 %vm428_vm15, %v10654_v5  ;;  %v10823_v47 = vadd.f32 %v5288_v43, %v5222_v39  ;;  %v6021_v43 = vld [vmem:[#allocation4 + $0x44] sm:$0xff] }
 0x6d3   : > { %7148 = vmatmul.msk.f32.gmra.mxu2 %vm428_vm15, %v10660_v58  ;;  %v5027_v40 = vpop.f32.mrf.mxu3  ;;  %v7154_v58 = vld [vmem:[%s10997_s8 + $0x480] sm:$0xff] }
 0x6d4   : > { %v5047_v19 = vadd.f32 %v5027_v40, %v10666_v57  ;;  %6075 = vmatpush.msra.mxu3 %v7154_v58  ;;  %v6025_v58 = vld [vmem:[#allocation4 + $0x84] sm:$0xff] }
 0x6d6   : > { %v5291_v15 = vpop.f32.mrf.mxu2  ;;  %v5118_v14 = vpop.f32.mrf.mxu0  ;;  %v5135_v61 = vadd.f32 %v5115_v27, %v5047_v19 }
 0x6d7   : > { %v5206_v63 = vpop.f32.mrf.mxu1 }
 0x6d8   : > { %v5223_v35 = vadd.f32 %v5203_v18, %v5135_v61  ;;  %7107 = vmatmul.msk.f32.gmra.mxu3 %vm428_vm15, %v5672_v62  ;;  %v6024_v61 = vld [vmem:[#allocation4 + $0x74] sm:$0xff] }
 0x6d9   : > { %7121 = vmatmul.msk.f32.gmra.mxu0 %vm428_vm15, %v10696_v31  ;;  %v5673_v31 = vld [vmem:[#allocation4 + $0x80] sm:$0xff] }
 0x6da   : > { %7135 = vmatmul.msk.f32.gmra.mxu1 %vm428_vm15, %v10698_v49  ;;  %v10836_v5 = vadd.f32 %v5291_v15, %v5223_v35  ;;  %v5849_v49 = vld [vmem:[#allocation4 + $0x82] sm:$0xff] }
 0x6db   : > { %7149 = vmatmul.msk.f32.gmra.mxu2 %vm428_vm15, %v10707_v41  ;;  %v5030_v57 = vpop.f32.mrf.mxu3  ;;  %v6023_v15 = vld [vmem:[#allocation4 + $0x64] sm:$0xff] }
 0x6dc   : > { %v5048_v0 = vadd.f32 %v5030_v57, %v10722_v56 }
 0x6de   : > { %v5294_v17 = vpop.f32.mrf.mxu2  ;;  %v5136_v11 = vadd.f32 %v5118_v14, %v5048_v0  ;;  %v5121_v30 = vpop.f32.mrf.mxu0 }
 0x6df   : > { %v5209_v41 = vpop.f32.mrf.mxu1 }
 0x6e0   : > { %v5224_v16 = vadd.f32 %v5206_v63, %v5136_v11  ;;  %7108 = vmatmul.msk.f32.gmra.mxu3 %vm428_vm15, %v5673_v31 }
 0x6e1   : > { %7122 = vmatmul.msk.f32.gmra.mxu0 %vm428_vm15, %v5761_v20 }
 0x6e2   : > { %7136 = vmatmul.msk.f32.gmra.mxu1 %vm428_vm15, %v5849_v49  ;;  %v10847_v36 = vadd.f32 %v5294_v17, %v5224_v16 }
 0x6e3   : > { %7150 = vmatmul.msk.f32.gmra.mxu2 %vm428_vm15, %v10406_v53  ;;  %v5033_v56 = vpop.f32.mrf.mxu3 }
 0x6e4   : > { %v5049_v10 = vadd.f32 %v5033_v56, %v10754_v12 }
 0x6e6   : > { %v5297_v3 = vpop.f32.mrf.mxu2  ;;  %v5137_v24 = vadd.f32 %v5121_v30, %v5049_v10  ;;  %v5124_v1 = vpop.f32.mrf.mxu0 }
 0x6e7   : > { %v5212_v37 = vpop.f32.mrf.mxu1 }
 0x6e8   : > { %v5225_v13 = vadd.f32 %v5209_v41, %v5137_v24  ;;  %7109 = vmatmul.msk.f32.gmra.mxu3 %vm428_vm15, %v10416_v55 }
 0x6e9   : > { %7123 = vmatmul.msk.f32.gmra.mxu0 %vm428_vm15, %v10418_v7 }
 0x6ea   : > { %7137 = vmatmul.msk.f32.gmra.mxu1 %vm428_vm15, %v10584_v22  ;;  %v5313_v53 = vadd.f32 %v5297_v3, %v5225_v13 }
 0x6eb   : > { %7151 = vmatmul.msk.f32.gmra.mxu2 %vm428_vm15, %v10586_v38  ;;  %v5036_v45 = vpop.f32.mrf.mxu3 }
 0x6ec   : > { %v5050_v12 = vadd.f32 %v5036_v45, %v10765_v59 }
 0x6ee   : > { %v5300_v46 = vpop.f32.mrf.mxu2  ;;  %v5138_v60 = vadd.f32 %v5124_v1, %v5050_v12  ;;  %v5127_v7 = vpop.f32.mrf.mxu0 }
 0x6ef   : > { %v5215_v59 = vpop.f32.mrf.mxu1 }
 0x6f0   : > { %v5226_v23 = vadd.f32 %v5212_v37, %v5138_v60  ;;  %7110 = vmatmul.msk.f32.gmra.mxu3 %vm428_vm15, %v10582_v44  ;;  %v5852_v44 = vld [vmem:[#allocation4 + $0xb2] sm:$0xff] }
 0x6f1   : > { %7124 = vmatmul.msk.f32.gmra.mxu0 %vm428_vm15, %v10771_v9 }
 0x6f2   : > { %7138 = vmatmul.msk.f32.gmra.mxu1 %vm428_vm15, %v10773_v21  ;;  %v5314_v55 = vadd.f32 %v5300_v46, %v5226_v23 }
 0x6f3   : > { %7152 = vmatmul.msk.f32.gmra.mxu2 %vm428_vm15, %v10775_v4  ;;  %v5039_v22 = vpop.f32.mrf.mxu3 }
 0x6f4   : > { %v5051_v38 = vadd.f32 %v5039_v22, %v10787_v50 }
 0x6f6   : > { %v5139_v32 = vadd.f32 %v5127_v7, %v5051_v38  ;;  %v5303_v48 = vpop.f32.mrf.mxu2  ;;  %v5130_v50 = vpop.f32.mrf.mxu0 }
 0x6f7   : > { %v5218_v33 = vpop.f32.mrf.mxu1 }
 0x6f8   : > { %v5227_v29 = vadd.f32 %v5215_v59, %v5139_v32  ;;  %7111 = vmatmul.msk.f32.gmra.mxu3 %vm428_vm15, %v5676_v54 }
 0x6f9   : > { %7125 = vmatmul.msk.f32.gmra.mxu0 %vm428_vm15, %v5764_v28 }
 0x6fa   : > { %7139 = vmatmul.msk.f32.gmra.mxu1 %vm428_vm15, %v5852_v44  ;;  %v5315_v9 = vadd.f32 %v5303_v48, %v5227_v29 }
 0x6fb   : > { %7153 = vmatmul.msk.f32.gmra.mxu2 %vm428_vm15, %v5940_v2  ;;  %v5042_v21 = vpop.f32.mrf.mxu3 }
 0x6fc   : > { %v5052_v4 = vadd.f32 %v5042_v21, %v10800_v34 }
 0x6fe   : > { %v5140_v8 = vadd.f32 %v5130_v50, %v5052_v4  ;;  %v5306_v52 = vpop.f32.mrf.mxu2  ;;  %v5461_v63 = vpop.f32.mrf.mxu0 }
 0x6ff   : > { %v5549_v35 = vpop.f32.mrf.mxu1 }
 0x700   : > { %v5228_v27 = vadd.f32 %v5218_v33, %v5140_v8  ;;  %7160 = vmatmul.msk.f32.vlgmr.msra.gmra.mxu3 %vm428_vm15, %v6021_v43 }
 0x702   : > { %v5316_v18 = vadd.f32 %v5306_v52, %v5228_v27 }
 0x703   : > { %v5373_v42 = vpop.f32.mrf.mxu3 }
 0x704   : > { %v5397_v39 = vadd.f32 %v5373_v42, %v10813_v51 }
 0x706   : > { %v5464_v17 = vpop.f32.mrf.mxu0  ;;  %v5485_v48 = vadd.f32 %v5461_v63, %v5397_v39 }
 0x708   : > { %7161 = vmatmul.msk.f32.gmra.mxu3 %vm428_vm15, %v6022_v26 }
 0x70b   : > { %v5376_v40 = vpop.f32.mrf.mxu3 }
 0x70c   : > { %v5398_v19 = vadd.f32 %v5376_v40, %v10823_v47  ;;  %v5637_v47 = vpop.f32.mrf.mxu2 }
 0x70e   : > { %v5467_v20 = vpop.f32.mrf.mxu0  ;;  %v5486_v8 = vadd.f32 %v5464_v17, %v5398_v19  ;;  %v10933_v19 = vld [vmem:[%s10998_s9] ss:$0 sm:$0xff] }
 0x710   : > { %7162 = vmatmul.msk.f32.gmra.mxu3 %vm428_vm15, %v6023_v15 }
 0x713   : > { %v5379_v34 = vpop.f32.mrf.mxu3 }
 0x714   : > { %v10879_v14 = vadd.f32 %v5379_v34, %v10836_v5  ;;  %v5552_v5 = vpop.f32.mrf.mxu1  ;;  %v5640_v31 = vpop.f32.mrf.mxu2 }
 0x715   : > { %v5574_v27 = vadd.f32 %v5552_v5, %v5486_v8 }
 0x716   : > { %v5470_v10 = vpop.f32.mrf.mxu0  ;;  %v5487_v40 = vadd.f32 %v5467_v20, %v10879_v14 }
 0x717   : > { %v5662_v26 = vadd.f32 %v5640_v31, %v5574_v27 }
 0x718   : > { %7163 = vmatmul.msk.f32.gmra.mxu3 %vm428_vm15, %v6024_v61 }
 0x71b   : > { %v5382_v62 = vpop.f32.mrf.mxu3 }
 0x71c   : > { %v10883_v51 = vadd.f32 %v5382_v62, %v10847_v36  ;;  %v5555_v16 = vpop.f32.mrf.mxu1  ;;  %v6028_v36 = vld [vmem:[#allocation4 + $0xb4] sm:$0xff]  ;;  %v5643_v56 = vpop.f32.mrf.mxu2 }
 0x71d   : > { %v5575_v63 = vadd.f32 %v5555_v16, %v5487_v40 }
 0x71e   : > { %v5473_v1 = vpop.f32.mrf.mxu0  ;;  %v5488_v17 = vadd.f32 %v5470_v10, %v10883_v51 }
 0x720   : > { %7164 = vmatmul.msk.f32.gmra.mxu3 %vm428_vm15, %v6025_v58 }
 0x723   : > { %v5385_v57 = vpop.f32.mrf.mxu3 }
 0x724   : > { %v10886_v0 = vadd.f32 %v5385_v57, %v5313_v53  ;;  %v5558_v24 = vpop.f32.mrf.mxu1  ;;  %v5646_v13 = vpop.f32.mrf.mxu2  ;;  %v5663_v57 = vadd.f32 %v5643_v56, %v5575_v63 }
 0x725   : > { %v5576_v16 = vadd.f32 %v5558_v24, %v5488_v17 }
 0x726   : > { %v10903_v12 = vpop.f32.mrf.mxu0 }
 0x727   : > { %v5664_v10 = vadd.f32 %v5646_v13, %v5576_v16 }
 0x728   : > { %7165 = vmatmul.msk.f32.gmra.mxu3 %vm428_vm15, %v10592_v25 }
 0x72b   : > { %v5388_v11 = vpop.f32.mrf.mxu3 }
 0x72c   : > { %v10890_v30 = vadd.f32 %v5388_v11, %v5314_v55  ;;  %v10899_v37 = vpop.f32.mrf.mxu1  ;;  %v10901_v45 = vpop.f32.mrf.mxu2 }
 0x72e   : > { %v10909_v55 = vpop.f32.mrf.mxu0 }
 0x730   : > { %7166 = vmatmul.msk.f32.gmra.mxu3 %vm428_vm15, %v10777_v6 }
 0x733   : > { %v5391_v49 = vpop.f32.mrf.mxu3 }
 0x734   : > { %v10894_v41 = vadd.f32 %v5391_v49, %v5315_v9  ;;  %v10905_v46 = vpop.f32.mrf.mxu1  ;;  %v10907_v23 = vpop.f32.mrf.mxu2  ;;  %v5573_v9 = vadd.f32 %v5549_v35, %v5485_v48 }
 0x736   : > { %v10915_v59 = vpop.f32.mrf.mxu0  ;;  %v5661_v50 = vadd.f32 %v5637_v47, %v5573_v9 }
 0x738   : > { %7167 = vmatmul.msk.f32.gmra.mxu3 %vm428_vm15, %v6028_v36 }
 0x73b   : > { %v5394_v3 = vpop.f32.mrf.mxu3 }
 0x73c   : > { %v10897_v25 = vadd.f32 %v5394_v3, %v5316_v18  ;;  %v10911_v7 = vpop.f32.mrf.mxu1  ;;  %v10913_v38 = vpop.f32.mrf.mxu2 }
 0x73e   : > { %v5813_v2 = vpop.f32.mrf.mxu0 }
 0x743   : > { %v5725_v53 = vpop.f32.mrf.mxu3 }
 0x744   : > { %v10919_v28 = vpop.f32.mrf.mxu1  ;;  %v10921_v32 = vpop.f32.mrf.mxu2  ;;  %v5749_v43 = vadd.f32 %v5725_v53, %v5661_v50  ;;  %v5489_v53 = vadd.f32 %v5473_v1, %v10886_v0  ;;  %v5490_v0 = vadd.f32 %v10903_v12, %v10890_v30  ;;  %v5491_v30 = vadd.f32 %v10909_v55, %v10894_v41 }
 0x745   : > { %v5492_v41 = vadd.f32 %v10915_v59, %v10897_v25 }
 0x746   : > { %v5816_v33 = vpop.f32.mrf.mxu0  ;;  %v5837_v18 = vadd.f32 %v5813_v2, %v5749_v43  ;;  %v5577_v9 = vadd.f32 %v10899_v37, %v5489_v53 }
 0x748   : > { %v5665_v13 = vadd.f32 %v10901_v45, %v5577_v9 }
 0x74b   : > { %v5728_v6 = vpop.f32.mrf.mxu3 }
 0x74c   : > { %v5901_v29 = vpop.f32.mrf.mxu1  ;;  %v5989_v21 = vpop.f32.mrf.mxu2  ;;  %v5750_v34 = vadd.f32 %v5728_v6, %v5662_v26 }
 0x74d   : > { %v5925_v39 = vadd.f32 %v5901_v29, %v5837_v18  ;;  %v5578_v18 = vadd.f32 %v10905_v46, %v5490_v0 }
 0x74e   : > { %v5819_v61 = vpop.f32.mrf.mxu0  ;;  %v5838_v35 = vadd.f32 %v5816_v33, %v5750_v34 }
 0x74f   : > { %v6013_v62 = vadd.f32 %v5989_v21, %v5925_v39  ;;  %v5666_v34 = vadd.f32 %v10907_v23, %v5578_v18 }
 0x753   : > { %v5731_v60 = vpop.f32.mrf.mxu3 }
 0x754   : > { %v5904_v52 = vpop.f32.mrf.mxu1  ;;  %v5992_v15 = vpop.f32.mrf.mxu2  ;;  %v5751_v11 = vadd.f32 %v5731_v60, %v5663_v57 }
 0x755   : > { %v5926_v14 = vadd.f32 %v5904_v52, %v5838_v35 }
 0x756   : > { %v5822_v36 = vpop.f32.mrf.mxu0  ;;  %v5839_v56 = vadd.f32 %v5819_v61, %v5751_v11 }
 0x757   : > { %v6014_v3 = vadd.f32 %v5992_v15, %v5926_v14 }
 0x75b   : > { %v5734_v22 = vpop.f32.mrf.mxu3 }
 0x75c   : > { %v5907_v58 = vpop.f32.mrf.mxu1  ;;  %v5995_v20 = vpop.f32.mrf.mxu2  ;;  %v5752_v48 = vadd.f32 %v5734_v22, %v5664_v10 }
 0x75d   : > { %v5927_v2 = vadd.f32 %v5907_v58, %v5839_v56 }
 0x75e   : > { %v5840_v8 = vadd.f32 %v5822_v36, %v5752_v48  ;;  %v5825_v33 = vpop.f32.mrf.mxu0 }
 0x75f   : > { %v6015_v50 = vadd.f32 %v5995_v20, %v5927_v2 }
 0x763   : > { %v10917_v54 = vpop.f32.mrf.mxu3 }
 0x764   : > { %v5910_v60 = vpop.f32.mrf.mxu1  ;;  %v5998_v21 = vpop.f32.mrf.mxu2  ;;  %v5753_v27 = vadd.f32 %v10917_v54, %v5665_v13 }
 0x765   : > { %v5928_v22 = vadd.f32 %v5910_v60, %v5840_v8 }
 0x766   : > { %v5841_v15 = vadd.f32 %v5825_v33, %v5753_v27  ;;  %v5828_v54 = vpop.f32.mrf.mxu0 }
 0x767   : > { %v6016_v40 = vadd.f32 %v5998_v21, %v5928_v22 }
 0x76b   : > { %v10923_v44 = vpop.f32.mrf.mxu3 }
 0x76c   : > { %v5913_v52 = vpop.f32.mrf.mxu1  ;;  %v6001_v39 = vpop.f32.mrf.mxu2  ;;  %v5754_v63 = vadd.f32 %v10923_v44, %v5666_v34 }
 0x76d   : > { %v5929_v61 = vadd.f32 %v5913_v52, %v5841_v15 }
 0x76e   : > { %v5842_v57 = vadd.f32 %v5828_v54, %v5754_v63  ;;  %v5831_v44 = vpop.f32.mrf.mxu0 }
 0x773   : > { %v10925_v4 = vpop.f32.mrf.mxu3 }
 0x774   : > { %v5916_v58 = vpop.f32.mrf.mxu1 }
 0x775   : > { %v5930_v14 = vadd.f32 %v5916_v58, %v5842_v57 }
 0x776   : > { %v5834_v10 = vpop.f32.mrf.mxu0 }
 0x77b   : > { %v10927_v42 = vpop.f32.mrf.mxu3 }
 0x77c   : > { %v5919_v16 = vpop.f32.mrf.mxu1 }
 0x783   : > { %v6077_v47 = vpop.f32.mrf.mxu3 }
 0x784   : > { %v6101_v5 = vadd.f32 %v6077_v47, %v6013_v62  ;;  %v5579_v62 = vadd.f32 %v10911_v7, %v5491_v30  ;;  %v6017_v47 = vadd.f32 %v6001_v39, %v5929_v61  ;;  %v5922_v60 = vpop.f32.mrf.mxu1 }
 0x786   : > { %v6113_v31 = vadd.f32 %v10933_v19, %v6101_v5  ;;  %v5667_v17 = vadd.f32 %v10913_v38, %v5579_v62  ;;  %v6004_v5 = vpop.f32.mrf.mxu2 }
 0x788   : > { %v6121_v49 = vmax.f32 %v6113_v31, 0.0  ;;  %v5755_v11 = vadd.f32 %v10925_v4, %v5667_v17  ;;  %v5580_v31 = vadd.f32 %v10919_v28, %v5492_v41 }
 0x78a   : > { %6129 = vst.msk [vmem:[%s10942_s16] sm:$0xff] %vm464_vm0, %v6121_v49  ;;  %v6018_v49 = vadd.f32 %v6004_v5, %v5930_v14  ;;  %v5843_v36 = vadd.f32 %v5831_v44, %v5755_v11  ;;  %v5668_v25 = vadd.f32 %v10921_v32, %v5580_v31 }
 0x78b   : > { %v6080_v51 = vpop.f32.mrf.mxu3 }
 0x78c   : > { %v6102_v6 = vadd.f32 %v6080_v51, %v6014_v3  ;;  %v5931_v56 = vadd.f32 %v5919_v16, %v5843_v36  ;;  %v5756_v4 = vadd.f32 %v10927_v42, %v5668_v25 }
 0x78e   : > { %v6114_v29 = vadd.f32 %v10933_v19, %v6102_v6  ;;  %v6007_v3 = vpop.f32.mrf.mxu2  ;;  %v5844_v6 = vadd.f32 %v5834_v10, %v5756_v4 }
 0x78f   : > { %v6019_v53 = vadd.f32 %v6007_v3, %v5931_v56 }
 0x790   : > { %v6122_v24 = vmax.f32 %v6114_v29, 0.0  ;;  %v5932_v29 = vadd.f32 %v5922_v60, %v5844_v6 }
 0x792   : > { %6130 = vst.msk [vmem:[%s10942_s16 + $0x8] sm:$0xff] %vm464_vm0, %v6122_v24 }
 0x793   : > { %v6083_v43 = vpop.f32.mrf.mxu3 }
 0x794   : > { %v6103_v1 = vadd.f32 %v6083_v43, %v6015_v50 }
 0x796   : > { %v6115_v37 = vadd.f32 %v10933_v19, %v6103_v1  ;;  %v6010_v9 = vpop.f32.mrf.mxu2 }
 0x797   : > { %v6020_v21 = vadd.f32 %v6010_v9, %v5932_v29 }
 0x798   : > { %v6123_v26 = vmax.f32 %v6115_v37, 0.0 }
 0x79a   : > { %6131 = vst.msk [vmem:[%s10942_s16 + $0x10] sm:$0xff] %vm464_vm0, %v6123_v26 }
 0x79b   : > { %v6086_v45 = vpop.f32.mrf.mxu3 }
 0x79c   : > { %v6104_v12 = vadd.f32 %v6086_v45, %v6016_v40 }
 0x79e   : > { %v6116_v46 = vadd.f32 %v10933_v19, %v6104_v12 }
 0x7a0   : > { %v6124_v35 = vmax.f32 %v6116_v46, 0.0 }
 0x7a2   : > { %6132 = vst.msk [vmem:[%s10942_s16 + $0x18] sm:$0xff] %vm464_vm0, %v6124_v35 }
 0x7a3   : > { %v6089_v23 = vpop.f32.mrf.mxu3 }
 0x7a4   : > { %v6105_v55 = vadd.f32 %v6089_v23, %v6017_v47 }
 0x7a6   : > { %v6117_v7 = vadd.f32 %v10933_v19, %v6105_v55 }
 0x7a8   : > { %v6125_v20 = vmax.f32 %v6117_v7, 0.0 }
 0x7aa   : > { %6133 = vst.msk [vmem:[%s10942_s16 + $0x20] sm:$0xff] %vm464_vm0, %v6125_v20 }
 0x7ab   : > { %v6092_v38 = vpop.f32.mrf.mxu3 }
 0x7ac   : > { %v6106_v59 = vadd.f32 %v6092_v38, %v6018_v49 }
 0x7ae   : > { %v6118_v51 = vadd.f32 %v10933_v19, %v6106_v59 }
 0x7b0   : > { %v6126_v28 = vmax.f32 %v6118_v51, 0.0 }
 0x7b2   : > { %6134 = vst.msk [vmem:[%s10942_s16 + $0x28] sm:$0xff] %vm464_vm0, %v6126_v28 }
 0x7b3   : > { %v6095_v2 = vpop.f32.mrf.mxu3 }
 0x7b4   : > { %v6107_v48 = vadd.f32 %v6095_v2, %v6019_v53 }
 0x7b6   : > { %v6119_v32 = vadd.f32 %v10933_v19, %v6107_v48 }
 0x7b8   : > { %v6127_v24 = vmax.f32 %v6119_v32, 0.0 }
 0x7ba   : > { %6135 = vst.msk [vmem:[%s10942_s16 + $0x30] sm:$0xff] %vm464_vm0, %v6127_v24 }
 0x7bb   : > { %v6098_v42 = vpop.f32.mrf.mxu3 }
 0x7bc   : > { %v6108_v50 = vadd.f32 %v6098_v42, %v6020_v21 }
 0x7be   : > { %v6120_v8 = vadd.f32 %v10933_v19, %v6108_v50 }
 0x7c0   : > { %v6128_v33 = vmax.f32 %v6120_v8, 0.0 }
 0x7c2   : > { %6136 = vst.msk [vmem:[%s10942_s16 + $0x38] sm:$0xff] %vm464_vm0, %v6128_v33 }
 0x7c3 PF: > { %s20_s13 = sadd.s32 1, %s7214_s13  }
 0x7c4   : > { %p17_p4 = scmp.ge.s32.totalorder %s20_s13, 4  }
 0x7c6   :  { %19 = sbr.rel (!%p17_p4) target bundleno = 1 (0x1), region = 182 }

</bundles_post_ra>
